<compile_context>
chip_gen: v7x
topology: tpu7x:2x2x1
jax: 0.10.0
libtpu: 0.0.40
codegen_flags: <defaults>
</compile_context>

<pallas_src>
import functools
import itertools

import jax
import jax.numpy as jnp
import numpy as np
from jax import lax
from jax.experimental import pallas as pl
from jax.experimental.pallas import tpu as pltpu


_LANE = 128


def _round_up(x, m):
    return ((x + m - 1) // m) * m


def _vmem_capacity_bytes():
    try:
        return int(pltpu.get_tpu_info().vmem_capacity_bytes)
    except Exception:
        return 64 * 1024 * 1024            # conservative default (v7x per-core VMEM)


def _budgets():
    cap = _vmem_capacity_bytes()
    budget = int(cap * 0.55)               # what we allow our buffers to claim
    limit = min(int(cap * 0.75), 112 * 1024 * 1024)
    tq_cap = 4096 if cap >= 96 * 1024 * 1024 else 2048
    return budget, limit, tq_cap


# ----------------------------- Pallas kernels ------------------------------
def _fused_conv_gn_lrelu_kernel(x_ref, w_ref, b_ref, mask_ref, gamma_ref, beta_ref,
                                o_ref, y_acc,
                                *, tq, win, offsets, cg, groups, inv_count, eps,
                                neg_slope):
    # x_ref    : (Cin, Lp)      bf16  resident q-frame activations (this sample)
    # w_ref    : (27, Cout, Cin) bf16 resident per-tap conv weights
    # b_ref    : (Cout, 1)      f32   conv bias
    # mask_ref : (1, Lq)        f32   1.0 on the R valid q columns, 0.0 on halo/pad
    # gamma/beta_ref : (Cout,1) f32   GroupNorm affine
    # o_ref    : (Cout, Lq)     f32   output block, resident across q tiles
    # y_acc    : (Cout, Lq)     f32   VMEM scratch, pre-GN conv output
    qt = pl.program_id(1)
    q0 = pl.multiple_of(qt * tq, _LANE)

    # Aligned dynamic window (tq + halo); the 27 taps are static value slices.
    xw = x_ref[:, pl.ds(q0, win)]                                   # (Cin, win) bf16
    cout = b_ref.shape[0]
    acc = jnp.zeros((cout, tq), jnp.float32)
    for t, off in enumerate(offsets):
        acc = acc + jnp.dot(w_ref[t], xw[:, off:off + tq],
                            preferred_element_type=jnp.float32)
    acc = acc + b_ref[...]                                          # (Cout, 1) bcast
    y_acc[:, pl.ds(q0, tq)] = acc

    @pl.when(qt == pl.num_programs(1) - 1)
    def _finalize():
        # Exact GroupNorm over the resident pre-GN result (masked, centered).
        m = mask_ref[...]                                           # (1, Lq)
        for g in range(groups):
            lo, hi = g * cg, (g + 1) * cg
            yg = y_acc[lo:hi, :]                                    # (Cg, Lq) f32
            mean = jnp.sum(yg * m) * inv_count
            d = (yg - mean) * m
            var = jnp.sum(d * d) * inv_count
            yn = (yg - mean) * lax.rsqrt(var + eps)
            z = yn * gamma_ref[lo:hi, :] + beta_ref[lo:hi, :]
            o_ref[lo:hi, :] = jnp.where(z >= 0, z, neg_slope * z)


def _conv_stats_kernel(x_ref, w_ref, b_ref, mask_ref, y_ref, s1_ref, s2_ref,
                       *, tq, win, offsets):
    # Two-pass fallback, pass 1: bf16 pre-GN tiles to HBM + masked bias-free
    # per-channel sum / sum-of-squares (bias is folded back analytically in the
    # wrapper, which also makes the q-frame zero padding drop out of the stats).
    qt = pl.program_id(1)
    q0 = pl.multiple_of(qt * tq, _LANE)

    xw = x_ref[:, pl.ds(q0, win)]
    cout = b_ref.shape[0]
    acc = jnp.zeros((cout, tq), jnp.float32)
    for t, off in enumerate(offsets):
        acc = acc + jnp.dot(w_ref[t], xw[:, off:off + tq],
                            preferred_element_type=jnp.float32)

    @pl.when(qt == 0)
    def _init():
        s1_ref[...] = jnp.zeros_like(s1_ref)
        s2_ref[...] = jnp.zeros_like(s2_ref)

    m = mask_ref[...]                                               # (1, tq)
    am = acc * m
    s1_ref[...] += jnp.sum(am, axis=1, keepdims=True)
    s2_ref[...] += jnp.sum(acc * am, axis=1, keepdims=True)
    y_ref[...] = (acc + b_ref[...]).astype(y_ref.dtype)


def _gn_lrelu_kernel(y_ref, sc_ref, sh_ref, o_ref, *, neg_slope):
    # Two-pass fallback, pass 2: folded per-channel scale/shift + LeakyReLU.
    z = y_ref[...].astype(jnp.float32) * sc_ref[...] + sh_ref[...]
    o_ref[...] = jnp.where(z >= 0, z, neg_slope * z)


# ------------------------------ JAX wrapper --------------------------------
def conv3d_forward(x_ncdhw, w_oidhw, bias, gamma, beta, *,
                   groups=2, eps=1e-5, neg_slope=0.2):
    """Conv3d(k=3, s=1, p=1) + GroupNorm(groups) + LeakyReLU(neg_slope).

    x_ncdhw : (N, Cin, D, H, W) float32 (PyTorch NCDHW layout)
    w_oidhw : (Cout, Cin, 3, 3, 3) float32
    returns : (N, Cout, D, H, W) float32
    """
    N, Cin, D, H, W = x_ncdhw.shape
    Cout = w_oidhw.shape[0]
    assert Cout % groups == 0
    Cg = Cout // groups
    Dp, Hp, Wp = D + 2, H + 2, W + 2
    HpWp = Hp * Wp
    R = D * H * W                       # valid output positions per channel
    Lq = D * HpWp                       # q-frame output length (padded-HW frame)

    budget, vmem_limit, tq_cap = _budgets()

    # ----------------------------- q-frame tiling ------------------------------
    n_qt = max(1, -(-Lq // tq_cap))
    tq = _round_up(-(-Lq // n_qt), _LANE)
    lq_pad = n_qt * tq
    offsets = [kd * HpWp + kh * Wp + kw
               for kd, kh, kw in itertools.product(range(3), repeat=3)]
    pad_win = _round_up(max(offsets) + 1, _LANE)
    win = tq + pad_win
    lp_pad = lq_pad + pad_win                     # >= Dp*HpWp by construction

    # ------ glue (~1.3x input bytes): bf16 cast, pad, flatten to q frame -------
    xp = jnp.pad(x_ncdhw.astype(jnp.bfloat16),
                 ((0, 0), (0, 0), (1, 1), (1, 1), (1, 1)))
    x_flat = xp.reshape(N, Cin, Dp * HpWp)
    x_flat = jnp.pad(x_flat, ((0, 0), (0, 0), (0, lp_pad - Dp * HpWp)))

    # per-tap weights (27, Cout, Cin), ordered exactly like `offsets`
    w_taps = jnp.transpose(w_oidhw, (2, 3, 4, 0, 1)).reshape(27, Cout, Cin)
    w_taps = w_taps.astype(jnp.bfloat16)
    b_col = bias.reshape(Cout, 1).astype(jnp.float32)
    gamma_col = gamma.reshape(Cout, 1).astype(jnp.float32)
    beta_col = beta.reshape(Cout, 1).astype(jnp.float32)

    # validity mask over the q frame (drops HW-halo columns and the lane-pad tail)
    qi = jnp.arange(lq_pad, dtype=jnp.int32)
    hw = qi % HpWp
    valid = (qi < Lq) & (hw < H * Wp) & (hw % Wp < W)
    mask_q = valid.astype(jnp.float32).reshape(1, lq_pad)

    # ---------------------------- path selection ------------------------------
    x_bytes = 2 * Cin * lp_pad * 2
    w_bytes = 2 * 27 * Cout * Cin * 2
    vec_bytes = 2 * (3 * Cout * 4 + lq_pad * 4)
    tile_work = Cout * tq * 4 + 27 * Cin * tq * 2 + Cin * win * 2
    fused_need = (x_bytes + w_bytes + vec_bytes
                  + 3 * Cout * lq_pad * 4           # out block (x2) + y_acc scratch
                  + 4 * Cg * lq_pad * 4             # finalize temporaries
                  + tile_work + (2 << 20))
    use_fused = fused_need <= budget

    cparams_seq = pltpu.CompilerParams(
        dimension_semantics=("parallel", "arbitrary"),
        vmem_limit_bytes=vmem_limit)

    if use_fused:
        # ---- single fused pass: conv + exact GroupNorm + LeakyReLU ----
        # TODO(synk): when N == 1 on v7x, add a leading size-2 core-parallel grid
        # axis splitting the q range (partial stats merged at finalize) so the
        # second TensorCore is not idle.
        out_q = pl.pallas_call(
            functools.partial(
                _fused_conv_gn_lrelu_kernel,
                tq=tq, win=win, offsets=offsets, cg=Cg, groups=groups,
                inv_count=1.0 / (Cg * R), eps=float(eps),
                neg_slope=float(neg_slope)),
            out_shape=jax.ShapeDtypeStruct((N, Cout, lq_pad), jnp.float32),
            grid_spec=pltpu.PrefetchScalarGridSpec(
                num_scalar_prefetch=0,
                grid=(N, n_qt),
                in_specs=[
                    pl.BlockSpec((None, Cin, lp_pad), lambda n, q: (n, 0, 0)),
                    pl.BlockSpec((27, Cout, Cin), lambda n, q: (0, 0, 0)),
                    pl.BlockSpec((Cout, 1), lambda n, q: (0, 0)),
                    pl.BlockSpec((1, lq_pad), lambda n, q: (0, 0)),
                    pl.BlockSpec((Cout, 1), lambda n, q: (0, 0)),
                    pl.BlockSpec((Cout, 1), lambda n, q: (0, 0)),
                ],
                out_specs=pl.BlockSpec((None, Cout, lq_pad), lambda n, q: (n, 0, 0)),
                scratch_shapes=[pltpu.VMEM((Cout, lq_pad), jnp.float32)]),
            compiler_params=cparams_seq,
        )(x_flat, w_taps, b_col, mask_q, gamma_col, beta_col)
    else:
        # ---- two-pass fallback (large Cout*Lq): bf16 intermediate + stats ----
        # TODO(synk): when the resident activation block (2*Cin*lp_pad*2) itself
        # exceeds the budget, switch x to memory_space=pl.ANY + manual halo DMA.
        y_pre, s1, s2 = pl.pallas_call(
            functools.partial(_conv_stats_kernel, tq=tq, win=win, offsets=offsets),
            out_shape=(jax.ShapeDtypeStruct((N, Cout, lq_pad), jnp.bfloat16),
                       jax.ShapeDtypeStruct((N, Cout, 1), jnp.float32),
                       jax.ShapeDtypeStruct((N, Cout, 1), jnp.float32)),
            grid_spec=pltpu.PrefetchScalarGridSpec(
                num_scalar_prefetch=0,
                grid=(N, n_qt),
                in_specs=[
                    pl.BlockSpec((None, Cin, lp_pad), lambda n, q: (n, 0, 0)),
                    pl.BlockSpec((27, Cout, Cin), lambda n, q: (0, 0, 0)),
                    pl.BlockSpec((Cout, 1), lambda n, q: (0, 0)),
                    pl.BlockSpec((1, tq), lambda n, q: (0, q)),
                ],
                out_specs=[
                    pl.BlockSpec((None, Cout, tq), lambda n, q: (n, 0, q)),
                    pl.BlockSpec((None, Cout, 1), lambda n, q: (n, 0, 0)),
                    pl.BlockSpec((None, Cout, 1), lambda n, q: (n, 0, 0)),
                ]),
            compiler_params=cparams_seq,
        )(x_flat, w_taps, b_col, mask_q)

        # Tiny per-(sample, group) stats -> folded per-channel affine.  s1/s2 are
        # masked and bias-free, so padding contributes nothing and the conv bias
        # is folded back exactly here (avoids bias-driven E[x^2]-m^2 cancellation).
        s1 = s1.reshape(N, groups, Cg)
        s2 = s2.reshape(N, groups, Cg)
        bg = bias.astype(jnp.float32).reshape(groups, Cg)
        cnt = float(Cg * R)
        mean = (s1.sum(-1) + R * bg.sum(-1)[None]) / cnt                    # (N, G)
        ey2 = (s2.sum(-1) + 2.0 * (s1 * bg[None]).sum(-1)
               + R * (bg * bg).sum(-1)[None]) / cnt
        var = jnp.maximum(ey2 - mean * mean, 0.0)
        inv = lax.rsqrt(var + eps)
        scale = gamma.astype(jnp.float32).reshape(1, groups, Cg) * inv[..., None]
        shift = (beta.astype(jnp.float32).reshape(1, groups, Cg)
                 - mean[..., None] * scale)
        scale = scale.reshape(N, Cout, 1)
        shift = shift.reshape(N, Cout, 1)

        # NOTE: output stays f32 (module semantics) so it cannot alias the bf16
        # y_pre buffer; the bf16 intermediate already halves that HBM traffic.
        out_q = pl.pallas_call(
            functools.partial(_gn_lrelu_kernel, neg_slope=float(neg_slope)),
            out_shape=jax.ShapeDtypeStruct((N, Cout, lq_pad), jnp.float32),
            grid_spec=pltpu.PrefetchScalarGridSpec(
                num_scalar_prefetch=0,
                grid=(N, n_qt),
                in_specs=[
                    pl.BlockSpec((None, Cout, tq), lambda n, q: (n, 0, q)),
                    pl.BlockSpec((None, Cout, 1), lambda n, q: (n, 0, 0)),
                    pl.BlockSpec((None, Cout, 1), lambda n, q: (n, 0, 0)),
                ],
                out_specs=pl.BlockSpec((None, Cout, tq), lambda n, q: (n, 0, q))),
            compiler_params=pltpu.CompilerParams(
                dimension_semantics=("parallel", "parallel"),
                vmem_limit_bytes=vmem_limit),
        )(y_pre, scale, shift)

    # q-frame -> NCDHW: drop the HW-halo columns and the lane-padding tail.
    # TODO(synk): fold this compaction into the kernel stores (strided vst per
    # Wp row) to remove the extra ~1.3x output-sized XLA slice.
    out = out_q[:, :, :Lq].reshape(N, Cout, D, Hp, Wp)[:, :, :, :H, :W]
    return out


# --------------------------- pure-JAX reference ----------------------------
def conv3d_reference(x, w, b, gamma, beta, *, groups=2, eps=1e-5, neg_slope=0.2):
    y = lax.conv_general_dilated(
        x, w, window_strides=(1, 1, 1), padding=((1, 1), (1, 1), (1, 1)),
        dimension_numbers=("NCDHW", "OIDHW", "NCDHW"))
    y = y + b.reshape(1, -1, 1, 1, 1)
    N, C, D, H, W = y.shape
    Cg = C // groups
    yg = y.reshape(N, groups, Cg, D, H, W)
    mean = yg.mean(axis=(2, 3, 4, 5), keepdims=True)
    var = yg.var(axis=(2, 3, 4, 5), keepdims=True)
    yn = (yg - mean) / jnp.sqrt(var + eps)
    yn = (yn.reshape(N, C, D, H, W) * gamma.reshape(1, -1, 1, 1, 1)
          + beta.reshape(1, -1, 1, 1, 1))
    return jnp.where(yn >= 0, yn, neg_slope * yn)


# ---------------------------------- main -----------------------------------
if __name__ == "__main__":
    # Small shapes consistent with the module (NCDHW input).  Lq = 8*18*18 = 2592
    # so on 64 MiB parts the q axis splits into 2 tiles (exercises the carry).
    N, Cin, Cout, D, H, W = 2, 4, 8, 8, 16, 16

    key = jax.random.PRNGKey(0)
    kx, kw, kb, kg, kbt = jax.random.split(key, 5)
    x = jax.random.normal(kx, (N, Cin, D, H, W), dtype=jnp.float32)
    w = 0.1 * jax.random.normal(kw, (Cout, Cin, 3, 3, 3), dtype=jnp.float32)
    b = 0.1 * jax.random.normal(kb, (Cout,), dtype=jnp.float32)
    gamma = 1.0 + 0.1 * jax.random.normal(kg, (Cout,), dtype=jnp.float32)
    beta = 0.1 * jax.random.normal(kbt, (Cout,), dtype=jnp.float32)

    y = jax.block_until_ready(conv3d_forward(x, w, b, gamma, beta))
    y_ref = jax.block_until_ready(conv3d_reference(x, w, b, gamma, beta))

    # Activations/weights feed the MXU in bf16 (f32 accumulation), so compare
    # against the pure-f32 reference with a bf16-appropriate tolerance.
    np.testing.assert_allclose(np.asarray(y), np.asarray(y_ref), rtol=2e-2, atol=2e-2)

    print("KERNEL_OK")
</pallas_src>

<mosaic_0001>
module attributes {stable_mosaic.version = 11 : i64} {
  func.func @_fused_conv_gn_lrelu_kernel(%arg0: i32, %arg1: i32, %arg2: memref<1x4x3584xbf16, #tpu.memory_space<vmem>>, %arg3: memref<27x8x4xbf16, #tpu.memory_space<vmem>>, %arg4: memref<8x1xf32, #tpu.memory_space<vmem>>, %arg5: memref<1x2816xf32, #tpu.memory_space<vmem>>, %arg6: memref<8x1xf32, #tpu.memory_space<vmem>>, %arg7: memref<8x1xf32, #tpu.memory_space<vmem>>, %arg8: memref<1x8x2816xf32, #tpu.memory_space<vmem>>, %arg9: memref<8x2816xf32, #tpu.memory_space<vmem>>) attributes {dimension_semantics = [#tpu.dimension_semantics<parallel>, #tpu.dimension_semantics<arbitrary>], iteration_bounds = array<i64: 2, 2>, scalar_prefetch = 0 : i64, scratch_operands = 1 : i64, tpu.core_type = #tpu.core_type<tc>, window_params = [{transform_indices = @transform_0, window_bounds = array<i64: 1, 4, 3584>}, {pipeline_mode = #tpu.pipeline_mode<synchronous>, transform_indices = @transform_1, window_bounds = array<i64: 27, 8, 4>}, {pipeline_mode = #tpu.pipeline_mode<synchronous>, transform_indices = @transform_2, window_bounds = array<i64: 8, 1>}, {pipeline_mode = #tpu.pipeline_mode<synchronous>, transform_indices = @transform_3, window_bounds = array<i64: 1, 2816>}, {pipeline_mode = #tpu.pipeline_mode<synchronous>, transform_indices = @transform_4, window_bounds = array<i64: 8, 1>}, {pipeline_mode = #tpu.pipeline_mode<synchronous>, transform_indices = @transform_5, window_bounds = array<i64: 8, 1>}, {transform_indices = @transform_6, window_bounds = array<i64: 1, 8, 2816>}]} {
    %c1408_i32 = arith.constant 1408 : i32
    %0 = arith.muli %arg1, %c1408_i32 : i32
    %1 = tpu.assume_multiple %0, 128 : i32
    %c0 = arith.constant 0 : index
    %c0_0 = arith.constant 0 : index
    %2 = arith.index_cast %1 : i32 to index
    %3 = vector.load %arg2[%c0, %c0_0, %2] : memref<1x4x3584xbf16, #tpu.memory_space<vmem>>, vector<1x4x2176xbf16>
    %4 = vector.shape_cast %3 : vector<1x4x2176xbf16> to vector<4x2176xbf16>
    %cst = arith.constant 0.000000e+00 : f32
    %5 = vector.broadcast %cst : f32 to vector<8x1408xf32>
    %c0_1 = arith.constant 0 : index
    %c0_2 = arith.constant 0 : index
    %c0_3 = arith.constant 0 : index
    %6 = vector.load %arg3[%c0_1, %c0_2, %c0_3] : memref<27x8x4xbf16, #tpu.memory_space<vmem>>, vector<1x8x4xbf16>
    %7 = vector.shape_cast %6 : vector<1x8x4xbf16> to vector<8x4xbf16>
    %8 = vector.extract_strided_slice %4 {offsets = [0, 0], sizes = [4, 1408], strides = [1, 1]} : vector<4x2176xbf16> to vector<4x1408xbf16>
    %cst_4 = arith.constant dense<0.000000e+00> : vector<8x1408xf32>
    %9 = tpu.matmul %7, %8, %cst_4 {dimension_numbers = #tpu.dot_dimension_numbers<[1], [0], [0], [1], [0, 0, 1, 1], [], []>} : vector<8x4xbf16>, vector<4x1408xbf16>, vector<8x1408xf32> -> vector<8x1408xf32>
    %10 = arith.addf %5, %9 : vector<8x1408xf32>
    %c1 = arith.constant 1 : index
    %c0_5 = arith.constant 0 : index
    %c0_6 = arith.constant 0 : index
    %11 = vector.load %arg3[%c1, %c0_5, %c0_6] : memref<27x8x4xbf16, #tpu.memory_space<vmem>>, vector<1x8x4xbf16>
    %12 = vector.shape_cast %11 : vector<1x8x4xbf16> to vector<8x4xbf16>
    %13 = vector.extract_strided_slice %4 {offsets = [0, 1], sizes = [4, 1408], strides = [1, 1]} : vector<4x2176xbf16> to vector<4x1408xbf16>
    %cst_7 = arith.constant dense<0.000000e+00> : vector<8x1408xf32>
    %14 = tpu.matmul %12, %13, %cst_7 {dimension_numbers = #tpu.dot_dimension_numbers<[1], [0], [0], [1], [0, 0, 1, 1], [], []>} : vector<8x4xbf16>, vector<4x1408xbf16>, vector<8x1408xf32> -> vector<8x1408xf32>
    %15 = arith.addf %10, %14 : vector<8x1408xf32>
    %c2 = arith.constant 2 : index
    %c0_8 = arith.constant 0 : index
    %c0_9 = arith.constant 0 : index
    %16 = vector.load %arg3[%c2, %c0_8, %c0_9] : memref<27x8x4xbf16, #tpu.memory_space<vmem>>, vector<1x8x4xbf16>
    %17 = vector.shape_cast %16 : vector<1x8x4xbf16> to vector<8x4xbf16>
    %18 = vector.extract_strided_slice %4 {offsets = [0, 2], sizes = [4, 1408], strides = [1, 1]} : vector<4x2176xbf16> to vector<4x1408xbf16>
    %cst_10 = arith.constant dense<0.000000e+00> : vector<8x1408xf32>
    %19 = tpu.matmul %17, %18, %cst_10 {dimension_numbers = #tpu.dot_dimension_numbers<[1], [0], [0], [1], [0, 0, 1, 1], [], []>} : vector<8x4xbf16>, vector<4x1408xbf16>, vector<8x1408xf32> -> vector<8x1408xf32>
    %20 = arith.addf %15, %19 : vector<8x1408xf32>
    %c3 = arith.constant 3 : index
    %c0_11 = arith.constant 0 : index
    %c0_12 = arith.constant 0 : index
    %21 = vector.load %arg3[%c3, %c0_11, %c0_12] : memref<27x8x4xbf16, #tpu.memory_space<vmem>>, vector<1x8x4xbf16>
    %22 = vector.shape_cast %21 : vector<1x8x4xbf16> to vector<8x4xbf16>
    %23 = vector.extract_strided_slice %4 {offsets = [0, 18], sizes = [4, 1408], strides = [1, 1]} : vector<4x2176xbf16> to vector<4x1408xbf16>
    %cst_13 = arith.constant dense<0.000000e+00> : vector<8x1408xf32>
    %24 = tpu.matmul %22, %23, %cst_13 {dimension_numbers = #tpu.dot_dimension_numbers<[1], [0], [0], [1], [0, 0, 1, 1], [], []>} : vector<8x4xbf16>, vector<4x1408xbf16>, vector<8x1408xf32> -> vector<8x1408xf32>
    %25 = arith.addf %20, %24 : vector<8x1408xf32>
    %c4 = arith.constant 4 : index
    %c0_14 = arith.constant 0 : index
    %c0_15 = arith.constant 0 : index
    %26 = vector.load %arg3[%c4, %c0_14, %c0_15] : memref<27x8x4xbf16, #tpu.memory_space<vmem>>, vector<1x8x4xbf16>
    %27 = vector.shape_cast %26 : vector<1x8x4xbf16> to vector<8x4xbf16>
    %28 = vector.extract_strided_slice %4 {offsets = [0, 19], sizes = [4, 1408], strides = [1, 1]} : vector<4x2176xbf16> to vector<4x1408xbf16>
    %cst_16 = arith.constant dense<0.000000e+00> : vector<8x1408xf32>
    %29 = tpu.matmul %27, %28, %cst_16 {dimension_numbers = #tpu.dot_dimension_numbers<[1], [0], [0], [1], [0, 0, 1, 1], [], []>} : vector<8x4xbf16>, vector<4x1408xbf16>, vector<8x1408xf32> -> vector<8x1408xf32>
    %30 = arith.addf %25, %29 : vector<8x1408xf32>
    %c5 = arith.constant 5 : index
    %c0_17 = arith.constant 0 : index
    %c0_18 = arith.constant 0 : index
    %31 = vector.load %arg3[%c5, %c0_17, %c0_18] : memref<27x8x4xbf16, #tpu.memory_space<vmem>>, vector<1x8x4xbf16>
    %32 = vector.shape_cast %31 : vector<1x8x4xbf16> to vector<8x4xbf16>
    %33 = vector.extract_strided_slice %4 {offsets = [0, 20], sizes = [4, 1408], strides = [1, 1]} : vector<4x2176xbf16> to vector<4x1408xbf16>
    %cst_19 = arith.constant dense<0.000000e+00> : vector<8x1408xf32>
    %34 = tpu.matmul %32, %33, %cst_19 {dimension_numbers = #tpu.dot_dimension_numbers<[1], [0], [0], [1], [0, 0, 1, 1], [], []>} : vector<8x4xbf16>, vector<4x1408xbf16>, vector<8x1408xf32> -> vector<8x1408xf32>
    %35 = arith.addf %30, %34 : vector<8x1408xf32>
    %c6 = arith.constant 6 : index
    %c0_20 = arith.constant 0 : index
    %c0_21 = arith.constant 0 : index
    %36 = vector.load %arg3[%c6, %c0_20, %c0_21] : memref<27x8x4xbf16, #tpu.memory_space<vmem>>, vector<1x8x4xbf16>
    %37 = vector.shape_cast %36 : vector<1x8x4xbf16> to vector<8x4xbf16>
    %38 = vector.extract_strided_slice %4 {offsets = [0, 36], sizes = [4, 1408], strides = [1, 1]} : vector<4x2176xbf16> to vector<4x1408xbf16>
    %cst_22 = arith.constant dense<0.000000e+00> : vector<8x1408xf32>
    %39 = tpu.matmul %37, %38, %cst_22 {dimension_numbers = #tpu.dot_dimension_numbers<[1], [0], [0], [1], [0, 0, 1, 1], [], []>} : vector<8x4xbf16>, vector<4x1408xbf16>, vector<8x1408xf32> -> vector<8x1408xf32>
    %40 = arith.addf %35, %39 : vector<8x1408xf32>
    %c7 = arith.constant 7 : index
    %c0_23 = arith.constant 0 : index
    %c0_24 = arith.constant 0 : index
    %41 = vector.load %arg3[%c7, %c0_23, %c0_24] : memref<27x8x4xbf16, #tpu.memory_space<vmem>>, vector<1x8x4xbf16>
    %42 = vector.shape_cast %41 : vector<1x8x4xbf16> to vector<8x4xbf16>
    %43 = vector.extract_strided_slice %4 {offsets = [0, 37], sizes = [4, 1408], strides = [1, 1]} : vector<4x2176xbf16> to vector<4x1408xbf16>
    %cst_25 = arith.constant dense<0.000000e+00> : vector<8x1408xf32>
    %44 = tpu.matmul %42, %43, %cst_25 {dimension_numbers = #tpu.dot_dimension_numbers<[1], [0], [0], [1], [0, 0, 1, 1], [], []>} : vector<8x4xbf16>, vector<4x1408xbf16>, vector<8x1408xf32> -> vector<8x1408xf32>
    %45 = arith.addf %40, %44 : vector<8x1408xf32>
    %c8 = arith.constant 8 : index
    %c0_26 = arith.constant 0 : index
    %c0_27 = arith.constant 0 : index
    %46 = vector.load %arg3[%c8, %c0_26, %c0_27] : memref<27x8x4xbf16, #tpu.memory_space<vmem>>, vector<1x8x4xbf16>
    %47 = vector.shape_cast %46 : vector<1x8x4xbf16> to vector<8x4xbf16>
    %48 = vector.extract_strided_slice %4 {offsets = [0, 38], sizes = [4, 1408], strides = [1, 1]} : vector<4x2176xbf16> to vector<4x1408xbf16>
    %cst_28 = arith.constant dense<0.000000e+00> : vector<8x1408xf32>
    %49 = tpu.matmul %47, %48, %cst_28 {dimension_numbers = #tpu.dot_dimension_numbers<[1], [0], [0], [1], [0, 0, 1, 1], [], []>} : vector<8x4xbf16>, vector<4x1408xbf16>, vector<8x1408xf32> -> vector<8x1408xf32>
    %50 = arith.addf %45, %49 : vector<8x1408xf32>
    %c9 = arith.constant 9 : index
    %c0_29 = arith.constant 0 : index
    %c0_30 = arith.constant 0 : index
    %51 = vector.load %arg3[%c9, %c0_29, %c0_30] : memref<27x8x4xbf16, #tpu.memory_space<vmem>>, vector<1x8x4xbf16>
    %52 = vector.shape_cast %51 : vector<1x8x4xbf16> to vector<8x4xbf16>
    %53 = vector.extract_strided_slice %4 {offsets = [0, 324], sizes = [4, 1408], strides = [1, 1]} : vector<4x2176xbf16> to vector<4x1408xbf16>
    %cst_31 = arith.constant dense<0.000000e+00> : vector<8x1408xf32>
    %54 = tpu.matmul %52, %53, %cst_31 {dimension_numbers = #tpu.dot_dimension_numbers<[1], [0], [0], [1], [0, 0, 1, 1], [], []>} : vector<8x4xbf16>, vector<4x1408xbf16>, vector<8x1408xf32> -> vector<8x1408xf32>
    %55 = arith.addf %50, %54 : vector<8x1408xf32>
    %c10 = arith.constant 10 : index
    %c0_32 = arith.constant 0 : index
    %c0_33 = arith.constant 0 : index
    %56 = vector.load %arg3[%c10, %c0_32, %c0_33] : memref<27x8x4xbf16, #tpu.memory_space<vmem>>, vector<1x8x4xbf16>
    %57 = vector.shape_cast %56 : vector<1x8x4xbf16> to vector<8x4xbf16>
    %58 = vector.extract_strided_slice %4 {offsets = [0, 325], sizes = [4, 1408], strides = [1, 1]} : vector<4x2176xbf16> to vector<4x1408xbf16>
    %cst_34 = arith.constant dense<0.000000e+00> : vector<8x1408xf32>
    %59 = tpu.matmul %57, %58, %cst_34 {dimension_numbers = #tpu.dot_dimension_numbers<[1], [0], [0], [1], [0, 0, 1, 1], [], []>} : vector<8x4xbf16>, vector<4x1408xbf16>, vector<8x1408xf32> -> vector<8x1408xf32>
    %60 = arith.addf %55, %59 : vector<8x1408xf32>
    %c11 = arith.constant 11 : index
    %c0_35 = arith.constant 0 : index
    %c0_36 = arith.constant 0 : index
    %61 = vector.load %arg3[%c11, %c0_35, %c0_36] : memref<27x8x4xbf16, #tpu.memory_space<vmem>>, vector<1x8x4xbf16>
    %62 = vector.shape_cast %61 : vector<1x8x4xbf16> to vector<8x4xbf16>
    %63 = vector.extract_strided_slice %4 {offsets = [0, 326], sizes = [4, 1408], strides = [1, 1]} : vector<4x2176xbf16> to vector<4x1408xbf16>
    %cst_37 = arith.constant dense<0.000000e+00> : vector<8x1408xf32>
    %64 = tpu.matmul %62, %63, %cst_37 {dimension_numbers = #tpu.dot_dimension_numbers<[1], [0], [0], [1], [0, 0, 1, 1], [], []>} : vector<8x4xbf16>, vector<4x1408xbf16>, vector<8x1408xf32> -> vector<8x1408xf32>
    %65 = arith.addf %60, %64 : vector<8x1408xf32>
    %c12 = arith.constant 12 : index
    %c0_38 = arith.constant 0 : index
    %c0_39 = arith.constant 0 : index
    %66 = vector.load %arg3[%c12, %c0_38, %c0_39] : memref<27x8x4xbf16, #tpu.memory_space<vmem>>, vector<1x8x4xbf16>
    %67 = vector.shape_cast %66 : vector<1x8x4xbf16> to vector<8x4xbf16>
    %68 = vector.extract_strided_slice %4 {offsets = [0, 342], sizes = [4, 1408], strides = [1, 1]} : vector<4x2176xbf16> to vector<4x1408xbf16>
    %cst_40 = arith.constant dense<0.000000e+00> : vector<8x1408xf32>
    %69 = tpu.matmul %67, %68, %cst_40 {dimension_numbers = #tpu.dot_dimension_numbers<[1], [0], [0], [1], [0, 0, 1, 1], [], []>} : vector<8x4xbf16>, vector<4x1408xbf16>, vector<8x1408xf32> -> vector<8x1408xf32>
    %70 = arith.addf %65, %69 : vector<8x1408xf32>
    %c13 = arith.constant 13 : index
    %c0_41 = arith.constant 0 : index
    %c0_42 = arith.constant 0 : index
    %71 = vector.load %arg3[%c13, %c0_41, %c0_42] : memref<27x8x4xbf16, #tpu.memory_space<vmem>>, vector<1x8x4xbf16>
    %72 = vector.shape_cast %71 : vector<1x8x4xbf16> to vector<8x4xbf16>
    %73 = vector.extract_strided_slice %4 {offsets = [0, 343], sizes = [4, 1408], strides = [1, 1]} : vector<4x2176xbf16> to vector<4x1408xbf16>
    %cst_43 = arith.constant dense<0.000000e+00> : vector<8x1408xf32>
    %74 = tpu.matmul %72, %73, %cst_43 {dimension_numbers = #tpu.dot_dimension_numbers<[1], [0], [0], [1], [0, 0, 1, 1], [], []>} : vector<8x4xbf16>, vector<4x1408xbf16>, vector<8x1408xf32> -> vector<8x1408xf32>
    %75 = arith.addf %70, %74 : vector<8x1408xf32>
    %c14 = arith.constant 14 : index
    %c0_44 = arith.constant 0 : index
    %c0_45 = arith.constant 0 : index
    %76 = vector.load %arg3[%c14, %c0_44, %c0_45] : memref<27x8x4xbf16, #tpu.memory_space<vmem>>, vector<1x8x4xbf16>
    %77 = vector.shape_cast %76 : vector<1x8x4xbf16> to vector<8x4xbf16>
    %78 = vector.extract_strided_slice %4 {offsets = [0, 344], sizes = [4, 1408], strides = [1, 1]} : vector<4x2176xbf16> to vector<4x1408xbf16>
    %cst_46 = arith.constant dense<0.000000e+00> : vector<8x1408xf32>
    %79 = tpu.matmul %77, %78, %cst_46 {dimension_numbers = #tpu.dot_dimension_numbers<[1], [0], [0], [1], [0, 0, 1, 1], [], []>} : vector<8x4xbf16>, vector<4x1408xbf16>, vector<8x1408xf32> -> vector<8x1408xf32>
    %80 = arith.addf %75, %79 : vector<8x1408xf32>
    %c15 = arith.constant 15 : index
    %c0_47 = arith.constant 0 : index
    %c0_48 = arith.constant 0 : index
    %81 = vector.load %arg3[%c15, %c0_47, %c0_48] : memref<27x8x4xbf16, #tpu.memory_space<vmem>>, vector<1x8x4xbf16>
    %82 = vector.shape_cast %81 : vector<1x8x4xbf16> to vector<8x4xbf16>
    %83 = vector.extract_strided_slice %4 {offsets = [0, 360], sizes = [4, 1408], strides = [1, 1]} : vector<4x2176xbf16> to vector<4x1408xbf16>
    %cst_49 = arith.constant dense<0.000000e+00> : vector<8x1408xf32>
    %84 = tpu.matmul %82, %83, %cst_49 {dimension_numbers = #tpu.dot_dimension_numbers<[1], [0], [0], [1], [0, 0, 1, 1], [], []>} : vector<8x4xbf16>, vector<4x1408xbf16>, vector<8x1408xf32> -> vector<8x1408xf32>
    %85 = arith.addf %80, %84 : vector<8x1408xf32>
    %c16 = arith.constant 16 : index
    %c0_50 = arith.constant 0 : index
    %c0_51 = arith.constant 0 : index
    %86 = vector.load %arg3[%c16, %c0_50, %c0_51] : memref<27x8x4xbf16, #tpu.memory_space<vmem>>, vector<1x8x4xbf16>
    %87 = vector.shape_cast %86 : vector<1x8x4xbf16> to vector<8x4xbf16>
    %88 = vector.extract_strided_slice %4 {offsets = [0, 361], sizes = [4, 1408], strides = [1, 1]} : vector<4x2176xbf16> to vector<4x1408xbf16>
    %cst_52 = arith.constant dense<0.000000e+00> : vector<8x1408xf32>
    %89 = tpu.matmul %87, %88, %cst_52 {dimension_numbers = #tpu.dot_dimension_numbers<[1], [0], [0], [1], [0, 0, 1, 1], [], []>} : vector<8x4xbf16>, vector<4x1408xbf16>, vector<8x1408xf32> -> vector<8x1408xf32>
    %90 = arith.addf %85, %89 : vector<8x1408xf32>
    %c17 = arith.constant 17 : index
    %c0_53 = arith.constant 0 : index
    %c0_54 = arith.constant 0 : index
    %91 = vector.load %arg3[%c17, %c0_53, %c0_54] : memref<27x8x4xbf16, #tpu.memory_space<vmem>>, vector<1x8x4xbf16>
    %92 = vector.shape_cast %91 : vector<1x8x4xbf16> to vector<8x4xbf16>
    %93 = vector.extract_strided_slice %4 {offsets = [0, 362], sizes = [4, 1408], strides = [1, 1]} : vector<4x2176xbf16> to vector<4x1408xbf16>
    %cst_55 = arith.constant dense<0.000000e+00> : vector<8x1408xf32>
    %94 = tpu.matmul %92, %93, %cst_55 {dimension_numbers = #tpu.dot_dimension_numbers<[1], [0], [0], [1], [0, 0, 1, 1], [], []>} : vector<8x4xbf16>, vector<4x1408xbf16>, vector<8x1408xf32> -> vector<8x1408xf32>
    %95 = arith.addf %90, %94 : vector<8x1408xf32>
    %c18 = arith.constant 18 : index
    %c0_56 = arith.constant 0 : index
    %c0_57 = arith.constant 0 : index
    %96 = vector.load %arg3[%c18, %c0_56, %c0_57] : memref<27x8x4xbf16, #tpu.memory_space<vmem>>, vector<1x8x4xbf16>
    %97 = vector.shape_cast %96 : vector<1x8x4xbf16> to vector<8x4xbf16>
    %98 = vector.extract_strided_slice %4 {offsets = [0, 648], sizes = [4, 1408], strides = [1, 1]} : vector<4x2176xbf16> to vector<4x1408xbf16>
    %cst_58 = arith.constant dense<0.000000e+00> : vector<8x1408xf32>
    %99 = tpu.matmul %97, %98, %cst_58 {dimension_numbers = #tpu.dot_dimension_numbers<[1], [0], [0], [1], [0, 0, 1, 1], [], []>} : vector<8x4xbf16>, vector<4x1408xbf16>, vector<8x1408xf32> -> vector<8x1408xf32>
    %100 = arith.addf %95, %99 : vector<8x1408xf32>
    %c19 = arith.constant 19 : index
    %c0_59 = arith.constant 0 : index
    %c0_60 = arith.constant 0 : index
    %101 = vector.load %arg3[%c19, %c0_59, %c0_60] : memref<27x8x4xbf16, #tpu.memory_space<vmem>>, vector<1x8x4xbf16>
    %102 = vector.shape_cast %101 : vector<1x8x4xbf16> to vector<8x4xbf16>
    %103 = vector.extract_strided_slice %4 {offsets = [0, 649], sizes = [4, 1408], strides = [1, 1]} : vector<4x2176xbf16> to vector<4x1408xbf16>
    %cst_61 = arith.constant dense<0.000000e+00> : vector<8x1408xf32>
    %104 = tpu.matmul %102, %103, %cst_61 {dimension_numbers = #tpu.dot_dimension_numbers<[1], [0], [0], [1], [0, 0, 1, 1], [], []>} : vector<8x4xbf16>, vector<4x1408xbf16>, vector<8x1408xf32> -> vector<8x1408xf32>
    %105 = arith.addf %100, %104 : vector<8x1408xf32>
    %c20 = arith.constant 20 : index
    %c0_62 = arith.constant 0 : index
    %c0_63 = arith.constant 0 : index
    %106 = vector.load %arg3[%c20, %c0_62, %c0_63] : memref<27x8x4xbf16, #tpu.memory_space<vmem>>, vector<1x8x4xbf16>
    %107 = vector.shape_cast %106 : vector<1x8x4xbf16> to vector<8x4xbf16>
    %108 = vector.extract_strided_slice %4 {offsets = [0, 650], sizes = [4, 1408], strides = [1, 1]} : vector<4x2176xbf16> to vector<4x1408xbf16>
    %cst_64 = arith.constant dense<0.000000e+00> : vector<8x1408xf32>
    %109 = tpu.matmul %107, %108, %cst_64 {dimension_numbers = #tpu.dot_dimension_numbers<[1], [0], [0], [1], [0, 0, 1, 1], [], []>} : vector<8x4xbf16>, vector<4x1408xbf16>, vector<8x1408xf32> -> vector<8x1408xf32>
    %110 = arith.addf %105, %109 : vector<8x1408xf32>
    %c21 = arith.constant 21 : index
    %c0_65 = arith.constant 0 : index
    %c0_66 = arith.constant 0 : index
    %111 = vector.load %arg3[%c21, %c0_65, %c0_66] : memref<27x8x4xbf16, #tpu.memory_space<vmem>>, vector<1x8x4xbf16>
    %112 = vector.shape_cast %111 : vector<1x8x4xbf16> to vector<8x4xbf16>
    %113 = vector.extract_strided_slice %4 {offsets = [0, 666], sizes = [4, 1408], strides = [1, 1]} : vector<4x2176xbf16> to vector<4x1408xbf16>
    %cst_67 = arith.constant dense<0.000000e+00> : vector<8x1408xf32>
    %114 = tpu.matmul %112, %113, %cst_67 {dimension_numbers = #tpu.dot_dimension_numbers<[1], [0], [0], [1], [0, 0, 1, 1], [], []>} : vector<8x4xbf16>, vector<4x1408xbf16>, vector<8x1408xf32> -> vector<8x1408xf32>
    %115 = arith.addf %110, %114 : vector<8x1408xf32>
    %c22 = arith.constant 22 : index
    %c0_68 = arith.constant 0 : index
    %c0_69 = arith.constant 0 : index
    %116 = vector.load %arg3[%c22, %c0_68, %c0_69] : memref<27x8x4xbf16, #tpu.memory_space<vmem>>, vector<1x8x4xbf16>
    %117 = vector.shape_cast %116 : vector<1x8x4xbf16> to vector<8x4xbf16>
    %118 = vector.extract_strided_slice %4 {offsets = [0, 667], sizes = [4, 1408], strides = [1, 1]} : vector<4x2176xbf16> to vector<4x1408xbf16>
    %cst_70 = arith.constant dense<0.000000e+00> : vector<8x1408xf32>
    %119 = tpu.matmul %117, %118, %cst_70 {dimension_numbers = #tpu.dot_dimension_numbers<[1], [0], [0], [1], [0, 0, 1, 1], [], []>} : vector<8x4xbf16>, vector<4x1408xbf16>, vector<8x1408xf32> -> vector<8x1408xf32>
    %120 = arith.addf %115, %119 : vector<8x1408xf32>
    %c23 = arith.constant 23 : index
    %c0_71 = arith.constant 0 : index
    %c0_72 = arith.constant 0 : index
    %121 = vector.load %arg3[%c23, %c0_71, %c0_72] : memref<27x8x4xbf16, #tpu.memory_space<vmem>>, vector<1x8x4xbf16>
    %122 = vector.shape_cast %121 : vector<1x8x4xbf16> to vector<8x4xbf16>
    %123 = vector.extract_strided_slice %4 {offsets = [0, 668], sizes = [4, 1408], strides = [1, 1]} : vector<4x2176xbf16> to vector<4x1408xbf16>
    %cst_73 = arith.constant dense<0.000000e+00> : vector<8x1408xf32>
    %124 = tpu.matmul %122, %123, %cst_73 {dimension_numbers = #tpu.dot_dimension_numbers<[1], [0], [0], [1], [0, 0, 1, 1], [], []>} : vector<8x4xbf16>, vector<4x1408xbf16>, vector<8x1408xf32> -> vector<8x1408xf32>
    %125 = arith.addf %120, %124 : vector<8x1408xf32>
    %c24 = arith.constant 24 : index
    %c0_74 = arith.constant 0 : index
    %c0_75 = arith.constant 0 : index
    %126 = vector.load %arg3[%c24, %c0_74, %c0_75] : memref<27x8x4xbf16, #tpu.memory_space<vmem>>, vector<1x8x4xbf16>
    %127 = vector.shape_cast %126 : vector<1x8x4xbf16> to vector<8x4xbf16>
    %128 = vector.extract_strided_slice %4 {offsets = [0, 684], sizes = [4, 1408], strides = [1, 1]} : vector<4x2176xbf16> to vector<4x1408xbf16>
    %cst_76 = arith.constant dense<0.000000e+00> : vector<8x1408xf32>
    %129 = tpu.matmul %127, %128, %cst_76 {dimension_numbers = #tpu.dot_dimension_numbers<[1], [0], [0], [1], [0, 0, 1, 1], [], []>} : vector<8x4xbf16>, vector<4x1408xbf16>, vector<8x1408xf32> -> vector<8x1408xf32>
    %130 = arith.addf %125, %129 : vector<8x1408xf32>
    %c25 = arith.constant 25 : index
    %c0_77 = arith.constant 0 : index
    %c0_78 = arith.constant 0 : index
    %131 = vector.load %arg3[%c25, %c0_77, %c0_78] : memref<27x8x4xbf16, #tpu.memory_space<vmem>>, vector<1x8x4xbf16>
    %132 = vector.shape_cast %131 : vector<1x8x4xbf16> to vector<8x4xbf16>
    %133 = vector.extract_strided_slice %4 {offsets = [0, 685], sizes = [4, 1408], strides = [1, 1]} : vector<4x2176xbf16> to vector<4x1408xbf16>
    %cst_79 = arith.constant dense<0.000000e+00> : vector<8x1408xf32>
    %134 = tpu.matmul %132, %133, %cst_79 {dimension_numbers = #tpu.dot_dimension_numbers<[1], [0], [0], [1], [0, 0, 1, 1], [], []>} : vector<8x4xbf16>, vector<4x1408xbf16>, vector<8x1408xf32> -> vector<8x1408xf32>
    %135 = arith.addf %130, %134 : vector<8x1408xf32>
    %c26 = arith.constant 26 : index
    %c0_80 = arith.constant 0 : index
    %c0_81 = arith.constant 0 : index
    %136 = vector.load %arg3[%c26, %c0_80, %c0_81] : memref<27x8x4xbf16, #tpu.memory_space<vmem>>, vector<1x8x4xbf16>
    %137 = vector.shape_cast %136 : vector<1x8x4xbf16> to vector<8x4xbf16>
    %138 = vector.extract_strided_slice %4 {offsets = [0, 686], sizes = [4, 1408], strides = [1, 1]} : vector<4x2176xbf16> to vector<4x1408xbf16>
    %cst_82 = arith.constant dense<0.000000e+00> : vector<8x1408xf32>
    %139 = tpu.matmul %137, %138, %cst_82 {dimension_numbers = #tpu.dot_dimension_numbers<[1], [0], [0], [1], [0, 0, 1, 1], [], []>} : vector<8x4xbf16>, vector<4x1408xbf16>, vector<8x1408xf32> -> vector<8x1408xf32>
    %140 = arith.addf %135, %139 : vector<8x1408xf32>
    %c0_83 = arith.constant 0 : index
    %c0_84 = arith.constant 0 : index
    %141 = vector.load %arg4[%c0_83, %c0_84] : memref<8x1xf32, #tpu.memory_space<vmem>>, vector<8x1xf32>
    %142 = vector.broadcast %141 : vector<8x1xf32> to vector<8x1408xf32>
    %143 = arith.addf %140, %142 : vector<8x1408xf32>
    %c0_85 = arith.constant 0 : index
    %144 = arith.index_cast %1 : i32 to index
    %145 = vector.load %arg9[%c0_85, %144] : memref<8x2816xf32, #tpu.memory_space<vmem>>, vector<8x1408xf32>
    tpu.vector_store %arg9[%c0_85, %144], %143 {strides = array<i32>} : memref<8x2816xf32, #tpu.memory_space<vmem>>, vector<8x1408xf32>,
    %c1_i32 = arith.constant 1 : i32
    %146 = arith.cmpi eq, %arg1, %c1_i32 : i32
    %147 = arith.extui %146 : i1 to i32
    %c0_i32 = arith.constant 0 : i32
    %148 = arith.cmpi ne, %147, %c0_i32 : i32
    scf.if %148 {
      %c0_86 = arith.constant 0 : index
      %c0_87 = arith.constant 0 : index
      %149 = vector.load %arg5[%c0_86, %c0_87] : memref<1x2816xf32, #tpu.memory_space<vmem>>, vector<1x2816xf32>
      %c0_88 = arith.constant 0 : index
      %c0_89 = arith.constant 0 : index
      %150 = vector.load %arg9[%c0_88, %c0_89] : memref<8x2816xf32, #tpu.memory_space<vmem>>, vector<4x2816xf32>
      %151 = vector.broadcast %149 : vector<1x2816xf32> to vector<4x2816xf32>
      %152 = arith.mulf %150, %151 : vector<4x2816xf32>
      %153 = vector.shape_cast %152 : vector<4x2816xf32> to vector<1x4x2816xf32>
      %cst_90 = arith.constant dense<0.000000e+00> : vector<1xf32>
      %154 = vector.multi_reduction <add>, %153, %cst_90 [1, 2] : vector<1x4x2816xf32> to vector<1xf32>
      %155 = vector.shape_cast %154 : vector<1xf32> to vector<1x1x1xf32>
      %156 = vector.extract %155[0, 0, 0] : f32 from vector<1x1x1xf32>
      %cst_91 = arith.constant 1.22070313E-4 : f32
      %157 = arith.mulf %156, %cst_91 : f32
      %158 = vector.broadcast %157 : f32 to vector<4x2816xf32>
      %159 = arith.subf %150, %158 : vector<4x2816xf32>
      %160 = vector.broadcast %149 : vector<1x2816xf32> to vector<4x2816xf32>
      %161 = arith.mulf %159, %160 : vector<4x2816xf32>
      %162 = arith.mulf %161, %161 : vector<4x2816xf32>
      %163 = vector.shape_cast %162 : vector<4x2816xf32> to vector<1x4x2816xf32>
      %cst_92 = arith.constant dense<0.000000e+00> : vector<1xf32>
      %164 = vector.multi_reduction <add>, %163, %cst_92 [1, 2] : vector<1x4x2816xf32> to vector<1xf32>
      %165 = vector.shape_cast %164 : vector<1xf32> to vector<1x1x1xf32>
      %166 = vector.extract %165[0, 0, 0] : f32 from vector<1x1x1xf32>
      %cst_93 = arith.constant 1.22070313E-4 : f32
      %167 = arith.mulf %166, %cst_93 : f32
      %168 = vector.broadcast %157 : f32 to vector<4x2816xf32>
      %169 = arith.subf %150, %168 : vector<4x2816xf32>
      %cst_94 = arith.constant 9.99999974E-6 : f32
      %170 = arith.addf %167, %cst_94 : f32
      %171 = math.rsqrt %170 : f32
      %172 = vector.broadcast %171 : f32 to vector<4x2816xf32>
      %173 = arith.mulf %169, %172 : vector<4x2816xf32>
      %c0_95 = arith.constant 0 : index
      %c0_96 = arith.constant 0 : index
      %174 = vector.load %arg6[%c0_95, %c0_96] : memref<8x1xf32, #tpu.memory_space<vmem>>, vector<4x1xf32>
      %175 = vector.broadcast %174 : vector<4x1xf32> to vector<4x2816xf32>
      %176 = arith.mulf %173, %175 : vector<4x2816xf32>
      %c0_97 = arith.constant 0 : index
      %c0_98 = arith.constant 0 : index
      %177 = vector.load %arg7[%c0_97, %c0_98] : memref<8x1xf32, #tpu.memory_space<vmem>>, vector<4x1xf32>
      %178 = vector.broadcast %177 : vector<4x1xf32> to vector<4x2816xf32>
      %179 = arith.addf %176, %178 : vector<4x2816xf32>
      %cst_99 = arith.constant 0.000000e+00 : f32
      %180 = vector.broadcast %cst_99 : f32 to vector<4x2816xf32>
      %181 = arith.cmpf oge, %179, %180 : vector<4x2816xf32>
      %cst_100 = arith.constant 2.000000e-01 : f32
      %182 = vector.broadcast %cst_100 : f32 to vector<4x2816xf32>
      %183 = arith.mulf %182, %179 : vector<4x2816xf32>
      %184 = arith.select %181, %179, %183 : vector<4x2816xi1>, vector<4x2816xf32>
      %c0_101 = arith.constant 0 : index
      %c0_102 = arith.constant 0 : index
      %c0_103 = arith.constant 0 : index
      %185 = vector.load %arg8[%c0_101, %c0_102, %c0_103] : memref<1x8x2816xf32, #tpu.memory_space<vmem>>, vector<1x4x2816xf32>
      %186 = vector.shape_cast %185 : vector<1x4x2816xf32> to vector<4x2816xf32>
      %187 = vector.shape_cast %184 : vector<4x2816xf32> to vector<1x4x2816xf32>
      tpu.vector_store %arg8[%c0_101, %c0_102, %c0_103], %187 {strides = array<i32>} : memref<1x8x2816xf32, #tpu.memory_space<vmem>>, vector<1x4x2816xf32>,
      %c4_104 = arith.constant 4 : index
      %c0_105 = arith.constant 0 : index
      %188 = vector.load %arg9[%c4_104, %c0_105] : memref<8x2816xf32, #tpu.memory_space<vmem>>, vector<4x2816xf32>
      %189 = vector.broadcast %149 : vector<1x2816xf32> to vector<4x2816xf32>
      %190 = arith.mulf %188, %189 : vector<4x2816xf32>
      %191 = vector.shape_cast %190 : vector<4x2816xf32> to vector<1x4x2816xf32>
      %cst_106 = arith.constant dense<0.000000e+00> : vector<1xf32>
      %192 = vector.multi_reduction <add>, %191, %cst_106 [1, 2] : vector<1x4x2816xf32> to vector<1xf32>
      %193 = vector.shape_cast %192 : vector<1xf32> to vector<1x1x1xf32>
      %194 = vector.extract %193[0, 0, 0] : f32 from vector<1x1x1xf32>
      %cst_107 = arith.constant 1.22070313E-4 : f32
      %195 = arith.mulf %194, %cst_107 : f32
      %196 = vector.broadcast %195 : f32 to vector<4x2816xf32>
      %197 = arith.subf %188, %196 : vector<4x2816xf32>
      %198 = vector.broadcast %149 : vector<1x2816xf32> to vector<4x2816xf32>
      %199 = arith.mulf %197, %198 : vector<4x2816xf32>
      %200 = arith.mulf %199, %199 : vector<4x2816xf32>
      %201 = vector.shape_cast %200 : vector<4x2816xf32> to vector<1x4x2816xf32>
      %cst_108 = arith.constant dense<0.000000e+00> : vector<1xf32>
      %202 = vector.multi_reduction <add>, %201, %cst_108 [1, 2] : vector<1x4x2816xf32> to vector<1xf32>
      %203 = vector.shape_cast %202 : vector<1xf32> to vector<1x1x1xf32>
      %204 = vector.extract %203[0, 0, 0] : f32 from vector<1x1x1xf32>
      %cst_109 = arith.constant 1.22070313E-4 : f32
      %205 = arith.mulf %204, %cst_109 : f32
      %206 = vector.broadcast %195 : f32 to vector<4x2816xf32>
      %207 = arith.subf %188, %206 : vector<4x2816xf32>
      %cst_110 = arith.constant 9.99999974E-6 : f32
      %208 = arith.addf %205, %cst_110 : f32
      %209 = math.rsqrt %208 : f32
      %210 = vector.broadcast %209 : f32 to vector<4x2816xf32>
      %211 = arith.mulf %207, %210 : vector<4x2816xf32>
      %c4_111 = arith.constant 4 : index
      %c0_112 = arith.constant 0 : index
      %212 = vector.load %arg6[%c4_111, %c0_112] : memref<8x1xf32, #tpu.memory_space<vmem>>, vector<4x1xf32>
      %213 = vector.broadcast %212 : vector<4x1xf32> to vector<4x2816xf32>
      %214 = arith.mulf %211, %213 : vector<4x2816xf32>
      %c4_113 = arith.constant 4 : index
      %c0_114 = arith.constant 0 : index
      %215 = vector.load %arg7[%c4_113, %c0_114] : memref<8x1xf32, #tpu.memory_space<vmem>>, vector<4x1xf32>
      %216 = vector.broadcast %215 : vector<4x1xf32> to vector<4x2816xf32>
      %217 = arith.addf %214, %216 : vector<4x2816xf32>
      %cst_115 = arith.constant 0.000000e+00 : f32
      %218 = vector.broadcast %cst_115 : f32 to vector<4x2816xf32>
      %219 = arith.cmpf oge, %217, %218 : vector<4x2816xf32>
      %cst_116 = arith.constant 2.000000e-01 : f32
      %220 = vector.broadcast %cst_116 : f32 to vector<4x2816xf32>
      %221 = arith.mulf %220, %217 : vector<4x2816xf32>
      %222 = arith.select %219, %217, %221 : vector<4x2816xi1>, vector<4x2816xf32>
      %c0_117 = arith.constant 0 : index
      %c4_118 = arith.constant 4 : index
      %c0_119 = arith.constant 0 : index
      %223 = vector.load %arg8[%c0_117, %c4_118, %c0_119] : memref<1x8x2816xf32, #tpu.memory_space<vmem>>, vector<1x4x2816xf32>
      %224 = vector.shape_cast %223 : vector<1x4x2816xf32> to vector<4x2816xf32>
      %225 = vector.shape_cast %222 : vector<4x2816xf32> to vector<1x4x2816xf32>
      tpu.vector_store %arg8[%c0_117, %c4_118, %c0_119], %225 {strides = array<i32>} : memref<1x8x2816xf32, #tpu.memory_space<vmem>>, vector<1x4x2816xf32>,
    } else {
    }
    return
  }
  func.func @transform_0(%arg0: i32, %arg1: i32) -> (i32, i32, i32) {
    %c0_i32 = arith.constant 0 : i32
    %c0_i32_0 = arith.constant 0 : i32
    %c0_i32_1 = arith.constant 0 : i32
    return %arg0, %c0_i32, %c0_i32_0 : i32, i32, i32
  }
  func.func @transform_1(%arg0: i32, %arg1: i32) -> (i32, i32, i32) {
    %c0_i32 = arith.constant 0 : i32
    %c0_i32_0 = arith.constant 0 : i32
    %c0_i32_1 = arith.constant 0 : i32
    %c0_i32_2 = arith.constant 0 : i32
    return %c0_i32, %c0_i32_0, %c0_i32_1 : i32, i32, i32
  }
  func.func @transform_2(%arg0: i32, %arg1: i32) -> (i32, i32) {
    %c0_i32 = arith.constant 0 : i32
    %c0_i32_0 = arith.constant 0 : i32
    %c0_i32_1 = arith.constant 0 : i32
    return %c0_i32, %c0_i32_0 : i32, i32
  }
  func.func @transform_3(%arg0: i32, %arg1: i32) -> (i32, i32) {
    %c0_i32 = arith.constant 0 : i32
    %c0_i32_0 = arith.constant 0 : i32
    %c0_i32_1 = arith.constant 0 : i32
    return %c0_i32, %c0_i32_0 : i32, i32
  }
  func.func @transform_4(%arg0: i32, %arg1: i32) -> (i32, i32) {
    %c0_i32 = arith.constant 0 : i32
    %c0_i32_0 = arith.constant 0 : i32
    %c0_i32_1 = arith.constant 0 : i32
    return %c0_i32, %c0_i32_0 : i32, i32
  }
  func.func @transform_5(%arg0: i32, %arg1: i32) -> (i32, i32) {
    %c0_i32 = arith.constant 0 : i32
    %c0_i32_0 = arith.constant 0 : i32
    %c0_i32_1 = arith.constant 0 : i32
    return %c0_i32, %c0_i32_0 : i32, i32
  }
  func.func @transform_6(%arg0: i32, %arg1: i32) -> (i32, i32, i32) {
    %c0_i32 = arith.constant 0 : i32
    %c0_i32_0 = arith.constant 0 : i32
    %c0_i32_1 = arith.constant 0 : i32
    return %arg0, %c0_i32, %c0_i32_0 : i32, i32, i32
  }
}

</mosaic_0001>

<bundles_post_ra>
// kernel: tpu_custom_call.1
= control target key start
LH: loop header
LB: loop body
LE: loop exit
PB: predicated region body
PF: predicated region fallthrough
CT: control target
= control target key end

     0   :  { %11 = vsyncpa [#allocation4], 0  ;;  %s15591_s0 = inlined_call_operand.vmem [shape: bf16[2,4,3584], index: 0, kind: input, shape index: {}]   ;;  %s15592_s1 = inlined_call_operand.vmem [shape: bf16[27,8,4], index: 1, kind: input, shape index: {}]   ;;  %s15593_s2 = inlined_call_operand.vmem [shape: f32[8,1], index: 2, kind: input, shape index: {}]   ;;  %s15594_s3 = inlined_call_operand.vmem [shape: f32[1,2816], index: 3, kind: input, shape index: {}]   ;;  %s15595_s4 = inlined_call_operand.vmem [shape: f32[8,1], index: 4, kind: input, shape index: {}]   ;;  %s15596_s5 = inlined_call_operand.vmem [shape: f32[8,1], index: 5, kind: input, shape index: {}]   ;;  %s15597_s6 = inlined_call_operand.hbm [shape: f32[2,8,2816], index: 6, kind: output, shape index: {}]  }
   0x1   :  { %13 = vsyncpa [#allocation4 + $0x1], 0  ;;  %s11200_s21 = smov 0   ;;  %s11202_s22 = smov 0  }
   0x2   :  { %s11204_s23 = smov 0   ;;  %s11206_s24 = smov 0  }
   0x3   :  { %s11208_s25 = smov 0   ;;  %s11210_s26 = smov 0  }
   0x4   :  { %s11212_s27 = smov 0   ;;  %s11214_s28 = smov 0  }
   0x5 LB: > { %s10356_s29 = sadd.s32 4294967295, %s11131_s28   ;;  %s10357_s30 = sadd.s32 4294967294, %s11131_s28   ;;  %s11131_s28 = sphi %s11214_s28, %s19_s28   ;;  %s11127_s27 = sphi %s11212_s27, %s15703_s27   ;;  %s11123_s26 = sphi %s11210_s26, %s15702_s26   ;;  %s11119_s25 = sphi %s11208_s25, %s15701_s25   ;;  %s11115_s24 = sphi %s11206_s24, %s15700_s24   ;;  %s11111_s23 = sphi %s11204_s23, %s15699_s23   ;;  %s11107_s22 = sphi %s11202_s22, %s15698_s22   ;;  %s11103_s21 = sphi %s11200_s21, %s15697_s21  }
   0x6   : > { %s28_s7 = sadd.s32 1, %s11123_s26  ;;  %s31_s8 = sadd.s32 1, %s11127_s27 }
   0x7   : > { %p29_p0 = scmp.ge.s32.totalorder %s28_s7, 2  ;;  %p179_p1 = scmp.ne.s32.totalorder %s11111_s23, %s11107_s22 }
   0x8   : > { %p180_p2 = scmp.eq.s32.totalorder %s10356_s29, 3  ;;  %p185_p4 = scmp.ne.s32.totalorder %s11107_s22, %s11103_s21 }
   0x9   : > { %s15705_s7 = smov (%p29_p0, %s28_s7), 0  ;;  %s15707_s8 = smov (!%p29_p0, %s31_s8), %s11127_s27 }
   0xa   : > { %p11249_p3 = por %p180_p2, %p179_p1  ;;  %p33_p5 = scmp.ge.s32.totalorder %s15707_s8, 2 }
   0xb   : > { %p186_p6 = scmp.eq.s32.totalorder %s10357_s30, 3  ;;  %p10360_p7 = scmp.ge.s32.totalorder %s11131_s28, 1 }
   0xc   : > { %p227_p8 = scmp.lt.s32.totalorder %s11131_s28, 5  ;;  %s15709_s8 = smov (%p33_p5, %s15707_s8), 0 }
   0xd   : > { %p11259_p9 = por %p186_p6, %p185_p4  ;;  %s166_s11 = ssub.s32 %s11127_s27, %s15709_s8 }
   0xe   : > { %p228_p10 = pnand %p10360_p7, %p227_p8  ;;  %s169_s12 = sadd.s32 1, %s11111_s23 }
   0xf   : > { %p167_p11 = scmp.eq.s32.totalorder %s166_s11, 0  ;;  %p257_p12 = scmp.lt.s32.totalorder (!%p228_p10), %s11119_s25, 1  ;;  %v283_v0 = vlaneseq (!%p228_p10)  ;;  %v11133_v1 = vmov (!%p228_p10), 1983009808   ;;  %v11134_v6 = vmov (!%p228_p10), 0   ;;  %vm354_vm0 = vcmask (!%p228_p10), 1039360  }
  0x10   : > { %231 = sbr.rel (%p228_p10) target bundleno = 2013 (0x7dd), region = 44  ;;  %v281_v2 = vunpack.c.l.s4 (!%p228_p10), %v11133_v1  ;;  %s254_s30 = sand.u32 (!%p228_p10), 1, %s11107_s22   ;;  %436 = vmatprep.mubr.bf16.mxu0 (!%p228_p10), %v11134_v6  ;;  %477 = vmatprep.mubr.bf16.mxu1 (!%p228_p10), %v11134_v6  ;;  %vm370_vm1 = vcmask (!%p228_p10), 1041408   ;;  %v11415_v35 = vld [vmem:[%s15592_s1 + $0x4] sm:$0xf] (!%p228_p10)  ;;  %vm366_vm2 = vcmask (!%p228_p10), 31744  }
  0x11   : > { %s11267_s13 = scalar_select %p167_p11, %s11111_s23, %s169_s12  }
  0x12   : > { %s263_s14 = smul.u32 (!%p228_p10), 1408, %s11115_s24  ;;  %v11272_v3 = vshrl.u32 (!%p228_p10), %v283_v0, 7  ;;  %v282_v4 = vunpack.c.0.s8 (!%p228_p10), %v281_v2  ;;  %11025 = vset.pattern.permute.xlu0 (!%p228_p10), %v11134_v6  ;;  %s11139_s19 = smov (!%p228_p10), 108   ;;  %v11141_v53 = vmov (!%p228_p10), 0.0   ;;  %vm11142_vm3 = vmmov (!%p228_p10), 0  }
  0x13   : > { %s11290_s12 = smul.u32 (!%p228_p10), 176, %s254_s30  ;;  %s11140_s20 = smov (!%p228_p10), 92   ;;  %v11489_v0 = vld [vmem:[%s15592_s1] sm:$0xf] (!%p228_p10)  ;;  %vm956_vm4 = vcmask (!%p228_p10), 1031168   ;;  %vm1286_vm5 = vcmask (!%p228_p10), 900096  }
  0x14   : > { %s11274_s16 = sshra.s32 (!%p228_p10), %s263_s14, 7  ;;  %v11278_v5 = vsub.s32 (!%p228_p10), %v282_v4, %v11272_v3  ;;  %s11135_s14 = smov (!%p228_p10), 127   ;;  %vm1616_vm6 = vcmask (!%p228_p10), 891904   ;;  %vm1946_vm7 = vcmask (!%p228_p10), 883712   ;;  %vm2276_vm8 = vcmask (!%p228_p10), 752640  }
  0x15   : > { %s10362_s18 = sshll.u32 (!%p228_p10), %s11274_s16, 1  ;;  %vm2606_vm9 = vcmask (!%p228_p10), 744448   ;;  %vm2936_vm10 = vcmask (!%p228_p10), 736256   ;;  %vm3275_vm11 = vcmask (!%p228_p10), 490496   ;;  %vm3605_vm12 = vcmask (!%p228_p10), 482304   ;;  %p10688_p13 = scmp.ne.s32.totalorder (!%p228_p10), %s11115_s24, 1 }
  0x16   : > { %vm3935_vm13 = vcmask (!%p228_p10), 474112   ;;  %vm4265_vm14 = vcmask (!%p228_p10), 343040   ;;  %vm4595_vm15 = vcmask (!%p228_p10), 334848  }
  0x17   : > { %s258_s15 = scalar_select %p257_p12, %s11119_s25, 1 }
  0x19   : > { %s10909_s17 = smul.u32 56, %s258_s15  ;;  %s11136_s15 = smov 126  }
  0x1b   : > { %s261_s29 = scalar_lea.vmem %s15591_s0, %s10909_s17  ;;  %s11137_s17 = smov 110  }
  0x1c   : > { %s11286_s11 = scalar_lea.vmem %s261_s29, %s10362_s18  ;;  %s11138_s18 = smov 109  }
  0x1d   : > { %v268_v7 = vld [vmem:[%s11286_s11] sm:$0xff]  ;;  %v11295_v8 = vld [vmem:[%s11286_s11 + $0x18] sm:$0xff]  ;;  %v269_v12 = vld [vmem:[%s11286_s11 + $0x8] sm:$0xff]  ;;  %s11144_s29 = smov 90  }
  0x1e   : > { %v11298_v9 = vrot.slane %v268_v7, %v11278_v5  ;;  %v6222_v10 = vcombine.high %v11295_v8, %v11295_v8  ;;  %v279_v11 = vcombine.high %v268_v7, %v268_v7  ;;  %v296_v16 = vcombine.high %v269_v12, %v269_v12  ;;  %v270_v21 = vld [vmem:[%s11286_s11 + $0x10] sm:$0xff] }
  0x1f   : > { %v11315_v17 = vrot.slane %v269_v12, %v11278_v5  ;;  %v313_v22 = vcombine.high %v270_v21, %v270_v21  ;;  %v11334_v23 = vrot.slane %v270_v21, %v11278_v5 }
  0x20   : > { %330 = vrot.lane.b32.xlu0 %v11298_v9, %s11135_s14  ;;  %v11306_v13 = vcombine.high %v11298_v9, %v11298_v9  ;;  %v11309_v14 = vrot.slane %v6222_v10, %v11278_v5  ;;  %v11312_v15 = vrot.slane %v279_v11, %v11278_v5  ;;  %v11324_v19 = vrot.slane %v296_v16, %v11278_v5 }
  0x21   : > { %v11328_v20 = vcombine.high %v11315_v17, %v11315_v17  ;;  %v11343_v25 = vrot.slane %v313_v22, %v11278_v5  ;;  %v11348_v26 = vcombine.high %v11334_v23, %v11334_v23  ;;  %v653_v58 = vsel %vm370_vm1, %v11298_v9, 0 }
  0x22   : > { %334 = vrot.lane.b32.xlu1 %v11312_v15, %s11135_s14  ;;  %v11320_v18 = vcombine.high %v11312_v15, %v11312_v15  ;;  %v11339_v24 = vcombine.high %v11324_v19, %v11324_v19  ;;  %v659_v62 = vsel %vm370_vm1, %v11312_v15, 0  ;;  %v665_v2 = vsel %vm370_vm1, %v11315_v17, 0 }
  0x23   : > { %v11354_v27 = vcombine.high %v11343_v25, %v11343_v25  ;;  %v671_v10 = vsel %vm370_vm1, %v11324_v19, 0  ;;  %v677_v16 = vsel %vm370_vm1, %v11334_v23, 0 }
  0x24   : > { %332 = vrot.lane.b32.xlu0 %v11306_v13, %s11135_s14 }
  0x26   : > { %336 = vrot.lane.b32.xlu1 %v11320_v18, %s11135_s14 }
  0x28   : > { %338 = vrot.lane.b32.xlu0 %v11315_v17, %s11135_s14 }
  0x2a   : > { %340 = vrot.lane.b32.xlu1 %v11328_v20, %s11135_s14 }
  0x2c   : > { %342 = vrot.lane.b32.xlu0 %v11324_v19, %s11135_s14 }
  0x2e   : > { %344 = vrot.lane.b32.xlu1 %v11339_v24, %s11135_s14 }
  0x30   : > { %346 = vrot.lane.b32.xlu0 %v11334_v23, %s11135_s14 }
  0x32   : > { %348 = vrot.lane.b32.xlu1 %v11348_v26, %s11135_s14 }
  0x34   : > { %350 = vrot.lane.b32.xlu0 %v11343_v25, %s11135_s14 }
  0x36   : > { %352 = vrot.lane.b32.xlu1 %v11354_v27, %s11135_s14  ;;  %s11149_s14 = smov 41  }
  0x38   : > { %932 = vrot.lane.b32.xlu0 %v11298_v9, %s11136_s15 }
  0x3a   : > { %934 = vrot.lane.b32.xlu1 %v11306_v13, %s11136_s15 }
  0x3c   : > { %936 = vrot.lane.b32.xlu0 %v11312_v15, %s11136_s15 }
  0x3e   : > { %938 = vrot.lane.b32.xlu1 %v11320_v18, %s11136_s15 }
  0x40   : > { %940 = vrot.lane.b32.xlu0 %v11315_v17, %s11136_s15 }
  0x42   : > { %942 = vrot.lane.b32.xlu1 %v11328_v20, %s11136_s15 }
  0x44   : > { %944 = vrot.lane.b32.xlu0 %v11324_v19, %s11136_s15 }
  0x46   : > { %946 = vrot.lane.b32.xlu1 %v11339_v24, %s11136_s15 }
  0x48   : > { %948 = vrot.lane.b32.xlu0 %v11334_v23, %s11136_s15 }
  0x4a   : > { %950 = vrot.lane.b32.xlu1 %v11348_v26, %s11136_s15 }
  0x4c   : > { %952 = vrot.lane.b32.xlu0 %v11343_v25, %s11136_s15 }
  0x4e   : > { %954 = vrot.lane.b32.xlu1 %v11354_v27, %s11136_s15  ;;  %s11147_s15 = smov 58  }
  0x50   : > { %1262 = vrot.lane.b32.xlu0 %v11298_v9, %s11137_s17 }
  0x52   : > { %1264 = vrot.lane.b32.xlu1 %v11306_v13, %s11137_s17 }
  0x54   : > { %1266 = vrot.lane.b32.xlu0 %v11312_v15, %s11137_s17 }
  0x56   : > { %1268 = vrot.lane.b32.xlu1 %v11320_v18, %s11137_s17 }
  0x58   : > { %1270 = vrot.lane.b32.xlu0 %v11315_v17, %s11137_s17 }
  0x5a   : > { %1272 = vrot.lane.b32.xlu1 %v11328_v20, %s11137_s17 }
  0x5c   : > { %1274 = vrot.lane.b32.xlu0 %v11324_v19, %s11137_s17 }
  0x5e   : > { %1276 = vrot.lane.b32.xlu1 %v11339_v24, %s11137_s17 }
  0x60   : > { %1278 = vrot.lane.b32.xlu0 %v11334_v23, %s11137_s17 }
  0x62   : > { %1280 = vrot.lane.b32.xlu1 %v11348_v26, %s11137_s17 }
  0x64   : > { %1282 = vrot.lane.b32.xlu0 %v11343_v25, %s11137_s17 }
  0x66   : > { %1284 = vrot.lane.b32.xlu1 %v11354_v27, %s11137_s17  ;;  %s11145_s17 = smov 60  }
  0x68   : > { %1592 = vrot.lane.b32.xlu0 %v11298_v9, %s11138_s18 }
  0x6a   : > { %1594 = vrot.lane.b32.xlu1 %v11306_v13, %s11138_s18 }
  0x6c   : > { %1596 = vrot.lane.b32.xlu0 %v11312_v15, %s11138_s18 }
  0x6e   : > { %1598 = vrot.lane.b32.xlu1 %v11320_v18, %s11138_s18 }
  0x70   : > { %1600 = vrot.lane.b32.xlu0 %v11315_v17, %s11138_s18 }
  0x72   : > { %1602 = vrot.lane.b32.xlu1 %v11328_v20, %s11138_s18 }
  0x74   : > { %1604 = vrot.lane.b32.xlu0 %v11324_v19, %s11138_s18 }
  0x76   : > { %1606 = vrot.lane.b32.xlu1 %v11339_v24, %s11138_s18 }
  0x78   : > { %1608 = vrot.lane.b32.xlu0 %v11334_v23, %s11138_s18 }
  0x7a   : > { %1610 = vrot.lane.b32.xlu1 %v11348_v26, %s11138_s18 }
  0x7c   : > { %1612 = vrot.lane.b32.xlu0 %v11343_v25, %s11138_s18 }
  0x7e   : > { %1614 = vrot.lane.b32.xlu1 %v11354_v27, %s11138_s18  ;;  %s11143_s18 = smov 91  }
  0x80   : > { %1922 = vrot.lane.b32.xlu0 %v11298_v9, %s11139_s19 }
  0x82   : > { %1924 = vrot.lane.b32.xlu1 %v11306_v13, %s11139_s19 }
  0x84   : > { %1926 = vrot.lane.b32.xlu0 %v11312_v15, %s11139_s19 }
  0x86   : > { %1928 = vrot.lane.b32.xlu1 %v11320_v18, %s11139_s19 }
  0x88   : > { %1930 = vrot.lane.b32.xlu0 %v11315_v17, %s11139_s19 }
  0x8a   : > { %1932 = vrot.lane.b32.xlu1 %v11328_v20, %s11139_s19 }
  0x8c   : > { %1934 = vrot.lane.b32.xlu0 %v11324_v19, %s11139_s19 }
  0x8e   : > { %1936 = vrot.lane.b32.xlu1 %v11339_v24, %s11139_s19 }
  0x90   : > { %1938 = vrot.lane.b32.xlu0 %v11334_v23, %s11139_s19 }
  0x92   : > { %v331_v28 = vpop.permute.xlu0 %330  ;;  %1940 = vrot.lane.b32.xlu1 %v11348_v26, %s11139_s19 }
  0x94   : > { %1942 = vrot.lane.b32.xlu0 %v11343_v25, %s11139_s19  ;;  %v335_v29 = vpop.permute.xlu1 %334 }
  0x96   : > { %v333_v30 = vpop.permute.xlu0 %332  ;;  %1944 = vrot.lane.b32.xlu1 %v11354_v27, %s11139_s19  ;;  %s11148_s19 = smov 42  }
  0x97   : > { %v356_v31 = vsel %vm354_vm0, %v333_v30, %v335_v29  ;;  %v355_v32 = vsel %vm354_vm0, %v331_v28, %v333_v30 }
  0x98   : > { %10364 = vmatprep.subr.msk.bf16.mxu0 %vm370_vm1, %v356_v31  ;;  %v372_v33 = vsel %vm370_vm1, %v355_v32, 0  ;;  %2252 = vrot.lane.b32.xlu0 %v11298_v9, %s11140_s20  ;;  %v337_v34 = vpop.permute.xlu1 %336 }
  0x99   : > { %405 = vmatpush1.bf16.msra.mxu0 %v372_v33  ;;  %v357_v37 = vsel %vm354_vm0, %v335_v29, %v337_v34  ;;  %v683_v29 = vsel %vm370_vm1, %v11343_v25, 0 }
  0x9a   : > { %v339_v36 = vpop.permute.xlu0 %338  ;;  %2254 = vrot.lane.b32.xlu1 %v11306_v13, %s11140_s20  ;;  %v378_v39 = vsel %vm370_vm1, %v357_v37, 0 }
  0x9b   : > { %v358_v38 = vsel %vm354_vm0, %v337_v34, %v339_v36 }
  0x9c   : > { %10365 = vmatmul.mubr.msk.bf16.vlgmr.msra.gmra.mrb[0].mxu0 %vm366_vm2, %v11415_v35  ;;  %10366 = vmatprep.subr.msk.bf16.mxu1 %vm370_vm1, %v358_v38  ;;  %v341_v40 = vpop.permute.xlu1 %340 }
  0x9d   : > { %446 = vmatpush1.bf16.msra.mxu1 %v378_v39  ;;  %518 = vmatprep.mubr.bf16.mxu0 %v11134_v6  ;;  %v359_v41 = vsel %vm354_vm0, %v339_v36, %v341_v40 }
  0x9e   : > { %v343_v42 = vpop.permute.xlu0 %342  ;;  %2256 = vrot.lane.b32.xlu0 %v11312_v15, %s11140_s20  ;;  %2258 = vrot.lane.b32.xlu1 %v11320_v18, %s11140_s20  ;;  %v384_v44 = vsel %vm370_vm1, %v359_v41, 0 }
  0x9f   : > { %v360_v43 = vsel %vm354_vm0, %v341_v40, %v343_v42 }
  0xa0   : > { %10367 = vmatmul.mubr.msk.bf16.vlgmr.msra.gmra.mrb[0].mxu1 %vm366_vm2, %v11415_v35  ;;  %10368 = vmatprep.subr.msk.bf16.mxu0 %vm370_vm1, %v360_v43  ;;  %v345_v45 = vpop.permute.xlu1 %344  ;;  %v11562_v43 = vld [vmem:[%s15592_s1 + $0x8] sm:$0xf] }
  0xa1   : > { %487 = vmatpush1.bf16.msra.mxu0 %v384_v44  ;;  %559 = vmatprep.mubr.bf16.mxu1 %v11134_v6  ;;  %v361_v46 = vsel %vm354_vm0, %v343_v42, %v345_v45 }
  0xa2   : > { %v347_v47 = vpop.permute.xlu0 %346  ;;  %2260 = vrot.lane.b32.xlu0 %v11315_v17, %s11140_s20  ;;  %2262 = vrot.lane.b32.xlu1 %v11328_v20, %s11140_s20  ;;  %v390_v49 = vsel %vm370_vm1, %v361_v46, 0 }
  0xa3   : > { %v362_v48 = vsel %vm354_vm0, %v345_v45, %v347_v47 }
  0xa4   : > { %10369 = vmatmul.mubr.msk.bf16.vlgmr.msra.gmra.mrb[4].mxu0 %vm366_vm2, %v11415_v35  ;;  %10370 = vmatprep.subr.msk.bf16.mxu1 %vm370_vm1, %v362_v48  ;;  %v349_v50 = vpop.permute.xlu1 %348 }
  0xa5   : > { %528 = vmatpush1.bf16.msra.mxu1 %v390_v49  ;;  %600 = vmatprep.mubr.bf16.mxu0 %v11134_v6  ;;  %v363_v51 = vsel %vm354_vm0, %v347_v47, %v349_v50 }
  0xa6   : > { %v351_v52 = vpop.permute.xlu0 %350  ;;  %10746 = vmatprep.subr.bf16.mxu1 %v11141_v53  ;;  %2264 = vrot.lane.b32.xlu0 %v11324_v19, %s11140_s20  ;;  %v396_v55 = vsel %vm370_vm1, %v363_v51, 0 }
  0xa7   : > { %v364_v54 = vsel %vm354_vm0, %v349_v50, %v351_v52  ;;  %2266 = vrot.lane.b32.xlu1 %v11339_v24, %s11140_s20 }
  0xa8   : > { %10371 = vmatmul.mubr.msk.bf16.vlgmr.msra.gmra.mrb[4].mxu1 %vm366_vm2, %v11415_v35  ;;  %10372 = vmatprep.subr.msk.bf16.mxu0 %vm370_vm1, %v364_v54  ;;  %v353_v56 = vpop.permute.xlu1 %352 }
  0xa9   : > { %569 = vmatpush1.bf16.msra.mxu0 %v396_v55  ;;  %10748 = vmatprep.mubr.msk.bf16.mxu1 %vm11142_vm3, %v11141_v53  ;;  %v365_v57 = vsel %vm354_vm0, %v351_v52, %v353_v56  ;;  %vm4925_vm0 = vcmask 326656  }
  0xaa   : > { %10375 = vmatprep.subr.msk.bf16.mxu0 %vm370_vm1, %v11306_v13  ;;  %2268 = vrot.lane.b32.xlu0 %v11334_v23, %s11140_s20  ;;  %v933_v59 = vpop.permute.xlu0 %932  ;;  %v402_v60 = vsel %vm370_vm1, %v365_v57, 0 }
  0xab   : > { %2270 = vrot.lane.b32.xlu1 %v11348_v26, %s11140_s20  ;;  %10747 = vmatpush3.bf16.msra.mxu1 %v402_v60 }
  0xac   : > { %10373 = vmatmul.mubr.msk.bf16.vlgmr.msra.gmra.mrb[8].mxu0 %vm366_vm2, %v11415_v35  ;;  %v935_v61 = vpop.permute.xlu1 %934  ;;  %10377 = vmatprep.subr.msk.bf16.mxu1 %vm370_vm1, %v11320_v18 }
  0xad   : > { %686 = vmatpush1.bf16.msra.mxu0 %v653_v58  ;;  %717 = vmatprep.mubr.bf16.mxu0 %v11134_v6  ;;  %v957_v31 = vsel %vm956_vm4, %v933_v59, %v935_v61 }
  0xae   : > { %10379 = vmatprep.subr.msk.bf16.mxu0 %vm370_vm1, %v11328_v20  ;;  %v937_v63 = vpop.permute.xlu0 %936  ;;  %2272 = vrot.lane.b32.xlu0 %v11343_v25, %s11140_s20  ;;  %v972_v34 = vsel %vm370_vm1, %v957_v31, 0 }
  0xaf   : > { %2274 = vrot.lane.b32.xlu1 %v11354_v27, %s11140_s20  ;;  %v958_v22 = vsel %vm956_vm4, %v935_v61, %v937_v63  ;;  %s11146_s20 = smov 59  }
  0xb0   : > { %10749 = vmatmul.mubr.msk.bf16.vlgmr.msra.gmra.mrb[8].mxu1 %vm366_vm2, %v11415_v35  ;;  %v939_v1 = vpop.permute.xlu1 %938 }
  0xb1   : > { %727 = vmatpush1.bf16.msra.mxu1 %v659_v62  ;;  %758 = vmatprep.mubr.bf16.mxu1 %v11134_v6  ;;  %v959_v36 = vsel %vm956_vm4, %v937_v63, %v939_v1 }
  0xb2   : > { %10381 = vmatprep.subr.msk.bf16.mxu1 %vm370_vm1, %v11339_v24  ;;  %v941_v4 = vpop.permute.xlu0 %940  ;;  %2582 = vrot.lane.b32.xlu0 %v11298_v9, %s11143_s18  ;;  %v978_v39 = vsel %vm370_vm1, %v959_v36, 0 }
  0xb3   : > { %2584 = vrot.lane.b32.xlu1 %v11306_v13, %s11143_s18  ;;  %v960_v32 = vsel %vm956_vm4, %v939_v1, %v941_v4 }
  0xb4   : > { %10376 = vmatmul.mubr.msk.bf16.vlgmr.msra.gmra.mrb[12].mxu0 %vm366_vm2, %v11489_v0  ;;  %v943_v7 = vpop.permute.xlu1 %942 }
  0xb5   : > { %768 = vmatpush1.bf16.msra.mxu0 %v665_v2  ;;  %799 = vmatprep.mubr.bf16.mxu0 %v11134_v6  ;;  %v961_v41 = vsel %vm956_vm4, %v941_v4, %v943_v7 }
  0xb6   : > { %10383 = vmatprep.subr.msk.bf16.mxu0 %vm370_vm1, %v11348_v26  ;;  %v945_v11 = vpop.permute.xlu0 %944  ;;  %2586 = vrot.lane.b32.xlu0 %v11312_v15, %s11143_s18  ;;  %v984_v45 = vsel %vm370_vm1, %v961_v41, 0 }
  0xb7   : > { %2588 = vrot.lane.b32.xlu1 %v11320_v18, %s11143_s18  ;;  %v962_v37 = vsel %vm956_vm4, %v943_v7, %v945_v11 }
  0xb8   : > { %10378 = vmatmul.mubr.msk.bf16.vlgmr.msra.gmra.mrb[12].mxu1 %vm366_vm2, %v11489_v0  ;;  %v947_v12 = vpop.permute.xlu1 %946 }
  0xb9   : > { %809 = vmatpush1.bf16.msra.mxu1 %v671_v10  ;;  %840 = vmatprep.mubr.bf16.mxu1 %v11134_v6  ;;  %v963_v47 = vsel %vm956_vm4, %v945_v11, %v947_v12 }
  0xba   : > { %10752 = vmatprep.subr.bf16.mxu1 %v11141_v53  ;;  %v949_v21 = vpop.permute.xlu0 %948  ;;  %2590 = vrot.lane.b32.xlu0 %v11315_v17, %s11143_s18  ;;  %v990_v50 = vsel %vm370_vm1, %v963_v47, 0 }
  0xbb   : > { %2592 = vrot.lane.b32.xlu1 %v11328_v20, %s11143_s18  ;;  %v964_v42 = vsel %vm956_vm4, %v947_v12, %v949_v21 }
  0xbc   : > { %10380 = vmatmul.mubr.msk.bf16.vlgmr.msra.gmra.mrb[16].mxu0 %vm366_vm2, %v11489_v0  ;;  %v951_v28 = vpop.permute.xlu1 %950 }
  0xbd   : > { %850 = vmatpush1.bf16.msra.mxu0 %v677_v16  ;;  %881 = vmatprep.mubr.bf16.mxu0 %v11134_v6  ;;  %v965_v52 = vsel %vm956_vm4, %v949_v21, %v951_v28  ;;  %v11633_v16 = vld [vmem:[%s15592_s1 + $0xc] sm:$0xf] }
  0xbe   : > { %10387 = vmatprep.subr.msk.bf16.mxu0 %vm370_vm1, %v958_v22  ;;  %v953_v30 = vpop.permute.xlu0 %952  ;;  %2594 = vrot.lane.b32.xlu0 %v11324_v19, %s11143_s18 }
  0xbf   : > { %2596 = vrot.lane.b32.xlu1 %v11339_v24, %s11143_s18  ;;  %v966_v48 = vsel %vm956_vm4, %v951_v28, %v953_v30 }
  0xc0   : > { %10382 = vmatmul.mubr.msk.bf16.vlgmr.msra.gmra.mrb[16].mxu1 %vm366_vm2, %v11489_v0  ;;  %v955_v33 = vpop.permute.xlu1 %954 }
  0xc1   : > { %10753 = vmatpush3.bf16.msra.mxu1 %v683_v29  ;;  %10754 = vmatprep.mubr.msk.bf16.mxu1 %vm11142_vm3, %v11141_v53  ;;  %v967_v55 = vsel %vm956_vm4, %v953_v30, %v955_v33  ;;  %vm5255_vm4 = vcmask 195584  }
  0xc2   : > { %10389 = vmatprep.subr.msk.bf16.mxu1 %vm370_vm1, %v960_v32  ;;  %v1263_v35 = vpop.permute.xlu0 %1262  ;;  %2598 = vrot.lane.b32.xlu0 %v11334_v23, %s11143_s18  ;;  %v1002_v58 = vsel %vm370_vm1, %v967_v55, 0 }
  0xc3   : > { %2600 = vrot.lane.b32.xlu1 %v11348_v26, %s11143_s18 }
  0xc4   : > { %10384 = vmatmul.mubr.msk.bf16.vlgmr.msra.gmra.mrb[20].mxu0 %vm366_vm2, %v11489_v0  ;;  %v1265_v38 = vpop.permute.xlu1 %1264 }
  0xc5   : > { %1005 = vmatpush1.bf16.msra.mxu0 %v972_v34  ;;  %1036 = vmatprep.mubr.bf16.mxu0 %v11134_v6  ;;  %v1287_v60 = vsel %vm1286_vm5, %v1263_v35, %v1265_v38 }
  0xc6   : > { %10391 = vmatprep.subr.msk.bf16.mxu0 %vm370_vm1, %v962_v37  ;;  %v1267_v40 = vpop.permute.xlu0 %1266  ;;  %2602 = vrot.lane.b32.xlu0 %v11343_v25, %s11143_s18  ;;  %v1302_v63 = vsel %vm370_vm1, %v1287_v60, 0 }
  0xc7   : > { %2604 = vrot.lane.b32.xlu1 %v11354_v27, %s11143_s18  ;;  %v1288_v56 = vsel %vm1286_vm5, %v1265_v38, %v1267_v40  ;;  %s11150_s18 = smov 40  }
  0xc8   : > { %10755 = vmatmul.mubr.msk.bf16.vlgmr.msra.gmra.mrb[20].mxu1 %vm366_vm2, %v11489_v0  ;;  %v1269_v44 = vpop.permute.xlu1 %1268 }
  0xc9   : > { %1046 = vmatpush1.bf16.msra.mxu1 %v978_v39  ;;  %1077 = vmatprep.mubr.bf16.mxu1 %v11134_v6  ;;  %v1289_v1 = vsel %vm1286_vm5, %v1267_v40, %v1269_v44 }
  0xca   : > { %10393 = vmatprep.subr.msk.bf16.mxu1 %vm370_vm1, %v964_v42  ;;  %v1271_v46 = vpop.permute.xlu0 %1270  ;;  %2912 = vrot.lane.b32.xlu0 %v11298_v9, %s11144_s29  ;;  %v1308_v7 = vsel %vm370_vm1, %v1289_v1, 0 }
  0xcb   : > { %2914 = vrot.lane.b32.xlu1 %v11306_v13, %s11144_s29  ;;  %v996_v13 = vsel %vm370_vm1, %v965_v52, 0  ;;  %v1290_v61 = vsel %vm1286_vm5, %v1269_v44, %v1271_v46 }
  0xcc   : > { %10388 = vmatmul.mubr.msk.bf16.vlgmr.msra.gmra.mrb[24].mxu0 %vm366_vm2, %v11562_v43  ;;  %v1273_v49 = vpop.permute.xlu1 %1272 }
  0xcd   : > { %1087 = vmatpush1.bf16.msra.mxu0 %v984_v45  ;;  %1118 = vmatprep.mubr.bf16.mxu0 %v11134_v6  ;;  %v1291_v11 = vsel %vm1286_vm5, %v1271_v46, %v1273_v49  ;;  %v11680_v45 = vrot.slane %v11295_v8, %v11278_v5 }
  0xce   : > { %10395 = vmatprep.subr.msk.bf16.mxu0 %vm370_vm1, %v966_v48  ;;  %v1275_v51 = vpop.permute.xlu0 %1274  ;;  %2916 = vrot.lane.b32.xlu0 %v11312_v15, %s11144_s29  ;;  %v1314_v22 = vsel %vm370_vm1, %v1291_v11, 0 }
  0xcf   : > { %2918 = vrot.lane.b32.xlu1 %v11320_v18, %s11144_s29  ;;  %v1292_v2 = vsel %vm1286_vm5, %v1273_v49, %v1275_v51  ;;  %v11694_v5 = vcombine.high %v11680_v45, %v11680_v45 }
  0xd0   : > { %10390 = vmatmul.mubr.msk.bf16.vlgmr.msra.gmra.mrb[24].mxu1 %vm366_vm2, %v11562_v43  ;;  %v1277_v9 = vpop.permute.xlu1 %1276 }
  0xd1   : > { %1128 = vmatpush1.bf16.msra.mxu1 %v990_v50  ;;  %1159 = vmatprep.mubr.bf16.mxu1 %v11134_v6  ;;  %v1293_v29 = vsel %vm1286_vm5, %v1275_v51, %v1277_v9 }
  0xd2   : > { %10758 = vmatprep.subr.bf16.mxu1 %v11141_v53  ;;  %v1279_v54 = vpop.permute.xlu0 %1278  ;;  %2920 = vrot.lane.b32.xlu0 %v11315_v17, %s11144_s29  ;;  %v1320_v32 = vsel %vm370_vm1, %v1293_v29, 0 }
  0xd3   : > { %2922 = vrot.lane.b32.xlu1 %v11328_v20, %s11144_s29  ;;  %v1294_v12 = vsel %vm1286_vm5, %v1277_v9, %v1279_v54 }
  0xd4   : > { %10392 = vmatmul.mubr.msk.bf16.vlgmr.msra.gmra.mrb[28].mxu0 %vm366_vm2, %v11562_v43  ;;  %v1281_v57 = vpop.permute.xlu1 %1280 }
  0xd5   : > { %1169 = vmatpush1.bf16.msra.mxu0 %v996_v13  ;;  %1200 = vmatprep.mubr.bf16.mxu0 %v11134_v6  ;;  %v1295_v34 = vsel %vm1286_vm5, %v1279_v54, %v1281_v57  ;;  %v11712_v54 = vld [vmem:[%s15592_s1 + $0x10] sm:$0xf] }
  0xd6   : > { %10399 = vmatprep.subr.msk.bf16.mxu0 %vm370_vm1, %v1288_v56  ;;  %v1283_v59 = vpop.permute.xlu0 %1282  ;;  %2924 = vrot.lane.b32.xlu0 %v11324_v19, %s11144_s29  ;;  %v1326_v36 = vsel %vm370_vm1, %v1295_v34, 0 }
  0xd7   : > { %2926 = vrot.lane.b32.xlu1 %v11339_v24, %s11144_s29  ;;  %v1296_v30 = vsel %vm1286_vm5, %v1281_v57, %v1283_v59 }
  0xd8   : > { %10394 = vmatmul.mubr.msk.bf16.vlgmr.msra.gmra.mrb[28].mxu1 %vm366_vm2, %v11562_v43  ;;  %v1285_v62 = vpop.permute.xlu1 %1284 }
  0xd9   : > { %10759 = vmatpush3.bf16.msra.mxu1 %v1002_v58  ;;  %10760 = vmatprep.mubr.msk.bf16.mxu1 %vm11142_vm3, %v11141_v53  ;;  %v1297_v38 = vsel %vm1286_vm5, %v1283_v59, %v1285_v62  ;;  %vm5585_vm5 = vcmask 187392  }
  0xda   : > { %10401 = vmatprep.subr.msk.bf16.mxu1 %vm370_vm1, %v1290_v61  ;;  %v1593_v0 = vpop.permute.xlu0 %1592  ;;  %2928 = vrot.lane.b32.xlu0 %v11334_v23, %s11144_s29  ;;  %v1332_v41 = vsel %vm370_vm1, %v1297_v38, 0 }
  0xdb   : > { %2930 = vrot.lane.b32.xlu1 %v11348_v26, %s11144_s29 }
  0xdc   : > { %10396 = vmatmul.mubr.msk.bf16.vlgmr.msra.gmra.mrb[32].mxu0 %vm366_vm2, %v11562_v43  ;;  %v1595_v4 = vpop.permute.xlu1 %1594 }
  0xdd   : > { %1335 = vmatpush1.bf16.msra.mxu0 %v1302_v63  ;;  %1366 = vmatprep.mubr.bf16.mxu0 %v11134_v6 }
  0xde   : > { %10403 = vmatprep.subr.msk.bf16.mxu0 %vm370_vm1, %v1292_v2  ;;  %v1597_v10 = vpop.permute.xlu0 %1596  ;;  %2932 = vrot.lane.b32.xlu0 %v11343_v25, %s11144_s29 }
  0xdf   : > { %2934 = vrot.lane.b32.xlu1 %v11354_v27, %s11144_s29  ;;  %v1618_v39 = vsel %vm1616_vm6, %v1595_v4, %v1597_v10  ;;  %s11151_s29 = smov 24  }
  0xe0   : > { %10761 = vmatmul.mubr.msk.bf16.vlgmr.msra.gmra.mrb[32].mxu1 %vm366_vm2, %v11562_v43  ;;  %v1599_v21 = vpop.permute.xlu1 %1598  ;;  %v1617_v43 = vsel %vm1616_vm6, %v1593_v0, %v1595_v4 }
  0xe1   : > { %1376 = vmatpush1.bf16.msra.mxu1 %v1308_v7  ;;  %1407 = vmatprep.mubr.bf16.mxu1 %v11134_v6  ;;  %v1632_v47 = vsel %vm370_vm1, %v1617_v43, 0  ;;  %v1619_v49 = vsel %vm1616_vm6, %v1597_v10, %v1599_v21 }
  0xe2   : > { %10405 = vmatprep.subr.msk.bf16.mxu1 %vm370_vm1, %v1294_v12  ;;  %v1601_v28 = vpop.permute.xlu0 %1600  ;;  %3251 = vrot.lane.b32.xlu0 %v11312_v15, %s11145_s17  ;;  %v1638_v51 = vsel %vm370_vm1, %v1619_v49, 0 }
  0xe3   : > { %3253 = vrot.lane.b32.xlu1 %v11320_v18, %s11145_s17  ;;  %v1620_v44 = vsel %vm1616_vm6, %v1599_v21, %v1601_v28 }
  0xe4   : > { %10400 = vmatmul.mubr.msk.bf16.vlgmr.msra.gmra.mrb[36].mxu0 %vm366_vm2, %v11633_v16  ;;  %v1603_v31 = vpop.permute.xlu1 %1602 }
  0xe5   : > { %1417 = vmatpush1.bf16.msra.mxu0 %v1314_v22  ;;  %1448 = vmatprep.mubr.bf16.mxu0 %v11134_v6  ;;  %v1621_v9 = vsel %vm1616_vm6, %v1601_v28, %v1603_v31 }
  0xe6   : > { %10407 = vmatprep.subr.msk.bf16.mxu0 %vm370_vm1, %v1296_v30  ;;  %v1605_v33 = vpop.permute.xlu0 %1604  ;;  %3255 = vrot.lane.b32.xlu0 %v11315_v17, %s11145_s17  ;;  %v1644_v56 = vsel %vm370_vm1, %v1621_v9, 0 }
  0xe7   : > { %3257 = vrot.lane.b32.xlu1 %v11328_v20, %s11145_s17  ;;  %v1622_v50 = vsel %vm1616_vm6, %v1603_v31, %v1605_v33 }
  0xe8   : > { %10402 = vmatmul.mubr.msk.bf16.vlgmr.msra.gmra.mrb[36].mxu1 %vm366_vm2, %v11633_v16  ;;  %v1607_v35 = vpop.permute.xlu1 %1606 }
  0xe9   : > { %1458 = vmatpush1.bf16.msra.mxu1 %v1320_v32  ;;  %1489 = vmatprep.mubr.bf16.mxu1 %v11134_v6  ;;  %v1623_v58 = vsel %vm1616_vm6, %v1605_v33, %v1607_v35 }
  0xea   : > { %10764 = vmatprep.subr.bf16.mxu1 %v11141_v53  ;;  %v1609_v37 = vpop.permute.xlu0 %1608  ;;  %3259 = vrot.lane.b32.xlu0 %v11324_v19, %s11145_s17  ;;  %v1650_v61 = vsel %vm370_vm1, %v1623_v58, 0 }
  0xeb   : > { %3261 = vrot.lane.b32.xlu1 %v11339_v24, %s11145_s17  ;;  %v1624_v13 = vsel %vm1616_vm6, %v1607_v35, %v1609_v37 }
  0xec   : > { %10404 = vmatmul.mubr.msk.bf16.vlgmr.msra.gmra.mrb[40].mxu0 %vm366_vm2, %v11633_v16  ;;  %v1611_v40 = vpop.permute.xlu1 %1610 }
  0xed   : > { %1499 = vmatpush1.bf16.msra.mxu0 %v1326_v36  ;;  %1530 = vmatprep.mubr.bf16.mxu0 %v11134_v6  ;;  %v1625_v63 = vsel %vm1616_vm6, %v1609_v37, %v1611_v40  ;;  %v11783_v37 = vld [vmem:[%s15592_s1 + $0x14] sm:$0xf] }
  0xee   : > { %10411 = vmatprep.subr.msk.bf16.mxu0 %vm370_vm1, %v1618_v39  ;;  %v1613_v42 = vpop.permute.xlu0 %1612  ;;  %3263 = vrot.lane.b32.xlu0 %v11334_v23, %s11145_s17  ;;  %v1656_v1 = vsel %vm370_vm1, %v1625_v63, 0 }
  0xef   : > { %3265 = vrot.lane.b32.xlu1 %v11348_v26, %s11145_s17  ;;  %v1626_v59 = vsel %vm1616_vm6, %v1611_v40, %v1613_v42 }
  0xf0   : > { %10406 = vmatmul.mubr.msk.bf16.vlgmr.msra.gmra.mrb[40].mxu1 %vm366_vm2, %v11633_v16  ;;  %v1615_v46 = vpop.permute.xlu1 %1614 }
  0xf1   : > { %10765 = vmatpush3.bf16.msra.mxu1 %v1332_v41  ;;  %10766 = vmatprep.mubr.msk.bf16.mxu1 %vm11142_vm3, %v11141_v53  ;;  %v1627_v4 = vsel %vm1616_vm6, %v1613_v42, %v1615_v46  ;;  %vm5915_vm6 = vcmask 179200  }
  0xf2   : > { %10413 = vmatprep.subr.msk.bf16.mxu1 %vm370_vm1, %v1620_v44  ;;  %v1923_v48 = vpop.permute.xlu0 %1922  ;;  %3267 = vrot.lane.b32.xlu0 %v11343_v25, %s11145_s17  ;;  %v1662_v11 = vsel %vm370_vm1, %v1627_v4, 0 }
  0xf3   : > { %3269 = vrot.lane.b32.xlu1 %v11354_v27, %s11145_s17 }
  0xf4   : > { %10408 = vmatmul.mubr.msk.bf16.vlgmr.msra.gmra.mrb[44].mxu0 %vm366_vm2, %v11633_v16  ;;  %v1925_v8 = vpop.permute.xlu1 %1924 }
  0xf5   : > { %1665 = vmatpush1.bf16.msra.mxu0 %v1632_v47  ;;  %1696 = vmatprep.mubr.bf16.mxu0 %v11134_v6 }
  0xf6   : > { %10415 = vmatprep.subr.msk.bf16.mxu0 %vm370_vm1, %v1622_v50  ;;  %v1927_v52 = vpop.permute.xlu0 %1926  ;;  %3271 = vrot.lane.b32.xlu0 %v11680_v45, %s11145_s17 }
  0xf7   : > { %3273 = vrot.lane.b32.xlu1 %v11694_v5, %s11145_s17  ;;  %v1948_v7 = vsel %vm1946_vm7, %v1925_v8, %v1927_v52  ;;  %s11152_s17 = smov 23  }
  0xf8   : > { %10767 = vmatmul.mubr.msk.bf16.vlgmr.msra.gmra.mrb[44].mxu1 %vm366_vm2, %v11633_v16  ;;  %v1929_v55 = vpop.permute.xlu1 %1928  ;;  %v1947_v16 = vsel %vm1946_vm7, %v1923_v48, %v1925_v8 }
  0xf9   : > { %1706 = vmatpush1.bf16.msra.mxu1 %v1638_v51  ;;  %1737 = vmatprep.mubr.bf16.mxu1 %v11134_v6  ;;  %v1962_v28 = vsel %vm370_vm1, %v1947_v16, 0  ;;  %v1949_v30 = vsel %vm1946_vm7, %v1927_v52, %v1929_v55 }
  0xfa   : > { %10417 = vmatprep.subr.msk.bf16.mxu1 %vm370_vm1, %v1624_v13  ;;  %v1931_v57 = vpop.permute.xlu0 %1930  ;;  %3581 = vrot.lane.b32.xlu0 %v11312_v15, %s11146_s20  ;;  %v1968_v33 = vsel %vm370_vm1, %v1949_v30, 0 }
  0xfb   : > { %3583 = vrot.lane.b32.xlu1 %v11320_v18, %s11146_s20  ;;  %v1950_v21 = vsel %vm1946_vm7, %v1929_v55, %v1931_v57 }
  0xfc   : > { %10412 = vmatmul.mubr.msk.bf16.vlgmr.msra.gmra.mrb[48].mxu0 %vm366_vm2, %v11712_v54  ;;  %v1933_v60 = vpop.permute.xlu1 %1932 }
  0xfd   : > { %1747 = vmatpush1.bf16.msra.mxu0 %v1644_v56  ;;  %1778 = vmatprep.mubr.bf16.mxu0 %v11134_v6  ;;  %v1951_v34 = vsel %vm1946_vm7, %v1931_v57, %v1933_v60 }
  0xfe   : > { %10419 = vmatprep.subr.msk.bf16.mxu0 %vm370_vm1, %v1626_v59  ;;  %v1935_v62 = vpop.permute.xlu0 %1934  ;;  %3585 = vrot.lane.b32.xlu0 %v11315_v17, %s11146_s20  ;;  %v1974_v39 = vsel %vm370_vm1, %v1951_v34, 0 }
  0xff   : > { %3587 = vrot.lane.b32.xlu1 %v11328_v20, %s11146_s20  ;;  %v1952_v31 = vsel %vm1946_vm7, %v1933_v60, %v1935_v62 }
 0x100   : > { %10414 = vmatmul.mubr.msk.bf16.vlgmr.msra.gmra.mrb[48].mxu1 %vm366_vm2, %v11712_v54  ;;  %v1937_v0 = vpop.permute.xlu1 %1936 }
 0x101   : > { %1788 = vmatpush1.bf16.msra.mxu1 %v1650_v61  ;;  %1819 = vmatprep.mubr.bf16.mxu1 %v11134_v6  ;;  %v1953_v40 = vsel %vm1946_vm7, %v1935_v62, %v1937_v0 }
 0x102   : > { %10770 = vmatprep.subr.bf16.mxu1 %v11141_v53  ;;  %v1939_v2 = vpop.permute.xlu0 %1938  ;;  %3589 = vrot.lane.b32.xlu0 %v11324_v19, %s11146_s20  ;;  %v1980_v44 = vsel %vm370_vm1, %v1953_v40, 0 }
 0x103   : > { %3591 = vrot.lane.b32.xlu1 %v11339_v24, %s11146_s20  ;;  %v1954_v35 = vsel %vm1946_vm7, %v1937_v0, %v1939_v2 }
 0x104   : > { %10416 = vmatmul.mubr.msk.bf16.vlgmr.msra.gmra.mrb[52].mxu0 %vm366_vm2, %v11712_v54  ;;  %v1941_v10 = vpop.permute.xlu1 %1940 }
 0x105   : > { %1829 = vmatpush1.bf16.msra.mxu0 %v1656_v1  ;;  %1860 = vmatprep.mubr.bf16.mxu0 %v11134_v6  ;;  %v1955_v46 = vsel %vm1946_vm7, %v1939_v2, %v1941_v10  ;;  %v11854_v1 = vld [vmem:[%s15592_s1 + $0x18] sm:$0xf] }
 0x106   : > { %10423 = vmatprep.subr.msk.bf16.mxu0 %vm370_vm1, %v1948_v7  ;;  %v1943_v12 = vpop.permute.xlu0 %1942  ;;  %3593 = vrot.lane.b32.xlu0 %v11334_v23, %s11146_s20  ;;  %v1986_v49 = vsel %vm370_vm1, %v1955_v46, 0 }
 0x107   : > { %3595 = vrot.lane.b32.xlu1 %v11348_v26, %s11146_s20  ;;  %v1956_v41 = vsel %vm1946_vm7, %v1941_v10, %v1943_v12 }
 0x108   : > { %10418 = vmatmul.mubr.msk.bf16.vlgmr.msra.gmra.mrb[52].mxu1 %vm366_vm2, %v11712_v54  ;;  %v1945_v22 = vpop.permute.xlu1 %1944 }
 0x109   : > { %10771 = vmatpush3.bf16.msra.mxu1 %v1662_v11  ;;  %10772 = vmatprep.mubr.msk.bf16.mxu1 %vm11142_vm3, %v11141_v53  ;;  %v1957_v50 = vsel %vm1946_vm7, %v1943_v12, %v1945_v22  ;;  %vm6262_vm7 = vcmask 982016  }
 0x10a   : > { %10425 = vmatprep.subr.msk.bf16.mxu1 %vm370_vm1, %v1950_v21  ;;  %v2253_v29 = vpop.permute.xlu0 %2252  ;;  %3597 = vrot.lane.b32.xlu0 %v11343_v25, %s11146_s20  ;;  %v1992_v9 = vsel %vm370_vm1, %v1957_v50, 0 }
 0x10b   : > { %3599 = vrot.lane.b32.xlu1 %v11354_v27, %s11146_s20 }
 0x10c   : > { %10420 = vmatmul.mubr.msk.bf16.vlgmr.msra.gmra.mrb[56].mxu0 %vm366_vm2, %v11712_v54  ;;  %v2255_v32 = vpop.permute.xlu1 %2254 }
 0x10d   : > { %1995 = vmatpush1.bf16.msra.mxu0 %v1962_v28  ;;  %2026 = vmatprep.mubr.bf16.mxu0 %v11134_v6  ;;  %v2277_v13 = vsel %vm2276_vm8, %v2253_v29, %v2255_v32 }
 0x10e   : > { %10427 = vmatprep.subr.msk.bf16.mxu0 %vm370_vm1, %v1952_v31  ;;  %3601 = vrot.lane.b32.xlu0 %v11680_v45, %s11146_s20  ;;  %v2292_v57 = vsel %vm370_vm1, %v2277_v13, 0 }
 0x10f   : > { %3603 = vrot.lane.b32.xlu1 %v11694_v5, %s11146_s20  ;;  %s11153_s20 = smov 22  }
 0x110   : > { %10773 = vmatmul.mubr.msk.bf16.vlgmr.msra.gmra.mrb[56].mxu1 %vm366_vm2, %v11712_v54  ;;  %v2257_v36 = vpop.permute.xlu0 %2256  ;;  %v2259_v38 = vpop.permute.xlu1 %2258 }
 0x111   : > { %2036 = vmatpush1.bf16.msra.mxu1 %v1968_v33  ;;  %2067 = vmatprep.mubr.bf16.mxu1 %v11134_v6  ;;  %v2278_v8 = vsel %vm2276_vm8, %v2255_v32, %v2257_v36  ;;  %v2279_v58 = vsel %vm2276_vm8, %v2257_v36, %v2259_v38 }
 0x112   : > { %10429 = vmatprep.subr.msk.bf16.mxu1 %vm370_vm1, %v1954_v35  ;;  %3911 = vrot.lane.b32.xlu0 %v11312_v15, %s11147_s15  ;;  %v2298_v62 = vsel %vm370_vm1, %v2279_v58, 0 }
 0x113   : > { %3913 = vrot.lane.b32.xlu1 %v11320_v18, %s11147_s15 }
 0x114   : > { %10424 = vmatmul.mubr.msk.bf16.vlgmr.msra.gmra.mrb[60].mxu0 %vm366_vm2, %v11783_v37  ;;  %v2261_v42 = vpop.permute.xlu0 %2260  ;;  %v2263_v43 = vpop.permute.xlu1 %2262 }
 0x115   : > { %2077 = vmatpush1.bf16.msra.mxu0 %v1974_v39  ;;  %2108 = vmatprep.mubr.bf16.mxu0 %v11134_v6  ;;  %v2280_v54 = vsel %vm2276_vm8, %v2259_v38, %v2261_v42  ;;  %v2281_v63 = vsel %vm2276_vm8, %v2261_v42, %v2263_v43 }
 0x116   : > { %10431 = vmatprep.subr.msk.bf16.mxu0 %vm370_vm1, %v1956_v41  ;;  %3915 = vrot.lane.b32.xlu0 %v11315_v17, %s11147_s15  ;;  %v2304_v7 = vsel %vm370_vm1, %v2281_v63, 0 }
 0x117   : > { %3917 = vrot.lane.b32.xlu1 %v11328_v20, %s11147_s15 }
 0x118   : > { %10426 = vmatmul.mubr.msk.bf16.vlgmr.msra.gmra.mrb[60].mxu1 %vm366_vm2, %v11783_v37  ;;  %v2265_v47 = vpop.permute.xlu0 %2264 }
 0x119   : > { %2118 = vmatpush1.bf16.msra.mxu1 %v1980_v44  ;;  %2149 = vmatprep.mubr.bf16.mxu1 %v11134_v6  ;;  %v2267_v48 = vpop.permute.xlu1 %2266  ;;  %v2282_v59 = vsel %vm2276_vm8, %v2263_v43, %v2265_v47 }
 0x11a   : > { %10776 = vmatprep.subr.bf16.mxu1 %v11141_v53  ;;  %3919 = vrot.lane.b32.xlu0 %v11324_v19, %s11147_s15  ;;  %v2283_v10 = vsel %vm2276_vm8, %v2265_v47, %v2267_v48 }
 0x11b   : > { %3921 = vrot.lane.b32.xlu1 %v11339_v24, %s11147_s15  ;;  %v2310_v21 = vsel %vm370_vm1, %v2283_v10, 0 }
 0x11c   : > { %10428 = vmatmul.mubr.msk.bf16.vlgmr.msra.gmra.mrb[64].mxu0 %vm366_vm2, %v11783_v37  ;;  %v2269_v51 = vpop.permute.xlu0 %2268 }
 0x11d   : > { %2159 = vmatpush1.bf16.msra.mxu0 %v1986_v49  ;;  %2190 = vmatprep.mubr.bf16.mxu0 %v11134_v6  ;;  %v2271_v52 = vpop.permute.xlu1 %2270  ;;  %v2284_v0 = vsel %vm2276_vm8, %v2267_v48, %v2269_v51  ;;  %v11925_v49 = vld [vmem:[%s15592_s1 + $0x1c] sm:$0xf] }
 0x11e   : > { %10435 = vmatprep.subr.msk.bf16.mxu0 %vm370_vm1, %v2278_v8  ;;  %3923 = vrot.lane.b32.xlu0 %v11334_v23, %s11147_s15  ;;  %v2285_v22 = vsel %vm2276_vm8, %v2269_v51, %v2271_v52 }
 0x11f   : > { %3925 = vrot.lane.b32.xlu1 %v11348_v26, %s11147_s15  ;;  %v2316_v30 = vsel %vm370_vm1, %v2285_v22, 0 }
 0x120   : > { %10430 = vmatmul.mubr.msk.bf16.vlgmr.msra.gmra.mrb[64].mxu1 %vm366_vm2, %v11783_v37  ;;  %v2273_v55 = vpop.permute.xlu0 %2272 }
 0x121   : > { %10777 = vmatpush3.bf16.msra.mxu1 %v1992_v9  ;;  %10778 = vmatprep.mubr.msk.bf16.mxu1 %vm11142_vm3, %v11141_v53  ;;  %v2275_v56 = vpop.permute.xlu1 %2274  ;;  %v2286_v11 = vsel %vm2276_vm8, %v2271_v52, %v2273_v55 }
 0x122   : > { %10437 = vmatprep.subr.msk.bf16.mxu1 %vm370_vm1, %v2280_v54  ;;  %3927 = vrot.lane.b32.xlu0 %v11343_v25, %s11147_s15  ;;  %v2287_v31 = vsel %vm2276_vm8, %v2273_v55, %v2275_v56  ;;  %vm6592_vm8 = vcmask 973824  }
 0x123   : > { %3929 = vrot.lane.b32.xlu1 %v11354_v27, %s11147_s15  ;;  %v2322_v35 = vsel %vm370_vm1, %v2287_v31, 0 }
 0x124   : > { %10432 = vmatmul.mubr.msk.bf16.vlgmr.msra.gmra.mrb[68].mxu0 %vm366_vm2, %v11783_v37  ;;  %v2583_v60 = vpop.permute.xlu0 %2582 }
 0x125   : > { %2325 = vmatpush1.bf16.msra.mxu0 %v2292_v57  ;;  %2356 = vmatprep.mubr.bf16.mxu0 %v11134_v6  ;;  %v2585_v61 = vpop.permute.xlu1 %2584 }
 0x126   : > { %10439 = vmatprep.subr.msk.bf16.mxu0 %vm370_vm1, %v2282_v59  ;;  %3931 = vrot.lane.b32.xlu0 %v11680_v45, %s11147_s15  ;;  %v2607_v36 = vsel %vm2606_vm9, %v2583_v60, %v2585_v61 }
 0x127   : > { %3933 = vrot.lane.b32.xlu1 %v11694_v5, %s11147_s15  ;;  %v2622_v40 = vsel %vm370_vm1, %v2607_v36, 0  ;;  %s11154_s15 = smov 120  }
 0x128   : > { %10779 = vmatmul.mubr.msk.bf16.vlgmr.msra.gmra.mrb[68].mxu1 %vm366_vm2, %v11783_v37  ;;  %v2587_v2 = vpop.permute.xlu0 %2586 }
 0x129   : > { %2366 = vmatpush1.bf16.msra.mxu1 %v2298_v62  ;;  %2397 = vmatprep.mubr.bf16.mxu1 %v11134_v6  ;;  %v2589_v4 = vpop.permute.xlu1 %2588  ;;  %v2608_v32 = vsel %vm2606_vm9, %v2585_v61, %v2587_v2 }
 0x12a   : > { %10441 = vmatprep.subr.msk.bf16.mxu1 %vm370_vm1, %v2284_v0  ;;  %4241 = vrot.lane.b32.xlu0 %v11312_v15, %s11148_s19  ;;  %v2609_v41 = vsel %vm2606_vm9, %v2587_v2, %v2589_v4 }
 0x12b   : > { %4243 = vrot.lane.b32.xlu1 %v11320_v18, %s11148_s19  ;;  %v2628_v46 = vsel %vm370_vm1, %v2609_v41, 0 }
 0x12c   : > { %10436 = vmatmul.mubr.msk.bf16.vlgmr.msra.gmra.mrb[72].mxu0 %vm366_vm2, %v11854_v1  ;;  %v2591_v12 = vpop.permute.xlu0 %2590 }
 0x12d   : > { %2407 = vmatpush1.bf16.msra.mxu0 %v2304_v7  ;;  %2438 = vmatprep.mubr.bf16.mxu0 %v11134_v6  ;;  %v2593_v16 = vpop.permute.xlu1 %2592  ;;  %v2610_v37 = vsel %vm2606_vm9, %v2589_v4, %v2591_v12 }
 0x12e   : > { %10443 = vmatprep.subr.msk.bf16.mxu0 %vm370_vm1, %v2286_v11  ;;  %4245 = vrot.lane.b32.xlu0 %v11315_v17, %s11148_s19  ;;  %v2611_v47 = vsel %vm2606_vm9, %v2591_v12, %v2593_v16 }
 0x12f   : > { %4247 = vrot.lane.b32.xlu1 %v11328_v20, %s11148_s19  ;;  %v2634_v51 = vsel %vm370_vm1, %v2611_v47, 0 }
 0x130   : > { %10438 = vmatmul.mubr.msk.bf16.vlgmr.msra.gmra.mrb[72].mxu1 %vm366_vm2, %v11854_v1  ;;  %v2595_v28 = vpop.permute.xlu0 %2594 }
 0x131   : > { %2448 = vmatpush1.bf16.msra.mxu1 %v2310_v21  ;;  %2479 = vmatprep.mubr.bf16.mxu1 %v11134_v6  ;;  %v2597_v29 = vpop.permute.xlu1 %2596  ;;  %v2612_v42 = vsel %vm2606_vm9, %v2593_v16, %v2595_v28 }
 0x132   : > { %10782 = vmatprep.subr.bf16.mxu1 %v11141_v53  ;;  %4249 = vrot.lane.b32.xlu0 %v11324_v19, %s11148_s19  ;;  %v2613_v52 = vsel %vm2606_vm9, %v2595_v28, %v2597_v29 }
 0x133   : > { %4251 = vrot.lane.b32.xlu1 %v11339_v24, %s11148_s19  ;;  %v2640_v55 = vsel %vm370_vm1, %v2613_v52, 0 }
 0x134   : > { %10440 = vmatmul.mubr.msk.bf16.vlgmr.msra.gmra.mrb[76].mxu0 %vm366_vm2, %v11854_v1  ;;  %v2599_v33 = vpop.permute.xlu0 %2598 }
 0x135   : > { %2489 = vmatpush1.bf16.msra.mxu0 %v2316_v30  ;;  %2520 = vmatprep.mubr.bf16.mxu0 %v11134_v6  ;;  %v2601_v34 = vpop.permute.xlu1 %2600  ;;  %v2614_v48 = vsel %vm2606_vm9, %v2597_v29, %v2599_v33  ;;  %v11996_v30 = vld [vmem:[%s15592_s1 + $0x20] sm:$0xf] }
 0x136   : > { %10447 = vmatprep.subr.msk.bf16.mxu0 %vm370_vm1, %v2608_v32  ;;  %4253 = vrot.lane.b32.xlu0 %v11334_v23, %s11148_s19  ;;  %v2615_v56 = vsel %vm2606_vm9, %v2599_v33, %v2601_v34 }
 0x137   : > { %4255 = vrot.lane.b32.xlu1 %v11348_v26, %s11148_s19  ;;  %v2646_v59 = vsel %vm370_vm1, %v2615_v56, 0 }
 0x138   : > { %10442 = vmatmul.mubr.msk.bf16.vlgmr.msra.gmra.mrb[76].mxu1 %vm366_vm2, %v11854_v1  ;;  %v2603_v38 = vpop.permute.xlu0 %2602 }
 0x139   : > { %10783 = vmatpush3.bf16.msra.mxu1 %v2322_v35  ;;  %10784 = vmatprep.mubr.msk.bf16.mxu1 %vm11142_vm3, %v11141_v53  ;;  %v2605_v39 = vpop.permute.xlu1 %2604  ;;  %v2616_v9 = vsel %vm2606_vm9, %v2601_v34, %v2603_v38 }
 0x13a   : > { %10449 = vmatprep.subr.msk.bf16.mxu1 %vm370_vm1, %v2610_v37  ;;  %4257 = vrot.lane.b32.xlu0 %v11343_v25, %s11148_s19  ;;  %v2617_v60 = vsel %vm2606_vm9, %v2603_v38, %v2605_v39  ;;  %vm6922_vm9 = vcmask 965632  }
 0x13b   : > { %4259 = vrot.lane.b32.xlu1 %v11354_v27, %s11148_s19  ;;  %v2652_v0 = vsel %vm370_vm1, %v2617_v60, 0 }
 0x13c   : > { %10444 = vmatmul.mubr.msk.bf16.vlgmr.msra.gmra.mrb[80].mxu0 %vm366_vm2, %v11854_v1  ;;  %v2913_v43 = vpop.permute.xlu0 %2912 }
 0x13d   : > { %2655 = vmatpush1.bf16.msra.mxu0 %v2622_v40  ;;  %2686 = vmatprep.mubr.bf16.mxu0 %v11134_v6  ;;  %v2915_v44 = vpop.permute.xlu1 %2914 }
 0x13e   : > { %10451 = vmatprep.subr.msk.bf16.mxu0 %vm370_vm1, %v2612_v42  ;;  %4261 = vrot.lane.b32.xlu0 %v11680_v45, %s11148_s19 }
 0x13f   : > { %4263 = vrot.lane.b32.xlu1 %v11694_v5, %s11148_s19  ;;  %s11155_s19 = smov 119  }
 0x140   : > { %10785 = vmatmul.mubr.msk.bf16.vlgmr.msra.gmra.mrb[80].mxu1 %vm366_vm2, %v11854_v1  ;;  %v2917_v50 = vpop.permute.xlu0 %2916  ;;  %v2937_v1 = vsel %vm2936_vm10, %v2913_v43, %v2915_v44 }
 0x141   : > { %2696 = vmatpush1.bf16.msra.mxu1 %v2628_v46  ;;  %2727 = vmatprep.mubr.bf16.mxu1 %v11134_v6  ;;  %v2919_v8 = vpop.permute.xlu1 %2918  ;;  %v2938_v61 = vsel %vm2936_vm10, %v2915_v44, %v2917_v50  ;;  %v2952_v10 = vsel %vm370_vm1, %v2937_v1, 0 }
 0x142   : > { %10453 = vmatprep.subr.msk.bf16.mxu1 %vm370_vm1, %v2614_v48  ;;  %4571 = vrot.lane.b32.xlu0 %v11312_v15, %s11149_s14  ;;  %v2939_v11 = vsel %vm2936_vm10, %v2917_v50, %v2919_v8 }
 0x143   : > { %4573 = vrot.lane.b32.xlu1 %v11320_v18, %s11149_s14  ;;  %v2958_v22 = vsel %vm370_vm1, %v2939_v11, 0 }
 0x144   : > { %10448 = vmatmul.mubr.msk.bf16.vlgmr.msra.gmra.mrb[84].mxu0 %vm366_vm2, %v11925_v49  ;;  %v2921_v13 = vpop.permute.xlu0 %2920 }
 0x145   : > { %2737 = vmatpush1.bf16.msra.mxu0 %v2634_v51  ;;  %2768 = vmatprep.mubr.bf16.mxu0 %v11134_v6  ;;  %v2923_v54 = vpop.permute.xlu1 %2922  ;;  %v2940_v2 = vsel %vm2936_vm10, %v2919_v8, %v2921_v13 }
 0x146   : > { %10455 = vmatprep.subr.msk.bf16.mxu0 %vm370_vm1, %v2616_v9  ;;  %4575 = vrot.lane.b32.xlu0 %v11315_v17, %s11149_s14  ;;  %v2941_v28 = vsel %vm2936_vm10, %v2921_v13, %v2923_v54 }
 0x147   : > { %4577 = vrot.lane.b32.xlu1 %v11328_v20, %s11149_s14  ;;  %v2964_v33 = vsel %vm370_vm1, %v2941_v28, 0 }
 0x148   : > { %10450 = vmatmul.mubr.msk.bf16.vlgmr.msra.gmra.mrb[84].mxu1 %vm366_vm2, %v11925_v49  ;;  %v2925_v57 = vpop.permute.xlu0 %2924 }
 0x149   : > { %2778 = vmatpush1.bf16.msra.mxu1 %v2640_v55  ;;  %2809 = vmatprep.mubr.bf16.mxu1 %v11134_v6  ;;  %v2927_v58 = vpop.permute.xlu1 %2926  ;;  %v2942_v12 = vsel %vm2936_vm10, %v2923_v54, %v2925_v57 }
 0x14a   : > { %10788 = vmatprep.subr.bf16.mxu1 %v11141_v53  ;;  %4579 = vrot.lane.b32.xlu0 %v11324_v19, %s11149_s14  ;;  %v2943_v34 = vsel %vm2936_vm10, %v2925_v57, %v2927_v58 }
 0x14b   : > { %4581 = vrot.lane.b32.xlu1 %v11339_v24, %s11149_s14  ;;  %v2970_v38 = vsel %vm370_vm1, %v2943_v34, 0 }
 0x14c   : > { %10452 = vmatmul.mubr.msk.bf16.vlgmr.msra.gmra.mrb[88].mxu0 %vm366_vm2, %v11925_v49  ;;  %v2929_v62 = vpop.permute.xlu0 %2928 }
 0x14d   : > { %2819 = vmatpush1.bf16.msra.mxu0 %v2646_v59  ;;  %2850 = vmatprep.mubr.bf16.mxu0 %v11134_v6  ;;  %v2931_v63 = vpop.permute.xlu1 %2930  ;;  %v2944_v29 = vsel %vm2936_vm10, %v2927_v58, %v2929_v62 }
 0x14e   : > { %10459 = vmatprep.subr.msk.bf16.mxu0 %vm370_vm1, %v2938_v61  ;;  %4583 = vrot.lane.b32.xlu0 %v11334_v23, %s11149_s14  ;;  %v2945_v39 = vsel %vm2936_vm10, %v2929_v62, %v2931_v63  ;;  %v12079_v61 = vld [vmem:[%s15592_s1 + $0x24] sm:$0xf] }
 0x14f   : > { %4585 = vrot.lane.b32.xlu1 %v11348_v26, %s11149_s14  ;;  %v2976_v42 = vsel %vm370_vm1, %v2945_v39, 0 }
 0x150   : > { %10454 = vmatmul.mubr.msk.bf16.vlgmr.msra.gmra.mrb[88].mxu1 %vm366_vm2, %v11925_v49  ;;  %v2933_v4 = vpop.permute.xlu0 %2932 }
 0x151   : > { %10789 = vmatpush3.bf16.msra.mxu1 %v2652_v0  ;;  %10790 = vmatprep.mubr.msk.bf16.mxu1 %vm11142_vm3, %v11141_v53  ;;  %v2935_v7 = vpop.permute.xlu1 %2934  ;;  %v2946_v35 = vsel %vm2936_vm10, %v2931_v63, %v2933_v4 }
 0x152   : > { %10461 = vmatprep.subr.msk.bf16.mxu1 %vm370_vm1, %v2940_v2  ;;  %4587 = vrot.lane.b32.xlu0 %v11343_v25, %s11149_s14  ;;  %v2947_v43 = vsel %vm2936_vm10, %v2933_v4, %v2935_v7  ;;  %vm7252_vm10 = vcmask 834560  }
 0x153   : > { %4589 = vrot.lane.b32.xlu1 %v11354_v27, %s11149_s14  ;;  %v2982_v48 = vsel %vm370_vm1, %v2947_v43, 0 }
 0x154   : > { %10456 = vmatmul.mubr.msk.bf16.vlgmr.msra.gmra.mrb[92].mxu0 %vm366_vm2, %v11925_v49  ;;  %v3252_v16 = vpop.permute.xlu0 %3251 }
 0x155   : > { %2985 = vmatpush1.bf16.msra.mxu0 %v2952_v10  ;;  %3016 = vmatprep.mubr.bf16.mxu0 %v11134_v6  ;;  %v3254_v21 = vpop.permute.xlu1 %3253 }
 0x156   : > { %10463 = vmatprep.subr.msk.bf16.mxu0 %vm370_vm1, %v2942_v12  ;;  %4591 = vrot.lane.b32.xlu0 %v11680_v45, %s11149_s14 }
 0x157   : > { %4593 = vrot.lane.b32.xlu1 %v11694_v5, %s11149_s14  ;;  %s11156_s14 = smov 118  }
 0x158   : > { %10791 = vmatmul.mubr.msk.bf16.vlgmr.msra.gmra.mrb[92].mxu1 %vm366_vm2, %v11925_v49  ;;  %v3256_v31 = vpop.permute.xlu0 %3255  ;;  %v3276_v49 = vsel %vm3275_vm11, %v3252_v16, %v3254_v21 }
 0x159   : > { %3026 = vmatpush1.bf16.msra.mxu1 %v2958_v22  ;;  %3057 = vmatprep.mubr.bf16.mxu1 %v11134_v6  ;;  %v3258_v32 = vpop.permute.xlu1 %3257  ;;  %v3277_v44 = vsel %vm3275_vm11, %v3254_v21, %v3256_v31  ;;  %v3291_v52 = vsel %vm370_vm1, %v3276_v49, 0 }
 0x15a   : > { %10465 = vmatprep.subr.msk.bf16.mxu1 %vm370_vm1, %v2944_v29  ;;  %4901 = vrot.lane.b32.xlu0 %v11312_v15, %s11150_s18  ;;  %v3278_v9 = vsel %vm3275_vm11, %v3256_v31, %v3258_v32 }
 0x15b   : > { %4903 = vrot.lane.b32.xlu1 %v11320_v18, %s11150_s18  ;;  %v3297_v56 = vsel %vm370_vm1, %v3278_v9, 0 }
 0x15c   : > { %10460 = vmatmul.mubr.msk.bf16.vlgmr.msra.gmra.mrb[96].mxu0 %vm366_vm2, %v11996_v30  ;;  %v3260_v36 = vpop.permute.xlu0 %3259 }
 0x15d   : > { %3067 = vmatpush1.bf16.msra.mxu0 %v2964_v33  ;;  %3098 = vmatprep.mubr.bf16.mxu0 %v11134_v6  ;;  %v3262_v37 = vpop.permute.xlu1 %3261  ;;  %v3279_v50 = vsel %vm3275_vm11, %v3258_v32, %v3260_v36 }
 0x15e   : > { %10467 = vmatprep.subr.msk.bf16.mxu0 %vm370_vm1, %v2946_v35  ;;  %4905 = vrot.lane.b32.xlu0 %v11315_v17, %s11150_s18  ;;  %v3280_v57 = vsel %vm3275_vm11, %v3260_v36, %v3262_v37 }
 0x15f   : > { %4907 = vrot.lane.b32.xlu1 %v11328_v20, %s11150_s18  ;;  %v3303_v0 = vsel %vm370_vm1, %v3280_v57, 0 }
 0x160   : > { %10462 = vmatmul.mubr.msk.bf16.vlgmr.msra.gmra.mrb[96].mxu1 %vm366_vm2, %v11996_v30  ;;  %v3264_v40 = vpop.permute.xlu0 %3263 }
 0x161   : > { %3108 = vmatpush1.bf16.msra.mxu1 %v2970_v38  ;;  %3139 = vmatprep.mubr.bf16.mxu1 %v11134_v6  ;;  %v3266_v41 = vpop.permute.xlu1 %3265  ;;  %v3281_v13 = vsel %vm3275_vm11, %v3262_v37, %v3264_v40 }
 0x162   : > { %10794 = vmatprep.subr.bf16.mxu1 %v11141_v53  ;;  %4909 = vrot.lane.b32.xlu0 %v11324_v19, %s11150_s18  ;;  %v3282_v7 = vsel %vm3275_vm11, %v3264_v40, %v3266_v41 }
 0x163   : > { %4911 = vrot.lane.b32.xlu1 %v11339_v24, %s11150_s18  ;;  %v3309_v22 = vsel %vm370_vm1, %v3282_v7, 0 }
 0x164   : > { %10464 = vmatmul.mubr.msk.bf16.vlgmr.msra.gmra.mrb[100].mxu0 %vm366_vm2, %v11996_v30  ;;  %v3268_v46 = vpop.permute.xlu0 %3267 }
 0x165   : > { %3149 = vmatpush1.bf16.msra.mxu0 %v2976_v42  ;;  %3180 = vmatprep.mubr.bf16.mxu0 %v11134_v6  ;;  %v3270_v47 = vpop.permute.xlu1 %3269  ;;  %v3283_v59 = vsel %vm3275_vm11, %v3266_v41, %v3268_v46 }
 0x166   : > { %10471 = vmatprep.subr.msk.bf16.mxu0 %vm370_vm1, %v3277_v44  ;;  %4913 = vrot.lane.b32.xlu0 %v11334_v23, %s11150_s18  ;;  %v3284_v29 = vsel %vm3275_vm11, %v3268_v46, %v3270_v47 }
 0x167   : > { %4915 = vrot.lane.b32.xlu1 %v11348_v26, %s11150_s18  ;;  %v3315_v34 = vsel %vm370_vm1, %v3284_v29, 0 }
 0x168   : > { %10466 = vmatmul.mubr.msk.bf16.vlgmr.msra.gmra.mrb[100].mxu1 %vm366_vm2, %v11996_v30  ;;  %v12043_v8 = vpop.permute.xlu0 %3271 }
 0x169   : > { %10795 = vmatpush3.bf16.msra.mxu1 %v2982_v48  ;;  %10796 = vmatprep.mubr.msk.bf16.mxu1 %vm11142_vm3, %v11141_v53  ;;  %v12045_v51 = vpop.permute.xlu1 %3273  ;;  %v3285_v10 = vsel %vm3275_vm11, %v3270_v47, %v12043_v8 }
 0x16a   : > { %10473 = vmatprep.subr.msk.bf16.mxu1 %vm370_vm1, %v3279_v50  ;;  %4917 = vrot.lane.b32.xlu0 %v11343_v25, %s11150_s18  ;;  %v3286_v38 = vsel %vm3275_vm11, %v12043_v8, %v12045_v51  ;;  %vm7582_vm11 = vcmask 826368  }
 0x16b   : > { %4919 = vrot.lane.b32.xlu1 %v11354_v27, %s11150_s18  ;;  %v3321_v43 = vsel %vm370_vm1, %v3286_v38, 0 }
 0x16c   : > { %10468 = vmatmul.mubr.msk.bf16.vlgmr.msra.gmra.mrb[104].mxu0 %vm366_vm2, %v11996_v30  ;;  %v12058_v54 = vpop.permute.xlu0 %3581 }
 0x16d   : > { %3324 = vmatpush1.bf16.msra.mxu0 %v3291_v52  ;;  %3355 = vmatprep.mubr.bf16.mxu0 %v11134_v6  ;;  %v12060_v55 = vpop.permute.xlu1 %3583 }
 0x16e   : > { %10475 = vmatprep.subr.msk.bf16.mxu0 %vm370_vm1, %v3281_v13  ;;  %4921 = vrot.lane.b32.xlu0 %v11680_v45, %s11150_s18  ;;  %v3606_v47 = vsel %vm3605_vm12, %v12058_v54, %v12060_v55 }
 0x16f   : > { %v12065_v58 = vpop.f32.mrb[0].mxu0  ;;  %4923 = vrot.lane.b32.xlu1 %v11694_v5, %s11150_s18  ;;  %v3621_v52 = vsel %vm370_vm1, %v3606_v47, 0  ;;  %s11157_s18 = smov 102  }
 0x170   : > { %10797 = vmatmul.mubr.msk.bf16.vlgmr.msra.gmra.mrb[104].mxu1 %vm366_vm2, %v11996_v30  ;;  %v12074_v60 = vpop.f32.mrb[1].mxu0  ;;  %v12082_v63 = vpop.permute.xlu0 %3585 }
 0x171   : > { %3365 = vmatpush1.bf16.msra.mxu1 %v3297_v56  ;;  %v442_v62 = vpop.f32.mrb[2].mxu0  ;;  %3396 = vmatprep.mubr.bf16.mxu1 %v11134_v6  ;;  %v12086_v2 = vpop.permute.xlu1 %3587  ;;  %v3607_v39 = vsel %vm3605_vm12, %v12060_v55, %v12082_v63 }
 0x172   : > { %v443_v1 = vpop.f32.mrb[3].mxu0  ;;  %10477 = vmatprep.subr.msk.bf16.mxu1 %vm370_vm1, %v3283_v59  ;;  %5231 = vrot.lane.b32.xlu0 %v11312_v15, %s11151_s29  ;;  %v3608_v55 = vsel %vm3605_vm12, %v12082_v63, %v12086_v2 }
 0x173   : > { %v12088_v4 = vpop.f32.mrb[0].mxu1  ;;  %5233 = vrot.lane.b32.xlu1 %v11320_v18, %s11151_s29 }
 0x174   : > { %10472 = vmatmul.mubr.msk.bf16.vlgmr.msra.gmra.mrb[108].mxu0 %vm366_vm2, %v12079_v61  ;;  %v12099_v11 = vpop.f32.mrb[1].mxu1  ;;  %v12102_v16 = vpop.permute.xlu0 %3589 }
 0x175   : > { %3406 = vmatpush1.bf16.msra.mxu0 %v3303_v0  ;;  %v483_v12 = vpop.f32.mrb[2].mxu1  ;;  %3437 = vmatprep.mubr.bf16.mxu0 %v11134_v6  ;;  %v12106_v28 = vpop.permute.xlu1 %3591  ;;  %v3609_v49 = vsel %vm3605_vm12, %v12086_v2, %v12102_v16  ;;  %v3627_v0 = vsel %vm370_vm1, %v3608_v55, 0 }
 0x176   : > { %v484_v21 = vpop.f32.mrb[3].mxu1  ;;  %10479 = vmatprep.subr.msk.bf16.mxu0 %vm370_vm1, %v3285_v10  ;;  %5235 = vrot.lane.b32.xlu0 %v11315_v17, %s11151_s29  ;;  %v3610_v7 = vsel %vm3605_vm12, %v12102_v16, %v12106_v28  ;;  %v12215_v16 = vld [vmem:[%s15592_s1 + $0x28] sm:$0xf] }
 0x177   : > { %v12109_v30 = vpop.f32.mrb[4].mxu0  ;;  %5237 = vrot.lane.b32.xlu1 %v11328_v20, %s11151_s29 }
 0x178   : > { %10474 = vmatmul.mubr.msk.bf16.vlgmr.msra.gmra.mrb[108].mxu1 %vm366_vm2, %v12079_v61  ;;  %v12117_v31 = vpop.f32.mrb[5].mxu0  ;;  %v12120_v33 = vpop.permute.xlu0 %3593 }
 0x179   : > { %3447 = vmatpush1.bf16.msra.mxu1 %v3309_v22  ;;  %v524_v32 = vpop.f32.mrb[6].mxu0  ;;  %3478 = vmatprep.mubr.bf16.mxu1 %v11134_v6  ;;  %v12124_v36 = vpop.permute.xlu1 %3595  ;;  %v3611_v56 = vsel %vm3605_vm12, %v12106_v28, %v12120_v33 }
 0x17a   : > { %v525_v35 = vpop.f32.mrb[7].mxu0  ;;  %10800 = vmatprep.subr.bf16.mxu1 %v11141_v53  ;;  %5239 = vrot.lane.b32.xlu0 %v11324_v19, %s11151_s29 }
 0x17b   : > { %v12126_v37 = vpop.f32.mrb[4].mxu1  ;;  %5241 = vrot.lane.b32.xlu1 %v11339_v24, %s11151_s29 }
 0x17c   : > { %10476 = vmatmul.mubr.msk.bf16.vlgmr.msra.gmra.mrb[112].mxu0 %vm366_vm2, %v12079_v61  ;;  %v12140_v40 = vpop.f32.mrb[5].mxu1  ;;  %v12143_v42 = vpop.permute.xlu0 %3597 }
 0x17d   : > { %3488 = vmatpush1.bf16.msra.mxu0 %v3315_v34  ;;  %v565_v41 = vpop.f32.mrb[6].mxu1  ;;  %3519 = vmatprep.mubr.bf16.mxu0 %v11134_v6  ;;  %v12147_v46 = vpop.permute.xlu1 %3599  ;;  %v3613_v10 = vsel %vm3605_vm12, %v12124_v36, %v12143_v42  ;;  %v3612_v34 = vsel %vm3605_vm12, %v12120_v33, %v12124_v36 }
 0x17e   : > { %v566_v44 = vpop.f32.mrb[7].mxu1  ;;  %10483 = vmatprep.subr.msk.bf16.mxu0 %vm370_vm1, %v3607_v39  ;;  %5243 = vrot.lane.b32.xlu0 %v11334_v23, %s11151_s29 }
 0x17f   : > { %v12152_v48 = vpop.f32.mrb[8].mxu0  ;;  %5245 = vrot.lane.b32.xlu1 %v11348_v26, %s11151_s29  ;;  %v3639_v44 = vsel %vm370_vm1, %v3612_v34, 0 }
 0x180   : > { %10478 = vmatmul.mubr.msk.bf16.vlgmr.msra.gmra.mrb[112].mxu1 %vm366_vm2, %v12079_v61  ;;  %v12163_v50 = vpop.f32.mrb[9].mxu0  ;;  %v12167_v51 = vpop.permute.xlu0 %3601 }
 0x181   : > { %10801 = vmatpush3.bf16.msra.mxu1 %v3321_v43  ;;  %v606_v8 = vpop.f32.mrb[10].mxu0  ;;  %10802 = vmatprep.mubr.msk.bf16.mxu1 %vm11142_vm3, %v11141_v53  ;;  %v12171_v13 = vpop.permute.xlu1 %3603  ;;  %v3615_v35 = vsel %vm3605_vm12, %v12147_v46, %v12167_v51 }
 0x182   : > { %v607_v9 = vpop.f32.mrb[11].mxu0  ;;  %10485 = vmatprep.subr.msk.bf16.mxu1 %vm370_vm1, %v3609_v49  ;;  %5247 = vrot.lane.b32.xlu0 %v11343_v25, %s11151_s29  ;;  %v3614_v49 = vsel %vm3605_vm12, %v12143_v42, %v12147_v46 }
 0x183   : > { %v12173_v54 = vpop.f32.mrb[8].mxu1  ;;  %5249 = vrot.lane.b32.xlu1 %v11354_v27, %s11151_s29  ;;  %v3645_v46 = vsel %vm370_vm1, %v3614_v49, 0 }
 0x184   : > { %10480 = vmatmul.mubr.msk.bf16.vlgmr.msra.gmra.mrb[116].mxu0 %vm366_vm2, %v12079_v61  ;;  %v10750_v57 = vpop.f32.mrb[9].mxu1  ;;  %v12188_v62 = vpop.permute.xlu0 %3911 }
 0x185   : > { %3654 = vmatpush1.bf16.msra.mxu0 %v3621_v52  ;;  %v646_v59 = vpop.f32.mrb[10].mxu1  ;;  %3685 = vmatprep.mubr.bf16.mxu0 %v11134_v6  ;;  %v12192_v1 = vpop.permute.xlu1 %3913  ;;  %v3616_v57 = vsel %vm3605_vm12, %v12167_v51, %v12171_v13  ;;  %vm7912_vm12 = vcmask 818176  }
 0x186   : > { %v10751_v63 = vpop.f32.mrb[11].mxu1  ;;  %10487 = vmatprep.subr.msk.bf16.mxu0 %vm370_vm1, %v3611_v56  ;;  %5251 = vrot.lane.b32.xlu0 %v11680_v45, %s11151_s29 }
 0x187   : > { %v719_v2 = vpop.f32.mrb[12].mxu0  ;;  %5253 = vrot.lane.b32.xlu1 %v11694_v5, %s11151_s29  ;;  %s11158_s29 = smov 101  }
 0x188   : > { %v12205_v12 = vadd.f32 %v719_v2, %v12065_v58  ;;  %v721_v21 = vpop.f32.mrb[13].mxu0  ;;  %10803 = vmatmul.mubr.msk.bf16.vlgmr.msra.gmra.mrb[116].mxu1 %vm366_vm2, %v12079_v61  ;;  %v12218_v29 = vpop.permute.xlu0 %3915  ;;  %v3633_v58 = vsel %vm370_vm1, %v3610_v7, 0  ;;  %v3651_v2 = vsel %vm370_vm1, %v3616_v57, 0 }
 0x189   : > { %v12210_v22 = vadd.f32 %v721_v21, %v12074_v60  ;;  %3695 = vmatpush1.bf16.msra.mxu1 %v3627_v0  ;;  %v723_v28 = vpop.f32.mrb[14].mxu0  ;;  %3726 = vmatprep.mubr.bf16.mxu1 %v11134_v6  ;;  %v12222_v61 = vpop.permute.xlu1 %3917  ;;  %v3936_v21 = vsel %vm3935_vm13, %v12188_v62, %v12192_v1 }
 0x18a   : > { %v724_v32 = vpop.f32.mrb[15].mxu0  ;;  %10489 = vmatprep.subr.msk.bf16.mxu1 %vm370_vm1, %v3613_v10  ;;  %5561 = vrot.lane.b32.xlu0 %v11312_v15, %s11152_s17 }
 0x18b   : > { %v760_v60 = vpop.f32.mrb[12].mxu1  ;;  %5563 = vrot.lane.b32.xlu1 %v11320_v18, %s11152_s17 }
 0x18c   : > { %v12235_v38 = vadd.f32 %v760_v60, %v12088_v4  ;;  %v762_v39 = vpop.f32.mrb[13].mxu1  ;;  %10484 = vmatmul.mubr.msk.bf16.vlgmr.msra.gmra.mrb[120].mxu0 %vm366_vm2, %v12215_v16  ;;  %v12243_v41 = vpop.permute.xlu0 %3919  ;;  %v3951_v60 = vsel %vm370_vm1, %v3936_v21, 0 }
 0x18d   : > { %v12240_v33 = vadd.f32 %v762_v39, %v12099_v11  ;;  %3736 = vmatpush1.bf16.msra.mxu0 %v3633_v58  ;;  %v764_v36 = vpop.f32.mrb[14].mxu1  ;;  %3767 = vmatprep.mubr.bf16.mxu0 %v11134_v6  ;;  %v12247_v4 = vpop.permute.xlu1 %3921 }
 0x18e   : > { %v765_v43 = vpop.f32.mrb[15].mxu1  ;;  %10491 = vmatprep.subr.msk.bf16.mxu0 %vm370_vm1, %v3615_v35  ;;  %5565 = vrot.lane.b32.xlu0 %v11315_v17, %s11152_s17 }
 0x18f   : > { %v801_v47 = vpop.f32.mrb[16].mxu0  ;;  %5567 = vrot.lane.b32.xlu1 %v11328_v20, %s11152_s17 }
 0x190   : > { %v12257_v11 = vadd.f32 %v801_v47, %v12109_v30  ;;  %v803_v8 = vpop.f32.mrb[17].mxu0  ;;  %10486 = vmatmul.mubr.msk.bf16.vlgmr.msra.gmra.mrb[120].mxu1 %vm366_vm2, %v12215_v16  ;;  %v12265_v42 = vpop.permute.xlu0 %3923 }
 0x191   : > { %v12262_v52 = vadd.f32 %v803_v8, %v12117_v31  ;;  %3777 = vmatpush1.bf16.msra.mxu1 %v3639_v44  ;;  %v805_v9 = vpop.f32.mrb[18].mxu0  ;;  %3808 = vmatprep.mubr.bf16.mxu1 %v11134_v6  ;;  %v12269_v30 = vpop.permute.xlu1 %3925  ;;  %v3937_v31 = vsel %vm3935_vm13, %v12192_v1, %v12218_v29  ;;  %v3941_v39 = vsel %vm3935_vm13, %v12247_v4, %v12265_v42 }
 0x192   : > { %v806_v55 = vpop.f32.mrb[19].mxu0  ;;  %10806 = vmatprep.subr.bf16.mxu1 %v11141_v53  ;;  %5569 = vrot.lane.b32.xlu0 %v11324_v19, %s11152_s17 }
 0x193   : > { %v842_v56 = vpop.f32.mrb[16].mxu1  ;;  %5571 = vrot.lane.b32.xlu1 %v11339_v24, %s11152_s17 }
 0x194   : > { %v12282_v59 = vadd.f32 %v842_v56, %v12126_v37  ;;  %v844_v63 = vpop.f32.mrb[17].mxu1  ;;  %10488 = vmatmul.mubr.msk.bf16.vlgmr.msra.gmra.mrb[124].mxu0 %vm366_vm2, %v12215_v16  ;;  %v12290_v13 = vpop.permute.xlu0 %3927 }
 0x195   : > { %v12287_v0 = vadd.f32 %v844_v63, %v12140_v40  ;;  %3818 = vmatpush1.bf16.msra.mxu0 %v3645_v46  ;;  %v846_v51 = vpop.f32.mrb[18].mxu1  ;;  %3849 = vmatprep.mubr.bf16.mxu0 %v11134_v6  ;;  %v12294_v37 = vpop.permute.xlu1 %3929  ;;  %v3939_v40 = vsel %vm3935_vm13, %v12222_v61, %v12243_v41  ;;  %v3943_v9 = vsel %vm3935_vm13, %v12269_v30, %v12290_v13 }
 0x196   : > { %v847_v7 = vpop.f32.mrb[19].mxu1  ;;  %10495 = vmatprep.subr.msk.bf16.mxu0 %vm370_vm1, %v3937_v31  ;;  %5573 = vrot.lane.b32.xlu0 %v11334_v23, %s11152_s17  ;;  %v3942_v63 = vsel %vm3935_vm13, %v12265_v42, %v12269_v30 }
 0x197   : > { %v883_v10 = vpop.f32.mrb[20].mxu0  ;;  %5575 = vrot.lane.b32.xlu1 %v11348_v26, %s11152_s17  ;;  %v3969_v21 = vsel %vm370_vm1, %v3942_v63, 0 }
 0x198   : > { %v12307_v28 = vadd.f32 %v883_v10, %v12152_v48  ;;  %v885_v58 = vpop.f32.mrb[21].mxu0  ;;  %10490 = vmatmul.mubr.msk.bf16.vlgmr.msra.gmra.mrb[124].mxu1 %vm366_vm2, %v12215_v16  ;;  %v12316_v1 = vpop.permute.xlu0 %3931 }
 0x199   : > { %v12312_v32 = vadd.f32 %v885_v58, %v12163_v50  ;;  %10807 = vmatpush3.bf16.msra.mxu1 %v3651_v2  ;;  %v887_v62 = vpop.f32.mrb[22].mxu0  ;;  %10808 = vmatprep.mubr.msk.bf16.mxu1 %vm11142_vm3, %v11141_v53  ;;  %v12320_v48 = vpop.permute.xlu1 %3933  ;;  %v3938_v50 = vsel %vm3935_vm13, %v12218_v29, %v12222_v61  ;;  %v3945_v51 = vsel %vm3935_vm13, %v12294_v37, %v12316_v1 }
 0x19a   : > { %v888_v34 = vpop.f32.mrb[23].mxu0  ;;  %10497 = vmatprep.subr.msk.bf16.mxu1 %vm370_vm1, %v3939_v40  ;;  %5577 = vrot.lane.b32.xlu0 %v11343_v25, %s11152_s17  ;;  %v3957_v47 = vsel %vm370_vm1, %v3938_v50, 0  ;;  %v3944_v40 = vsel %vm3935_vm13, %v12290_v13, %v12294_v37 }
 0x19b   : > { %v924_v35 = vpop.f32.mrb[20].mxu1  ;;  %5579 = vrot.lane.b32.xlu1 %v11354_v27, %s11152_s17 }
 0x19c   : > { %v12333_v36 = vadd.f32 %v924_v35, %v12173_v54  ;;  %10492 = vmatmul.mubr.msk.bf16.vlgmr.msra.gmra.mrb[128].mxu0 %vm366_vm2, %v12215_v16  ;;  %v10756_v43 = vpop.f32.mrb[21].mxu1  ;;  %v12338_v29 = vpop.permute.xlu0 %4241  ;;  %v3940_v54 = vsel %vm3935_vm13, %v12243_v41, %v12247_v4  ;;  %v12365_v41 = vld [vmem:[%s15592_s1 + $0x2c] sm:$0xf]  ;;  %v3946_v35 = vsel %vm3935_vm13, %v12316_v1, %v12320_v48  ;;  %vm8242_vm13 = vcmask 687104  }
 0x19d   : > { %3984 = vmatpush1.bf16.msra.mxu0 %v3951_v60  ;;  %v927_v44 = vpop.f32.mrb[22].mxu1  ;;  %4015 = vmatprep.mubr.bf16.mxu0 %v11134_v6  ;;  %v12342_v49 = vpop.permute.xlu1 %4243 }
 0x19e   : > { %v10757_v61 = vpop.f32.mrb[23].mxu1  ;;  %10499 = vmatprep.subr.msk.bf16.mxu0 %vm370_vm1, %v3941_v39  ;;  %5581 = vrot.lane.b32.xlu0 %v11680_v45, %s11152_s17  ;;  %v3981_v44 = vsel %vm370_vm1, %v3946_v35, 0 }
 0x19f   : > { %v1038_v8 = vpop.f32.mrb[24].mxu0  ;;  %5583 = vrot.lane.b32.xlu1 %v11694_v5, %s11152_s17  ;;  %s11159_s17 = smov 100  }
 0x1a0   : > { %v12355_v46 = vadd.f32 %v1038_v8, %v12205_v12  ;;  %v1040_v55 = vpop.f32.mrb[25].mxu0  ;;  %10809 = vmatmul.mubr.msk.bf16.vlgmr.msra.gmra.mrb[128].mxu1 %vm366_vm2, %v12215_v16  ;;  %v12368_v57 = vpop.permute.xlu0 %4245  ;;  %v3963_v12 = vsel %vm370_vm1, %v3940_v54, 0  ;;  %v4266_v8 = vsel %vm4265_vm14, %v12338_v29, %v12342_v49 }
 0x1a1   : > { %v12360_v56 = vadd.f32 %v1040_v55, %v12210_v22  ;;  %4025 = vmatpush1.bf16.msra.mxu1 %v3957_v47  ;;  %v1042_v4 = vpop.f32.mrb[26].mxu0  ;;  %4056 = vmatprep.mubr.bf16.mxu1 %v11134_v6  ;;  %v12372_v16 = vpop.permute.xlu1 %4247 }
 0x1a2   : > { %v1043_v31 = vpop.f32.mrb[27].mxu0  ;;  %10501 = vmatprep.subr.msk.bf16.mxu1 %vm370_vm1, %v3943_v9  ;;  %5891 = vrot.lane.b32.xlu0 %v11312_v15, %s11153_s20  ;;  %v4281_v4 = vsel %vm370_vm1, %v4266_v8, 0 }
 0x1a3   : > { %v1079_v22 = vpop.f32.mrb[24].mxu1  ;;  %5893 = vrot.lane.b32.xlu1 %v11320_v18, %s11153_s20 }
 0x1a4   : > { %v12385_v2 = vadd.f32 %v1079_v22, %v12235_v38  ;;  %v1081_v7 = vpop.f32.mrb[25].mxu1  ;;  %10496 = vmatmul.mubr.msk.bf16.vlgmr.msra.gmra.mrb[132].mxu0 %vm366_vm2, %v12365_v41  ;;  %v12393_v10 = vpop.permute.xlu0 %4249 }
 0x1a5   : > { %v12390_v42 = vadd.f32 %v1081_v7, %v12240_v33  ;;  %4066 = vmatpush1.bf16.msra.mxu0 %v3963_v12  ;;  %v1083_v30 = vpop.f32.mrb[26].mxu1  ;;  %4097 = vmatprep.mubr.bf16.mxu0 %v11134_v6  ;;  %v12397_v18 = vpop.permute.xlu1 %4251 }
 0x1a6   : > { %v1084_v15 = vpop.f32.mrb[27].mxu1  ;;  %10503 = vmatprep.subr.msk.bf16.mxu0 %vm370_vm1, %v3945_v51  ;;  %5895 = vrot.lane.b32.xlu0 %v11315_v17, %s11153_s20  ;;  %v3975_v17 = vsel %vm370_vm1, %v3944_v40, 0 }
 0x1a7   : > { %v1120_v38 = vpop.f32.mrb[28].mxu0  ;;  %5897 = vrot.lane.b32.xlu1 %v11328_v20, %s11153_s20 }
 0x1a8   : > { %v12407_v33 = vadd.f32 %v1120_v38, %v12257_v11  ;;  %v1122_v58 = vpop.f32.mrb[29].mxu0  ;;  %10498 = vmatmul.mubr.msk.bf16.vlgmr.msra.gmra.mrb[132].mxu1 %vm366_vm2, %v12365_v41  ;;  %v12415_v13 = vpop.permute.xlu0 %4253 }
 0x1a9   : > { %v12412_v62 = vadd.f32 %v1122_v58, %v12262_v52  ;;  %4107 = vmatpush1.bf16.msra.mxu1 %v3969_v21  ;;  %v1124_v60 = vpop.f32.mrb[30].mxu0  ;;  %4138 = vmatprep.mubr.bf16.mxu1 %v11134_v6  ;;  %v12419_v11 = vpop.permute.xlu1 %4255  ;;  %v4267_v52 = vsel %vm4265_vm14, %v12342_v49, %v12368_v57  ;;  %v4271_v22 = vsel %vm4265_vm14, %v12397_v18, %v12415_v13 }
 0x1aa   : > { %v1125_v37 = vpop.f32.mrb[31].mxu0  ;;  %10812 = vmatprep.subr.bf16.mxu1 %v11141_v53  ;;  %5899 = vrot.lane.b32.xlu0 %v11324_v19, %s11153_s20 }
 0x1ab   : > { %v1161_v34 = vpop.f32.mrb[28].mxu1  ;;  %5901 = vrot.lane.b32.xlu1 %v11339_v24, %s11153_s20 }
 0x1ac   : > { %v12432_v50 = vadd.f32 %v1161_v34, %v12282_v59  ;;  %v1163_v39 = vpop.f32.mrb[29].mxu1  ;;  %10500 = vmatmul.mubr.msk.bf16.vlgmr.msra.gmra.mrb[136].mxu0 %vm366_vm2, %v12365_v41  ;;  %v12440_v48 = vpop.permute.xlu0 %4257  ;;  %v4272_v34 = vsel %vm4265_vm14, %v12415_v13, %v12419_v11 }
 0x1ad   : > { %v12437_v43 = vadd.f32 %v1163_v39, %v12287_v0  ;;  %4148 = vmatpush1.bf16.msra.mxu0 %v3975_v17  ;;  %v1165_v1 = vpop.f32.mrb[30].mxu1  ;;  %4179 = vmatprep.mubr.bf16.mxu0 %v11134_v6  ;;  %v12444_v59 = vpop.permute.xlu1 %4259  ;;  %v4269_v0 = vsel %vm4265_vm14, %v12372_v16, %v12393_v10  ;;  %v4273_v38 = vsel %vm4265_vm14, %v12419_v11, %v12440_v48 }
 0x1ae   : > { %v1166_v61 = vpop.f32.mrb[31].mxu1  ;;  %10507 = vmatprep.subr.msk.bf16.mxu0 %vm370_vm1, %v4267_v52  ;;  %5903 = vrot.lane.b32.xlu0 %v11334_v23, %s11153_s20  ;;  %v4274_v8 = vsel %vm4265_vm14, %v12440_v48, %v12444_v59 }
 0x1af   : > { %v1202_v47 = vpop.f32.mrb[32].mxu0  ;;  %5905 = vrot.lane.b32.xlu1 %v11348_v26, %s11153_s20  ;;  %v4299_v61 = vsel %vm370_vm1, %v4272_v34, 0  ;;  %v12632_v34 = vcombine.high %v11309_v14, %v11309_v14 }
 0x1b0   : > { %v12457_v54 = vadd.f32 %v1202_v47, %v12307_v28  ;;  %v1204_v9 = vpop.f32.mrb[33].mxu0  ;;  %10502 = vmatmul.mubr.msk.bf16.vlgmr.msra.gmra.mrb[136].mxu1 %vm366_vm2, %v12365_v41  ;;  %v12466_v49 = vpop.permute.xlu0 %4261 }
 0x1b1   : > { %v12462_v55 = vadd.f32 %v1204_v9, %v12312_v32  ;;  %10813 = vmatpush3.bf16.msra.mxu1 %v3981_v44  ;;  %v1206_v29 = vpop.f32.mrb[34].mxu0  ;;  %10814 = vmatprep.mubr.msk.bf16.mxu1 %vm11142_vm3, %v11141_v53  ;;  %v12470_v28 = vpop.permute.xlu1 %4263  ;;  %v4268_v32 = vsel %vm4265_vm14, %v12368_v57, %v12372_v16  ;;  %v4275_v35 = vsel %vm4265_vm14, %v12444_v59, %v12466_v49  ;;  %v4305_v59 = vsel %vm370_vm1, %v4274_v8, 0 }
 0x1b2   : > { %v1207_v12 = vpop.f32.mrb[35].mxu0  ;;  %10509 = vmatprep.subr.msk.bf16.mxu1 %vm370_vm1, %v4269_v0  ;;  %5907 = vrot.lane.b32.xlu0 %v11343_v25, %s11153_s20  ;;  %v4287_v30 = vsel %vm370_vm1, %v4268_v32, 0 }
 0x1b3   : > { %v1243_v31 = vpop.f32.mrb[32].mxu1  ;;  %5909 = vrot.lane.b32.xlu1 %v11354_v27, %s11153_s20 }
 0x1b4   : > { %v12483_v63 = vadd.f32 %v1243_v31, %v12333_v36  ;;  %10504 = vmatmul.mubr.msk.bf16.vlgmr.msra.gmra.mrb[140].mxu0 %vm366_vm2, %v12365_v41  ;;  %v10762_v51 = vpop.f32.mrb[33].mxu1  ;;  %v12488_v57 = vpop.permute.xlu0 %4571  ;;  %v4270_v36 = vsel %vm4265_vm14, %v12393_v10, %v12397_v18  ;;  %v12515_v10 = vld [vmem:[%s15592_s1 + $0x30] sm:$0xf]  ;;  %v4276_v31 = vsel %vm4265_vm14, %v12466_v49, %v12470_v28  ;;  %vm8572_vm14 = vcmask 678912  }
 0x1b5   : > { %4314 = vmatpush1.bf16.msra.mxu0 %v4281_v4  ;;  %v1246_v7 = vpop.f32.mrb[34].mxu1  ;;  %4345 = vmatprep.mubr.bf16.mxu0 %v11134_v6  ;;  %v12492_v15 = vpop.permute.xlu1 %4573 }
 0x1b6   : > { %v10763_v16 = vpop.f32.mrb[35].mxu1  ;;  %10511 = vmatprep.subr.msk.bf16.mxu0 %vm370_vm1, %v4271_v22  ;;  %5911 = vrot.lane.b32.xlu0 %v11680_v45, %s11153_s20  ;;  %v4311_v7 = vsel %vm370_vm1, %v4276_v31, 0 }
 0x1b7   : > { %v1368_v21 = vpop.f32.mrb[36].mxu0  ;;  %5913 = vrot.lane.b32.xlu1 %v11694_v5, %s11153_s20 }
 0x1b8   : > { %v12505_v40 = vadd.f32 %v1368_v21, %v12355_v46  ;;  %v1370_v58 = vpop.f32.mrb[37].mxu0  ;;  %10815 = vmatmul.mubr.msk.bf16.vlgmr.msra.gmra.mrb[140].mxu1 %vm366_vm2, %v12365_v41  ;;  %v12518_v17 = vpop.permute.xlu0 %4575  ;;  %v4293_v46 = vsel %vm370_vm1, %v4270_v36, 0  ;;  %v4596_v21 = vsel %vm4595_vm15, %v12488_v57, %v12492_v15 }
 0x1b9   : > { %v12510_v60 = vadd.f32 %v1370_v58, %v12360_v56  ;;  %4355 = vmatpush1.bf16.msra.mxu1 %v4287_v30  ;;  %v1372_v18 = vpop.f32.mrb[38].mxu0  ;;  %4386 = vmatprep.mubr.bf16.mxu1 %v11134_v6  ;;  %v12522_v41 = vpop.permute.xlu1 %4577 }
 0x1ba   : > { %v1373_v37 = vpop.f32.mrb[39].mxu0  ;;  %10513 = vmatprep.subr.msk.bf16.mxu1 %vm370_vm1, %v4273_v38  ;;  %6238 = vrot.lane.b32.xlu0 %v11328_v20, %s11154_s15  ;;  %v4611_v18 = vsel %vm370_vm1, %v4596_v21, 0 }
 0x1bb   : > { %v1409_v56 = vpop.f32.mrb[36].mxu1  ;;  %6240 = vrot.lane.b32.xlu1 %v11324_v19, %s11154_s15 }
 0x1bc   : > { %v12535_v52 = vadd.f32 %v1409_v56, %v12385_v2  ;;  %v1411_v39 = vpop.f32.mrb[37].mxu1  ;;  %10508 = vmatmul.mubr.msk.bf16.vlgmr.msra.gmra.mrb[144].mxu0 %vm366_vm2, %v12515_v10  ;;  %v12543_v1 = vpop.permute.xlu0 %4579 }
 0x1bd   : > { %v12540_v13 = vadd.f32 %v1411_v39, %v12390_v42  ;;  %4396 = vmatpush1.bf16.msra.mxu0 %v4293_v46  ;;  %v1413_v11 = vpop.f32.mrb[38].mxu1  ;;  %4427 = vmatprep.mubr.bf16.mxu0 %v11134_v6  ;;  %v12547_v2 = vpop.permute.xlu1 %4581 }
 0x1be   : > { %v1414_v44 = vpop.f32.mrb[39].mxu1  ;;  %10515 = vmatprep.subr.msk.bf16.mxu0 %vm370_vm1, %v4275_v35  ;;  %6242 = vrot.lane.b32.xlu0 %v11339_v24, %s11154_s15  ;;  %v4600_v8 = vsel %vm4595_vm15, %v12543_v1, %v12547_v2 }
 0x1bf   : > { %v1450_v47 = vpop.f32.mrb[40].mxu0  ;;  %6244 = vrot.lane.b32.xlu1 %v11334_v23, %s11154_s15 }
 0x1c0   : > { %v12557_v42 = vadd.f32 %v1450_v47, %v12407_v33  ;;  %v1452_v0 = vpop.f32.mrb[41].mxu0  ;;  %10510 = vmatmul.mubr.msk.bf16.vlgmr.msra.gmra.mrb[144].mxu1 %vm366_vm2, %v12515_v10  ;;  %v12565_v48 = vpop.permute.xlu0 %4583 }
 0x1c1   : > { %v12562_v9 = vadd.f32 %v1452_v0, %v12412_v62  ;;  %4437 = vmatpush1.bf16.msra.mxu1 %v4299_v61  ;;  %v1454_v29 = vpop.f32.mrb[42].mxu0  ;;  %4468 = vmatprep.mubr.bf16.mxu1 %v11134_v6  ;;  %v12569_v33 = vpop.permute.xlu1 %4585  ;;  %v4597_v62 = vsel %vm4595_vm15, %v12492_v15, %v12518_v17  ;;  %v4601_v56 = vsel %vm4595_vm15, %v12547_v2, %v12565_v48 }
 0x1c2   : > { %v1455_v4 = vpop.f32.mrb[43].mxu0  ;;  %10818 = vmatprep.subr.bf16.mxu1 %v11141_v53  ;;  %6246 = vrot.lane.b32.xlu0 %v11348_v26, %s11154_s15 }
 0x1c3   : > { %v1491_v12 = vpop.f32.mrb[40].mxu1  ;;  %6248 = vrot.lane.b32.xlu1 %v11343_v25, %s11154_s15 }
 0x1c4   : > { %v12582_v32 = vadd.f32 %v1491_v12, %v12432_v50  ;;  %v1493_v22 = vpop.f32.mrb[41].mxu1  ;;  %10512 = vmatmul.mubr.msk.bf16.vlgmr.msra.gmra.mrb[148].mxu0 %vm366_vm2, %v12515_v10  ;;  %v12590_v28 = vpop.permute.xlu0 %4587 }
 0x1c5   : > { %v12587_v51 = vadd.f32 %v1493_v22, %v12437_v43  ;;  %4478 = vmatpush1.bf16.msra.mxu0 %v4305_v59  ;;  %v1495_v49 = vpop.f32.mrb[42].mxu1  ;;  %4509 = vmatprep.mubr.bf16.mxu0 %v11134_v6  ;;  %v12594_v50 = vpop.permute.xlu1 %4589  ;;  %v4599_v43 = vsel %vm4595_vm15, %v12522_v41, %v12543_v1  ;;  %v4603_v0 = vsel %vm4595_vm15, %v12569_v33, %v12590_v28  ;;  %v12672_v1 = vld [vmem:[%s15592_s1 + $0x34] sm:$0xf] }
 0x1c6   : > { %v1496_v16 = vpop.f32.mrb[43].mxu1  ;;  %10519 = vmatprep.subr.msk.bf16.mxu0 %vm370_vm1, %v4597_v62  ;;  %6250 = vrot.lane.b32.xlu0 %v11354_v27, %s11154_s15  ;;  %v4602_v62 = vsel %vm4595_vm15, %v12565_v48, %v12569_v33 }
 0x1c7   : > { %v1532_v30 = vpop.f32.mrb[44].mxu0  ;;  %6252 = vrot.lane.b32.xlu1 %v11680_v45, %s11154_s15  ;;  %v4629_v21 = vsel %vm370_vm1, %v4602_v62, 0 }
 0x1c8   : > { %v12607_v36 = vadd.f32 %v1532_v30, %v12457_v54  ;;  %v1534_v38 = vpop.f32.mrb[45].mxu0  ;;  %10514 = vmatmul.mubr.msk.bf16.vlgmr.msra.gmra.mrb[148].mxu1 %vm366_vm2, %v12515_v10  ;;  %v12616_v15 = vpop.permute.xlu0 %4591 }
 0x1c9   : > { %v12612_v58 = vadd.f32 %v1534_v38, %v12462_v55  ;;  %10819 = vmatpush3.bf16.msra.mxu1 %v4311_v7  ;;  %v1536_v57 = vpop.f32.mrb[46].mxu0  ;;  %10820 = vmatprep.mubr.msk.bf16.mxu1 %vm11142_vm3, %v11141_v53  ;;  %v12620_v54 = vpop.permute.xlu1 %4593  ;;  %v4598_v55 = vsel %vm4595_vm15, %v12518_v17, %v12522_v41  ;;  %v12642_v41 = vld.sshfl [vmem:[%s11286_s11 + $0x20] sm:$0x3 pattern:$0x76325410]  ;;  %v4605_v22 = vsel %vm4595_vm15, %v12594_v50, %v12616_v15 }
 0x1ca   : > { %v1537_v46 = vpop.f32.mrb[47].mxu0  ;;  %10521 = vmatprep.subr.msk.bf16.mxu1 %vm370_vm1, %v4599_v43  ;;  %6254 = vrot.lane.b32.xlu0 %v11694_v5, %s11154_s15  ;;  %v4617_v61 = vsel %vm370_vm1, %v4598_v55, 0  ;;  %v4604_v38 = vsel %vm4595_vm15, %v12590_v28, %v12594_v50 }
 0x1cb   : > { %v1573_v37 = vpop.f32.mrb[44].mxu1  ;;  %6256 = vrot.lane.b32.xlu1 %v11309_v14, %s11154_s15  ;;  %v4635_v50 = vsel %vm370_vm1, %v4604_v38, 0 }
 0x1cc   : > { %v12637_v35 = vadd.f32 %v1573_v37, %v12483_v63  ;;  %10516 = vmatmul.mubr.msk.bf16.vlgmr.msra.gmra.mrb[152].mxu0 %vm366_vm2, %v12515_v10  ;;  %v10768_v17 = vpop.f32.mrb[45].mxu1  ;;  %v12645_v11 = vpop.permute.xlu0 %4901 }
 0x1cd   : > { %4644 = vmatpush1.bf16.msra.mxu0 %v4611_v18  ;;  %v1576_v39 = vpop.f32.mrb[46].mxu1  ;;  %4675 = vmatprep.mubr.bf16.mxu0 %v11134_v6  ;;  %v12649_v47 = vpop.permute.xlu1 %4903 }
 0x1ce   : > { %v10769_v44 = vpop.f32.mrb[47].mxu1  ;;  %10523 = vmatprep.subr.msk.bf16.mxu0 %vm370_vm1, %v4601_v56  ;;  %6258 = vrot.lane.b32.xlu0 %v12632_v34, %s11154_s15  ;;  %v4606_v56 = vsel %vm4595_vm15, %v12616_v15, %v12620_v54  ;;  %vm8902_vm15 = vcmask 670720  }
 0x1cf   : > { %v1698_v63 = vpop.f32.mrb[48].mxu0  ;;  %6260 = vrot.lane.b32.xlu1 %v12642_v41, %s11154_s15 }
 0x1d0   : > { %v12662_v29 = vadd.f32 %v1698_v63, %v12505_v40  ;;  %v1700_v59 = vpop.f32.mrb[49].mxu0  ;;  %10821 = vmatmul.mubr.msk.bf16.vlgmr.msra.gmra.mrb[152].mxu1 %vm366_vm2, %v12515_v10  ;;  %v12675_v12 = vpop.permute.xlu0 %4905  ;;  %v4623_v40 = vsel %vm370_vm1, %v4600_v8, 0 }
 0x1d1   : > { %v12667_v4 = vadd.f32 %v1700_v59, %v12510_v60  ;;  %4685 = vmatpush1.bf16.msra.mxu1 %v4617_v61  ;;  %v1702_v2 = vpop.f32.mrb[50].mxu0  ;;  %4716 = vmatprep.mubr.bf16.mxu1 %v11134_v6  ;;  %v12679_v10 = vpop.permute.xlu1 %4907  ;;  %v4641_v61 = vsel %vm370_vm1, %v4606_v56, 0 }
 0x1d2   : > { %v1703_v31 = vpop.f32.mrb[51].mxu0  ;;  %10525 = vmatprep.subr.msk.bf16.mxu1 %vm370_vm1, %v4603_v0  ;;  %6568 = vrot.lane.b32.xlu0 %v11328_v20, %s11155_s19  ;;  %v4926_v0 = vsel %vm4925_vm0, %v12645_v11, %v12649_v47 }
 0x1d3   : > { %v1739_v60 = vpop.f32.mrb[48].mxu1  ;;  %6570 = vrot.lane.b32.xlu1 %v11324_v19, %s11155_s19  ;;  %v4941_v31 = vsel %vm370_vm1, %v4926_v0, 0 }
 0x1d4   : > { %v12692_v49 = vadd.f32 %v1739_v60, %v12535_v52  ;;  %v1741_v7 = vpop.f32.mrb[49].mxu1  ;;  %10520 = vmatmul.mubr.msk.bf16.vlgmr.msra.gmra.mrb[156].mxu0 %vm366_vm2, %v12672_v1  ;;  %v12700_v16 = vpop.permute.xlu0 %4909 }
 0x1d5   : > { %v12697_v48 = vadd.f32 %v1741_v7, %v12540_v13  ;;  %4726 = vmatpush1.bf16.msra.mxu0 %v4623_v40  ;;  %v1743_v33 = vpop.f32.mrb[50].mxu1  ;;  %4757 = vmatprep.mubr.bf16.mxu0 %v11134_v6  ;;  %v12704_v52 = vpop.permute.xlu1 %4911 }
 0x1d6   : > { %v1744_v30 = vpop.f32.mrb[51].mxu1  ;;  %10527 = vmatprep.subr.msk.bf16.mxu0 %vm370_vm1, %v4605_v22  ;;  %6572 = vrot.lane.b32.xlu0 %v11339_v24, %s11155_s19 }
 0x1d7   : > { %v1780_v43 = vpop.f32.mrb[52].mxu0  ;;  %6574 = vrot.lane.b32.xlu1 %v11334_v23, %s11155_s19 }
 0x1d8   : > { %v12714_v13 = vadd.f32 %v1780_v43, %v12557_v42  ;;  %v1782_v57 = vpop.f32.mrb[53].mxu0  ;;  %10522 = vmatmul.mubr.msk.bf16.vlgmr.msra.gmra.mrb[156].mxu1 %vm366_vm2, %v12672_v1  ;;  %v12722_v28 = vpop.permute.xlu0 %4913 }
 0x1d9   : > { %v12719_v18 = vadd.f32 %v1782_v57, %v12562_v9  ;;  %4767 = vmatpush1.bf16.msra.mxu1 %v4629_v21  ;;  %v1784_v46 = vpop.f32.mrb[54].mxu0  ;;  %4798 = vmatprep.mubr.bf16.mxu1 %v11134_v6  ;;  %v12726_v42 = vpop.permute.xlu1 %4915  ;;  %v4927_v9 = vsel %vm4925_vm0, %v12649_v47, %v12675_v12  ;;  %v4931_v7 = vsel %vm4925_vm0, %v12704_v52, %v12722_v28 }
 0x1da   : > { %v1785_v37 = vpop.f32.mrb[55].mxu0  ;;  %10824 = vmatprep.subr.bf16.mxu1 %v11141_v53  ;;  %6576 = vrot.lane.b32.xlu0 %v11348_v26, %s11155_s19  ;;  %v4930_v57 = vsel %vm4925_vm0, %v12700_v16, %v12704_v52 }
 0x1db   : > { %v1821_v55 = vpop.f32.mrb[52].mxu1  ;;  %6578 = vrot.lane.b32.xlu1 %v11343_v25, %s11155_s19  ;;  %v4953_v56 = vsel %vm370_vm1, %v4930_v57, 0 }
 0x1dc   : > { %v12739_v17 = vadd.f32 %v1821_v55, %v12582_v32  ;;  %v1823_v39 = vpop.f32.mrb[53].mxu1  ;;  %10524 = vmatmul.mubr.msk.bf16.vlgmr.msra.gmra.mrb[160].mxu0 %vm366_vm2, %v12672_v1  ;;  %v12747_v54 = vpop.permute.xlu0 %4917 }
 0x1dd   : > { %v12744_v44 = vadd.f32 %v1823_v39, %v12587_v51  ;;  %4808 = vmatpush1.bf16.msra.mxu0 %v4635_v50  ;;  %v1825_v15 = vpop.f32.mrb[54].mxu1  ;;  %4839 = vmatprep.mubr.bf16.mxu0 %v11134_v6  ;;  %v12751_v32 = vpop.permute.xlu1 %4919  ;;  %v4929_v51 = vsel %vm4925_vm0, %v12679_v10, %v12700_v16  ;;  %v12819_v16 = vld [vmem:[%s15592_s1 + $0x38] sm:$0xf]  ;;  %v4932_v39 = vsel %vm4925_vm0, %v12722_v28, %v12726_v42 }
 0x1de   : > { %v1826_v63 = vpop.f32.mrb[55].mxu1  ;;  %10531 = vmatprep.subr.msk.bf16.mxu0 %vm370_vm1, %v4927_v9  ;;  %6580 = vrot.lane.b32.xlu0 %v11354_v27, %s11155_s19  ;;  %v4959_v0 = vsel %vm370_vm1, %v4932_v39, 0 }
 0x1df   : > { %v1862_v8 = vpop.f32.mrb[56].mxu0  ;;  %6582 = vrot.lane.b32.xlu1 %v11680_v45, %s11155_s19 }
 0x1e0   : > { %v1864_v59 = vpop.f32.mrb[57].mxu0  ;;  %10526 = vmatmul.mubr.msk.bf16.vlgmr.msra.gmra.mrb[160].mxu1 %vm366_vm2, %v12672_v1  ;;  %v12766_v2 = vadd.f32 %v1862_v8, %v12607_v36  ;;  %v12770_v11 = vpop.permute.xlu0 %4921  ;;  %v4928_v36 = vsel %vm4925_vm0, %v12675_v12, %v12679_v10 }
 0x1e1   : > { %10825 = vmatpush3.bf16.msra.mxu1 %v4641_v61  ;;  %v1866_v40 = vpop.f32.mrb[58].mxu0  ;;  %10826 = vmatprep.mubr.msk.bf16.mxu1 %vm11142_vm3, %v11141_v53  ;;  %v12773_v47 = vadd.f32 %v1864_v59, %v12612_v58  ;;  %v12777_v62 = vpop.permute.xlu1 %4923  ;;  %v4947_v21 = vsel %vm370_vm1, %v4928_v36, 0  ;;  %v4935_v15 = vsel %vm4925_vm0, %v12751_v32, %v12770_v11 }
 0x1e2   : > { %v1867_v60 = vpop.f32.mrb[59].mxu0  ;;  %10533 = vmatprep.subr.msk.bf16.mxu1 %vm370_vm1, %v4929_v51  ;;  %6584 = vrot.lane.b32.xlu0 %v11694_v5, %s11155_s19 }
 0x1e3   : > { %v1903_v22 = vpop.f32.mrb[56].mxu1  ;;  %6586 = vrot.lane.b32.xlu1 %v11309_v14, %s11155_s19 }
 0x1e4   : > { %10528 = vmatmul.mubr.msk.bf16.vlgmr.msra.gmra.mrb[164].mxu0 %vm366_vm2, %v12672_v1  ;;  %v10774_v58 = vpop.f32.mrb[57].mxu1  ;;  %v12792_v33 = vadd.f32 %v1903_v22, %v12637_v35  ;;  %v12795_v12 = vpop.permute.xlu0 %5231  ;;  %v4933_v35 = vsel %vm4925_vm0, %v12726_v42, %v12747_v54 }
 0x1e5   : > { %4974 = vmatpush1.bf16.msra.mxu0 %v4941_v31  ;;  %v1906_v30 = vpop.f32.mrb[58].mxu1  ;;  %5005 = vmatprep.mubr.bf16.mxu0 %v11134_v6  ;;  %v12799_v43 = vpop.permute.xlu1 %5233 }
 0x1e6   : > { %v10775_v10 = vpop.f32.mrb[59].mxu1  ;;  %10535 = vmatprep.subr.msk.bf16.mxu0 %vm370_vm1, %v4931_v7  ;;  %6588 = vrot.lane.b32.xlu0 %v12632_v34, %s11155_s19 }
 0x1e7   : > { %v2028_v38 = vpop.f32.mrb[60].mxu0  ;;  %6590 = vrot.lane.b32.xlu1 %v12642_v41, %s11155_s19 }
 0x1e8   : > { %v2030_v46 = vpop.f32.mrb[61].mxu0  ;;  %10827 = vmatmul.mubr.msk.bf16.vlgmr.msra.gmra.mrb[164].mxu1 %vm366_vm2, %v12672_v1  ;;  %v12814_v50 = vadd.f32 %v2028_v38, %v12662_v29  ;;  %v12822_v37 = vpop.permute.xlu0 %5235 }
 0x1e9   : > { %5015 = vmatpush1.bf16.msra.mxu1 %v4947_v21  ;;  %v2032_v52 = vpop.f32.mrb[62].mxu0  ;;  %5046 = vmatprep.mubr.bf16.mxu1 %v11134_v6  ;;  %v12825_v55 = vadd.f32 %v2030_v46, %v12667_v4  ;;  %v12829_v29 = vpop.permute.xlu1 %5237  ;;  %v5257_v58 = vsel %vm5255_vm4, %v12799_v43, %v12822_v37 }
 0x1ea   : > { %v2033_v1 = vpop.f32.mrb[63].mxu0  ;;  %10537 = vmatprep.subr.msk.bf16.mxu1 %vm370_vm1, %v4933_v35  ;;  %6898 = vrot.lane.b32.xlu0 %v11328_v20, %s11156_s14 }
 0x1eb   : > { %v2069_v9 = vpop.f32.mrb[60].mxu1  ;;  %6900 = vrot.lane.b32.xlu1 %v11324_v19, %s11156_s14 }
 0x1ec   : > { %v2071_v4 = vpop.f32.mrb[61].mxu1  ;;  %10532 = vmatmul.mubr.msk.bf16.vlgmr.msra.gmra.mrb[168].mxu0 %vm366_vm2, %v12819_v16  ;;  %v12844_v61 = vadd.f32 %v2069_v9, %v12692_v49  ;;  %v12847_v42 = vpop.permute.xlu0 %5239  ;;  %v4934_v49 = vsel %vm4925_vm0, %v12747_v54, %v12751_v32 }
 0x1ed   : > { %5056 = vmatpush1.bf16.msra.mxu0 %v4953_v56  ;;  %v2073_v28 = vpop.f32.mrb[62].mxu1  ;;  %5087 = vmatprep.mubr.bf16.mxu0 %v11134_v6  ;;  %v12850_v63 = vadd.f32 %v2071_v4, %v12697_v48  ;;  %v12854_v51 = vpop.permute.xlu1 %5241  ;;  %v4965_v32 = vsel %vm370_vm1, %v4934_v49, 0  ;;  %v5259_v46 = vsel %vm5255_vm4, %v12829_v29, %v12847_v42 }
 0x1ee   : > { %v2074_v8 = vpop.f32.mrb[63].mxu1  ;;  %10539 = vmatprep.subr.msk.bf16.mxu0 %vm370_vm1, %v4935_v15  ;;  %6902 = vrot.lane.b32.xlu0 %v11339_v24, %s11156_s14 }
 0x1ef   : > { %v2110_v59 = vpop.f32.mrb[64].mxu0  ;;  %6904 = vrot.lane.b32.xlu1 %v11334_v23, %s11156_s14 }
 0x1f0   : > { %v2112_v48 = vpop.f32.mrb[65].mxu0  ;;  %10534 = vmatmul.mubr.msk.bf16.vlgmr.msra.gmra.mrb[168].mxu1 %vm366_vm2, %v12819_v16  ;;  %v12866_v40 = vadd.f32 %v2110_v59, %v12714_v13  ;;  %v12869_v60 = vpop.permute.xlu0 %5243  ;;  %v4936_v13 = vsel %vm4925_vm0, %v12770_v11, %v12777_v62 }
 0x1f1   : > { %5097 = vmatpush1.bf16.msra.mxu1 %v4959_v0  ;;  %v2114_v31 = vpop.f32.mrb[66].mxu0  ;;  %5128 = vmatprep.mubr.bf16.mxu1 %v11134_v6  ;;  %v12872_v54 = vadd.f32 %v2112_v48, %v12719_v18  ;;  %v12876_v36 = vpop.permute.xlu1 %5245  ;;  %v4971_v21 = vsel %vm370_vm1, %v4936_v13, 0  ;;  %v5261_v15 = vsel %vm5255_vm4, %v12854_v51, %v12869_v60 }
 0x1f2   : > { %v2115_v22 = vpop.f32.mrb[67].mxu0  ;;  %10830 = vmatprep.subr.bf16.mxu1 %v11141_v53  ;;  %6906 = vrot.lane.b32.xlu0 %v11348_v26, %s11156_s14 }
 0x1f3   : > { %v2151_v7 = vpop.f32.mrb[64].mxu1  ;;  %6908 = vrot.lane.b32.xlu1 %v11343_v25, %s11156_s14 }
 0x1f4   : > { %v2153_v18 = vpop.f32.mrb[65].mxu1  ;;  %10536 = vmatmul.mubr.msk.bf16.vlgmr.msra.gmra.mrb[172].mxu0 %vm366_vm2, %v12819_v16  ;;  %v12891_v30 = vadd.f32 %v2151_v7, %v12739_v17  ;;  %v12894_v11 = vpop.permute.xlu0 %5247  ;;  %v5256_v17 = vsel %vm5255_vm4, %v12795_v12, %v12799_v43 }
 0x1f5   : > { %5138 = vmatpush1.bf16.msra.mxu0 %v4965_v32  ;;  %v2155_v10 = vpop.f32.mrb[66].mxu1  ;;  %5169 = vmatprep.mubr.bf16.mxu0 %v11134_v6  ;;  %v12897_v62 = vadd.f32 %v2153_v18, %v12744_v44  ;;  %v12901_v57 = vpop.permute.xlu1 %5249  ;;  %v5271_v1 = vsel %vm370_vm1, %v5256_v17, 0  ;;  %v5263_v48 = vsel %vm5255_vm4, %v12876_v36, %v12894_v11 }
 0x1f6   : > { %v2156_v38 = vpop.f32.mrb[67].mxu1  ;;  %10543 = vmatprep.subr.msk.bf16.mxu0 %vm370_vm1, %v5257_v58  ;;  %6910 = vrot.lane.b32.xlu0 %v11354_v27, %s11156_s14  ;;  %v5262_v58 = vsel %vm5255_vm4, %v12869_v60, %v12876_v36 }
 0x1f7   : > { %v2192_v35 = vpop.f32.mrb[68].mxu0  ;;  %6912 = vrot.lane.b32.xlu1 %v11680_v45, %s11156_s14  ;;  %v5289_v17 = vsel %vm370_vm1, %v5262_v58, 0 }
 0x1f8   : > { %v12914_v44 = vadd.f32 %v2192_v35, %v12766_v2  ;;  %v2194_v52 = vpop.f32.mrb[69].mxu0  ;;  %10538 = vmatmul.mubr.msk.bf16.vlgmr.msra.gmra.mrb[172].mxu1 %vm366_vm2, %v12819_v16  ;;  %v12923_v43 = vpop.permute.xlu0 %5251 }
 0x1f9   : > { %v12919_v56 = vadd.f32 %v2194_v52, %v12773_v47  ;;  %10831 = vmatpush3.bf16.msra.mxu1 %v4971_v21  ;;  %v2196_v12 = vpop.f32.mrb[70].mxu0  ;;  %10832 = vmatprep.mubr.msk.bf16.mxu1 %vm11142_vm3, %v11141_v53  ;;  %v12927_v2 = vpop.permute.xlu1 %5253  ;;  %v5258_v47 = vsel %vm5255_vm4, %v12822_v37, %v12829_v29  ;;  %v5265_v18 = vsel %vm5255_vm4, %v12901_v57, %v12923_v43 }
 0x1fa   : > { %v2197_v9 = vpop.f32.mrb[71].mxu0  ;;  %10545 = vmatprep.subr.msk.bf16.mxu1 %vm370_vm1, %v5259_v46  ;;  %6914 = vrot.lane.b32.xlu0 %v11694_v5, %s11156_s14  ;;  %v5277_v0 = vsel %vm370_vm1, %v5258_v47, 0  ;;  %v5264_v52 = vsel %vm5255_vm4, %v12894_v11, %v12901_v57 }
 0x1fb   : > { %v2233_v39 = vpop.f32.mrb[68].mxu1  ;;  %6916 = vrot.lane.b32.xlu1 %v11309_v14, %s11156_s14  ;;  %v5295_v57 = vsel %vm370_vm1, %v5264_v52, 0 }
 0x1fc   : > { %v12940_v4 = vadd.f32 %v2233_v39, %v12792_v33  ;;  %10540 = vmatmul.mubr.msk.bf16.vlgmr.msra.gmra.mrb[176].mxu0 %vm366_vm2, %v12819_v16  ;;  %v10780_v28 = vpop.f32.mrb[69].mxu1  ;;  %v12945_v37 = vpop.permute.xlu0 %5561  ;;  %v5260_v33 = vsel %vm5255_vm4, %v12847_v42, %v12854_v51  ;;  %v12972_v42 = vld [vmem:[%s15592_s1 + $0x3c] sm:$0xf] }
 0x1fd   : > { %5304 = vmatpush1.bf16.msra.mxu0 %v5271_v1  ;;  %v2236_v8 = vpop.f32.mrb[70].mxu1  ;;  %5335 = vmatprep.mubr.bf16.mxu0 %v11134_v6  ;;  %v12949_v59 = vpop.permute.xlu1 %5563 }
 0x1fe   : > { %v10781_v29 = vpop.f32.mrb[71].mxu1  ;;  %10547 = vmatprep.subr.msk.bf16.mxu0 %vm370_vm1, %v5261_v15  ;;  %6918 = vrot.lane.b32.xlu0 %v12632_v34, %s11156_s14  ;;  %v5266_v15 = vsel %vm5255_vm4, %v12923_v43, %v12927_v2 }
 0x1ff   : > { %v2358_v49 = vpop.f32.mrb[72].mxu0  ;;  %6920 = vrot.lane.b32.xlu1 %v12642_v41, %s11156_s14  ;;  %s11161_s14 = smov 83  }
 0x200   : > { %v12962_v31 = vadd.f32 %v2358_v49, %v12814_v50  ;;  %v2360_v32 = vpop.f32.mrb[73].mxu0  ;;  %10833 = vmatmul.mubr.msk.bf16.vlgmr.msra.gmra.mrb[176].mxu1 %vm366_vm2, %v12819_v16  ;;  %v12975_v7 = vpop.permute.xlu0 %5565  ;;  %v5283_v50 = vsel %vm370_vm1, %v5260_v33, 0 }
 0x201   : > { %v12967_v22 = vadd.f32 %v2360_v32, %v12825_v55  ;;  %5345 = vmatpush1.bf16.msra.mxu1 %v5277_v0  ;;  %v2362_v51 = vpop.f32.mrb[74].mxu0  ;;  %5376 = vmatprep.mubr.bf16.mxu1 %v11134_v6  ;;  %v12979_v16 = vpop.permute.xlu1 %5567  ;;  %v5301_v0 = vsel %vm370_vm1, %v5266_v15, 0 }
 0x202   : > { %v2363_v13 = vpop.f32.mrb[75].mxu0  ;;  %10549 = vmatprep.subr.msk.bf16.mxu1 %vm370_vm1, %v5263_v48  ;;  %7228 = vrot.lane.b32.xlu0 %v11328_v20, %s11157_s18  ;;  %v5586_v48 = vsel %vm5585_vm5, %v12945_v37, %v12949_v59 }
 0x203   : > { %v2399_v55 = vpop.f32.mrb[72].mxu1  ;;  %7230 = vrot.lane.b32.xlu1 %v11324_v19, %s11157_s18  ;;  %v5601_v13 = vsel %vm370_vm1, %v5586_v48, 0 }
 0x204   : > { %v12992_v10 = vadd.f32 %v2399_v55, %v12844_v61  ;;  %v2401_v21 = vpop.f32.mrb[73].mxu1  ;;  %10544 = vmatmul.mubr.msk.bf16.vlgmr.msra.gmra.mrb[180].mxu0 %vm366_vm2, %v12972_v42  ;;  %v13000_v38 = vpop.permute.xlu0 %5569 }
 0x205   : > { %v12997_v60 = vadd.f32 %v2401_v21, %v12850_v63  ;;  %5386 = vmatpush1.bf16.msra.mxu0 %v5283_v50  ;;  %v2403_v36 = vpop.f32.mrb[74].mxu1  ;;  %5417 = vmatprep.mubr.bf16.mxu0 %v11134_v6  ;;  %v13004_v61 = vpop.permute.xlu1 %5571 }
 0x206   : > { %v2404_v35 = vpop.f32.mrb[75].mxu1  ;;  %10551 = vmatprep.subr.msk.bf16.mxu0 %vm370_vm1, %v5265_v18  ;;  %7232 = vrot.lane.b32.xlu0 %v11339_v24, %s11157_s18 }
 0x207   : > { %v2440_v46 = vpop.f32.mrb[76].mxu0  ;;  %7234 = vrot.lane.b32.xlu1 %v11334_v23, %s11157_s18 }
 0x208   : > { %v13014_v63 = vadd.f32 %v2440_v46, %v12866_v40  ;;  %v2442_v12 = vpop.f32.mrb[77].mxu0  ;;  %10546 = vmatmul.mubr.msk.bf16.vlgmr.msra.gmra.mrb[180].mxu1 %vm366_vm2, %v12972_v42  ;;  %v13022_v11 = vpop.permute.xlu0 %5573 }
 0x209   : > { %v13019_v1 = vadd.f32 %v2442_v12, %v12872_v54  ;;  %5427 = vmatpush1.bf16.msra.mxu1 %v5289_v17  ;;  %v2444_v9 = vpop.f32.mrb[78].mxu0  ;;  %5458 = vmatprep.mubr.bf16.mxu1 %v11134_v6  ;;  %v13026_v40 = vpop.permute.xlu1 %5575  ;;  %v5587_v54 = vsel %vm5585_vm5, %v12949_v59, %v12975_v7  ;;  %v5591_v18 = vsel %vm5585_vm5, %v13004_v61, %v13022_v11 }
 0x20a   : > { %v2445_v39 = vpop.f32.mrb[79].mxu0  ;;  %10836 = vmatprep.subr.bf16.mxu1 %v11141_v53  ;;  %7236 = vrot.lane.b32.xlu0 %v11348_v26, %s11157_s18 }
 0x20b   : > { %v2481_v47 = vpop.f32.mrb[76].mxu1  ;;  %7238 = vrot.lane.b32.xlu1 %v11343_v25, %s11157_s18 }
 0x20c   : > { %v13039_v28 = vadd.f32 %v2481_v47, %v12891_v30  ;;  %v2483_v8 = vpop.f32.mrb[77].mxu1  ;;  %10548 = vmatmul.mubr.msk.bf16.vlgmr.msra.gmra.mrb[184].mxu0 %vm366_vm2, %v12972_v42  ;;  %v13047_v2 = vpop.permute.xlu0 %5577 }
 0x20d   : > { %v13044_v29 = vadd.f32 %v2483_v8, %v12897_v62  ;;  %5468 = vmatpush1.bf16.msra.mxu0 %v5295_v57  ;;  %v2485_v43 = vpop.f32.mrb[78].mxu1  ;;  %5499 = vmatprep.mubr.bf16.mxu0 %v11134_v6  ;;  %v13051_v30 = vpop.permute.xlu1 %5579  ;;  %v5589_v62 = vsel %vm5585_vm5, %v12979_v16, %v13000_v38  ;;  %v5593_v12 = vsel %vm5585_vm5, %v13026_v40, %v13047_v2 }
 0x20e   : > { %v2486_v49 = vpop.f32.mrb[79].mxu1  ;;  %10555 = vmatprep.subr.msk.bf16.mxu0 %vm370_vm1, %v5587_v54  ;;  %7240 = vrot.lane.b32.xlu0 %v11354_v27, %s11157_s18  ;;  %v5592_v54 = vsel %vm5585_vm5, %v13022_v11, %v13026_v40 }
 0x20f   : > { %v2522_v33 = vpop.f32.mrb[80].mxu0  ;;  %7242 = vrot.lane.b32.xlu1 %v11680_v45, %s11157_s18  ;;  %v5619_v48 = vsel %vm370_vm1, %v5592_v54, 0 }
 0x210   : > { %v13064_v32 = vadd.f32 %v2522_v33, %v12914_v44  ;;  %v2524_v51 = vpop.f32.mrb[81].mxu0  ;;  %10550 = vmatmul.mubr.msk.bf16.vlgmr.msra.gmra.mrb[184].mxu1 %vm366_vm2, %v12972_v42  ;;  %v13073_v59 = vpop.permute.xlu0 %5581 }
 0x211   : > { %v13069_v50 = vadd.f32 %v2524_v51, %v12919_v56  ;;  %10837 = vmatpush3.bf16.msra.mxu1 %v5301_v0  ;;  %v2526_v37 = vpop.f32.mrb[82].mxu0  ;;  %10838 = vmatprep.mubr.msk.bf16.mxu1 %vm11142_vm3, %v11141_v53  ;;  %v13077_v44 = vpop.permute.xlu1 %5583  ;;  %v5588_v56 = vsel %vm5585_vm5, %v12975_v7, %v12979_v16  ;;  %v5595_v8 = vsel %vm5585_vm5, %v13051_v30, %v13073_v59 }
 0x212   : > { %v2527_v55 = vpop.f32.mrb[83].mxu0  ;;  %10557 = vmatprep.subr.msk.bf16.mxu1 %vm370_vm1, %v5589_v62  ;;  %7244 = vrot.lane.b32.xlu0 %v11694_v5, %s11157_s18  ;;  %v5607_v17 = vsel %vm370_vm1, %v5588_v56, 0  ;;  %v5594_v51 = vsel %vm5585_vm5, %v13047_v2, %v13051_v30 }
 0x213   : > { %v2563_v58 = vpop.f32.mrb[80].mxu1  ;;  %7246 = vrot.lane.b32.xlu1 %v11309_v14, %s11157_s18  ;;  %v5625_v30 = vsel %vm370_vm1, %v5594_v51, 0 }
 0x214   : > { %v13090_v21 = vadd.f32 %v2563_v58, %v12940_v4  ;;  %10552 = vmatmul.mubr.msk.bf16.vlgmr.msra.gmra.mrb[188].mxu0 %vm366_vm2, %v12972_v42  ;;  %v10786_v36 = vpop.f32.mrb[81].mxu1  ;;  %v13095_v7 = vpop.permute.xlu0 %5891  ;;  %v5590_v4 = vsel %vm5585_vm5, %v13000_v38, %v13004_v61  ;;  %v13122_v38 = vld [vmem:[%s15592_s1 + $0x40] sm:$0xf] }
 0x215   : > { %5634 = vmatpush1.bf16.msra.mxu0 %v5601_v13  ;;  %v2566_v35 = vpop.f32.mrb[82].mxu1  ;;  %5665 = vmatprep.mubr.bf16.mxu0 %v11134_v6  ;;  %v13099_v46 = vpop.permute.xlu1 %5893 }
 0x216   : > { %v10787_v16 = vpop.f32.mrb[83].mxu1  ;;  %10559 = vmatprep.subr.msk.bf16.mxu0 %vm370_vm1, %v5591_v18  ;;  %7248 = vrot.lane.b32.xlu0 %v12632_v34, %s11157_s18  ;;  %v5596_v18 = vsel %vm5585_vm5, %v13073_v59, %v13077_v44 }
 0x217   : > { %v2688_v52 = vpop.f32.mrb[84].mxu0  ;;  %7250 = vrot.lane.b32.xlu1 %v12642_v41, %s11157_s18  ;;  %s11162_s18 = smov 82  }
 0x218   : > { %v13112_v9 = vadd.f32 %v2688_v52, %v12962_v31  ;;  %v2690_v57 = vpop.f32.mrb[85].mxu0  ;;  %10839 = vmatmul.mubr.msk.bf16.vlgmr.msra.gmra.mrb[188].mxu1 %vm366_vm2, %v12972_v42  ;;  %v13125_v47 = vpop.permute.xlu0 %5895  ;;  %v5613_v31 = vsel %vm370_vm1, %v5590_v4, 0 }
 0x219   : > { %v13117_v39 = vadd.f32 %v2690_v57, %v12967_v22  ;;  %5675 = vmatpush1.bf16.msra.mxu1 %v5607_v17  ;;  %v2692_v61 = vpop.f32.mrb[86].mxu0  ;;  %5706 = vmatprep.mubr.bf16.mxu1 %v11134_v6  ;;  %v13129_v42 = vpop.permute.xlu1 %5897  ;;  %v5631_v17 = vsel %vm370_vm1, %v5596_v18, 0 }
 0x21a   : > { %v2693_v15 = vpop.f32.mrb[87].mxu0  ;;  %10561 = vmatprep.subr.msk.bf16.mxu1 %vm370_vm1, %v5593_v12  ;;  %7558 = vrot.lane.b32.xlu0 %v11328_v20, %s11158_s29  ;;  %v5916_v12 = vsel %vm5915_vm6, %v13095_v7, %v13099_v46 }
 0x21b   : > { %v2729_v22 = vpop.f32.mrb[84].mxu1  ;;  %7560 = vrot.lane.b32.xlu1 %v11324_v19, %s11158_s29  ;;  %v5931_v15 = vsel %vm370_vm1, %v5916_v12, 0 }
 0x21c   : > { %v13142_v43 = vadd.f32 %v2729_v22, %v12992_v10  ;;  %v2731_v0 = vpop.f32.mrb[85].mxu1  ;;  %10556 = vmatmul.mubr.msk.bf16.vlgmr.msra.gmra.mrb[192].mxu0 %vm366_vm2, %v13122_v38  ;;  %v13150_v49 = vpop.permute.xlu0 %5899 }
 0x21d   : > { %v13147_v11 = vadd.f32 %v2731_v0, %v12997_v60  ;;  %5716 = vmatpush1.bf16.msra.mxu0 %v5613_v31  ;;  %v2733_v40 = vpop.f32.mrb[86].mxu1  ;;  %5747 = vmatprep.mubr.bf16.mxu0 %v11134_v6  ;;  %v13154_v10 = vpop.permute.xlu1 %5901 }
 0x21e   : > { %v2734_v33 = vpop.f32.mrb[87].mxu1  ;;  %10563 = vmatprep.subr.msk.bf16.mxu0 %vm370_vm1, %v5595_v8  ;;  %7562 = vrot.lane.b32.xlu0 %v11339_v24, %s11158_s29 }
 0x21f   : > { %v2770_v62 = vpop.f32.mrb[88].mxu0  ;;  %7564 = vrot.lane.b32.xlu1 %v11334_v23, %s11158_s29 }
 0x220   : > { %v13164_v60 = vadd.f32 %v2770_v62, %v13014_v63  ;;  %v2772_v37 = vpop.f32.mrb[89].mxu0  ;;  %10558 = vmatmul.mubr.msk.bf16.vlgmr.msra.gmra.mrb[192].mxu1 %vm366_vm2, %v13122_v38  ;;  %v13172_v2 = vpop.permute.xlu0 %5903 }
 0x221   : > { %v13169_v13 = vadd.f32 %v2772_v37, %v13019_v1  ;;  %5757 = vmatpush1.bf16.msra.mxu1 %v5619_v48  ;;  %v2774_v55 = vpop.f32.mrb[90].mxu0  ;;  %5788 = vmatprep.mubr.bf16.mxu1 %v11134_v6  ;;  %v13176_v63 = vpop.permute.xlu1 %5905  ;;  %v5917_v1 = vsel %vm5915_vm6, %v13099_v46, %v13125_v47  ;;  %v5921_v8 = vsel %vm5915_vm6, %v13154_v10, %v13172_v2 }
 0x222   : > { %v2775_v58 = vpop.f32.mrb[91].mxu0  ;;  %10842 = vmatprep.subr.bf16.mxu1 %v11141_v53  ;;  %7566 = vrot.lane.b32.xlu0 %v11348_v26, %s11158_s29  ;;  %v5922_v18 = vsel %vm5915_vm6, %v13172_v2, %v13176_v63 }
 0x223   : > { %v2811_v56 = vpop.f32.mrb[88].mxu1  ;;  %7568 = vrot.lane.b32.xlu1 %v11343_v25, %s11158_s29 }
 0x224   : > { %v13189_v36 = vadd.f32 %v2811_v56, %v13039_v28  ;;  %v2813_v35 = vpop.f32.mrb[89].mxu1  ;;  %10560 = vmatmul.mubr.msk.bf16.vlgmr.msra.gmra.mrb[196].mxu0 %vm366_vm2, %v13122_v38  ;;  %v13197_v44 = vpop.permute.xlu0 %5907 }
 0x225   : > { %v13194_v16 = vadd.f32 %v2813_v35, %v13044_v29  ;;  %5798 = vmatpush1.bf16.msra.mxu0 %v5625_v30  ;;  %v2815_v59 = vpop.f32.mrb[90].mxu1  ;;  %5829 = vmatprep.mubr.bf16.mxu0 %v11134_v6  ;;  %v13201_v28 = vpop.permute.xlu1 %5909  ;;  %v5919_v29 = vsel %vm5915_vm6, %v13129_v42, %v13150_v49  ;;  %v5923_v37 = vsel %vm5915_vm6, %v13176_v63, %v13197_v44 }
 0x226   : > { %v2816_v52 = vpop.f32.mrb[91].mxu1  ;;  %10567 = vmatprep.subr.msk.bf16.mxu0 %vm370_vm1, %v5917_v1  ;;  %7570 = vrot.lane.b32.xlu0 %v11354_v27, %s11158_s29 }
 0x227   : > { %v2852_v4 = vpop.f32.mrb[92].mxu0  ;;  %7572 = vrot.lane.b32.xlu1 %v11680_v45, %s11158_s29 }
 0x228   : > { %v13214_v57 = vadd.f32 %v2852_v4, %v13064_v32  ;;  %v2854_v61 = vpop.f32.mrb[93].mxu0  ;;  %10562 = vmatmul.mubr.msk.bf16.vlgmr.msra.gmra.mrb[196].mxu1 %vm366_vm2, %v13122_v38  ;;  %v13223_v46 = vpop.permute.xlu0 %5911  ;;  %v5949_v4 = vsel %vm370_vm1, %v5922_v18, 0 }
 0x229   : > { %v13219_v31 = vadd.f32 %v2854_v61, %v13069_v50  ;;  %10843 = vmatpush3.bf16.msra.mxu1 %v5631_v17  ;;  %v2856_v7 = vpop.f32.mrb[94].mxu0  ;;  %10844 = vmatprep.mubr.msk.bf16.mxu1 %vm11142_vm3, %v11141_v53  ;;  %v13227_v32 = vpop.permute.xlu1 %5913  ;;  %v5918_v50 = vsel %vm5915_vm6, %v13125_v47, %v13129_v42  ;;  %v5925_v1 = vsel %vm5915_vm6, %v13201_v28, %v13223_v46 }
 0x22a   : > { %v2857_v22 = vpop.f32.mrb[95].mxu0  ;;  %10569 = vmatprep.subr.msk.bf16.mxu1 %vm370_vm1, %v5919_v29  ;;  %7574 = vrot.lane.b32.xlu0 %v11694_v5, %s11158_s29  ;;  %v5937_v48 = vsel %vm370_vm1, %v5918_v50, 0  ;;  %v5924_v29 = vsel %vm5915_vm6, %v13197_v44, %v13201_v28  ;;  %v5926_v50 = vsel %vm5915_vm6, %v13223_v46, %v13227_v32 }
 0x22b   : > { %v2893_v54 = vpop.f32.mrb[92].mxu1  ;;  %7576 = vrot.lane.b32.xlu1 %v11309_v14, %s11158_s29  ;;  %v5955_v28 = vsel %vm370_vm1, %v5924_v29, 0 }
 0x22c   : > { %v13240_v0 = vadd.f32 %v2893_v54, %v13090_v21  ;;  %10564 = vmatmul.mubr.msk.bf16.vlgmr.msra.gmra.mrb[200].mxu0 %vm366_vm2, %v13122_v38  ;;  %v10792_v40 = vpop.f32.mrb[93].mxu1  ;;  %v13245_v47 = vpop.permute.xlu0 %6238  ;;  %v5920_v21 = vsel %vm5915_vm6, %v13150_v49, %v13154_v10  ;;  %v13272_v49 = vld [vmem:[%s15592_s1 + $0x44] sm:$0xf] }
 0x22d   : > { %5964 = vmatpush1.bf16.msra.mxu0 %v5931_v15  ;;  %v2896_v33 = vpop.f32.mrb[94].mxu1  ;;  %5995 = vmatprep.mubr.bf16.mxu0 %v11134_v6  ;;  %v13249_v62 = vpop.permute.xlu1 %6240 }
 0x22e   : > { %v10793_v42 = vpop.f32.mrb[95].mxu1  ;;  %10571 = vmatprep.subr.msk.bf16.mxu0 %vm370_vm1, %v5921_v8  ;;  %7578 = vrot.lane.b32.xlu0 %v12632_v34, %s11158_s29 }
 0x22f   : > { %v3018_v51 = vpop.f32.mrb[96].mxu0  ;;  %7580 = vrot.lane.b32.xlu1 %v12642_v41, %s11158_s29  ;;  %v5961_v42 = vsel %vm370_vm1, %v5926_v50, 0 }
 0x230   : > { %v13262_v55 = vadd.f32 %v3018_v51, %v13112_v9  ;;  %v3020_v30 = vpop.f32.mrb[97].mxu0  ;;  %10845 = vmatmul.mubr.msk.bf16.vlgmr.msra.gmra.mrb[200].mxu1 %vm366_vm2, %v13122_v38  ;;  %v13275_v41 = vpop.permute.xlu0 %6242  ;;  %v5943_v9 = vsel %vm370_vm1, %v5920_v21, 0  ;;  %v6263_v21 = vsel %vm6262_vm7, %v13245_v47, %v13249_v62 }
 0x231   : > { %v13267_v58 = vadd.f32 %v3020_v30, %v13117_v39  ;;  %6005 = vmatpush1.bf16.msra.mxu1 %v5937_v48  ;;  %v3022_v10 = vpop.f32.mrb[98].mxu0  ;;  %6036 = vmatprep.mubr.bf16.mxu1 %v11134_v6  ;;  %v13279_v38 = vpop.permute.xlu1 %6244 }
 0x232   : > { %v3023_v56 = vpop.f32.mrb[99].mxu0  ;;  %10573 = vmatprep.subr.msk.bf16.mxu1 %vm370_vm1, %v5923_v37  ;;  %7888 = vrot.lane.b32.xlu0 %v11328_v20, %s11159_s17 }
 0x233   : > { %v3059_v39 = vpop.f32.mrb[96].mxu1  ;;  %7890 = vrot.lane.b32.xlu1 %v11324_v19, %s11159_s17 }
 0x234   : > { %v13292_v35 = vadd.f32 %v3059_v39, %v13142_v43  ;;  %v3061_v59 = vpop.f32.mrb[97].mxu1  ;;  %10568 = vmatmul.mubr.msk.bf16.vlgmr.msra.gmra.mrb[204].mxu0 %vm366_vm2, %v13272_v49  ;;  %v13300_v17 = vpop.permute.xlu0 %6246 }
 0x235   : > { %v13297_v2 = vadd.f32 %v3061_v59, %v13147_v11  ;;  %6046 = vmatpush1.bf16.msra.mxu0 %v5943_v9  ;;  %v3063_v63 = vpop.f32.mrb[98].mxu1  ;;  %6077 = vmatprep.mubr.bf16.mxu0 %v11134_v6  ;;  %v13304_v43 = vpop.permute.xlu1 %6248  ;;  %v6278_v9 = vsel %vm370_vm1, %v6263_v21, 0 }
 0x236   : > { %v3064_v52 = vpop.f32.mrb[99].mxu1  ;;  %10575 = vmatprep.subr.msk.bf16.mxu0 %vm370_vm1, %v5925_v1  ;;  %7892 = vrot.lane.b32.xlu0 %v11339_v24, %s11159_s17 }
 0x237   : > { %v3100_v12 = vpop.f32.mrb[100].mxu0  ;;  %7894 = vrot.lane.b32.xlu1 %v11334_v23, %s11159_s17 }
 0x238   : > { %v13314_v11 = vadd.f32 %v3100_v12, %v13164_v60  ;;  %v3102_v61 = vpop.f32.mrb[101].mxu0  ;;  %10570 = vmatmul.mubr.msk.bf16.vlgmr.msra.gmra.mrb[204].mxu1 %vm366_vm2, %v13272_v49  ;;  %v13322_v44 = vpop.permute.xlu0 %6250 }
 0x239   : > { %v13319_v7 = vadd.f32 %v3102_v61, %v13169_v13  ;;  %6087 = vmatpush1.bf16.msra.mxu1 %v5949_v4  ;;  %v3104_v15 = vpop.f32.mrb[102].mxu0  ;;  %6118 = vmatprep.mubr.bf16.mxu1 %v11134_v6  ;;  %v13326_v60 = vpop.permute.xlu1 %6252  ;;  %v6264_v13 = vsel %vm6262_vm7, %v13249_v62, %v13275_v41  ;;  %v6268_v18 = vsel %vm6262_vm7, %v13304_v43, %v13322_v44  ;;  %v13410_v61 = vld.sshfl [vmem:[%s11286_s11 + $0x20] sm:$0x3 pattern:$0x76325410]  ;;  %s11160_s11 = smov 84  }
 0x23a   : > { %v3105_v22 = vpop.f32.mrb[103].mxu0  ;;  %10848 = vmatprep.subr.bf16.mxu1 %v11141_v53  ;;  %7896 = vrot.lane.b32.xlu0 %v11348_v26, %s11159_s17 }
 0x23b   : > { %v3141_v54 = vpop.f32.mrb[100].mxu1  ;;  %7898 = vrot.lane.b32.xlu1 %v11343_v25, %s11159_s17 }
 0x23c   : > { %v13339_v8 = vadd.f32 %v3141_v54, %v13189_v36  ;;  %v3143_v40 = vpop.f32.mrb[101].mxu1  ;;  %10572 = vmatmul.mubr.msk.bf16.vlgmr.msra.gmra.mrb[208].mxu0 %vm366_vm2, %v13272_v49  ;;  %v13347_v32 = vpop.permute.xlu0 %6254 }
 0x23d   : > { %v13344_v33 = vadd.f32 %v3143_v40, %v13194_v16  ;;  %6128 = vmatpush1.bf16.msra.mxu0 %v5955_v28  ;;  %v3145_v46 = vpop.f32.mrb[102].mxu1  ;;  %6159 = vmatprep.mubr.bf16.mxu0 %v11134_v6  ;;  %v13351_v36 = vpop.permute.xlu1 %6256  ;;  %v6266_v16 = vsel %vm6262_vm7, %v13279_v38, %v13300_v17  ;;  %v6270_v29 = vsel %vm6262_vm7, %v13326_v60, %v13347_v32 }
 0x23e   : > { %v3146_v48 = vpop.f32.mrb[103].mxu1  ;;  %10580 = vmatprep.subr.msk.bf16.mxu0 %vm370_vm1, %v6264_v13  ;;  %7900 = vrot.lane.b32.xlu0 %v11354_v27, %s11159_s17  ;;  %v6269_v13 = vsel %vm6262_vm7, %v13322_v44, %v13326_v60 }
 0x23f   : > { %v3182_v51 = vpop.f32.mrb[104].mxu0  ;;  %7902 = vrot.lane.b32.xlu1 %v11680_v45, %s11159_s17  ;;  %v6296_v21 = vsel %vm370_vm1, %v6269_v13, 0 }
 0x240   : > { %v13364_v37 = vadd.f32 %v3182_v51, %v13214_v57  ;;  %v3184_v30 = vpop.f32.mrb[105].mxu0  ;;  %10574 = vmatmul.mubr.msk.bf16.vlgmr.msra.gmra.mrb[208].mxu1 %vm366_vm2, %v13272_v49  ;;  %v13373_v62 = vpop.permute.xlu0 %6258 }
 0x241   : > { %v13369_v10 = vadd.f32 %v3184_v30, %v13219_v31  ;;  %10849 = vmatpush3.bf16.msra.mxu1 %v5961_v42  ;;  %v3186_v47 = vpop.f32.mrb[106].mxu0  ;;  %10850 = vmatprep.mubr.msk.bf16.mxu1 %vm11142_vm3, %v11141_v53  ;;  %v13377_v57 = vpop.permute.xlu1 %6260  ;;  %v6265_v31 = vsel %vm6262_vm7, %v13275_v41, %v13279_v38  ;;  %v6272_v40 = vsel %vm6262_vm7, %v13351_v36, %v13373_v62 }
 0x242   : > { %v3187_v56 = vpop.f32.mrb[107].mxu0  ;;  %10582 = vmatprep.subr.msk.bf16.mxu1 %vm370_vm1, %v6266_v16  ;;  %7904 = vrot.lane.b32.xlu0 %v11694_v5, %s11159_s17  ;;  %v6284_v52 = vsel %vm370_vm1, %v6265_v31, 0  ;;  %v6271_v30 = vsel %vm6262_vm7, %v13347_v32, %v13351_v36 }
 0x243   : > { %v3223_v39 = vpop.f32.mrb[104].mxu1  ;;  %7906 = vrot.lane.b32.xlu1 %v11309_v14, %s11159_s17  ;;  %v6302_v36 = vsel %vm370_vm1, %v6271_v30, 0 }
 0x244   : > { %v13390_v1 = vadd.f32 %v3223_v39, %v13240_v0  ;;  %10576 = vmatmul.mubr.msk.bf16.vlgmr.msra.gmra.mrb[212].mxu0 %vm366_vm2, %v13272_v49  ;;  %v10798_v59 = vpop.f32.mrb[105].mxu1  ;;  %v13395_v38 = vpop.permute.xlu0 %6568  ;;  %v6267_v0 = vsel %vm6262_vm7, %v13300_v17, %v13304_v43  ;;  %v13425_v43 = vld [vmem:[%s15592_s1 + $0x48] sm:$0xf] }
 0x245   : > { %6311 = vmatpush1.bf16.msra.mxu0 %v6278_v9  ;;  %v3226_v41 = vpop.f32.mrb[106].mxu1  ;;  %6342 = vmatprep.mubr.bf16.mxu0 %v11134_v6  ;;  %v13399_v4 = vpop.permute.xlu1 %6570 }
 0x246   : > { %v10799_v63 = vpop.f32.mrb[107].mxu1  ;;  %10584 = vmatprep.subr.msk.bf16.mxu0 %vm370_vm1, %v6268_v18  ;;  %7908 = vrot.lane.b32.xlu0 %v12632_v34, %s11159_s17  ;;  %v6273_v18 = vsel %vm6262_vm7, %v13373_v62, %v13377_v57 }
 0x247   : > { %v3357_v12 = vpop.f32.mrb[108].mxu0  ;;  %7910 = vrot.lane.b32.xlu1 %v13410_v61, %s11159_s17  ;;  %s10687_s17 = sshll.u32 %s11274_s16, 3  ;;  %s14503_s16 = scalar_lea.vmem [#allocation3], %s11290_s12 }
 0x248   : > { %v13415_v15 = vadd.f32 %v3357_v12, %v13262_v55  ;;  %v3359_v28 = vpop.f32.mrb[109].mxu0  ;;  %10851 = vmatmul.mubr.msk.bf16.vlgmr.msra.gmra.mrb[212].mxu1 %vm366_vm2, %v13272_v49  ;;  %v13428_v54 = vpop.permute.xlu0 %6572  ;;  %v6290_v55 = vsel %vm370_vm1, %v6267_v0, 0 }
 0x249   : > { %v13420_v17 = vadd.f32 %v3359_v28, %v13267_v58  ;;  %6352 = vmatpush1.bf16.msra.mxu1 %v6284_v52  ;;  %v3361_v22 = vpop.f32.mrb[110].mxu0  ;;  %6383 = vmatprep.mubr.bf16.mxu1 %v11134_v6  ;;  %v13432_v49 = vpop.permute.xlu1 %6574  ;;  %v6308_v52 = vsel %vm370_vm1, %v6273_v18, 0 }
 0x24a   : > { %v3362_v50 = vpop.f32.mrb[111].mxu0  ;;  %10586 = vmatprep.subr.msk.bf16.mxu1 %vm370_vm1, %v6270_v29  ;;  %8218 = vrot.lane.b32.xlu0 %v11328_v20, %s11160_s11  ;;  %v6593_v29 = vsel %vm6592_vm8, %v13395_v38, %v13399_v4 }
 0x24b   : > { %v3398_v58 = vpop.f32.mrb[108].mxu1  ;;  %8220 = vrot.lane.b32.xlu1 %v11324_v19, %s11160_s11  ;;  %v6608_v50 = vsel %vm370_vm1, %v6593_v29, 0 }
 0x24c   : > { %v13445_v46 = vadd.f32 %v3398_v58, %v13292_v35  ;;  %v3400_v42 = vpop.f32.mrb[109].mxu1  ;;  %10581 = vmatmul.mubr.msk.bf16.vlgmr.msra.gmra.mrb[216].mxu0 %vm366_vm2, %v13425_v43  ;;  %v13453_v48 = vpop.permute.xlu0 %6576 }
 0x24d   : > { %v13450_v44 = vadd.f32 %v3400_v42, %v13297_v2  ;;  %6393 = vmatpush1.bf16.msra.mxu0 %v6290_v55  ;;  %v3402_v60 = vpop.f32.mrb[110].mxu1  ;;  %6424 = vmatprep.mubr.bf16.mxu0 %v11134_v6  ;;  %v13457_v35 = vpop.permute.xlu1 %6578 }
 0x24e   : > { %v3403_v51 = vpop.f32.mrb[111].mxu1  ;;  %10588 = vmatprep.subr.msk.bf16.mxu0 %vm370_vm1, %v6272_v40  ;;  %8222 = vrot.lane.b32.xlu0 %v11339_v24, %s11160_s11 }
 0x24f   : > { %v3439_v16 = vpop.f32.mrb[112].mxu0  ;;  %8224 = vrot.lane.b32.xlu1 %v11334_v23, %s11160_s11 }
 0x250   : > { %v13467_v2 = vadd.f32 %v3439_v16, %v13314_v11  ;;  %v3441_v47 = vpop.f32.mrb[113].mxu0  ;;  %10583 = vmatmul.mubr.msk.bf16.vlgmr.msra.gmra.mrb[216].mxu1 %vm366_vm2, %v13425_v43  ;;  %v13475_v32 = vpop.permute.xlu0 %6580 }
 0x251   : > { %v13472_v9 = vadd.f32 %v3441_v47, %v13319_v7  ;;  %6434 = vmatpush1.bf16.msra.mxu1 %v6296_v21  ;;  %v3443_v56 = vpop.f32.mrb[114].mxu0  ;;  %6465 = vmatprep.mubr.bf16.mxu1 %v11134_v6  ;;  %v13479_v11 = vpop.permute.xlu1 %6582  ;;  %v6594_v7 = vsel %vm6592_vm8, %v13399_v4, %v13428_v54  ;;  %v6598_v40 = vsel %vm6592_vm8, %v13457_v35, %v13475_v32 }
 0x252   : > { %v3444_v39 = vpop.f32.mrb[115].mxu0  ;;  %10854 = vmatprep.subr.bf16.mxu1 %v11141_v53  ;;  %8226 = vrot.lane.b32.xlu0 %v11348_v26, %s11160_s11 }
 0x253   : > { %v3480_v31 = vpop.f32.mrb[112].mxu1  ;;  %8228 = vrot.lane.b32.xlu1 %v11343_v25, %s11160_s11 }
 0x254   : > { %v13492_v59 = vadd.f32 %v3480_v31, %v13339_v8  ;;  %v3482_v41 = vpop.f32.mrb[113].mxu1  ;;  %10585 = vmatmul.mubr.msk.bf16.vlgmr.msra.gmra.mrb[220].mxu0 %vm366_vm2, %v13425_v43  ;;  %v13500_v57 = vpop.permute.xlu0 %6584 }
 0x255   : > { %v13497_v63 = vadd.f32 %v3482_v41, %v13344_v33  ;;  %6475 = vmatpush1.bf16.msra.mxu0 %v6302_v36  ;;  %v3484_v62 = vpop.f32.mrb[114].mxu1  ;;  %6506 = vmatprep.mubr.bf16.mxu0 %v11134_v6  ;;  %v13504_v8 = vpop.permute.xlu1 %6586  ;;  %v6596_v33 = vsel %vm6592_vm8, %v13432_v49, %v13453_v48  ;;  %v6600_v47 = vsel %vm6592_vm8, %v13479_v11, %v13500_v57 }
 0x256   : > { %v3485_v12 = vpop.f32.mrb[115].mxu1  ;;  %10592 = vmatprep.subr.msk.bf16.mxu0 %vm370_vm1, %v6594_v7  ;;  %8230 = vrot.lane.b32.xlu0 %v11354_v27, %s11160_s11  ;;  %v6599_v7 = vsel %vm6592_vm8, %v13475_v32, %v13479_v11 }
 0x257   : > { %v3521_v0 = vpop.f32.mrb[116].mxu0  ;;  %8232 = vrot.lane.b32.xlu1 %v11680_v45, %s11160_s11 }
 0x258   : > { %v13517_v28 = vadd.f32 %v3521_v0, %v13364_v37  ;;  %v3523_v22 = vpop.f32.mrb[117].mxu0  ;;  %10587 = vmatmul.mubr.msk.bf16.vlgmr.msra.gmra.mrb[220].mxu1 %vm366_vm2, %v13425_v43  ;;  %v13526_v4 = vpop.permute.xlu0 %6588  ;;  %v6626_v0 = vsel %vm370_vm1, %v6599_v7, 0 }
 0x259   : > { %v13522_v55 = vadd.f32 %v3523_v22, %v13369_v10  ;;  %10855 = vmatpush3.bf16.msra.mxu1 %v6308_v52  ;;  %v3525_v38 = vpop.f32.mrb[118].mxu0  ;;  %10856 = vmatprep.mubr.msk.bf16.mxu1 %vm11142_vm3, %v11141_v53  ;;  %v13530_v37 = vpop.permute.xlu1 %6590  ;;  %v6595_v10 = vsel %vm6592_vm8, %v13428_v54, %v13432_v49  ;;  %v6602_v41 = vsel %vm6592_vm8, %v13504_v8, %v13526_v4 }
 0x25a   : > { %v3526_v58 = vpop.f32.mrb[119].mxu0  ;;  %10594 = vmatprep.subr.msk.bf16.mxu1 %vm370_vm1, %v6596_v33  ;;  %8234 = vrot.lane.b32.xlu0 %v11694_v5, %s11160_s11  ;;  %v6614_v49 = vsel %vm370_vm1, %v6595_v10, 0  ;;  %v6601_v22 = vsel %vm6592_vm8, %v13500_v57, %v13504_v8 }
 0x25b   : > { %v3562_v13 = vpop.f32.mrb[116].mxu1  ;;  %8236 = vrot.lane.b32.xlu1 %v11309_v14, %s11160_s11  ;;  %v6632_v8 = vsel %vm370_vm1, %v6601_v22, 0 }
 0x25c   : > { %v13543_v42 = vadd.f32 %v3562_v13, %v13390_v1  ;;  %10589 = vmatmul.mubr.msk.bf16.vlgmr.msra.gmra.mrb[224].mxu0 %vm366_vm2, %v13425_v43  ;;  %v10804_v60 = vpop.f32.mrb[117].mxu1  ;;  %v13548_v54 = vpop.permute.xlu0 %6898  ;;  %v6597_v1 = vsel %vm6592_vm8, %v13453_v48, %v13457_v35  ;;  %v13575_v48 = vld [vmem:[%s15592_s1 + $0x4c] sm:$0xf] }
 0x25d   : > { %6641 = vmatpush1.bf16.msra.mxu0 %v6608_v50  ;;  %v3565_v51 = vpop.f32.mrb[118].mxu1  ;;  %6672 = vmatprep.mubr.bf16.mxu0 %v11134_v6  ;;  %v13552_v16 = vpop.permute.xlu1 %6900 }
 0x25e   : > { %v10805_v21 = vpop.f32.mrb[119].mxu1  ;;  %10596 = vmatprep.subr.msk.bf16.mxu0 %vm370_vm1, %v6598_v40  ;;  %8238 = vrot.lane.b32.xlu0 %v12632_v34, %s11160_s11  ;;  %v6603_v40 = vsel %vm6592_vm8, %v13526_v4, %v13530_v37 }
 0x25f   : > { %v3687_v30 = vpop.f32.mrb[120].mxu0  ;;  %8240 = vrot.lane.b32.xlu1 %v13410_v61, %s11160_s11  ;;  %v6638_v21 = vsel %vm370_vm1, %v6603_v40, 0 }
 0x260   : > { %v13565_v56 = vadd.f32 %v3687_v30, %v13415_v15  ;;  %v3689_v36 = vpop.f32.mrb[121].mxu0  ;;  %10857 = vmatmul.mubr.msk.bf16.vlgmr.msra.gmra.mrb[224].mxu1 %vm366_vm2, %v13425_v43  ;;  %v13578_v31 = vpop.permute.xlu0 %6902  ;;  %v6620_v15 = vsel %vm370_vm1, %v6597_v1, 0 }
 0x261   : > { %v13570_v39 = vadd.f32 %v3689_v36, %v13420_v17  ;;  %6682 = vmatpush1.bf16.msra.mxu1 %v6614_v49  ;;  %v3691_v35 = vpop.f32.mrb[122].mxu0  ;;  %6713 = vmatprep.mubr.bf16.mxu1 %v11134_v6  ;;  %v13582_v43 = vpop.permute.xlu1 %6904 }
 0x262   : > { %v3692_v18 = vpop.f32.mrb[123].mxu0  ;;  %10598 = vmatprep.subr.msk.bf16.mxu1 %vm370_vm1, %v6600_v47  ;;  %8548 = vrot.lane.b32.xlu0 %v11328_v20, %s11161_s14  ;;  %v6923_v47 = vsel %vm6922_vm9, %v13548_v54, %v13552_v16 }
 0x263   : > { %v3728_v17 = vpop.f32.mrb[120].mxu1  ;;  %8550 = vrot.lane.b32.xlu1 %v11324_v19, %s11161_s14  ;;  %v6938_v18 = vsel %vm370_vm1, %v6923_v47, 0 }
 0x264   : > { %v13595_v62 = vadd.f32 %v3728_v17, %v13445_v46  ;;  %v3730_v52 = vpop.f32.mrb[121].mxu1  ;;  %10593 = vmatmul.mubr.msk.bf16.vlgmr.msra.gmra.mrb[228].mxu0 %vm366_vm2, %v13575_v48  ;;  %v13603_v12 = vpop.permute.xlu0 %6906 }
 0x265   : > { %v13600_v32 = vadd.f32 %v3730_v52, %v13450_v44  ;;  %6723 = vmatpush1.bf16.msra.mxu0 %v6620_v15  ;;  %v3732_v11 = vpop.f32.mrb[122].mxu1  ;;  %6754 = vmatprep.mubr.bf16.mxu0 %v11134_v6  ;;  %v13607_v46 = vpop.permute.xlu1 %6908 }
 0x266   : > { %v3733_v29 = vpop.f32.mrb[123].mxu1  ;;  %10600 = vmatprep.subr.msk.bf16.mxu0 %vm370_vm1, %v6602_v41  ;;  %8552 = vrot.lane.b32.xlu0 %v11339_v24, %s11161_s14 }
 0x267   : > { %v3769_v33 = vpop.f32.mrb[124].mxu0  ;;  %8554 = vrot.lane.b32.xlu1 %v11334_v23, %s11161_s14 }
 0x268   : > { %v13617_v44 = vadd.f32 %v3769_v33, %v13467_v2  ;;  %v3771_v38 = vpop.f32.mrb[125].mxu0  ;;  %10595 = vmatmul.mubr.msk.bf16.vlgmr.msra.gmra.mrb[228].mxu1 %vm366_vm2, %v13575_v48  ;;  %v13625_v57 = vpop.permute.xlu0 %6910 }
 0x269   : > { %v13622_v50 = vadd.f32 %v3771_v38, %v13472_v9  ;;  %6764 = vmatpush1.bf16.msra.mxu1 %v6626_v0  ;;  %v3773_v58 = vpop.f32.mrb[126].mxu0  ;;  %6795 = vmatprep.mubr.bf16.mxu1 %v11134_v6  ;;  %v13629_v2 = vpop.permute.xlu1 %6912  ;;  %v6924_v9 = vsel %vm6922_vm9, %v13552_v16, %v13578_v31  ;;  %v6928_v41 = vsel %vm6922_vm9, %v13607_v46, %v13625_v57 }
 0x26a   : > { %v3774_v13 = vpop.f32.mrb[127].mxu0  ;;  %10860 = vmatprep.subr.bf16.mxu1 %v11141_v53  ;;  %8556 = vrot.lane.b32.xlu0 %v11348_v26, %s11161_s14 }
 0x26b   : > { %v3810_v10 = vpop.f32.mrb[124].mxu1  ;;  %8558 = vrot.lane.b32.xlu1 %v11343_v25, %s11161_s14 }
 0x26c   : > { %v13642_v60 = vadd.f32 %v3810_v10, %v13492_v59  ;;  %v3812_v51 = vpop.f32.mrb[125].mxu1  ;;  %10597 = vmatmul.mubr.msk.bf16.vlgmr.msra.gmra.mrb[232].mxu0 %vm366_vm2, %v13575_v48  ;;  %v13650_v37 = vpop.permute.xlu0 %6914 }
 0x26d   : > { %v13647_v49 = vadd.f32 %v3812_v51, %v13497_v63  ;;  %6805 = vmatpush1.bf16.msra.mxu0 %v6632_v8  ;;  %v3814_v4 = vpop.f32.mrb[126].mxu1  ;;  %6836 = vmatprep.mubr.bf16.mxu0 %v11134_v6  ;;  %v13654_v59 = vpop.permute.xlu1 %6916  ;;  %v6926_v63 = vsel %vm6922_vm9, %v13582_v43, %v13603_v12  ;;  %v6930_v38 = vsel %vm6922_vm9, %v13629_v2, %v13650_v37 }
 0x26e   : > { %v3815_v30 = vpop.f32.mrb[127].mxu1  ;;  %10604 = vmatprep.subr.msk.bf16.mxu0 %vm370_vm1, %v6924_v9  ;;  %8560 = vrot.lane.b32.xlu0 %v11354_v27, %s11161_s14  ;;  %v6929_v9 = vsel %vm6922_vm9, %v13625_v57, %v13629_v2  ;;  %v6931_v47 = vsel %vm6922_vm9, %v13650_v37, %v13654_v59 }
 0x26f   : > { %v3851_v1 = vpop.f32.mrb[128].mxu0  ;;  %8562 = vrot.lane.b32.xlu1 %v11680_v45, %s11161_s14 }
 0x270   : > { %v13667_v36 = vadd.f32 %v3851_v1, %v13517_v28  ;;  %v3853_v35 = vpop.f32.mrb[129].mxu0  ;;  %10599 = vmatmul.mubr.msk.bf16.vlgmr.msra.gmra.mrb[232].mxu1 %vm366_vm2, %v13575_v48  ;;  %v13676_v16 = vpop.permute.xlu0 %6918 }
 0x271   : > { %v13672_v15 = vadd.f32 %v3853_v35, %v13522_v55  ;;  %10861 = vmatpush3.bf16.msra.mxu1 %v6638_v21  ;;  %v3855_v54 = vpop.f32.mrb[130].mxu0  ;;  %10862 = vmatprep.mubr.msk.bf16.mxu1 %vm11142_vm3, %v11141_v53  ;;  %v13680_v28 = vpop.permute.xlu1 %6920  ;;  %v6925_v55 = vsel %vm6922_vm9, %v13578_v31, %v13582_v43  ;;  %v6932_v51 = vsel %vm6922_vm9, %v13654_v59, %v13676_v16 }
 0x272   : > { %v3856_v17 = vpop.f32.mrb[131].mxu0  ;;  %10606 = vmatprep.subr.msk.bf16.mxu1 %vm370_vm1, %v6926_v63  ;;  %8564 = vrot.lane.b32.xlu0 %v11694_v5, %s11161_s14  ;;  %v6944_v43 = vsel %vm370_vm1, %v6925_v55, 0 }
 0x273   : > { %v3892_v7 = vpop.f32.mrb[128].mxu1  ;;  %8566 = vrot.lane.b32.xlu1 %v11309_v14, %s11161_s14 }
 0x274   : > { %v13693_v52 = vadd.f32 %v3892_v7, %v13543_v42  ;;  %10601 = vmatmul.mubr.msk.bf16.vlgmr.msra.gmra.mrb[236].mxu0 %vm366_vm2, %v13575_v48  ;;  %v10810_v11 = vpop.f32.mrb[129].mxu1  ;;  %v13698_v31 = vpop.permute.xlu0 %7228  ;;  %v6927_v42 = vsel %vm6922_vm9, %v13603_v12, %v13607_v46  ;;  %v13725_v12 = vld [vmem:[%s15592_s1 + $0x50] sm:$0xf] }
 0x275   : > { %6971 = vmatpush1.bf16.msra.mxu0 %v6938_v18  ;;  %v3895_v0 = vpop.f32.mrb[130].mxu1  ;;  %7002 = vmatprep.mubr.bf16.mxu0 %v11134_v6  ;;  %v13702_v33 = vpop.permute.xlu1 %7230  ;;  %v6933_v18 = vsel %vm6922_vm9, %v13676_v16, %v13680_v28 }
 0x276   : > { %v10811_v29 = vpop.f32.mrb[131].mxu1  ;;  %10608 = vmatprep.subr.msk.bf16.mxu0 %vm370_vm1, %v6928_v41  ;;  %8568 = vrot.lane.b32.xlu0 %v12632_v34, %s11161_s14  ;;  %v7253_v11 = vsel %vm7252_vm10, %v13698_v31, %v13702_v33 }
 0x277   : > { %v4017_v22 = vpop.f32.mrb[132].mxu0  ;;  %8570 = vrot.lane.b32.xlu1 %v13410_v61, %s11161_s14 }
 0x278   : > { %v13715_v58 = vadd.f32 %v4017_v22, %v13565_v56  ;;  %v4019_v8 = vpop.f32.mrb[133].mxu0  ;;  %10863 = vmatmul.mubr.msk.bf16.vlgmr.msra.gmra.mrb[236].mxu1 %vm366_vm2, %v13575_v48  ;;  %v13728_v10 = vpop.permute.xlu0 %7232  ;;  %v6950_v56 = vsel %vm370_vm1, %v6927_v42, 0 }
 0x279   : > { %v13720_v13 = vadd.f32 %v4019_v8, %v13570_v39  ;;  %7012 = vmatpush1.bf16.msra.mxu1 %v6944_v43  ;;  %v4021_v46 = vpop.f32.mrb[134].mxu0  ;;  %7043 = vmatprep.mubr.bf16.mxu1 %v11134_v6  ;;  %v13732_v48 = vpop.permute.xlu1 %7234 }
 0x27a   : > { %v4022_v40 = vpop.f32.mrb[135].mxu0  ;;  %10610 = vmatprep.subr.msk.bf16.mxu1 %vm370_vm1, %v6930_v38  ;;  %8878 = vrot.lane.b32.xlu0 %v11328_v20, %s11162_s18  ;;  %v6956_v20 = vsel %vm370_vm1, %v6929_v9, 0 }
 0x27b   : > { %v4058_v39 = vpop.f32.mrb[132].mxu1  ;;  %8880 = vrot.lane.b32.xlu1 %v11324_v19, %s11162_s18 }
 0x27c   : > { %v13745_v4 = vadd.f32 %v4058_v39, %v13595_v62  ;;  %v4060_v21 = vpop.f32.mrb[133].mxu1  ;;  %10605 = vmatmul.mubr.msk.bf16.vlgmr.msra.gmra.mrb[240].mxu0 %vm366_vm2, %v13725_v12  ;;  %v13753_v30 = vpop.permute.xlu0 %7236 }
 0x27d   : > { %v13750_v57 = vadd.f32 %v4060_v21, %v13600_v32  ;;  %7053 = vmatpush1.bf16.msra.mxu0 %v6950_v56  ;;  %v4062_v2 = vpop.f32.mrb[134].mxu1  ;;  %7084 = vmatprep.mubr.bf16.mxu0 %v11134_v6  ;;  %v13757_v19 = vpop.permute.xlu1 %7238  ;;  %v13875_v21 = vld [vmem:[%s15592_s1 + $0x54] sm:$0xf] }
 0x27e   : > { %v4063_v1 = vpop.f32.mrb[135].mxu1  ;;  %10612 = vmatprep.subr.msk.bf16.mxu0 %vm370_vm1, %v6932_v51  ;;  %8882 = vrot.lane.b32.xlu0 %v11339_v24, %s11162_s18  ;;  %v6962_v24 = vsel %vm370_vm1, %v6931_v47, 0 }
 0x27f   : > { %v4099_v62 = vpop.f32.mrb[136].mxu0  ;;  %8884 = vrot.lane.b32.xlu1 %v11334_v23, %s11162_s18 }
 0x280   : > { %v13767_v32 = vadd.f32 %v4099_v62, %v13617_v44  ;;  %v4101_v63 = vpop.f32.mrb[137].mxu0  ;;  %10607 = vmatmul.mubr.msk.bf16.vlgmr.msra.gmra.mrb[240].mxu1 %vm366_vm2, %v13725_v12  ;;  %v13775_v37 = vpop.permute.xlu0 %7240 }
 0x281   : > { %v13772_v35 = vadd.f32 %v4101_v63, %v13622_v50  ;;  %7094 = vmatpush1.bf16.msra.mxu1 %v6956_v20  ;;  %v4103_v54 = vpop.f32.mrb[138].mxu0  ;;  %7125 = vmatprep.mubr.bf16.mxu1 %v11134_v6  ;;  %v13779_v44 = vpop.permute.xlu1 %7242  ;;  %v7254_v50 = vsel %vm7252_vm10, %v13702_v33, %v13728_v10  ;;  %v7258_v42 = vsel %vm7252_vm10, %v13757_v19, %v13775_v37 }
 0x282   : > { %v4104_v23 = vpop.f32.mrb[139].mxu0  ;;  %10866 = vmatprep.subr.bf16.mxu1 %v11141_v53  ;;  %8886 = vrot.lane.b32.xlu0 %v11348_v26, %s11162_s18  ;;  %v6968_v26 = vsel %vm370_vm1, %v6933_v18, 0 }
 0x283   : > { %v4140_v59 = vpop.f32.mrb[136].mxu1  ;;  %8888 = vrot.lane.b32.xlu1 %v11343_v25, %s11162_s18 }
 0x284   : > { %v13792_v17 = vadd.f32 %v4140_v59, %v13642_v60  ;;  %v4142_v7 = vpop.f32.mrb[137].mxu1  ;;  %10609 = vmatmul.mubr.msk.bf16.vlgmr.msra.gmra.mrb[244].mxu0 %vm366_vm2, %v13725_v12  ;;  %v13800_v28 = vpop.permute.xlu0 %7244 }
 0x285   : > { %v13797_v55 = vadd.f32 %v4142_v7, %v13647_v49  ;;  %7135 = vmatpush1.bf16.msra.mxu0 %v6962_v24  ;;  %v4144_v16 = vpop.f32.mrb[138].mxu1  ;;  %7166 = vmatprep.mubr.bf16.mxu0 %v11134_v6  ;;  %v13804_v25 = vpop.permute.xlu1 %7246  ;;  %v7256_v49 = vsel %vm7252_vm10, %v13732_v48, %v13753_v30 }
 0x286   : > { %v4145_v41 = vpop.f32.mrb[139].mxu1  ;;  %10616 = vmatprep.subr.msk.bf16.mxu0 %vm370_vm1, %v7254_v50  ;;  %8890 = vrot.lane.b32.xlu0 %v11354_v27, %s11162_s18  ;;  %v7268_v27 = vsel %vm370_vm1, %v7253_v11, 0  ;;  %v7261_v23 = vsel %vm7252_vm10, %v13800_v28, %v13804_v25 }
 0x287   : > { %v4181_v60 = vpop.f32.mrb[140].mxu0  ;;  %8892 = vrot.lane.b32.xlu1 %v11680_v45, %s11162_s18  ;;  %v7292_v7 = vsel %vm370_vm1, %v7261_v23, 0 }
 0x288   : > { %v13817_v0 = vadd.f32 %v4181_v60, %v13667_v36  ;;  %v4183_v43 = vpop.f32.mrb[141].mxu0  ;;  %10611 = vmatmul.mubr.msk.bf16.vlgmr.msra.gmra.mrb[244].mxu1 %vm366_vm2, %v13725_v12  ;;  %v13826_v33 = vpop.permute.xlu0 %7248 }
 0x289   : > { %v13822_v29 = vadd.f32 %v4183_v43, %v13672_v15  ;;  %10867 = vmatpush3.bf16.msra.mxu1 %v6968_v26  ;;  %v4185_v31 = vpop.f32.mrb[142].mxu0  ;;  %10868 = vmatprep.mubr.msk.bf16.mxu1 %vm11142_vm3, %v11141_v53  ;;  %v13830_v36 = vpop.permute.xlu1 %7250  ;;  %v7255_v15 = vsel %vm7252_vm10, %v13728_v10, %v13732_v48  ;;  %v7260_v48 = vsel %vm7252_vm10, %v13779_v44, %v13800_v28 }
 0x28a   : > { %v4186_v45 = vpop.f32.mrb[143].mxu0  ;;  %10618 = vmatprep.subr.msk.bf16.mxu1 %vm370_vm1, %v7256_v49  ;;  %8894 = vrot.lane.b32.xlu0 %v11694_v5, %s11162_s18  ;;  %v7274_v56 = vsel %vm370_vm1, %v7255_v15, 0  ;;  %v7262_v20 = vsel %vm7252_vm10, %v13804_v25, %v13826_v33  ;;  %v7263_v26 = vsel %vm7252_vm10, %v13826_v33, %v13830_v36 }
 0x28b   : > { %v4222_v22 = vpop.f32.mrb[140].mxu1  ;;  %8896 = vrot.lane.b32.xlu1 %v11309_v14, %s11162_s18  ;;  %v7298_v43 = vsel %vm370_vm1, %v7263_v26, 0 }
 0x28c   : > { %v13843_v38 = vadd.f32 %v4222_v22, %v13693_v52  ;;  %10613 = vmatmul.mubr.msk.bf16.vlgmr.msra.gmra.mrb[248].mxu0 %vm366_vm2, %v13725_v12  ;;  %v10816_v8 = vpop.f32.mrb[141].mxu1  ;;  %v13848_v10 = vpop.permute.xlu0 %7558  ;;  %v7257_v52 = vsel %vm7252_vm10, %v13753_v30, %v13757_v19  ;;  %v7259_v30 = vsel %vm7252_vm10, %v13775_v37, %v13779_v44 }
 0x28d   : > { %7301 = vmatpush1.bf16.msra.mxu0 %v7268_v27  ;;  %v4225_v46 = vpop.f32.mrb[142].mxu1  ;;  %7332 = vmatprep.mubr.bf16.mxu0 %v11134_v6  ;;  %v13852_v5 = vpop.permute.xlu1 %7560  ;;  %v7286_v54 = vsel %vm370_vm1, %v7259_v30, 0  ;;  %v13997_v30 = vld [vmem:[%s15592_s1 + $0x58] sm:$0xf] }
 0x28e   : > { %v10817_v40 = vpop.f32.mrb[143].mxu1  ;;  %10620 = vmatprep.subr.msk.bf16.mxu0 %vm370_vm1, %v7258_v42  ;;  %8898 = vrot.lane.b32.xlu0 %v12632_v34, %s11162_s18  ;;  %v7583_v27 = vsel %vm7582_vm11, %v13848_v10, %v13852_v5 }
 0x28f   : > { %v4347_v14 = vpop.f32.mrb[144].mxu0  ;;  %8900 = vrot.lane.b32.xlu1 %v13410_v61, %s11162_s18  ;;  %v7598_v8 = vsel %vm370_vm1, %v7583_v27, 0  ;;  %s14489_s18 = scalar_lea.vmem [#allocation2], %s10687_s17 }
 0x290   : > { %v13865_v39 = vadd.f32 %v4347_v14, %v13715_v58  ;;  %v4349_v9 = vpop.f32.mrb[145].mxu0  ;;  %10869 = vmatmul.mubr.msk.bf16.vlgmr.msra.gmra.mrb[248].mxu1 %vm366_vm2, %v13725_v12  ;;  %v13878_v61 = vpop.permute.xlu0 %7562  ;;  %v7280_v58 = vsel %vm370_vm1, %v7257_v52, 0 }
 0x291   : > { %v13870_v51 = vadd.f32 %v4349_v9, %v13720_v13  ;;  %7342 = vmatpush1.bf16.msra.mxu1 %v7274_v56  ;;  %v4351_v34 = vpop.f32.mrb[146].mxu0  ;;  %7373 = vmatprep.mubr.bf16.mxu1 %v11134_v6  ;;  %v13882_v12 = vpop.permute.xlu1 %7564 }
 0x292   : > { %v4352_v2 = vpop.f32.mrb[147].mxu0  ;;  %10622 = vmatprep.subr.msk.bf16.mxu1 %vm370_vm1, %v7260_v48 }
 0x293   : > { %v4388_v13 = vpop.f32.mrb[144].mxu1 }
 0x294   : > { %v13891_v1 = vadd.f32 %v4388_v13, %v13745_v4  ;;  %v4390_v19 = vpop.f32.mrb[145].mxu1  ;;  %10617 = vmatmul.mubr.msk.bf16.vlgmr.msra.gmra.mrb[252].mxu0 %vm366_vm2, %v13875_v21  ;;  %v13899_v63 = vpop.permute.xlu0 %7566 }
 0x295   : > { %v13896_v62 = vadd.f32 %v4390_v19, %v13750_v57  ;;  %7383 = vmatpush1.bf16.msra.mxu0 %v7280_v58  ;;  %v4392_v47 = vpop.f32.mrb[146].mxu1  ;;  %7414 = vmatprep.mubr.bf16.mxu0 %v11134_v6  ;;  %v7569_v4 = vpop.permute.xlu1 %7568 }
 0x296   : > { %v4393_v37 = vpop.f32.mrb[147].mxu1  ;;  %10624 = vmatprep.subr.msk.bf16.mxu0 %vm370_vm1, %v7262_v20 }
 0x297   : > { %v4429_v24 = vpop.f32.mrb[148].mxu0 }
 0x298   : > { %v13907_v57 = vadd.f32 %v4429_v24, %v13767_v32  ;;  %v4431_v44 = vpop.f32.mrb[149].mxu0  ;;  %10619 = vmatmul.mubr.msk.bf16.vlgmr.msra.gmra.mrb[252].mxu1 %vm366_vm2, %v13875_v21  ;;  %v13915_v50 = vpop.permute.xlu0 %7570 }
 0x299   : > { %v13912_v59 = vadd.f32 %v4431_v44, %v13772_v35  ;;  %7424 = vmatpush1.bf16.msra.mxu1 %v7286_v54  ;;  %v4433_v18 = vpop.f32.mrb[150].mxu0  ;;  %7455 = vmatprep.mubr.bf16.mxu1 %v11134_v6  ;;  %v13919_v32 = vpop.permute.xlu1 %7572  ;;  %v7584_v35 = vsel %vm7582_vm11, %v13852_v5, %v13878_v61  ;;  %v7588_v56 = vsel %vm7582_vm11, %v7569_v4, %v13915_v50 }
 0x29a   : > { %v4434_v16 = vpop.f32.mrb[151].mxu0  ;;  %10872 = vmatprep.subr.bf16.mxu1 %v11141_v53 }
 0x29b   : > { %v4470_v28 = vpop.f32.mrb[148].mxu1 }
 0x29c   : > { %v13928_v41 = vadd.f32 %v4470_v28, %v13792_v17  ;;  %v4472_v25 = vpop.f32.mrb[149].mxu1  ;;  %10621 = vmatmul.mubr.msk.bf16.vlgmr.msra.gmra.mrb[0].mxu0 %vm366_vm2, %v13875_v21  ;;  %v13936_v49 = vpop.permute.xlu0 %7574 }
 0x29d   : > { %v13933_v60 = vadd.f32 %v4472_v25, %v13797_v55  ;;  %7465 = vmatpush1.bf16.msra.mxu0 %v7292_v7  ;;  %v4474_v11 = vpop.f32.mrb[150].mxu1  ;;  %7496 = vmatprep.mubr.bf16.mxu0 %v11134_v6  ;;  %v13940_v17 = vpop.permute.xlu1 %7576  ;;  %v7586_v55 = vsel %vm7582_vm11, %v13882_v12, %v13899_v63  ;;  %v7590_v58 = vsel %vm7582_vm11, %v13919_v32, %v13936_v49 }
 0x29e   : > { %v4475_v31 = vpop.f32.mrb[151].mxu1  ;;  %10628 = vmatprep.subr.msk.bf16.mxu0 %vm370_vm1, %v7584_v35  ;;  %v7591_v16 = vsel %vm7582_vm11, %v13936_v49, %v13940_v17 }
 0x29f   : > { %v4511_v33 = vpop.f32.mrb[152].mxu0  ;;  %v7622_v25 = vsel %vm370_vm1, %v7591_v16, 0 }
 0x2a0   : > { %v13949_v45 = vadd.f32 %v4511_v33, %v13817_v0  ;;  %v4513_v36 = vpop.f32.mrb[153].mxu0  ;;  %10623 = vmatmul.mubr.msk.bf16.vlgmr.msra.gmra.mrb[0].mxu1 %vm366_vm2, %v13875_v21  ;;  %v13958_v42 = vpop.permute.xlu0 %7578 }
 0x2a1   : > { %v13954_v22 = vadd.f32 %v4513_v36, %v13822_v29  ;;  %10873 = vmatpush3.bf16.msra.mxu1 %v7298_v43  ;;  %v4515_v15 = vpop.f32.mrb[154].mxu0  ;;  %10874 = vmatprep.mubr.msk.bf16.mxu1 %vm11142_vm3, %v11141_v53  ;;  %v13962_v0 = vpop.permute.xlu1 %7580  ;;  %v7585_v29 = vsel %vm7582_vm11, %v13878_v61, %v13882_v12  ;;  %v7592_v54 = vsel %vm7582_vm11, %v13940_v17, %v13958_v42 }
 0x2a2   : > { %v4516_v46 = vpop.f32.mrb[155].mxu0  ;;  %10630 = vmatprep.subr.msk.bf16.mxu1 %vm370_vm1, %v7586_v55  ;;  %v7604_v48 = vsel %vm370_vm1, %v7585_v29, 0  ;;  %v7593_v43 = vsel %vm7582_vm11, %v13958_v42, %v13962_v0 }
 0x2a3   : > { %v4552_v10 = vpop.f32.mrb[152].mxu1  ;;  %v7628_v36 = vsel %vm370_vm1, %v7593_v43, 0 }
 0x2a4   : > { %v13970_v40 = vadd.f32 %v4552_v10, %v13843_v38  ;;  %10625 = vmatmul.mubr.msk.bf16.vlgmr.msra.gmra.mrb[4].mxu0 %vm366_vm2, %v13875_v21  ;;  %v10822_v5 = vpop.f32.mrb[153].mxu1  ;;  %v13975_v52 = vpop.permute.xlu0 %7888  ;;  %v7587_v38 = vsel %vm7582_vm11, %v13899_v63, %v7569_v4  ;;  %v7589_v63 = vsel %vm7582_vm11, %v13915_v50, %v13919_v32 }
 0x2a5   : > { %7631 = vmatpush1.bf16.msra.mxu0 %v7598_v8  ;;  %v4555_v14 = vpop.f32.mrb[154].mxu1  ;;  %7662 = vmatprep.mubr.bf16.mxu0 %v11134_v6  ;;  %v13979_v34 = vpop.permute.xlu1 %7890  ;;  %v7616_v18 = vsel %vm370_vm1, %v7589_v63, 0  ;;  %v14119_v63 = vld [vmem:[%s15592_s1 + $0x5c] sm:$0xf] }
 0x2a6   : > { %v10823_v9 = vpop.f32.mrb[155].mxu1  ;;  %10632 = vmatprep.subr.msk.bf16.mxu0 %vm370_vm1, %v7588_v56  ;;  %v7913_v8 = vsel %vm7912_vm12, %v13975_v52, %v13979_v34 }
 0x2a7   : > { %v4677_v61 = vpop.f32.mrb[156].mxu0  ;;  %v7928_v5 = vsel %vm370_vm1, %v7913_v8, 0 }
 0x2a8   : > { %v13987_v2 = vadd.f32 %v4677_v61, %v13865_v39  ;;  %v4679_v12 = vpop.f32.mrb[157].mxu0  ;;  %10875 = vmatmul.mubr.msk.bf16.vlgmr.msra.gmra.mrb[4].mxu1 %vm366_vm2, %v13875_v21  ;;  %v14000_v19 = vpop.permute.xlu0 %7892  ;;  %v7610_v39 = vsel %vm370_vm1, %v7587_v38, 0 }
 0x2a9   : > { %v13992_v13 = vadd.f32 %v4679_v12, %v13870_v51  ;;  %7672 = vmatpush1.bf16.msra.mxu1 %v7604_v48  ;;  %v4681_v20 = vpop.f32.mrb[158].mxu0  ;;  %7703 = vmatprep.mubr.bf16.mxu1 %v11134_v6  ;;  %v14004_v21 = vpop.permute.xlu1 %7894 }
 0x2aa   : > { %v4682_v47 = vpop.f32.mrb[159].mxu0  ;;  %10634 = vmatprep.subr.msk.bf16.mxu1 %vm370_vm1, %v7590_v58 }
 0x2ab   : > { %v4718_v51 = vpop.f32.mrb[156].mxu1 }
 0x2ac   : > { %v14013_v37 = vadd.f32 %v4718_v51, %v13891_v1  ;;  %v4720_v4 = vpop.f32.mrb[157].mxu1  ;;  %10629 = vmatmul.mubr.msk.bf16.vlgmr.msra.gmra.mrb[8].mxu0 %vm366_vm2, %v13997_v30  ;;  %v14021_v44 = vpop.permute.xlu0 %7896 }
 0x2ad   : > { %v14018_v24 = vadd.f32 %v4720_v4, %v13896_v62  ;;  %7713 = vmatpush1.bf16.msra.mxu0 %v7610_v39  ;;  %v4722_v23 = vpop.f32.mrb[158].mxu1  ;;  %7744 = vmatprep.mubr.bf16.mxu0 %v11134_v6  ;;  %v7899_v1 = vpop.permute.xlu1 %7898 }
 0x2ae   : > { %v4723_v50 = vpop.f32.mrb[159].mxu1  ;;  %10636 = vmatprep.subr.msk.bf16.mxu0 %vm370_vm1, %v7592_v54 }
 0x2af   : > { %v4759_v7 = vpop.f32.mrb[160].mxu0 }
 0x2b0   : > { %v14029_v62 = vadd.f32 %v4759_v7, %v13907_v57  ;;  %v4761_v32 = vpop.f32.mrb[161].mxu0  ;;  %10631 = vmatmul.mubr.msk.bf16.vlgmr.msra.gmra.mrb[8].mxu1 %vm366_vm2, %v13997_v30  ;;  %v14037_v35 = vpop.permute.xlu0 %7900 }
 0x2b1   : > { %v14034_v28 = vadd.f32 %v4761_v32, %v13912_v59  ;;  %7754 = vmatpush1.bf16.msra.mxu1 %v7616_v18  ;;  %v4763_v26 = vpop.f32.mrb[162].mxu0  ;;  %7785 = vmatprep.mubr.bf16.mxu1 %v11134_v6  ;;  %v14041_v57 = vpop.permute.xlu1 %7902  ;;  %v7914_v59 = vsel %vm7912_vm12, %v13979_v34, %v14000_v19  ;;  %v7918_v48 = vsel %vm7912_vm12, %v7899_v1, %v14037_v35 }
 0x2b2   : > { %v4764_v11 = vpop.f32.mrb[163].mxu0  ;;  %10878 = vmatprep.subr.bf16.mxu1 %v11141_v53 }
 0x2b3   : > { %v4800_v49 = vpop.f32.mrb[160].mxu1 }
 0x2b4   : > { %v14050_v31 = vadd.f32 %v4800_v49, %v13928_v41  ;;  %v4802_v17 = vpop.f32.mrb[161].mxu1  ;;  %10633 = vmatmul.mubr.msk.bf16.vlgmr.msra.gmra.mrb[12].mxu0 %vm366_vm2, %v13997_v30  ;;  %v14058_v55 = vpop.permute.xlu0 %7904 }
 0x2b5   : > { %v14055_v33 = vadd.f32 %v4802_v17, %v13933_v60  ;;  %7795 = vmatpush1.bf16.msra.mxu0 %v7622_v25  ;;  %v4804_v27 = vpop.f32.mrb[162].mxu1  ;;  %7826 = vmatprep.mubr.bf16.mxu0 %v11134_v6  ;;  %v14062_v41 = vpop.permute.xlu1 %7906  ;;  %v7916_v60 = vsel %vm7912_vm12, %v14004_v21, %v14021_v44  ;;  %v7920_v39 = vsel %vm7912_vm12, %v14041_v57, %v14058_v55 }
 0x2b6   : > { %v4805_v15 = vpop.f32.mrb[163].mxu1  ;;  %10640 = vmatprep.subr.msk.bf16.mxu0 %vm370_vm1, %v7914_v59  ;;  %v7921_v11 = vsel %vm7912_vm12, %v14058_v55, %v14062_v41 }
 0x2b7   : > { %v4841_v42 = vpop.f32.mrb[164].mxu0  ;;  %v7952_v17 = vsel %vm370_vm1, %v7921_v11, 0 }
 0x2b8   : > { %v14071_v46 = vadd.f32 %v4841_v42, %v13949_v45  ;;  %v4843_v0 = vpop.f32.mrb[165].mxu0  ;;  %10635 = vmatmul.mubr.msk.bf16.vlgmr.msra.gmra.mrb[12].mxu1 %vm366_vm2, %v13997_v30  ;;  %v14080_v56 = vpop.permute.xlu0 %7908 }
 0x2b9   : > { %v14076_v10 = vadd.f32 %v4843_v0, %v13954_v22  ;;  %10879 = vmatpush3.bf16.msra.mxu1 %v7628_v36  ;;  %v4845_v29 = vpop.f32.mrb[166].mxu0  ;;  %10880 = vmatprep.mubr.msk.bf16.mxu1 %vm11142_vm3, %v11141_v53  ;;  %v14084_v45 = vpop.permute.xlu1 %7910  ;;  %v7915_v22 = vsel %vm7912_vm12, %v14000_v19, %v14004_v21  ;;  %v7922_v18 = vsel %vm7912_vm12, %v14062_v41, %v14080_v56 }
 0x2ba   : > { %v4846_v14 = vpop.f32.mrb[167].mxu0  ;;  %10642 = vmatprep.subr.msk.bf16.mxu1 %vm370_vm1, %v7916_v60  ;;  %v7934_v58 = vsel %vm370_vm1, %v7915_v22, 0  ;;  %v7923_v36 = vsel %vm7912_vm12, %v14080_v56, %v14084_v45 }
 0x2bb   : > { %v4882_v52 = vpop.f32.mrb[164].mxu1  ;;  %v7958_v0 = vsel %vm370_vm1, %v7923_v36, 0 }
 0x2bc   : > { %v14092_v9 = vadd.f32 %v4882_v52, %v13970_v40  ;;  %10637 = vmatmul.mubr.msk.bf16.vlgmr.msra.gmra.mrb[16].mxu0 %vm366_vm2, %v13997_v30  ;;  %v10828_v34 = vpop.f32.mrb[165].mxu1  ;;  %v14097_v38 = vpop.permute.xlu0 %8218  ;;  %v7917_v40 = vsel %vm7912_vm12, %v14021_v44, %v7899_v1  ;;  %v7919_v44 = vsel %vm7912_vm12, %v14037_v35, %v14041_v57 }
 0x2bd   : > { %7961 = vmatpush1.bf16.msra.mxu0 %v7928_v5  ;;  %v4885_v61 = vpop.f32.mrb[166].mxu1  ;;  %7992 = vmatprep.mubr.bf16.mxu0 %v11134_v6  ;;  %v14101_v20 = vpop.permute.xlu1 %8220  ;;  %v7946_v26 = vsel %vm370_vm1, %v7919_v44, 0  ;;  %v14241_v44 = vld [vmem:[%s15592_s1 + $0x60] sm:$0xf] }
 0x2be   : > { %v10829_v12 = vpop.f32.mrb[167].mxu1  ;;  %10644 = vmatprep.subr.msk.bf16.mxu0 %vm370_vm1, %v7918_v48  ;;  %v8243_v5 = vsel %vm8242_vm13, %v14097_v38, %v14101_v20 }
 0x2bf   : > { %v5007_v19 = vpop.f32.mrb[168].mxu0  ;;  %v8258_v34 = vsel %vm370_vm1, %v8243_v5, 0 }
 0x2c0   : > { %v14109_v47 = vadd.f32 %v5007_v19, %v13987_v2  ;;  %v5009_v21 = vpop.f32.mrb[169].mxu0  ;;  %10881 = vmatmul.mubr.msk.bf16.vlgmr.msra.gmra.mrb[16].mxu1 %vm366_vm2, %v13997_v30  ;;  %v14122_v4 = vpop.permute.xlu0 %8222  ;;  %v7940_v2 = vsel %vm370_vm1, %v7917_v40, 0 }
 0x2c1   : > { %v14114_v51 = vadd.f32 %v5009_v21, %v13992_v13  ;;  %8002 = vmatpush1.bf16.msra.mxu1 %v7934_v58  ;;  %v5011_v54 = vpop.f32.mrb[170].mxu0  ;;  %8033 = vmatprep.mubr.bf16.mxu1 %v11134_v6  ;;  %v14126_v30 = vpop.permute.xlu1 %8224 }
 0x2c2   : > { %v5012_v23 = vpop.f32.mrb[171].mxu0  ;;  %10646 = vmatprep.subr.msk.bf16.mxu1 %vm370_vm1, %v7920_v39 }
 0x2c3   : > { %v5048_v13 = vpop.f32.mrb[168].mxu1 }
 0x2c4   : > { %v14135_v50 = vadd.f32 %v5048_v13, %v14013_v37  ;;  %v5050_v1 = vpop.f32.mrb[169].mxu1  ;;  %10641 = vmatmul.mubr.msk.bf16.vlgmr.msra.gmra.mrb[20].mxu0 %vm366_vm2, %v14119_v63  ;;  %v14143_v32 = vpop.permute.xlu0 %8226 }
 0x2c5   : > { %v14140_v7 = vadd.f32 %v5050_v1, %v14018_v24  ;;  %8043 = vmatpush1.bf16.msra.mxu0 %v7940_v2  ;;  %v5052_v16 = vpop.f32.mrb[170].mxu1  ;;  %8074 = vmatprep.mubr.bf16.mxu0 %v11134_v6  ;;  %v8229_v37 = vpop.permute.xlu1 %8228 }
 0x2c6   : > { %v5053_v35 = vpop.f32.mrb[171].mxu1  ;;  %10648 = vmatprep.subr.msk.bf16.mxu0 %vm370_vm1, %v7922_v18 }
 0x2c7   : > { %v5089_v25 = vpop.f32.mrb[172].mxu0 }
 0x2c8   : > { %v14151_v24 = vadd.f32 %v5089_v25, %v14029_v62  ;;  %v5091_v57 = vpop.f32.mrb[173].mxu0  ;;  %10643 = vmatmul.mubr.msk.bf16.vlgmr.msra.gmra.mrb[20].mxu1 %vm366_vm2, %v14119_v63  ;;  %v14159_v59 = vpop.permute.xlu0 %8230 }
 0x2c9   : > { %v14156_v49 = vadd.f32 %v5091_v57, %v14034_v28  ;;  %8084 = vmatpush1.bf16.msra.mxu1 %v7946_v26  ;;  %v5093_v43 = vpop.f32.mrb[174].mxu0  ;;  %8115 = vmatprep.mubr.bf16.mxu1 %v11134_v6  ;;  %v14163_v62 = vpop.permute.xlu1 %8232  ;;  %v8244_v28 = vsel %vm8242_vm13, %v14101_v20, %v14122_v4  ;;  %v8248_v58 = vsel %vm8242_vm13, %v8229_v37, %v14159_v59 }
 0x2ca   : > { %v5094_v27 = vpop.f32.mrb[175].mxu0  ;;  %10884 = vmatprep.subr.bf16.mxu1 %v11141_v53 }
 0x2cb   : > { %v5130_v55 = vpop.f32.mrb[172].mxu1 }
 0x2cc   : > { %v14172_v15 = vadd.f32 %v5130_v55, %v14050_v31  ;;  %v5132_v41 = vpop.f32.mrb[173].mxu1  ;;  %10645 = vmatmul.mubr.msk.bf16.vlgmr.msra.gmra.mrb[24].mxu0 %vm366_vm2, %v14119_v63  ;;  %v14180_v60 = vpop.permute.xlu0 %8234 }
 0x2cd   : > { %v14177_v42 = vadd.f32 %v5132_v41, %v14055_v33  ;;  %8125 = vmatpush1.bf16.msra.mxu0 %v7952_v17  ;;  %v5134_v8 = vpop.f32.mrb[174].mxu1  ;;  %8156 = vmatprep.mubr.bf16.mxu0 %v11134_v6  ;;  %v14184_v31 = vpop.permute.xlu1 %8236  ;;  %v8246_v33 = vsel %vm8242_vm13, %v14126_v30, %v14143_v32  ;;  %v8250_v2 = vsel %vm8242_vm13, %v14163_v62, %v14180_v60  ;;  %v9206_v41 = vld [vmem:[%s15593_s2] sm:$0xff] }
 0x2ce   : > { %v5135_v29 = vpop.f32.mrb[175].mxu1  ;;  %10652 = vmatprep.subr.msk.bf16.mxu0 %vm370_vm1, %v8244_v28  ;;  %v8251_v27 = vsel %vm8242_vm13, %v14180_v60, %v14184_v31  ;;  %9209 = vperm.xlu0 %11025, %v9206_v41  }
 0x2cf   : > { %v5171_v56 = vpop.f32.mrb[176].mxu0 }
 0x2d0   : > { %v14193_v14 = vadd.f32 %v5171_v56, %v14071_v46  ;;  %v5173_v45 = vpop.f32.mrb[177].mxu0  ;;  %10647 = vmatmul.mubr.msk.bf16.vlgmr.msra.gmra.mrb[24].mxu1 %vm366_vm2, %v14119_v63  ;;  %v14202_v48 = vpop.permute.xlu0 %8238 }
 0x2d1   : > { %v14198_v52 = vadd.f32 %v5173_v45, %v14076_v10  ;;  %10885 = vmatpush3.bf16.msra.mxu1 %v7958_v0  ;;  %v5175_v22 = vpop.f32.mrb[178].mxu0  ;;  %10886 = vmatprep.mubr.msk.bf16.mxu1 %vm11142_vm3, %v11141_v53  ;;  %v14206_v46 = vpop.permute.xlu1 %8240  ;;  %v8245_v10 = vsel %vm8242_vm13, %v14122_v4, %v14126_v30  ;;  %v8252_v26 = vsel %vm8242_vm13, %v14184_v31, %v14202_v48 }
 0x2d2   : > { %v5176_v61 = vpop.f32.mrb[179].mxu0  ;;  %10654 = vmatprep.subr.msk.bf16.mxu1 %vm370_vm1, %v8246_v33  ;;  %v8264_v39 = vsel %vm370_vm1, %v8245_v10, 0  ;;  %v8253_v0 = vsel %vm8242_vm13, %v14202_v48, %v14206_v46 }
 0x2d3   : > { %v5212_v38 = vpop.f32.mrb[176].mxu1  ;;  %v8288_v22 = vsel %vm370_vm1, %v8253_v0, 0 }
 0x2d4   : > { %v14214_v12 = vadd.f32 %v5212_v38, %v14092_v9  ;;  %10649 = vmatmul.mubr.msk.bf16.vlgmr.msra.gmra.mrb[28].mxu0 %vm366_vm2, %v14119_v63  ;;  %v10834_v20 = vpop.f32.mrb[177].mxu1  ;;  %v14219_v40 = vpop.permute.xlu0 %8548  ;;  %v8247_v9 = vsel %vm8242_vm13, %v14143_v32, %v8229_v37  ;;  %v8249_v32 = vsel %vm8242_vm13, %v14159_v59, %v14163_v62 }
 0x2d5   : > { %8291 = vmatpush1.bf16.msra.mxu0 %v8258_v34  ;;  %v5215_v19 = vpop.f32.mrb[178].mxu1  ;;  %8322 = vmatprep.mubr.bf16.mxu0 %v11134_v6  ;;  %v14223_v54 = vpop.permute.xlu1 %8550  ;;  %v8276_v43 = vsel %vm370_vm1, %v8249_v32, 0 }
 0x2d6   : > { %v10835_v21 = vpop.f32.mrb[179].mxu1  ;;  %10656 = vmatprep.subr.msk.bf16.mxu0 %vm370_vm1, %v8248_v58  ;;  %v8573_v61 = vsel %vm8572_vm14, %v14219_v40, %v14223_v54 }
 0x2d7   : > { %v5337_v4 = vpop.f32.mrb[180].mxu0  ;;  %v8588_v19 = vsel %vm370_vm1, %v8573_v61, 0 }
 0x2d8   : > { %v14231_v23 = vadd.f32 %v5337_v4, %v14109_v47  ;;  %v5339_v30 = vpop.f32.mrb[181].mxu0  ;;  %10887 = vmatmul.mubr.msk.bf16.vlgmr.msra.gmra.mrb[28].mxu1 %vm366_vm2, %v14119_v63  ;;  %v14244_v1 = vpop.permute.xlu0 %8552  ;;  %v8270_v47 = vsel %vm370_vm1, %v8247_v9, 0 }
 0x2d9   : > { %v14236_v13 = vadd.f32 %v5339_v30, %v14114_v51  ;;  %8332 = vmatpush1.bf16.msra.mxu1 %v8264_v39  ;;  %v5341_v18 = vpop.f32.mrb[182].mxu0  ;;  %8363 = vmatprep.mubr.bf16.mxu1 %v11134_v6  ;;  %v14248_v63 = vpop.permute.xlu1 %8554  ;;  %v8574_v29 = vsel %vm8572_vm14, %v14223_v54, %v14244_v1 }
 0x2da   : > { %v5342_v16 = vpop.f32.mrb[183].mxu0  ;;  %10658 = vmatprep.subr.msk.bf16.mxu1 %vm370_vm1, %v8250_v2  ;;  %v8575_v21 = vsel %vm8572_vm14, %v14244_v1, %v14248_v63 }
 0x2db   : > { %v5378_v51 = vpop.f32.mrb[180].mxu1  ;;  %v8594_v30 = vsel %vm370_vm1, %v8575_v21, 0 }
 0x2dc   : > { %v14257_v35 = vadd.f32 %v5378_v51, %v14135_v50  ;;  %v5380_v37 = vpop.f32.mrb[181].mxu1  ;;  %10653 = vmatmul.mubr.msk.bf16.vlgmr.msra.gmra.mrb[32].mxu0 %vm366_vm2, %v14241_v44  ;;  %v14265_v57 = vpop.permute.xlu0 %8556 }
 0x2dd   : > { %v14262_v25 = vadd.f32 %v5380_v37, %v14140_v7  ;;  %8373 = vmatpush1.bf16.msra.mxu0 %v8270_v47  ;;  %v5382_v11 = vpop.f32.mrb[182].mxu1  ;;  %8404 = vmatprep.mubr.bf16.mxu0 %v11134_v6  ;;  %v14269_v50 = vpop.permute.xlu1 %8558 }
 0x2de   : > { %v5383_v59 = vpop.f32.mrb[183].mxu1  ;;  %10660 = vmatprep.subr.msk.bf16.mxu0 %vm370_vm1, %v8252_v26  ;;  %v14364_v26 = vld [vmem:[%s15592_s1 + $0x64] sm:$0xf] }
 0x2df   : > { %v5419_v17 = vpop.f32.mrb[184].mxu0 }
 0x2e0   : > { %v14275_v7 = vadd.f32 %v5419_v17, %v14151_v24  ;;  %v5421_v62 = vpop.f32.mrb[185].mxu0  ;;  %10655 = vmatmul.mubr.msk.bf16.vlgmr.msra.gmra.mrb[32].mxu1 %vm366_vm2, %v14241_v44  ;;  %v14283_v28 = vpop.permute.xlu0 %8560  ;;  %v8282_v24 = vsel %vm370_vm1, %v8251_v27, 0 }
 0x2e1   : > { %v14280_v55 = vadd.f32 %v5421_v62, %v14156_v49  ;;  %8414 = vmatpush1.bf16.msra.mxu1 %v8276_v43  ;;  %v5423_v36 = vpop.f32.mrb[186].mxu0  ;;  %8445 = vmatprep.mubr.bf16.mxu1 %v11134_v6  ;;  %v14290_v60 = vpop.permute.xlu1 %8562 }
 0x2e2   : > { %v5424_v8 = vpop.f32.mrb[187].mxu0  ;;  %10890 = vmatprep.subr.bf16.mxu1 %v11141_v53 }
 0x2e3   : > { %v5460_v49 = vpop.f32.mrb[184].mxu1 }
 0x2e4   : > { %v14299_v31 = vadd.f32 %v5460_v49, %v14172_v15  ;;  %v5462_v56 = vpop.f32.mrb[185].mxu1  ;;  %10657 = vmatmul.mubr.msk.bf16.vlgmr.msra.gmra.mrb[36].mxu0 %vm366_vm2, %v14241_v44  ;;  %v14307_v45 = vpop.permute.xlu0 %8564 }
 0x2e5   : > { %v14304_v5 = vadd.f32 %v5462_v56, %v14177_v42  ;;  %8455 = vmatpush1.bf16.msra.mxu0 %v8282_v24  ;;  %v5464_v33 = vpop.f32.mrb[186].mxu1  ;;  %8486 = vmatprep.mubr.bf16.mxu0 %v11134_v6  ;;  %v8567_v15 = vpop.permute.xlu1 %8566  ;;  %v8576_v42 = vsel %vm8572_vm14, %v14248_v63, %v14265_v57  ;;  %v8580_v47 = vsel %vm8572_vm14, %v14290_v60, %v14307_v45 }
 0x2e6   : > { %v5465_v48 = vpop.f32.mrb[187].mxu1  ;;  %10664 = vmatprep.subr.msk.bf16.mxu0 %vm370_vm1, %v8574_v29  ;;  %v8581_v24 = vsel %vm8572_vm14, %v14307_v45, %v8567_v15 }
 0x2e7   : > { %v5501_v34 = vpop.f32.mrb[188].mxu0  ;;  %v8612_v0 = vsel %vm370_vm1, %v8581_v24, 0 }
 0x2e8   : > { %v14318_v46 = vadd.f32 %v5501_v34, %v14193_v14  ;;  %v5503_v38 = vpop.f32.mrb[189].mxu0  ;;  %10659 = vmatmul.mubr.msk.bf16.vlgmr.msra.gmra.mrb[36].mxu1 %vm366_vm2, %v14241_v44  ;;  %v14327_v20 = vpop.permute.xlu0 %8568 }
 0x2e9   : > { %v14323_v10 = vadd.f32 %v5503_v38, %v14198_v52  ;;  %10891 = vmatpush3.bf16.msra.mxu1 %v8288_v22  ;;  %v5505_v58 = vpop.f32.mrb[190].mxu0  ;;  %10892 = vmatprep.mubr.msk.bf16.mxu1 %vm11142_vm3, %v11141_v53  ;;  %v8571_v14 = vpop.permute.xlu1 %8570  ;;  %v8578_v52 = vsel %vm8572_vm14, %v14269_v50, %v14283_v28  ;;  %v8582_v43 = vsel %vm8572_vm14, %v8567_v15, %v14327_v20 }
 0x2ea   : > { %v5506_v40 = vpop.f32.mrb[191].mxu0  ;;  %10666 = vmatprep.subr.msk.bf16.mxu1 %vm370_vm1, %v8576_v42 }
 0x2eb   : > { %v5542_v39 = vpop.f32.mrb[188].mxu1 }
 0x2ec   : > { %v14338_v54 = vadd.f32 %v5542_v39, %v14214_v12  ;;  %10661 = vmatmul.mubr.msk.bf16.vlgmr.msra.gmra.mrb[40].mxu0 %vm366_vm2, %v14241_v44  ;;  %v10840_v4 = vpop.f32.mrb[189].mxu1  ;;  %v14343_v2 = vpop.permute.xlu0 %8878  ;;  %v8577_v12 = vsel %vm8572_vm14, %v14265_v57, %v14269_v50 }
 0x2ed   : > { %8621 = vmatpush1.bf16.msra.mxu0 %v8588_v19  ;;  %v5545_v9 = vpop.f32.mrb[190].mxu1  ;;  %8652 = vmatprep.mubr.bf16.mxu0 %v11134_v6  ;;  %v8881_v16 = vpop.permute.xlu1 %8880 }
 0x2ee   : > { %v10841_v18 = vpop.f32.mrb[191].mxu1  ;;  %10668 = vmatprep.subr.msk.bf16.mxu0 %vm370_vm1, %v8578_v52 }
 0x2ef   : > { %v5667_v1 = vpop.f32.mrb[192].mxu0 }
 0x2f0   : > { %v14354_v63 = vadd.f32 %v5667_v1, %v14231_v23  ;;  %v5669_v51 = vpop.f32.mrb[193].mxu0  ;;  %10893 = vmatmul.mubr.msk.bf16.vlgmr.msra.gmra.mrb[40].mxu1 %vm366_vm2, %v14241_v44  ;;  %v14367_v11 = vpop.permute.xlu0 %8882  ;;  %v8600_v23 = vsel %vm370_vm1, %v8577_v12, 0 }
 0x2f1   : > { %v14359_v32 = vadd.f32 %v5669_v51, %v14236_v13  ;;  %8662 = vmatpush1.bf16.msra.mxu1 %v8594_v30  ;;  %v5671_v37 = vpop.f32.mrb[194].mxu0  ;;  %8693 = vmatprep.mubr.bf16.mxu1 %v11134_v6  ;;  %v8579_v13 = vsel %vm8572_vm14, %v14283_v28, %v14290_v60  ;;  %v8885_v62 = vpop.permute.xlu1 %8884  ;;  %v8904_v33 = vsel %vm8902_vm15, %v8881_v16, %v14367_v11 }
 0x2f2   : > { %v5672_v57 = vpop.f32.mrb[195].mxu0  ;;  %10670 = vmatprep.subr.msk.bf16.mxu1 %vm370_vm1, %v8580_v47  ;;  %v8606_v36 = vsel %vm370_vm1, %v8579_v13, 0  ;;  %v8905_v4 = vsel %vm8902_vm15, %v14367_v11, %v8885_v62 }
 0x2f3   : > { %v5708_v44 = vpop.f32.mrb[192].mxu1  ;;  %v8924_v18 = vsel %vm370_vm1, %v8905_v4, 0  ;;  %v10675_v57 = vld [vmem:[%s15592_s1 + $0x68] sm:$0xf] }
 0x2f4   : > { %v14377_v59 = vadd.f32 %v5708_v44, %v14257_v35  ;;  %v5710_v50 = vpop.f32.mrb[193].mxu1  ;;  %10665 = vmatmul.mubr.msk.bf16.vlgmr.msra.gmra.mrb[44].mxu0 %vm366_vm2, %v14364_v26  ;;  %v8887_v41 = vpop.permute.xlu0 %8886 }
 0x2f5   : > { %v14382_v17 = vadd.f32 %v5710_v50, %v14262_v25  ;;  %8703 = vmatpush1.bf16.msra.mxu0 %v8600_v23  ;;  %v5712_v27 = vpop.f32.mrb[194].mxu1  ;;  %8734 = vmatprep.mubr.bf16.mxu0 %v11134_v6  ;;  %v8889_v45 = vpop.permute.xlu1 %8888  ;;  %v8906_v58 = vsel %vm8902_vm15, %v8885_v62, %v8887_v41 }
 0x2f6   : > { %v5713_v28 = vpop.f32.mrb[195].mxu1  ;;  %10672 = vmatprep.subr.msk.bf16.mxu0 %vm370_vm1, %v8582_v43  ;;  %v8907_v47 = vsel %vm8902_vm15, %v8887_v41, %v8889_v45 }
 0x2f7   : > { %v5749_v35 = vpop.f32.mrb[196].mxu0  ;;  %v8930_v13 = vsel %vm370_vm1, %v8907_v47, 0 }
 0x2f8   : > { %v14390_v8 = vadd.f32 %v5749_v35, %v14275_v7  ;;  %v5751_v25 = vpop.f32.mrb[197].mxu0  ;;  %10667 = vmatmul.mubr.msk.bf16.vlgmr.msra.gmra.mrb[44].mxu1 %vm366_vm2, %v14364_v26  ;;  %v8583_v7 = vsel %vm8572_vm14, %v14327_v20, %v8571_v14  ;;  %v8891_v48 = vpop.permute.xlu0 %8890 }
 0x2f9   : > { %v14395_v60 = vadd.f32 %v5751_v25, %v14280_v55  ;;  %8744 = vmatpush1.bf16.msra.mxu1 %v8606_v36  ;;  %v5753_v49 = vpop.f32.mrb[198].mxu0  ;;  %8775 = vmatprep.mubr.bf16.mxu1 %v11134_v6  ;;  %v8618_v61 = vsel %vm370_vm1, %v8583_v7, 0  ;;  %v8893_v14 = vpop.permute.xlu1 %8892  ;;  %v8908_v9 = vsel %vm8902_vm15, %v8889_v45, %v8891_v48 }
 0x2fa   : > { %v5754_v29 = vpop.f32.mrb[199].mxu0  ;;  %10896 = vmatprep.subr.bf16.mxu1 %v11141_v53 }
 0x2fb   : > { %v5790_v56 = vpop.f32.mrb[196].mxu1 }
 0x2fc   : > { %v14405_v55 = vadd.f32 %v5790_v56, %v14299_v31  ;;  %v5792_v22 = vpop.f32.mrb[197].mxu1  ;;  %10669 = vmatmul.mubr.msk.bf16.vlgmr.msra.gmra.mrb[48].mxu0 %vm366_vm2, %v14364_v26  ;;  %v8903_v31 = vsel %vm8902_vm15, %v14343_v2, %v8881_v16 }
 0x2fd   : > { %v14410_v15 = vadd.f32 %v5792_v22, %v14304_v5  ;;  %8785 = vmatpush1.bf16.msra.mxu0 %v8612_v0  ;;  %v5794_v34 = vpop.f32.mrb[198].mxu1  ;;  %8816 = vmatprep.mubr.bf16.mxu0 %v11134_v6  ;;  %v8918_v39 = vsel %vm370_vm1, %v8903_v31, 0 }
 0x2fe   : > { %v5795_v42 = vpop.f32.mrb[199].mxu1  ;;  %10676 = vmatprep.subr.msk.bf16.mxu0 %vm370_vm1, %v8904_v33 }
 0x2ff   : > { %v5831_v38 = vpop.f32.mrb[200].mxu0 }
 0x300   : > { %v14419_v20 = vadd.f32 %v5831_v38, %v14318_v46  ;;  %v5833_v5 = vpop.f32.mrb[201].mxu0  ;;  %10671 = vmatmul.mubr.msk.bf16.vlgmr.msra.gmra.mrb[48].mxu1 %vm366_vm2, %v14364_v26  ;;  %v8895_v46 = vpop.permute.xlu0 %8894 }
 0x301   : > { %v14424_v19 = vadd.f32 %v5833_v5, %v14323_v10  ;;  %10897 = vmatpush3.bf16.msra.mxu1 %v8618_v61  ;;  %v5835_v40 = vpop.f32.mrb[202].mxu0  ;;  %10898 = vmatprep.mubr.msk.bf16.mxu1 %vm11142_vm3, %v11141_v53  ;;  %v8910_v16 = vsel %vm8902_vm15, %v8893_v14, %v8895_v46 }
 0x302   : > { %v5836_v21 = vpop.f32.mrb[203].mxu0  ;;  %10678 = vmatprep.subr.msk.bf16.mxu1 %vm370_vm1, %v8906_v58 }
 0x303   : > { %v5872_v52 = vpop.f32.mrb[200].mxu1 }
 0x304   : > { %v14434_v10 = vadd.f32 %v5872_v52, %v14338_v54  ;;  %10673 = vmatmul.mubr.msk.bf16.vlgmr.msra.gmra.mrb[52].mxu0 %vm366_vm2, %v14364_v26  ;;  %v10846_v2 = vpop.f32.mrb[201].mxu1  ;;  %v8897_v54 = vpop.permute.xlu1 %8896 }
 0x305   : > { %8951 = vmatpush1.bf16.msra.mxu0 %v8918_v39  ;;  %v5875_v30 = vpop.f32.mrb[202].mxu1  ;;  %8982 = vmatprep.mubr.bf16.mxu0 %v11134_v6  ;;  %v8899_v11 = vpop.permute.xlu0 %8898  ;;  %v8911_v24 = vsel %vm8902_vm15, %v8895_v46, %v8897_v54 }
 0x306   : > { %v10847_v1 = vpop.f32.mrb[203].mxu1  ;;  %10680 = vmatprep.subr.msk.bf16.mxu0 %vm370_vm1, %v8908_v9  ;;  %v8912_v50 = vsel %vm8902_vm15, %v8897_v54, %v8899_v11  ;;  %v8942_v29 = vsel %vm370_vm1, %v8911_v24, 0 }
 0x307   : > { %v5997_v12 = vpop.f32.mrb[204].mxu0 }
 0x308   : > { %v14444_v51 = vadd.f32 %v5997_v12, %v14354_v63  ;;  %v5999_v37 = vpop.f32.mrb[205].mxu0  ;;  %10899 = vmatmul.mubr.msk.bf16.vlgmr.msra.gmra.mrb[52].mxu1 %vm366_vm2, %v14364_v26  ;;  %v8909_v26 = vsel %vm8902_vm15, %v8891_v48, %v8893_v14  ;;  %v8901_v49 = vpop.permute.xlu1 %8900 }
 0x309   : > { %v14449_v23 = vadd.f32 %v5999_v37, %v14359_v32  ;;  %8992 = vmatpush1.bf16.msra.mxu1 %v8924_v18  ;;  %v6001_v44 = vpop.f32.mrb[206].mxu0  ;;  %9023 = vmatprep.mubr.bf16.mxu1 %v11134_v6  ;;  %v8936_v28 = vsel %vm370_vm1, %v8909_v26, 0  ;;  %v8913_v33 = vsel %vm8902_vm15, %v8899_v11, %v8901_v49 }
 0x30a   : > { %v6002_v63 = vpop.f32.mrb[207].mxu0  ;;  %10682 = vmatprep.subr.msk.bf16.mxu1 %vm370_vm1, %v8910_v16  ;;  %v8948_v34 = vsel %vm370_vm1, %v8913_v33, 0 }
 0x30b   : > { %v6038_v43 = vpop.f32.mrb[204].mxu1 }
 0x30c   : > { %v6210_v32 = vadd.f32 %v6038_v43, %v14377_v59  ;;  %v6040_v27 = vpop.f32.mrb[205].mxu1  ;;  %10677 = vmatmul.mubr.msk.bf16.vlgmr.msra.gmra.mrb[56].mxu0 %vm366_vm2, %v10675_v57 }
 0x30d   : > { %v6211_v62 = vadd.f32 %v6040_v27, %v14382_v17  ;;  %9033 = vmatpush1.bf16.msra.mxu0 %v8930_v13  ;;  %v6042_v36 = vpop.f32.mrb[206].mxu1  ;;  %9064 = vmatprep.mubr.bf16.mxu0 %v11134_v6 }
 0x30e   : > { %v6043_v41 = vpop.f32.mrb[207].mxu1  ;;  %10684 = vmatprep.subr.msk.bf16.mxu0 %vm370_vm1, %v8912_v50 }
 0x30f   : > { %v6079_v35 = vpop.f32.mrb[208].mxu0 }
 0x310   : > { %v6212_v25 = vadd.f32 %v6079_v35, %v14390_v8  ;;  %v6081_v59 = vpop.f32.mrb[209].mxu0  ;;  %10679 = vmatmul.mubr.msk.bf16.vlgmr.msra.gmra.mrb[56].mxu1 %vm366_vm2, %v10675_v57 }
 0x311   : > { %v6213_v17 = vadd.f32 %v6081_v59, %v14395_v60  ;;  %9074 = vmatpush1.bf16.msra.mxu1 %v8936_v28  ;;  %v6083_v0 = vpop.f32.mrb[210].mxu0  ;;  %9105 = vmatprep.mubr.bf16.mxu1 %v11134_v6 }
 0x312   : > { %v6084_v56 = vpop.f32.mrb[211].mxu0  ;;  %10902 = vmatprep.subr.bf16.mxu1 %v11141_v53 }
 0x313   : > { %v6120_v7 = vpop.f32.mrb[208].mxu1 }
 0x314   : > { %v6214_v8 = vadd.f32 %v6120_v7, %v14405_v55  ;;  %v6122_v45 = vpop.f32.mrb[209].mxu1  ;;  %10681 = vmatmul.mubr.msk.bf16.vlgmr.msra.gmra.mrb[60].mxu0 %vm366_vm2, %v10675_v57 }
 0x315   : > { %v6215_v22 = vadd.f32 %v6122_v45, %v14410_v15  ;;  %9115 = vmatpush1.bf16.msra.mxu0 %v8942_v29  ;;  %v6124_v60 = vpop.f32.mrb[210].mxu1  ;;  %9146 = vmatprep.mubr.bf16.mxu0 %v11134_v6 }
 0x316   : > { %v6125_v48 = vpop.f32.mrb[211].mxu1 }
 0x317   : > { %v6161_v61 = vpop.f32.mrb[212].mxu0 }
 0x318   : > { %v6216_v42 = vadd.f32 %v6161_v61, %v14419_v20  ;;  %v6163_v38 = vpop.f32.mrb[213].mxu0  ;;  %10683 = vmatmul.mubr.msk.bf16.vlgmr.msra.gmra.mrb[60].mxu1 %vm366_vm2, %v10675_v57 }
 0x319   : > { %v6217_v55 = vadd.f32 %v6163_v38, %v14424_v19  ;;  %10903 = vmatpush3.bf16.msra.mxu1 %v8948_v34  ;;  %v6165_v31 = vpop.f32.mrb[214].mxu0  ;;  %10904 = vmatprep.mubr.msk.bf16.mxu1 %vm11142_vm3, %v11141_v53 }
 0x31a   : > { %v6166_v15 = vpop.f32.mrb[215].mxu0 }
 0x31b   : > { %v6202_v58 = vpop.f32.mrb[212].mxu1 }
 0x31c   : > { %v6218_v6 = vadd.f32 %v6202_v58, %v14434_v10  ;;  %10685 = vmatmul.mubr.msk.bf16.vlgmr.msra.gmra.mrb[64].mxu0 %vm366_vm2, %v10675_v57  ;;  %v10852_v5 = vpop.f32.mrb[213].mxu1 }
 0x31d   : > { %v6205_v40 = vpop.f32.mrb[214].mxu1 }
 0x31e   : > { %v10853_v14 = vpop.f32.mrb[215].mxu1 }
 0x31f   : > { %v6344_v20 = vpop.f32.mrb[216].mxu0 }
 0x320   : > { %v6555_v39 = vadd.f32 %v6344_v20, %v14444_v51  ;;  %v6346_v21 = vpop.f32.mrb[217].mxu0  ;;  %10905 = vmatmul.mubr.msk.bf16.vlgmr.msra.gmra.mrb[64].mxu1 %vm366_vm2, %v10675_v57 }
 0x321   : > { %v6556_v19 = vadd.f32 %v6346_v21, %v14449_v23  ;;  %v6348_v46 = vpop.f32.mrb[218].mxu0 }
 0x322   : > { %v6349_v52 = vpop.f32.mrb[219].mxu0 }
 0x323   : > { %v6385_v53 = vpop.f32.mrb[216].mxu1 }
 0x324   : > { %v6557_v4 = vadd.f32 %v6385_v53, %v6210_v32  ;;  %v6387_v9 = vpop.f32.mrb[217].mxu1 }
 0x325   : > { %v6558_v2 = vadd.f32 %v6387_v9, %v6211_v62  ;;  %v6389_v10 = vpop.f32.mrb[218].mxu1 }
 0x326   : > { %v6390_v30 = vpop.f32.mrb[219].mxu1 }
 0x327   : > { %v6426_v18 = vpop.f32.mrb[220].mxu0 }
 0x328   : > { %v6559_v1 = vadd.f32 %v6426_v18, %v6212_v25  ;;  %v6428_v12 = vpop.f32.mrb[221].mxu0 }
 0x329   : > { %v6560_v47 = vadd.f32 %v6428_v12, %v6213_v17  ;;  %v6430_v16 = vpop.f32.mrb[222].mxu0 }
 0x32a   : > { %v6431_v54 = vpop.f32.mrb[223].mxu0 }
 0x32b   : > { %v6467_v51 = vpop.f32.mrb[220].mxu1 }
 0x32c   : > { %v6561_v37 = vadd.f32 %v6467_v51, %v6214_v8  ;;  %v6469_v11 = vpop.f32.mrb[221].mxu1 }
 0x32d   : > { %v6562_v57 = vadd.f32 %v6469_v11, %v6215_v22  ;;  %v6471_v44 = vpop.f32.mrb[222].mxu1 }
 0x32e   : > { %v6472_v23 = vpop.f32.mrb[223].mxu1 }
 0x32f   : > { %v6508_v13 = vpop.f32.mrb[224].mxu0 }
 0x330   : > { %v6563_v63 = vadd.f32 %v6508_v13, %v6216_v42  ;;  %v6510_v43 = vpop.f32.mrb[225].mxu0 }
 0x331   : > { %v6564_v26 = vadd.f32 %v6510_v43, %v6217_v55  ;;  %v6512_v50 = vpop.f32.mrb[226].mxu0 }
 0x332   : > { %v6513_v32 = vpop.f32.mrb[227].mxu0 }
 0x333   : > { %v6549_v27 = vpop.f32.mrb[224].mxu1 }
 0x334   : > { %v6565_v62 = vadd.f32 %v6549_v27, %v6218_v6  ;;  %v10858_v36 = vpop.f32.mrb[225].mxu1 }
 0x335   : > { %v6552_v28 = vpop.f32.mrb[226].mxu1 }
 0x336   : > { %v10859_v41 = vpop.f32.mrb[227].mxu1 }
 0x337   : > { %v6674_v35 = vpop.f32.mrb[228].mxu0 }
 0x338   : > { %v6885_v24 = vadd.f32 %v6674_v35, %v6555_v39  ;;  %v6676_v25 = vpop.f32.mrb[229].mxu0 }
 0x339   : > { %v6886_v59 = vadd.f32 %v6676_v25, %v6556_v19  ;;  %v6678_v49 = vpop.f32.mrb[230].mxu0 }
 0x33a   : > { %v6679_v17 = vpop.f32.mrb[231].mxu0 }
 0x33b   : > { %v6715_v0 = vpop.f32.mrb[228].mxu1 }
 0x33c   : > { %v6887_v29 = vadd.f32 %v6715_v0, %v6557_v4  ;;  %v6717_v56 = vpop.f32.mrb[229].mxu1 }
 0x33d   : > { %v6888_v7 = vadd.f32 %v6717_v56, %v6558_v2  ;;  %v6719_v33 = vpop.f32.mrb[230].mxu1 }
 0x33e   : > { %v6720_v8 = vpop.f32.mrb[231].mxu1 }
 0x33f   : > { %v6756_v45 = vpop.f32.mrb[232].mxu0 }
 0x340   : > { %v6889_v22 = vadd.f32 %v6756_v45, %v6559_v1  ;;  %v6758_v60 = vpop.f32.mrb[233].mxu0 }
 0x341   : > { %v6890_v48 = vadd.f32 %v6758_v60, %v6560_v47  ;;  %v6760_v34 = vpop.f32.mrb[234].mxu0 }
 0x342   : > { %v6761_v61 = vpop.f32.mrb[235].mxu0 }
 0x343   : > { %v6797_v42 = vpop.f32.mrb[232].mxu1 }
 0x344   : > { %v6891_v38 = vadd.f32 %v6797_v42, %v6561_v37  ;;  %v6799_v55 = vpop.f32.mrb[233].mxu1 }
 0x345   : > { %v6892_v31 = vadd.f32 %v6799_v55, %v6562_v57  ;;  %v6801_v15 = vpop.f32.mrb[234].mxu1 }
 0x346   : > { %v6802_v58 = vpop.f32.mrb[235].mxu1 }
 0x347   : > { %v6838_v6 = vpop.f32.mrb[236].mxu0 }
 0x348   : > { %v6893_v5 = vadd.f32 %v6838_v6, %v6563_v63  ;;  %v6840_v40 = vpop.f32.mrb[237].mxu0 }
 0x349   : > { %v6894_v14 = vadd.f32 %v6840_v40, %v6564_v26  ;;  %v6842_v20 = vpop.f32.mrb[238].mxu0 }
 0x34a   : > { %v6843_v39 = vpop.f32.mrb[239].mxu0 }
 0x34b   : > { %v6879_v21 = vpop.f32.mrb[236].mxu1 }
 0x34c   : > { %v6895_v19 = vadd.f32 %v6879_v21, %v6565_v62  ;;  %v10864_v46 = vpop.f32.mrb[237].mxu1 }
 0x34d   : > { %v6882_v52 = vpop.f32.mrb[238].mxu1 }
 0x34e   : > { %v10865_v53 = vpop.f32.mrb[239].mxu1 }
 0x34f   : > { %v7004_v4 = vpop.f32.mrb[240].mxu0 }
 0x350   : > { %v7215_v9 = vadd.f32 %v7004_v4, %v6885_v24  ;;  %v7006_v2 = vpop.f32.mrb[241].mxu0 }
 0x351   : > { %v7216_v10 = vadd.f32 %v7006_v2, %v6886_v59  ;;  %v7008_v30 = vpop.f32.mrb[242].mxu0 }
 0x352   : > { %v7009_v18 = vpop.f32.mrb[243].mxu0 }
 0x353   : > { %v7045_v1 = vpop.f32.mrb[240].mxu1 }
 0x354   : > { %v7217_v12 = vadd.f32 %v7045_v1, %v6887_v29  ;;  %v7047_v47 = vpop.f32.mrb[241].mxu1 }
 0x355   : > { %v7218_v16 = vadd.f32 %v7047_v47, %v6888_v7  ;;  %v7049_v54 = vpop.f32.mrb[242].mxu1 }
 0x356   : > { %v7050_v51 = vpop.f32.mrb[243].mxu1 }
 0x357   : > { %v7086_v37 = vpop.f32.mrb[244].mxu0 }
 0x358   : > { %v7219_v11 = vadd.f32 %v7086_v37, %v6889_v22  ;;  %v7088_v57 = vpop.f32.mrb[245].mxu0 }
 0x359   : > { %v7220_v44 = vadd.f32 %v7088_v57, %v6890_v48  ;;  %v7090_v23 = vpop.f32.mrb[246].mxu0 }
 0x35a   : > { %v7091_v13 = vpop.f32.mrb[247].mxu0 }
 0x35b   : > { %v7127_v63 = vpop.f32.mrb[244].mxu1 }
 0x35c   : > { %v7221_v43 = vadd.f32 %v7127_v63, %v6891_v38  ;;  %v7129_v26 = vpop.f32.mrb[245].mxu1 }
 0x35d   : > { %v7222_v50 = vadd.f32 %v7129_v26, %v6892_v31  ;;  %v7131_v32 = vpop.f32.mrb[246].mxu1 }
 0x35e   : > { %v7132_v27 = vpop.f32.mrb[247].mxu1 }
 0x35f   : > { %v7168_v62 = vpop.f32.mrb[248].mxu0 }
 0x360   : > { %v7223_v36 = vadd.f32 %v7168_v62, %v6893_v5  ;;  %v7170_v28 = vpop.f32.mrb[249].mxu0 }
 0x361   : > { %v7224_v41 = vadd.f32 %v7170_v28, %v6894_v14  ;;  %v7172_v35 = vpop.f32.mrb[250].mxu0 }
 0x362   : > { %v7173_v24 = vpop.f32.mrb[251].mxu0 }
 0x363   : > { %v7209_v25 = vpop.f32.mrb[248].mxu1 }
 0x364   : > { %v7225_v59 = vadd.f32 %v7209_v25, %v6895_v19  ;;  %v10870_v49 = vpop.f32.mrb[249].mxu1 }
 0x365   : > { %v7212_v17 = vpop.f32.mrb[250].mxu1 }
 0x366   : > { %v10871_v0 = vpop.f32.mrb[251].mxu1 }
 0x367   : > { %v7334_v29 = vpop.f32.mrb[252].mxu0 }
 0x368   : > { %v7545_v56 = vadd.f32 %v7334_v29, %v7215_v9  ;;  %v7336_v7 = vpop.f32.mrb[253].mxu0 }
 0x369   : > { %v7546_v33 = vadd.f32 %v7336_v7, %v7216_v10  ;;  %v7338_v8 = vpop.f32.mrb[254].mxu0 }
 0x36a   : > { %v7339_v45 = vpop.f32.mrb[255].mxu0 }
 0x36b   : > { %v7375_v22 = vpop.f32.mrb[252].mxu1 }
 0x36c   : > { %v7547_v60 = vadd.f32 %v7375_v22, %v7217_v12  ;;  %v7377_v48 = vpop.f32.mrb[253].mxu1 }
 0x36d   : > { %v7548_v34 = vadd.f32 %v7377_v48, %v7218_v16  ;;  %v7379_v61 = vpop.f32.mrb[254].mxu1 }
 0x36e   : > { %v7380_v42 = vpop.f32.mrb[255].mxu1 }
 0x36f   : > { %v7416_v38 = vpop.f32.mrb[0].mxu0 }
 0x370   : > { %v7549_v55 = vadd.f32 %v7416_v38, %v7219_v11  ;;  %v7418_v31 = vpop.f32.mrb[1].mxu0 }
 0x371   : > { %v7550_v15 = vadd.f32 %v7418_v31, %v7220_v44  ;;  %v7420_v58 = vpop.f32.mrb[2].mxu0 }
 0x372   : > { %v7421_v6 = vpop.f32.mrb[3].mxu0 }
 0x373   : > { %v7457_v5 = vpop.f32.mrb[0].mxu1 }
 0x374   : > { %v7551_v40 = vadd.f32 %v7457_v5, %v7221_v43  ;;  %v7459_v14 = vpop.f32.mrb[1].mxu1 }
 0x375   : > { %v7552_v20 = vadd.f32 %v7459_v14, %v7222_v50  ;;  %v7461_v39 = vpop.f32.mrb[2].mxu1 }
 0x376   : > { %v7462_v21 = vpop.f32.mrb[3].mxu1 }
 0x377   : > { %v7498_v19 = vpop.f32.mrb[4].mxu0 }
 0x378   : > { %v7553_v46 = vadd.f32 %v7498_v19, %v7223_v36  ;;  %v7500_v52 = vpop.f32.mrb[5].mxu0 }
 0x379   : > { %v7554_v53 = vadd.f32 %v7500_v52, %v7224_v41  ;;  %v7502_v4 = vpop.f32.mrb[6].mxu0 }
 0x37a   : > { %v7503_v9 = vpop.f32.mrb[7].mxu0 }
 0x37b   : > { %v7539_v2 = vpop.f32.mrb[4].mxu1 }
 0x37c   : > { %v7555_v10 = vadd.f32 %v7539_v2, %v7225_v59  ;;  %v10876_v30 = vpop.f32.mrb[5].mxu1 }
 0x37d   : > { %v7542_v18 = vpop.f32.mrb[6].mxu1 }
 0x37e   : > { %v10877_v1 = vpop.f32.mrb[7].mxu1 }
 0x37f   : > { %v7664_v12 = vpop.f32.mrb[8].mxu0 }
 0x380   : > { %v7875_v47 = vadd.f32 %v7664_v12, %v7545_v56  ;;  %v7666_v16 = vpop.f32.mrb[9].mxu0 }
 0x381   : > { %v7876_v54 = vadd.f32 %v7666_v16, %v7546_v33  ;;  %v7668_v51 = vpop.f32.mrb[10].mxu0 }
 0x382   : > { %v7669_v37 = vpop.f32.mrb[11].mxu0 }
 0x383   : > { %v7705_v11 = vpop.f32.mrb[8].mxu1 }
 0x384   : > { %v7877_v57 = vadd.f32 %v7705_v11, %v7547_v60  ;;  %v7707_v44 = vpop.f32.mrb[9].mxu1 }
 0x385   : > { %v7878_v23 = vadd.f32 %v7707_v44, %v7548_v34  ;;  %v7709_v13 = vpop.f32.mrb[10].mxu1 }
 0x386   : > { %v7710_v63 = vpop.f32.mrb[11].mxu1 }
 0x387   : > { %v7746_v43 = vpop.f32.mrb[12].mxu0 }
 0x388   : > { %v7879_v26 = vadd.f32 %v7746_v43, %v7549_v55  ;;  %v7748_v50 = vpop.f32.mrb[13].mxu0 }
 0x389   : > { %v7880_v32 = vadd.f32 %v7748_v50, %v7550_v15  ;;  %v7750_v27 = vpop.f32.mrb[14].mxu0 }
 0x38a   : > { %v7751_v62 = vpop.f32.mrb[15].mxu0 }
 0x38b   : > { %v7787_v36 = vpop.f32.mrb[12].mxu1 }
 0x38c   : > { %v7881_v28 = vadd.f32 %v7787_v36, %v7551_v40  ;;  %v7789_v41 = vpop.f32.mrb[13].mxu1 }
 0x38d   : > { %v7882_v35 = vadd.f32 %v7789_v41, %v7552_v20  ;;  %v7791_v24 = vpop.f32.mrb[14].mxu1 }
 0x38e   : > { %v7792_v25 = vpop.f32.mrb[15].mxu1 }
 0x38f   : > { %v7828_v59 = vpop.f32.mrb[16].mxu0 }
 0x390   : > { %v7883_v49 = vadd.f32 %v7828_v59, %v7553_v46  ;;  %v7830_v17 = vpop.f32.mrb[17].mxu0 }
 0x391   : > { %v7884_v0 = vadd.f32 %v7830_v17, %v7554_v53  ;;  %v7832_v29 = vpop.f32.mrb[18].mxu0 }
 0x392   : > { %v7833_v56 = vpop.f32.mrb[19].mxu0 }
 0x393   : > { %v7869_v7 = vpop.f32.mrb[16].mxu1 }
 0x394   : > { %v7885_v33 = vadd.f32 %v7869_v7, %v7555_v10  ;;  %v10882_v8 = vpop.f32.mrb[17].mxu1 }
 0x395   : > { %v7872_v45 = vpop.f32.mrb[18].mxu1 }
 0x396   : > { %v10883_v22 = vpop.f32.mrb[19].mxu1 }
 0x397   : > { %v7994_v60 = vpop.f32.mrb[20].mxu0 }
 0x398   : > { %v8205_v48 = vadd.f32 %v7994_v60, %v7875_v47  ;;  %v7996_v34 = vpop.f32.mrb[21].mxu0 }
 0x399   : > { %v8206_v61 = vadd.f32 %v7996_v34, %v7876_v54  ;;  %v7998_v42 = vpop.f32.mrb[22].mxu0 }
 0x39a   : > { %v7999_v38 = vpop.f32.mrb[23].mxu0 }
 0x39b   : > { %v8035_v55 = vpop.f32.mrb[20].mxu1 }
 0x39c   : > { %v8207_v31 = vadd.f32 %v8035_v55, %v7877_v57  ;;  %v8037_v15 = vpop.f32.mrb[21].mxu1 }
 0x39d   : > { %v8208_v58 = vadd.f32 %v8037_v15, %v7878_v23  ;;  %v8039_v6 = vpop.f32.mrb[22].mxu1 }
 0x39e   : > { %v8040_v5 = vpop.f32.mrb[23].mxu1 }
 0x39f   : > { %v8076_v40 = vpop.f32.mrb[24].mxu0 }
 0x3a0   : > { %v8209_v14 = vadd.f32 %v8076_v40, %v7879_v26  ;;  %v8078_v20 = vpop.f32.mrb[25].mxu0 }
 0x3a1   : > { %v8210_v39 = vadd.f32 %v8078_v20, %v7880_v32  ;;  %v8080_v21 = vpop.f32.mrb[26].mxu0 }
 0x3a2   : > { %v8081_v19 = vpop.f32.mrb[27].mxu0 }
 0x3a3   : > { %v8117_v46 = vpop.f32.mrb[24].mxu1 }
 0x3a4   : > { %v8211_v52 = vadd.f32 %v8117_v46, %v7881_v28  ;;  %v8119_v53 = vpop.f32.mrb[25].mxu1 }
 0x3a5   : > { %v8212_v4 = vadd.f32 %v8119_v53, %v7882_v35  ;;  %v8121_v9 = vpop.f32.mrb[26].mxu1 }
 0x3a6   : > { %v8122_v2 = vpop.f32.mrb[27].mxu1 }
 0x3a7   : > { %v8158_v10 = vpop.f32.mrb[28].mxu0 }
 0x3a8   : > { %v8213_v30 = vadd.f32 %v8158_v10, %v7883_v49  ;;  %v8160_v18 = vpop.f32.mrb[29].mxu0 }
 0x3a9   : > { %v8214_v1 = vadd.f32 %v8160_v18, %v7884_v0  ;;  %v8162_v12 = vpop.f32.mrb[30].mxu0 }
 0x3aa   : > { %v8163_v47 = vpop.f32.mrb[31].mxu0 }
 0x3ab   : > { %v8199_v16 = vpop.f32.mrb[28].mxu1 }
 0x3ac   : > { %v8215_v54 = vadd.f32 %v8199_v16, %v7885_v33  ;;  %v10888_v51 = vpop.f32.mrb[29].mxu1 }
 0x3ad   : > { %v8202_v37 = vpop.f32.mrb[30].mxu1 }
 0x3ae   : > { %v10889_v11 = vpop.f32.mrb[31].mxu1 }
 0x3af   : > { %v8324_v57 = vpop.f32.mrb[32].mxu0 }
 0x3b0   : > { %v8535_v44 = vadd.f32 %v8324_v57, %v8205_v48  ;;  %v8326_v23 = vpop.f32.mrb[33].mxu0 }
 0x3b1   : > { %v8536_v13 = vadd.f32 %v8326_v23, %v8206_v61  ;;  %v8328_v63 = vpop.f32.mrb[34].mxu0 }
 0x3b2   : > { %v8329_v43 = vpop.f32.mrb[35].mxu0 }
 0x3b3   : > { %v8365_v26 = vpop.f32.mrb[32].mxu1 }
 0x3b4   : > { %v8537_v50 = vadd.f32 %v8365_v26, %v8207_v31  ;;  %v8367_v32 = vpop.f32.mrb[33].mxu1 }
 0x3b5   : > { %v8538_v27 = vadd.f32 %v8367_v32, %v8208_v58  ;;  %v8369_v62 = vpop.f32.mrb[34].mxu1  ;;  %v9210_v32 = vpop.permute.xlu0 %9209 }
 0x3b6   : > { %v8370_v36 = vpop.f32.mrb[35].mxu1 }
 0x3b7   : > { %v8406_v28 = vpop.f32.mrb[36].mxu0 }
 0x3b8   : > { %v8539_v41 = vadd.f32 %v8406_v28, %v8209_v14  ;;  %v8408_v35 = vpop.f32.mrb[37].mxu0 }
 0x3b9   : > { %v8540_v24 = vadd.f32 %v8408_v35, %v8210_v39  ;;  %v8410_v25 = vpop.f32.mrb[38].mxu0 }
 0x3ba   : > { %v8411_v59 = vpop.f32.mrb[39].mxu0 }
 0x3bb   : > { %v8447_v49 = vpop.f32.mrb[36].mxu1 }
 0x3bc   : > { %v8541_v17 = vadd.f32 %v8447_v49, %v8211_v52  ;;  %v8449_v0 = vpop.f32.mrb[37].mxu1 }
 0x3bd   : > { %v8542_v29 = vadd.f32 %v8449_v0, %v8212_v4  ;;  %v8451_v56 = vpop.f32.mrb[38].mxu1 }
 0x3be   : > { %v8452_v7 = vpop.f32.mrb[39].mxu1 }
 0x3bf   : > { %v8488_v33 = vpop.f32.mrb[40].mxu0 }
 0x3c0   : > { %v8543_v8 = vadd.f32 %v8488_v33, %v8213_v30  ;;  %v8490_v45 = vpop.f32.mrb[41].mxu0 }
 0x3c1   : > { %v8544_v22 = vadd.f32 %v8490_v45, %v8214_v1  ;;  %v8492_v60 = vpop.f32.mrb[42].mxu0 }
 0x3c2   : > { %v8493_v48 = vpop.f32.mrb[43].mxu0 }
 0x3c3   : > { %v8529_v34 = vpop.f32.mrb[40].mxu1 }
 0x3c4   : > { %v8545_v61 = vadd.f32 %v8529_v34, %v8215_v54  ;;  %v10894_v42 = vpop.f32.mrb[41].mxu1 }
 0x3c5   : > { %v8532_v38 = vpop.f32.mrb[42].mxu1 }
 0x3c6   : > { %v10895_v55 = vpop.f32.mrb[43].mxu1 }
 0x3c7   : > { %v8654_v31 = vpop.f32.mrb[44].mxu0 }
 0x3c8   : > { %v8865_v15 = vadd.f32 %v8654_v31, %v8535_v44  ;;  %v8656_v58 = vpop.f32.mrb[45].mxu0 }
 0x3c9   : > { %v8866_v6 = vadd.f32 %v8656_v58, %v8536_v13  ;;  %v8658_v5 = vpop.f32.mrb[46].mxu0 }
 0x3ca   : > { %v8659_v40 = vpop.f32.mrb[47].mxu0 }
 0x3cb   : > { %v8695_v14 = vpop.f32.mrb[44].mxu1 }
 0x3cc   : > { %v8867_v20 = vadd.f32 %v8695_v14, %v8537_v50  ;;  %v8697_v39 = vpop.f32.mrb[45].mxu1 }
 0x3cd   : > { %v8868_v21 = vadd.f32 %v8697_v39, %v8538_v27  ;;  %v8699_v19 = vpop.f32.mrb[46].mxu1 }
 0x3ce   : > { %v8700_v46 = vpop.f32.mrb[47].mxu1 }
 0x3cf   : > { %v8736_v52 = vpop.f32.mrb[48].mxu0 }
 0x3d0   : > { %v8869_v53 = vadd.f32 %v8736_v52, %v8539_v41  ;;  %v8738_v4 = vpop.f32.mrb[49].mxu0 }
 0x3d1   : > { %v8870_v9 = vadd.f32 %v8738_v4, %v8540_v24  ;;  %v8740_v2 = vpop.f32.mrb[50].mxu0 }
 0x3d2   : > { %v8741_v10 = vpop.f32.mrb[51].mxu0 }
 0x3d3   : > { %v8777_v30 = vpop.f32.mrb[48].mxu1 }
 0x3d4   : > { %v8871_v18 = vadd.f32 %v8777_v30, %v8541_v17  ;;  %v8779_v1 = vpop.f32.mrb[49].mxu1 }
 0x3d5   : > { %v8872_v12 = vadd.f32 %v8779_v1, %v8542_v29  ;;  %v8781_v47 = vpop.f32.mrb[50].mxu1 }
 0x3d6   : > { %v8782_v16 = vpop.f32.mrb[51].mxu1 }
 0x3d7   : > { %v8818_v54 = vpop.f32.mrb[52].mxu0 }
 0x3d8   : > { %v8873_v51 = vadd.f32 %v8818_v54, %v8543_v8  ;;  %v8820_v37 = vpop.f32.mrb[53].mxu0 }
 0x3d9   : > { %v8874_v11 = vadd.f32 %v8820_v37, %v8544_v22  ;;  %v8822_v57 = vpop.f32.mrb[54].mxu0 }
 0x3da   : > { %v8823_v44 = vpop.f32.mrb[55].mxu0 }
 0x3db   : > { %v8859_v23 = vpop.f32.mrb[52].mxu1 }
 0x3dc   : > { %v8875_v13 = vadd.f32 %v8859_v23, %v8545_v61  ;;  %v10900_v63 = vpop.f32.mrb[53].mxu1 }
 0x3dd   : > { %v8862_v43 = vpop.f32.mrb[54].mxu1 }
 0x3de   : > { %v10901_v26 = vpop.f32.mrb[55].mxu1 }
 0x3df   : > { %v8984_v50 = vpop.f32.mrb[56].mxu0 }
 0x3e0   : > { %v9195_v27 = vadd.f32 %v8984_v50, %v8865_v15  ;;  %v8986_v62 = vpop.f32.mrb[57].mxu0 }
 0x3e1   : > { %v9196_v36 = vadd.f32 %v8986_v62, %v8866_v6  ;;  %v8988_v28 = vpop.f32.mrb[58].mxu0 }
 0x3e2   : > { %v9212_v41 = vadd.f32 %v9210_v32, %v9195_v27  ;;  %v8989_v35 = vpop.f32.mrb[59].mxu0 }
 0x3e3   : > { %v9213_v24 = vadd.f32 %v9210_v32, %v9196_v36  ;;  %v9025_v25 = vpop.f32.mrb[56].mxu1 }
 0x3e4   : > { %9225 = vst [vmem:[%s14489_s18] sm:$0xff] %v9212_v41  ;;  %v9197_v59 = vadd.f32 %v9025_v25, %v8867_v20  ;;  %v9027_v49 = vpop.f32.mrb[57].mxu1 }
 0x3e5   : > { %9226 = vst [vmem:[%s14489_s18 + $0x8] sm:$0xff] %v9213_v24  ;;  %v9198_v17 = vadd.f32 %v9027_v49, %v8868_v21  ;;  %v9029_v0 = vpop.f32.mrb[58].mxu1 }
 0x3e6   : > { %v9214_v29 = vadd.f32 %v9210_v32, %v9197_v59  ;;  %v9030_v56 = vpop.f32.mrb[59].mxu1 }
 0x3e7   : > { %v9215_v7 = vadd.f32 %v9210_v32, %v9198_v17  ;;  %v9066_v33 = vpop.f32.mrb[60].mxu0 }
 0x3e8   : > { %9227 = vst [vmem:[%s14489_s18 + $0x10] sm:$0xff] %v9214_v29  ;;  %v9199_v8 = vadd.f32 %v9066_v33, %v8869_v53  ;;  %v9068_v45 = vpop.f32.mrb[61].mxu0 }
 0x3e9   : > { %9228 = vst [vmem:[%s14489_s18 + $0x18] sm:$0xff] %v9215_v7  ;;  %v9200_v22 = vadd.f32 %v9068_v45, %v8870_v9  ;;  %v9070_v60 = vpop.f32.mrb[62].mxu0 }
 0x3ea   : > { %v9216_v48 = vadd.f32 %v9210_v32, %v9199_v8  ;;  %v9071_v34 = vpop.f32.mrb[63].mxu0 }
 0x3eb   : > { %v9217_v61 = vadd.f32 %v9210_v32, %v9200_v22  ;;  %v9107_v42 = vpop.f32.mrb[60].mxu1 }
 0x3ec   : > { %9229 = vst [vmem:[%s14489_s18 + $0x20] sm:$0xff] %v9216_v48  ;;  %v9201_v38 = vadd.f32 %v9107_v42, %v8871_v18  ;;  %v9109_v55 = vpop.f32.mrb[61].mxu1 }
 0x3ed   : > { %9230 = vst [vmem:[%s14489_s18 + $0x28] sm:$0xff] %v9217_v61  ;;  %v9202_v31 = vadd.f32 %v9109_v55, %v8872_v12  ;;  %v9111_v15 = vpop.f32.mrb[62].mxu1 }
 0x3ee   : > { %v9218_v58 = vadd.f32 %v9210_v32, %v9201_v38  ;;  %v9112_v6 = vpop.f32.mrb[63].mxu1 }
 0x3ef   : > { %v9219_v5 = vadd.f32 %v9210_v32, %v9202_v31  ;;  %v9148_v40 = vpop.f32.mrb[64].mxu0 }
 0x3f0   : > { %9231 = vst [vmem:[%s14489_s18 + $0x30] sm:$0xff] %v9218_v58  ;;  %v9203_v14 = vadd.f32 %v9148_v40, %v8873_v51  ;;  %v9150_v20 = vpop.f32.mrb[65].mxu0 }
 0x3f1   : > { %9232 = vst [vmem:[%s14489_s18 + $0x38] sm:$0xff] %v9219_v5  ;;  %v9204_v39 = vadd.f32 %v9150_v20, %v8874_v11  ;;  %v9152_v21 = vpop.f32.mrb[66].mxu0 }
 0x3f2   : > { %v9220_v19 = vadd.f32 %v9210_v32, %v9203_v14  ;;  %v9153_v46 = vpop.f32.mrb[67].mxu0  ;;  %9239 = sbr.rel (%p10688_p13) target bundleno = 1988 (0x7c4), region = 48 }
 0x3f3   : > { %v9221_v52 = vadd.f32 %v9210_v32, %v9204_v39  ;;  %v9189_v53 = vpop.f32.mrb[64].mxu1 }
 0x3f4   : > { %9233 = vst [vmem:[%s14489_s18 + $0x40] sm:$0xff] %v9220_v19  ;;  %v9205_v4 = vadd.f32 %v9189_v53, %v8875_v13  ;;  %v10906_v9 = vpop.f32.mrb[65].mxu1 }
 0x3f5   : > { %9234 = vst [vmem:[%s14489_s18 + $0x48] sm:$0xff] %v9221_v52  ;;  %v9192_v2 = vpop.f32.mrb[66].mxu1 }
 0x3f6   : > { %v9222_v10 = vadd.f32 %v9210_v32, %v9205_v4  ;;  %v10907_v30 = vpop.f32.mrb[67].mxu1 }
 0x3f8   : > { %9235 = vst [vmem:[%s14489_s18 + $0x50] sm:$0xff] %v9222_v10 }
 0x3f9   : > { %v14507_v18 = vsub.s32 0, %v11272_v3  ;;  %v14510_v1 = vsub.s32 1, %v11272_v3  ;;  %v9240_v12 = vld [vmem:[%s15594_s3] sm:$0xff]  ;;  %v14516_v47 = vsub.s32 2, %v11272_v3  ;;  %v14519_v16 = vsub.s32 3, %v11272_v3 }
 0x3fa   : > { %v14531_v11 = vsub.s32 4, %v11272_v3  ;;  %v14543_v63 = vsub.s32 5, %v11272_v3  ;;  %v9294_v26 = vsub.s32 6, %v11272_v3  ;;  %vm9400_vm1 = vcmask 1043456  }
 0x3fb   : > { %v14522_v54 = vrot.slane %v9240_v12, %v14507_v18  ;;  %v14525_v51 = vrot.slane %v9240_v12, %v14510_v1  ;;  %v14528_v37 = vrot.slane %v9240_v12, %v14516_v47  ;;  %v14540_v13 = vrot.slane %v9240_v12, %v14519_v16 }
 0x3fc   : > { %v14549_v50 = vrot.slane %v9240_v12, %v14531_v11  ;;  %v14560_v28 = vrot.slane %v9240_v12, %v14543_v63  ;;  %v9298_v41 = vsub.s32 7, %v11272_v3  ;;  %v14567_v25 = vrot.slane %v9240_v12, %v9294_v26  ;;  %v9241_v3 = vld [vmem:[%s15594_s3 + $0x8] sm:$0xff] }
 0x3fd   : > { %v14587_v60 = vrot.slane %v9241_v3, %v14507_v18  ;;  %v14595_v38 = vrot.slane %v9241_v3, %v14510_v1  ;;  %v14603_v6 = vrot.slane %v9241_v3, %v14516_v47  ;;  %v14611_v39 = vrot.slane %v9241_v3, %v14519_v16 }
 0x3fe   : > { %v14579_v7 = vrot.slane %v9240_v12, %v9298_v41  ;;  %v14619_v53 = vrot.slane %v9241_v3, %v14531_v11  ;;  %v14627_v30 = vrot.slane %v9241_v3, %v14543_v63 }
 0x3ff   : > { %v14533_v57 = vld [vmem:[#allocation2] sm:$0xf]  ;;  %v14535_v44 = vld [vmem:[#allocation2 + $0x8] sm:$0xf]  ;;  %v14537_v23 = vld [vmem:[#allocation2 + $0x10] sm:$0xf] }
 0x400   : > { %v14545_v43 = vld [vmem:[#allocation2 + $0x18] sm:$0xf]  ;;  %v9378_v32 = vmul.f32 %v14522_v54, %v14533_v57  ;;  %v9379_v27 = vmul.f32 %v14525_v51, %v14535_v44  ;;  %v9380_v62 = vmul.f32 %v14528_v37, %v14537_v23  ;;  %v14557_v36 = vld [vmem:[#allocation2 + $0x20] sm:$0xf]  ;;  %v14565_v24 = vld [vmem:[#allocation2 + $0x28] sm:$0xf] }
 0x401   : > { %v9381_v35 = vmul.f32 %v14540_v13, %v14545_v43  ;;  %v9382_v59 = vmul.f32 %v14549_v50, %v14557_v36  ;;  %v14577_v29 = vld [vmem:[#allocation2 + $0x30] sm:$0xf]  ;;  %v9383_v33 = vmul.f32 %v14560_v28, %v14565_v24  ;;  %v14584_v45 = vld [vmem:[#allocation2 + $0x38] sm:$0xf]  ;;  %v14592_v61 = vld [vmem:[#allocation2 + $0x40] sm:$0xf] }
 0x402   : > { %v9401_v49 = vsel %vm9400_vm1, %v9378_v32, 0.0  ;;  %v9402_v17 = vsel %vm9400_vm1, %v9379_v27, 0.0  ;;  %v9404_v0 = vsel %vm9400_vm1, %v9380_v62, 0.0  ;;  %v9384_v48 = vmul.f32 %v14567_v25, %v14577_v29  ;;  %v14600_v15 = vld [vmem:[#allocation2 + $0x48] sm:$0xf] }
 0x403   : > { %v9403_v56 = vadd.f32 %v9402_v17, %v9401_v49  ;;  %v9406_v8 = vsel %vm9400_vm1, %v9381_v35, 0.0  ;;  %v9408_v34 = vsel %vm9400_vm1, %v9382_v59, 0.0  ;;  %v9385_v55 = vmul.f32 %v14579_v7, %v14584_v45  ;;  %v14608_v14 = vld [vmem:[#allocation2 + $0x50] sm:$0xf]  ;;  %v14616_v46 = vld [vmem:[#allocation2 + $0x58] sm:$0xf] }
 0x404   : > { %v9410_v31 = vsel %vm9400_vm1, %v9383_v33, 0.0  ;;  %v9386_v5 = vmul.f32 %v14587_v60, %v14592_v61  ;;  %v9412_v40 = vsel %vm9400_vm1, %v9384_v48, 0.0  ;;  %v9387_v21 = vmul.f32 %v14595_v38, %v14600_v15  ;;  %v14624_v2 = vld [vmem:[#allocation2 + $0x60] sm:$0xf]  ;;  %v14632_v27 = vld [vmem:[#allocation2 + $0x68] sm:$0xf] }
 0x405   : > { %v9405_v22 = vadd.f32 %v9404_v0, %v9403_v56  ;;  %v9414_v19 = vsel %vm9400_vm1, %v9385_v55, 0.0  ;;  %v9388_v4 = vmul.f32 %v14603_v6, %v14608_v14  ;;  %v9389_v12 = vmul.f32 %v14611_v39, %v14616_v46  ;;  %v9242_v17 = vld [vmem:[%s15594_s3 + $0x10] sm:$0x3f] }
 0x406   : > { %v9416_v9 = vsel %vm9400_vm1, %v9386_v5, 0.0  ;;  %v9418_v32 = vsel %vm9400_vm1, %v9387_v21, 0.0  ;;  %v14634_v35 = vrot.slane %v9241_v3, %v9294_v26  ;;  %v9390_v59 = vmul.f32 %v14619_v53, %v14624_v2  ;;  %v14642_v0 = vld [vmem:[#allocation2 + $0x70] sm:$0xf] }
 0x407   : > { %v9407_v42 = vadd.f32 %v9406_v8, %v9405_v22  ;;  %v9420_v49 = vsel %vm9400_vm1, %v9388_v4, 0.0  ;;  %v14644_v33 = vrot.slane %v9241_v3, %v9298_v41  ;;  %v9391_v8 = vmul.f32 %v14627_v30, %v14632_v27  ;;  %v14649_v22 = vld [vmem:[#allocation2 + $0x78] sm:$0xf] }
 0x408   : > { %v9422_v26 = vsel %vm9400_vm1, %v9389_v12, 0.0  ;;  %v9424_v55 = vsel %vm9400_vm1, %v9390_v59, 0.0  ;;  %v14660_v3 = vrot.slane %v9242_v17, %v14510_v1  ;;  %v14676_v4 = vrot.slane %v9242_v17, %v14519_v16  ;;  %v14681_v12 = vld [vmem:[#allocation2 + $0x98] sm:$0xf] }
 0x409   : > { %v9409_v58 = vadd.f32 %v9408_v34, %v9407_v42  ;;  %v14652_v34 = vrot.slane %v9242_v17, %v14507_v18  ;;  %v9392_v42 = vmul.f32 %v14634_v35, %v14642_v0  ;;  %v9426_v5 = vsel %vm9400_vm1, %v9391_v8, 0.0 }
 0x40a   : > { %v9397_v8 = vmul.f32 %v14676_v4, %v14681_v12 }
 0x40b   : > { %v9411_v20 = vadd.f32 %v9410_v31, %v9409_v58  ;;  %v14657_v31 = vld [vmem:[#allocation2 + $0x80] sm:$0xf]  ;;  %v9393_v58 = vmul.f32 %v14644_v33, %v14649_v22 }
 0x40c   : > { %v9394_v21 = vmul.f32 %v14652_v34, %v14657_v31 }
 0x40d   : > { %v9413_v52 = vadd.f32 %v9412_v40, %v9411_v20  ;;  %v14665_v40 = vld [vmem:[#allocation2 + $0x88] sm:$0xf]  ;;  %v14668_v20 = vrot.slane %v9242_v17, %v14516_v47 }
 0x40e   : > { %v9432_v59 = vsel %vm9400_vm1, %v9394_v21, 0.0 }
 0x40f   : > { %v9415_v10 = vadd.f32 %v9414_v19, %v9413_v52  ;;  %v9428_v19 = vsel %vm9400_vm1, %v9392_v42, 0.0  ;;  %v14673_v52 = vld [vmem:[#allocation2 + $0x90] sm:$0xf] }
 0x411   : > { %v9417_v62 = vadd.f32 %v9416_v9, %v9415_v10  ;;  %v9395_v9 = vmul.f32 %v14660_v3, %v14665_v40  ;;  %v9430_v10 = vsel %vm9400_vm1, %v9393_v58, 0.0 }
 0x413   : > { %v9419_v56 = vadd.f32 %v9418_v32, %v9417_v62  ;;  %v14684_v32 = vrot.slane %v9242_v17, %v14531_v11  ;;  %v9396_v62 = vmul.f32 %v14668_v20, %v14673_v52 }
 0x415   : > { %v9421_v48 = vadd.f32 %v9420_v49, %v9419_v56  ;;  %v14689_v49 = vld [vmem:[#allocation2 + $0xa0] sm:$0xf]  ;;  %v14692_v56 = vrot.slane %v9242_v17, %v14543_v63  ;;  %v9438_v63 = vsel %vm9400_vm1, %v9397_v8, 0.0 }
 0x416   : > { %15628 = vst [vmem:[#allocation6_spill] sm:$0xff] %v14689_v49  ;;  %v9398_v42 = vmul.f32 %v14684_v32, %v14689_v49  ;;  %v14770_v49 = vld [vmem:[#allocation2 + $0x70] sm:$0xf0] }
 0x417   : > { %v9423_v41 = vadd.f32 %v9422_v26, %v9421_v48  ;;  %v9434_v26 = vsel %vm9400_vm1, %v9395_v9, 0.0  ;;  %v14697_v48 = vld [vmem:[#allocation2 + $0xa8] sm:$0xf]  ;;  %v14707_v9 = vld [vmem:[#allocation2] sm:$0xf0]  ;;  %15644 = vst [vmem:[#allocation22_spill] sm:$0xff] %v14770_v49 }
 0x418   : > { %15629 = vst [vmem:[#allocation7_spill] sm:$0xff] %v14697_v48  ;;  %v9399_v58 = vmul.f32 %v14692_v56, %v14697_v48  ;;  %15630 = vst [vmem:[#allocation8_spill] sm:$0xff] %v14707_v9 }
 0x419   : > { %v9425_v18 = vadd.f32 %v9424_v55, %v9423_v41  ;;  %v9436_v55 = vsel %vm9400_vm1, %v9396_v62, 0.0 }
 0x41a   : > { %v9442_v21 = vsel %vm9400_vm1, %v9399_v58, 0.0 }
 0x41b   : > { %v9427_v1 = vadd.f32 %v9426_v5, %v9425_v18  ;;  %v9440_v5 = vsel %vm9400_vm1, %v9398_v42, 0.0 }
 0x41d   : > { %v9429_v47 = vadd.f32 %v9428_v19, %v9427_v1 }
 0x41f   : > { %v9431_v16 = vadd.f32 %v9430_v10, %v9429_v47  ;;  %v14709_v10 = vld [vmem:[#allocation2 + $0x8] sm:$0xf0]  ;;  %v9767_v47 = vmul.f32 %v14707_v9, %v14522_v54  ;;  %v14759_v9 = vld [vmem:[#allocation2 + $0x60] sm:$0xf0] }
 0x420   : > { %15631 = vst [vmem:[#allocation9_spill] sm:$0xff] %v14709_v10  ;;  %v9768_v62 = vmul.f32 %v14709_v10, %v14525_v51  ;;  %15642 = vst [vmem:[#allocation20_spill] sm:$0xff] %v14759_v9 }
 0x421   : > { %v9433_v11 = vadd.f32 %v9432_v59, %v9431_v16  ;;  %v14715_v59 = vld [vmem:[#allocation2 + $0x10] sm:$0xf0]  ;;  %v9811_v8 = vrot.slane %v9767_v47, 4 }
 0x422   : > { %15632 = vst [vmem:[#allocation10_spill] sm:$0xff] %v14715_v59  ;;  %v9769_v16 = vmul.f32 %v14715_v59, %v14528_v37 }
 0x423   : > { %v9435_v41 = vadd.f32 %v9434_v26, %v9433_v11  ;;  %v9812_v26 = vrot.slane %v9768_v62, 4  ;;  %v14719_v11 = vld [vmem:[#allocation2 + $0x18] sm:$0xf0] }
 0x424   : > { %15633 = vst [vmem:[#allocation11_spill] sm:$0xff] %v14719_v11  ;;  %v9770_v42 = vmul.f32 %v14719_v11, %v14540_v13 }
 0x425   : > { %v9437_v17 = vadd.f32 %v9436_v55, %v9435_v41  ;;  %v9813_v55 = vrot.slane %v9769_v16, 4  ;;  %v9855_v41 = vsel %vm9400_vm1, %v9811_v8, 0.0  ;;  %v9856_v58 = vsel %vm9400_vm1, %v9812_v26, 0.0 }
 0x427   : > { %v9439_v18 = vadd.f32 %v9438_v63, %v9437_v17  ;;  %v14725_v63 = vld [vmem:[#allocation2 + $0x20] sm:$0xf0]  ;;  %v9857_v17 = vadd.f32 %v9856_v58, %v9855_v41  ;;  %v14736_v41 = vld [vmem:[#allocation2 + $0x30] sm:$0xf0]  ;;  %v14738_v58 = vld [vmem:[#allocation2 + $0x38] sm:$0xf0] }
 0x428   : > { %15634 = vst [vmem:[#allocation12_spill] sm:$0xff] %v14725_v63  ;;  %15636 = vst [vmem:[#allocation14_spill] sm:$0xff] %v14736_v41 }
 0x429   : > { %v9441_v19 = vadd.f32 %v9440_v5, %v9439_v18  ;;  %v9771_v5 = vmul.f32 %v14725_v63, %v14549_v50  ;;  %v9814_v18 = vrot.slane %v9770_v42, 4  ;;  %15637 = vst [vmem:[#allocation15_spill] sm:$0xff] %v14738_v58  ;;  %v14740_v42 = vld [vmem:[#allocation2 + $0x40] sm:$0xf0]  ;;  %v14744_v63 = vld [vmem:[#allocation2 + $0x48] sm:$0xf0] }
 0x42a   : > { %15638 = vst [vmem:[#allocation16_spill] sm:$0xff] %v14740_v42  ;;  %15639 = vst [vmem:[#allocation17_spill] sm:$0xff] %v14744_v63 }
 0x42b   : > { %v9443_v1 = vadd.f32 %v9442_v21, %v9441_v19  ;;  %v9858_v21 = vsel %vm9400_vm1, %v9813_v55, 0.0  ;;  %v14730_v19 = vld [vmem:[#allocation2 + $0x28] sm:$0xf0]  ;;  %v9815_v62 = vrot.slane %v9771_v5, 4  ;;  %v9860_v16 = vsel %vm9400_vm1, %v9814_v18, 0.0 }
 0x42c   : > { %15635 = vst [vmem:[#allocation13_spill] sm:$0xff] %v14730_v19  ;;  %v9772_v47 = vmul.f32 %v14730_v19, %v14560_v28  ;;  %v9773_v55 = vmul.f32 %v14736_v41, %v14567_v25  ;;  %v9774_v5 = vmul.f32 %v14738_v58, %v14579_v7  ;;  %v9776_v19 = vmul.f32 %v14744_v63, %v14595_v38  ;;  %v14764_v63 = vld [vmem:[#allocation2 + $0x68] sm:$0xf0] }
 0x42d   : > { %9444 = vadd.xlane.f32.xlu0 %v9443_v1  ;;  %v9859_v1 = vadd.f32 %v9858_v21, %v9857_v17  ;;  %v9862_v11 = vsel %vm9400_vm1, %v9815_v62, 0.0  ;;  %v14751_v62 = vld [vmem:[#allocation2 + $0x50] sm:$0xf0]  ;;  %15643 = vst [vmem:[#allocation21_spill] sm:$0xff] %v14764_v63 }
 0x42e   : > { %v9816_v26 = vrot.slane %v9772_v47, 4  ;;  %v9775_v47 = vmul.f32 %v14740_v42, %v14587_v60  ;;  %15640 = vst [vmem:[#allocation18_spill] sm:$0xff] %v14751_v62  ;;  %v9817_v41 = vrot.slane %v9773_v55, 4  ;;  %v9818_v59 = vrot.slane %v9774_v5, 4 }
 0x42f   : > { %v9861_v8 = vadd.f32 %v9860_v16, %v9859_v1  ;;  %v9777_v58 = vmul.f32 %v14751_v62, %v14603_v6 }
 0x430   : > { %v9864_v18 = vsel %vm9400_vm1, %v9816_v26, 0.0  ;;  %v9819_v26 = vrot.slane %v9775_v47, 4 }
 0x431   : > { %v9863_v17 = vadd.f32 %v9862_v11, %v9861_v8  ;;  %v14755_v8 = vld [vmem:[#allocation2 + $0x58] sm:$0xf0]  ;;  %v9821_v62 = vrot.slane %v9777_v58, 4 }
 0x432   : > { %15641 = vst [vmem:[#allocation19_spill] sm:$0xff] %v14755_v8  ;;  %v9778_v42 = vmul.f32 %v14755_v8, %v14611_v39  ;;  %v9870_v47 = vsel %vm9400_vm1, %v9819_v26, 0.0 }
 0x433   : > { %v9865_v11 = vadd.f32 %v9864_v18, %v9863_v17  ;;  %v9868_v17 = vsel %vm9400_vm1, %v9818_v59, 0.0  ;;  %v9779_v18 = vmul.f32 %v14759_v9, %v14619_v53  ;;  %v9874_v26 = vsel %vm9400_vm1, %v9821_v62, 0.0  ;;  %v14780_v9 = vld [vmem:[#allocation2 + $0x80] sm:$0xf0] }
 0x434   : > { %15646 = vst [vmem:[#allocation24_spill] sm:$0xff] %v14780_v9 }
 0x435   : > { %v9823_v58 = vrot.slane %v9779_v18, 4 }
 0x437   : > { %v9878_v18 = vsel %vm9400_vm1, %v9823_v58, 0.0 }
 0x4ba   : > { %v9445_v21 = vpop.xlane.xlu0 %9444 }
 0x4bb   : > { %v9446_v1 = vrot.slane %v9445_v21, 4 }
 0x4bd   : > { %v9447_v16 = vadd.f32 %v9446_v1, %v9445_v21  ;;  %v9820_v21 = vrot.slane %v9776_v19, 4  ;;  %v9866_v1 = vsel %vm9400_vm1, %v9817_v41, 0.0  ;;  %v9780_v19 = vmul.f32 %v14764_v63, %v14627_v30 }
 0x4be   : > { %v9867_v55 = vadd.f32 %v9866_v1, %v9865_v11  ;;  %v9822_v41 = vrot.slane %v9778_v42, 4  ;;  %v14775_v11 = vld [vmem:[#allocation2 + $0x78] sm:$0xf0]  ;;  %v9781_v1 = vmul.f32 %v14770_v49, %v14634_v35 }
 0x4bf   : > { %v9448_v10 = vrot.slane %v9447_v16, 2  ;;  %v9872_v8 = vsel %vm9400_vm1, %v9820_v21, 0.0  ;;  %15645 = vst [vmem:[#allocation23_spill] sm:$0xff] %v14775_v11  ;;  %v14785_v21 = vld [vmem:[#allocation2 + $0x88] sm:$0xf0] }
 0x4c0   : > { %v9876_v42 = vsel %vm9400_vm1, %v9822_v41, 0.0  ;;  %15647 = vst [vmem:[#allocation25_spill] sm:$0xff] %v14785_v21 }
 0x4c1   : > { %v9449_v48 = vadd.f32 %v9448_v10, %v9447_v16  ;;  %v9869_v10 = vadd.f32 %v9868_v17, %v9867_v55  ;;  %v9824_v17 = vrot.slane %v9780_v19, 4 }
 0x4c3   : > { %v9450_v5 = vrot.slane %v9449_v48, 1  ;;  %v9871_v59 = vadd.f32 %v9870_v47, %v9869_v10  ;;  %v9783_v47 = vmul.f32 %v14780_v9, %v14652_v34  ;;  %v9825_v10 = vrot.slane %v9781_v1, 4  ;;  %v14800_v9 = vld [vmem:[#allocation2 + $0xa0] sm:$0xf0] }
 0x4c4   : > { %v9880_v19 = vsel %vm9400_vm1, %v9824_v17, 0.0  ;;  %15650 = vst [vmem:[#allocation28_spill] sm:$0xff] %v14800_v9 }
 0x4c5   : > { %v9451_v16 = vadd.f32 %v9450_v5, %v9449_v48  ;;  %v9873_v55 = vadd.f32 %v9872_v8, %v9871_v59  ;;  %v9782_v48 = vmul.f32 %v14775_v11, %v14644_v33  ;;  %v9784_v8 = vmul.f32 %v14785_v21, %v14660_v3  ;;  %v14795_v11 = vld [vmem:[#allocation2 + $0x98] sm:$0xf0]  ;;  %v14805_v21 = vld [vmem:[#allocation2 + $0xa8] sm:$0xf0] }
 0x4c6   : > { %15649 = vst [vmem:[#allocation27_spill] sm:$0xff] %v14795_v11  ;;  %v9882_v1 = vsel %vm9400_vm1, %v9825_v10, 0.0  ;;  %v9788_v10 = vmul.f32 %v14805_v21, %v14692_v56 }
 0x4c7   : > { %10910 = vpush %v9451_v16  ;;  %v9875_v5 = vadd.f32 %v9874_v26, %v9873_v55  ;;  %v14790_v16 = vld [vmem:[#allocation2 + $0x90] sm:$0xf0]  ;;  %v9826_v59 = vrot.slane %v9782_v48, 4  ;;  %v9827_v55 = vrot.slane %v9783_v47, 4 }
 0x4c8   : > { %15648 = vst [vmem:[#allocation26_spill] sm:$0xff] %v14790_v16  ;;  %v9785_v26 = vmul.f32 %v14790_v16, %v14668_v20  ;;  %v9832_v63 = vrot.slane %v9788_v10, 4 }
 0x4c9   : > { %v9877_v62 = vadd.f32 %v9876_v42, %v9875_v5  ;;  %v9786_v42 = vmul.f32 %v14795_v11, %v14676_v4  ;;  %v9828_v5 = vrot.slane %v9784_v8, 4  ;;  %v9884_v48 = vsel %vm9400_vm1, %v9826_v59, 0.0 }
 0x4ca   : > { %v9886_v47 = vsel %vm9400_vm1, %v9827_v55, 0.0  ;;  %v9896_v55 = vsel %vm9400_vm1, %v9832_v63, 0.0 }
 0x4cb   : > { %v9879_v41 = vadd.f32 %v9878_v18, %v9877_v62  ;;  %v9787_v18 = vmul.f32 %v14800_v9, %v14684_v32  ;;  %v9829_v62 = vrot.slane %v9785_v26, 4 }
 0x4cd   : > { %v9881_v58 = vadd.f32 %v9880_v19, %v9879_v41  ;;  %v9830_v19 = vrot.slane %v9786_v42, 4  ;;  %v9888_v41 = vsel %vm9400_vm1, %v9828_v5, 0.0  ;;  %v9831_v8 = vrot.slane %v9787_v18, 4 }
 0x4ce   : > { %v9890_v59 = vsel %vm9400_vm1, %v9829_v62, 0.0 }
 0x4cf   : > { %v9883_v17 = vadd.f32 %v9882_v1, %v9881_v58  ;;  %v9892_v1 = vsel %vm9400_vm1, %v9830_v19, 0.0  ;;  %v9894_v26 = vsel %vm9400_vm1, %v9831_v8, 0.0 }
 0x4d1   : > { %v9885_v16 = vadd.f32 %v9884_v48, %v9883_v17 }
 0x4d3   : > { %v9887_v11 = vadd.f32 %v9886_v47, %v9885_v16 }
 0x4d5   : > { %v9889_v49 = vadd.f32 %v9888_v41, %v9887_v11 }
 0x4d7   : > { %v9891_v58 = vadd.f32 %v9890_v59, %v9889_v49 }
 0x4d9   : > { %v9893_v9 = vadd.f32 %v9892_v1, %v9891_v58 }
 0x4db   : > { %v9895_v48 = vadd.f32 %v9894_v26, %v9893_v9 }
 0x4dd   : > { %v9897_v17 = vadd.f32 %v9896_v55, %v9895_v48 }
 0x4df   : > { %9898 = vadd.xlane.f32.xlu1 %v9897_v17 }
 0x4f8   : > { %s10911_s14 = spop %10910 }
 0x4f9   : > { %s9453_s15 = smul.f32 0.00012207031, %s10911_s14 }
 0x4fb   : > { %v14817_v42 = vstv %s9453_s15 }
 0x4fc   : > { %v14821_v16 = vsub.f32 %v14533_v57, %v14817_v42  ;;  %v14825_v11 = vsub.f32 %v14535_v44, %v14817_v42  ;;  %v14829_v49 = vsub.f32 %v14537_v23, %v14817_v42  ;;  %v14833_v9 = vsub.f32 %v14545_v43, %v14817_v42 }
 0x4fd   : > { %v14841_v57 = vsub.f32 %v14557_v36, %v14817_v42  ;;  %v14847_v23 = vsub.f32 %v14565_v24, %v14817_v42  ;;  %v14853_v47 = vsub.f32 %v14577_v29, %v14817_v42  ;;  %v14859_v19 = vsub.f32 %v14584_v45, %v14817_v42 }
 0x4fe   : > { %v9477_v63 = vmul.f32 %v14821_v16, %v14522_v54  ;;  %v9478_v5 = vmul.f32 %v14825_v11, %v14525_v51  ;;  %v9479_v44 = vmul.f32 %v14829_v49, %v14528_v37  ;;  %v9480_v43 = vmul.f32 %v14833_v9, %v14540_v13 }
 0x4ff   : > { %v9481_v36 = vmul.f32 %v14841_v57, %v14549_v50  ;;  %v9482_v24 = vmul.f32 %v14847_v23, %v14560_v28  ;;  %v14867_v29 = vsub.f32 %v14592_v61, %v14817_v42  ;;  %v9483_v58 = vmul.f32 %v14853_v47, %v14567_v25 }
 0x500   : > { %v9499_v18 = vmul.f32 %v9477_v63, %v9477_v63  ;;  %v9500_v62 = vmul.f32 %v9478_v5, %v9478_v5  ;;  %v9501_v10 = vmul.f32 %v9479_v44, %v9479_v44  ;;  %v9502_v41 = vmul.f32 %v9480_v43, %v9480_v43 }
 0x501   : > { %v9503_v26 = vmul.f32 %v9481_v36, %v9481_v36  ;;  %v14874_v48 = vsub.f32 %v14600_v15, %v14817_v42  ;;  %v9484_v17 = vmul.f32 %v14859_v19, %v14579_v7  ;;  %v9504_v63 = vmul.f32 %v9482_v24, %v9482_v24 }
 0x502   : > { %v9521_v8 = vsel %vm9400_vm1, %v9499_v18, 0.0  ;;  %v9522_v59 = vsel %vm9400_vm1, %v9500_v62, 0.0  ;;  %v9524_v45 = vsel %vm9400_vm1, %v9501_v10, 0.0  ;;  %v9526_v5 = vsel %vm9400_vm1, %v9502_v41, 0.0 }
 0x503   : > { %v9523_v1 = vadd.f32 %v9522_v59, %v9521_v8  ;;  %v14881_v61 = vsub.f32 %v14608_v14, %v14817_v42  ;;  %v9485_v43 = vmul.f32 %v14867_v29, %v14587_v60  ;;  %v9505_v18 = vmul.f32 %v9483_v58, %v9483_v58 }
 0x504   : > { %v9528_v62 = vsel %vm9400_vm1, %v9503_v26, 0.0  ;;  %v14888_v15 = vsub.f32 %v14616_v46, %v14817_v42  ;;  %v9486_v10 = vmul.f32 %v14874_v48, %v14595_v38  ;;  %v9506_v24 = vmul.f32 %v9484_v17, %v9484_v17 }
 0x505   : > { %v9525_v55 = vadd.f32 %v9524_v45, %v9523_v1  ;;  %v9530_v41 = vsel %vm9400_vm1, %v9504_v63, 0.0  ;;  %v14895_v14 = vsub.f32 %v14624_v2, %v14817_v42  ;;  %v9487_v59 = vmul.f32 %v14881_v61, %v14603_v6 }
 0x506   : > { %v9507_v1 = vmul.f32 %v9485_v43, %v9485_v43  ;;  %v9532_v58 = vsel %vm9400_vm1, %v9505_v18, 0.0  ;;  %v14902_v46 = vsub.f32 %v14632_v27, %v14817_v42  ;;  %v9488_v45 = vmul.f32 %v14888_v15, %v14611_v39 }
 0x507   : > { %v9527_v44 = vadd.f32 %v9526_v5, %v9525_v55  ;;  %v9508_v55 = vmul.f32 %v9486_v10, %v9486_v10  ;;  %v9534_v17 = vsel %vm9400_vm1, %v9506_v24, 0.0  ;;  %v14909_v2 = vsub.f32 %v14642_v0, %v14817_v42 }
 0x508   : > { %v9489_v5 = vmul.f32 %v14895_v14, %v14619_v53  ;;  %v9536_v43 = vsel %vm9400_vm1, %v9507_v1, 0.0  ;;  %v14916_v27 = vsub.f32 %v14649_v22, %v14817_v42  ;;  %v14923_v0 = vsub.f32 %v14657_v31, %v14817_v42 }
 0x509   : > { %v9529_v36 = vadd.f32 %v9528_v62, %v9527_v44  ;;  %v9509_v44 = vmul.f32 %v9487_v59, %v9487_v59  ;;  %v9490_v62 = vmul.f32 %v14902_v46, %v14627_v30  ;;  %v9538_v10 = vsel %vm9400_vm1, %v9508_v55, 0.0 }
 0x50a   : > { %v14930_v22 = vsub.f32 %v14665_v40, %v14817_v42  ;;  %v14937_v31 = vsub.f32 %v14673_v52, %v14817_v42  ;;  %v14944_v40 = vsub.f32 %v14681_v12, %v14817_v42  ;;  %v15651_v52 = vld [vmem:[#allocation6_spill] sm:$0xff]  ;;  %v15653_v12 = vld [vmem:[#allocation7_spill] sm:$0xff] }
 0x50b   : > { %v9531_v8 = vadd.f32 %v9530_v41, %v9529_v36  ;;  %v9510_v36 = vmul.f32 %v9488_v45, %v9488_v45  ;;  %v9491_v41 = vmul.f32 %v14909_v2, %v14634_v35  ;;  %v9540_v59 = vsel %vm9400_vm1, %v9509_v44, 0.0 }
 0x50d   : > { %v9533_v26 = vadd.f32 %v9532_v58, %v9531_v8  ;;  %v9511_v8 = vmul.f32 %v9489_v5, %v9489_v5  ;;  %v9492_v58 = vmul.f32 %v14916_v27, %v14644_v33  ;;  %v9542_v45 = vsel %vm9400_vm1, %v9510_v36, 0.0 }
 0x50f   : > { %v9535_v63 = vadd.f32 %v9534_v17, %v9533_v26  ;;  %v9512_v26 = vmul.f32 %v9490_v62, %v9490_v62  ;;  %v9493_v17 = vmul.f32 %v14923_v0, %v14652_v34  ;;  %v9544_v5 = vsel %vm9400_vm1, %v9511_v8, 0.0 }
 0x511   : > { %v9537_v18 = vadd.f32 %v9536_v43, %v9535_v63  ;;  %v9513_v63 = vmul.f32 %v9491_v41, %v9491_v41  ;;  %v9494_v43 = vmul.f32 %v14930_v22, %v14660_v3  ;;  %v9546_v62 = vsel %vm9400_vm1, %v9512_v26, 0.0 }
 0x512   : > { %v9515_v41 = vmul.f32 %v9493_v17, %v9493_v17 }
 0x513   : > { %v9539_v24 = vadd.f32 %v9538_v10, %v9537_v18  ;;  %v9514_v18 = vmul.f32 %v9492_v58, %v9492_v58  ;;  %v14951_v10 = vsub.f32 %v15651_v52, %v14817_v42  ;;  %v9548_v8 = vsel %vm9400_vm1, %v9513_v63, 0.0 }
 0x514   : > { %v9496_v58 = vmul.f32 %v14944_v40, %v14676_v4  ;;  %v9516_v26 = vmul.f32 %v9494_v43, %v9494_v43  ;;  %v9552_v17 = vsel %vm9400_vm1, %v9515_v41, 0.0 }
 0x515   : > { %v9541_v1 = vadd.f32 %v9540_v59, %v9539_v24  ;;  %15652 = vst [vmem:[#allocation6_spill] sm:$0xff] %v14951_v10  ;;  %v9495_v24 = vmul.f32 %v14937_v31, %v14668_v20 }
 0x517   : > { %v9543_v55 = vadd.f32 %v9542_v45, %v9541_v1  ;;  %v14958_v1 = vsub.f32 %v15653_v12, %v14817_v42  ;;  %v9550_v45 = vsel %vm9400_vm1, %v9514_v18, 0.0  ;;  %v9554_v42 = vsel %vm9400_vm1, %v9516_v26, 0.0 }
 0x519   : > { %v9545_v44 = vadd.f32 %v9544_v5, %v9543_v55  ;;  %15654 = vst [vmem:[#allocation7_spill] sm:$0xff] %v14958_v1  ;;  %v9497_v5 = vmul.f32 %v14951_v10, %v14684_v32  ;;  %v9498_v63 = vmul.f32 %v14958_v1, %v14692_v56 }
 0x51b   : > { %v9547_v36 = vadd.f32 %v9546_v62, %v9545_v44  ;;  %v9517_v44 = vmul.f32 %v9495_v24, %v9495_v24  ;;  %v9520_v18 = vmul.f32 %v9498_v63, %v9498_v63 }
 0x51d   : > { %v9549_v59 = vadd.f32 %v9548_v8, %v9547_v36  ;;  %v9518_v36 = vmul.f32 %v9496_v58, %v9496_v58  ;;  %v9519_v8 = vmul.f32 %v9497_v5, %v9497_v5  ;;  %v9556_v43 = vsel %vm9400_vm1, %v9517_v44, 0.0 }
 0x51e   : > { %v9562_v41 = vsel %vm9400_vm1, %v9520_v18, 0.0 }
 0x51f   : > { %v9551_v55 = vadd.f32 %v9550_v45, %v9549_v59  ;;  %v9558_v59 = vsel %vm9400_vm1, %v9518_v36, 0.0  ;;  %v9560_v24 = vsel %vm9400_vm1, %v9519_v8, 0.0 }
 0x521   : > { %v9553_v62 = vadd.f32 %v9552_v17, %v9551_v55 }
 0x523   : > { %v9555_v52 = vadd.f32 %v9554_v42, %v9553_v62 }
 0x525   : > { %v9557_v12 = vadd.f32 %v9556_v43, %v9555_v52 }
 0x527   : > { %v9559_v45 = vadd.f32 %v9558_v59, %v9557_v12  ;;  %v11163_v12 = vmov 0  }
 0x528   : > { %11032 = vset.pattern.permute.xlu1 %v11163_v12  ;;  %11031 = vset.pattern.permute.xlu0 %v11163_v12 }
 0x529   : > { %v9561_v10 = vadd.f32 %v9560_v24, %v9559_v45  ;;  %v15655_v45 = vld [vmem:[#allocation8_spill] sm:$0xff] }
 0x52b   : > { %v9563_v55 = vadd.f32 %v9562_v41, %v9561_v10  ;;  %v15656_v41 = vld [vmem:[#allocation9_spill] sm:$0xff] }
 0x52d   : > { %9564 = vadd.xlane.f32.xlu0 %v9563_v55 }
 0x56c   : > { %v9899_v44 = vpop.xlane.xlu1 %9898 }
 0x56d   : > { %v9900_v63 = vrot.slane %v9899_v44, 4 }
 0x56f   : > { %v9901_v52 = vadd.f32 %v9900_v63, %v9899_v44  ;;  %v15659_v44 = vld [vmem:[#allocation12_spill] sm:$0xff] }
 0x571   : > { %v9902_v36 = vrot.slane %v9901_v52, 2 }
 0x573   : > { %v9903_v43 = vadd.f32 %v9902_v36, %v9901_v52  ;;  %v15660_v36 = vld [vmem:[#allocation13_spill] sm:$0xff] }
 0x575   : > { %v9904_v10 = vrot.slane %v9903_v43, 1 }
 0x577   : > { %v9905_v59 = vadd.f32 %v9904_v10, %v9903_v43 }
 0x5ba   : > { %v9565_v17 = vpop.xlane.xlu0 %9564 }
 0x5bb   : > { %v9566_v58 = vrot.slane %v9565_v17, 4 }
 0x5bd   : > { %v9567_v1 = vadd.f32 %v9566_v58, %v9565_v17  ;;  %v15657_v17 = vld [vmem:[#allocation10_spill] sm:$0xff] }
 0x5bf   : > { %v9568_v26 = vrot.slane %v9567_v1, 2 }
 0x5c1   : > { %v9569_v62 = vadd.f32 %v9568_v26, %v9567_v1  ;;  %v15658_v26 = vld [vmem:[#allocation11_spill] sm:$0xff] }
 0x5c3   : > { %v9570_v5 = vrot.slane %v9569_v62, 1 }
 0x5c5   : > { %v9571_v42 = vadd.f32 %v9570_v5, %v9569_v62 }
 0x5c7   : > { %10912 = vpush %v9571_v42 }
 0x5f8   : > { %s10913_s17 = spop %10912 }
 0x5f9   : > { %s9573_s18 = smul.f32 0.00012207031, %s10913_s17 }
 0x5fb   : > { %s9574_s19 = sadd.f32 1e-05, %s9573_s18 }
 0x5fd   : > { %v9575_v8 = vstv %s9574_s19 }
 0x5fe   : > { %11033 = vrsqrt.f32 %v9575_v8 }
 0x608   : > { %v11034_v18 = vpop.eup %11033 }
 0x609   : > { %10914 = vpush %v11034_v18 }
 0x60a   : > { %10916 = vpush %v9905_v59 }
 0x63a   : > { %s14973_s11 = spop %10914 }
 0x63b   : > { %s10917_s24 = spop %10916 }
 0x63c   : > { %s9907_s12 = smul.f32 0.00012207031, %s10917_s24 }
 0x63e   : > { %v14975_v1 = vstv %s9907_s12 }
 0x63f   : > { %v14979_v24 = vsub.f32 %v15655_v45, %v14975_v1  ;;  %v14983_v55 = vsub.f32 %v15656_v41, %v14975_v1  ;;  %v14987_v58 = vsub.f32 %v15657_v17, %v14975_v1  ;;  %v14991_v62 = vsub.f32 %v15658_v26, %v14975_v1  ;;  %v15664_v45 = vld [vmem:[#allocation15_spill] sm:$0xff] }
 0x640   : > { %v14999_v63 = vsub.f32 %v15659_v44, %v14975_v1  ;;  %v15005_v8 = vsub.f32 %v15660_v36, %v14975_v1 }
 0x641   : > { %v9931_v5 = vmul.f32 %v14979_v24, %v14522_v54  ;;  %v9932_v42 = vmul.f32 %v14983_v55, %v14525_v51  ;;  %v9933_v52 = vmul.f32 %v14987_v58, %v14528_v37  ;;  %v9934_v43 = vmul.f32 %v14991_v62, %v14540_v13  ;;  %v15662_v54 = vld [vmem:[#allocation14_spill] sm:$0xff] }
 0x642   : > { %15661 = vst [vmem:[#allocation8_spill] sm:$0xff] %v15005_v8  ;;  %v15011_v18 = vsub.f32 %v15662_v54, %v14975_v1  ;;  %v9935_v51 = vmul.f32 %v14999_v63, %v14549_v50  ;;  %v15017_v37 = vsub.f32 %v15664_v45, %v14975_v1  ;;  %v9936_v41 = vmul.f32 %v15005_v8, %v14560_v28 }
 0x643   : > { %v9953_v10 = vmul.f32 %v9931_v5, %v9931_v5  ;;  %v9954_v12 = vmul.f32 %v9932_v42, %v9932_v42  ;;  %v9955_v59 = vmul.f32 %v9933_v52, %v9933_v52  ;;  %v9956_v17 = vmul.f32 %v9934_v43, %v9934_v43  ;;  %v15666_v5 = vld [vmem:[#allocation16_spill] sm:$0xff]  ;;  %v15667_v52 = vld [vmem:[#allocation17_spill] sm:$0xff] }
 0x644   : > { %15663 = vst [vmem:[#allocation9_spill] sm:$0xff] %v15011_v18  ;;  %15665 = vst [vmem:[#allocation10_spill] sm:$0xff] %v15017_v37  ;;  %v15023_v42 = vsub.f32 %v15666_v5, %v14975_v1  ;;  %v9937_v44 = vmul.f32 %v15011_v18, %v14567_v25  ;;  %v9957_v36 = vmul.f32 %v9935_v51, %v9935_v51  ;;  %v15668_v5 = vld [vmem:[#allocation18_spill] sm:$0xff] }
 0x645   : > { %v9997_v26 = vrot.slane %v9953_v10, 4  ;;  %v9998_v13 = vrot.slane %v9954_v12, 4  ;;  %v9999_v50 = vrot.slane %v9955_v59, 4  ;;  %v15029_v54 = vsub.f32 %v15667_v52, %v14975_v1 }
 0x646   : > { %v9938_v45 = vmul.f32 %v15017_v37, %v14579_v7  ;;  %v9958_v28 = vmul.f32 %v9936_v41, %v9936_v41  ;;  %v10000_v43 = vrot.slane %v9956_v17, 4  ;;  %v15037_v8 = vsub.f32 %v15668_v5, %v14975_v1  ;;  %v15669_v7 = vld [vmem:[#allocation19_spill] sm:$0xff] }
 0x647   : > { %v10041_v10 = vsel %vm9400_vm1, %v9997_v26, 0.0  ;;  %v10042_v12 = vsel %vm9400_vm1, %v9998_v13, 0.0  ;;  %v9939_v51 = vmul.f32 %v15023_v42, %v14587_v60  ;;  %v9959_v59 = vmul.f32 %v9937_v44, %v9937_v44 }
 0x648   : > { %v10043_v25 = vadd.f32 %v10042_v12, %v10041_v10  ;;  %v10001_v52 = vrot.slane %v9957_v36, 4  ;;  %v10044_v18 = vsel %vm9400_vm1, %v9999_v50, 0.0  ;;  %v15044_v41 = vsub.f32 %v15669_v7, %v14975_v1  ;;  %v15670_v10 = vld [vmem:[#allocation20_spill] sm:$0xff] }
 0x649   : > { %v9940_v26 = vmul.f32 %v15029_v54, %v14595_v38  ;;  %v9960_v13 = vmul.f32 %v9938_v45, %v9938_v45  ;;  %v10002_v37 = vrot.slane %v9958_v28, 4  ;;  %v10046_v5 = vsel %vm9400_vm1, %v10000_v43, 0.0 }
 0x64a   : > { %v10045_v17 = vadd.f32 %v10044_v18, %v10043_v25  ;;  %v15051_v12 = vsub.f32 %v15670_v10, %v14975_v1  ;;  %v9941_v44 = vmul.f32 %v15037_v8, %v14603_v6  ;;  %v9961_v36 = vmul.f32 %v9939_v51, %v9939_v51  ;;  %v15671_v18 = vld [vmem:[#allocation21_spill] sm:$0xff] }
 0x64b   : > { %v10003_v50 = vrot.slane %v9959_v59, 4  ;;  %v10048_v7 = vsel %vm9400_vm1, %v10001_v52, 0.0  ;;  %v15058_v25 = vsub.f32 %v15671_v18, %v14975_v1  ;;  %v9942_v45 = vmul.f32 %v15044_v41, %v14611_v39 }
 0x64c   : > { %v10047_v60 = vadd.f32 %v10046_v5, %v10045_v17  ;;  %v9962_v28 = vmul.f32 %v9940_v26, %v9940_v26  ;;  %v10004_v43 = vrot.slane %v9960_v13, 4  ;;  %v10050_v10 = vsel %vm9400_vm1, %v10002_v37, 0.0  ;;  %v15672_v17 = vld [vmem:[#allocation22_spill] sm:$0xff] }
 0x64d   : > { %v15065_v5 = vsub.f32 %v15672_v17, %v14975_v1  ;;  %v9943_v51 = vmul.f32 %v15051_v12, %v14619_v53  ;;  %v9963_v59 = vmul.f32 %v9941_v44, %v9941_v44  ;;  %v10005_v52 = vrot.slane %v9961_v36, 4 }
 0x64e   : > { %v10049_v38 = vadd.f32 %v10048_v7, %v10047_v60  ;;  %v10052_v18 = vsel %vm9400_vm1, %v10003_v50, 0.0  ;;  %v15673_v60 = vld [vmem:[#allocation23_spill] sm:$0xff]  ;;  %v9944_v37 = vmul.f32 %v15058_v25, %v14627_v30  ;;  %v9964_v26 = vmul.f32 %v9942_v45, %v9942_v45 }
 0x64f   : > { %v15072_v7 = vsub.f32 %v15673_v60, %v14975_v1  ;;  %v10006_v13 = vrot.slane %v9962_v28, 4  ;;  %v10054_v17 = vsel %vm9400_vm1, %v10004_v43, 0.0  ;;  %v9945_v44 = vmul.f32 %v15065_v5, %v14634_v35 }
 0x650   : > { %v10051_v6 = vadd.f32 %v10050_v10, %v10049_v38  ;;  %v15674_v38 = vld [vmem:[#allocation24_spill] sm:$0xff]  ;;  %v9965_v36 = vmul.f32 %v9943_v51, %v9943_v51  ;;  %v10007_v50 = vrot.slane %v9963_v59, 4  ;;  %v10056_v60 = vsel %vm9400_vm1, %v10005_v52, 0.0 }
 0x651   : > { %v15079_v10 = vsub.f32 %v15674_v38, %v14975_v1  ;;  %v9946_v45 = vmul.f32 %v15072_v7, %v14644_v33  ;;  %v9966_v28 = vmul.f32 %v9944_v37, %v9944_v37  ;;  %v10008_v43 = vrot.slane %v9964_v26, 4 }
 0x652   : > { %v10053_v39 = vadd.f32 %v10052_v18, %v10051_v6  ;;  %v15675_v6 = vld [vmem:[#allocation25_spill] sm:$0xff]  ;;  %v10058_v38 = vsel %vm9400_vm1, %v10006_v13, 0.0  ;;  %v9967_v59 = vmul.f32 %v9945_v44, %v9945_v44  ;;  %v10009_v52 = vrot.slane %v9965_v36, 4 }
 0x653   : > { %v15086_v18 = vsub.f32 %v15675_v6, %v14975_v1  ;;  %v9947_v51 = vmul.f32 %v15079_v10, %v14652_v34  ;;  %v10060_v6 = vsel %vm9400_vm1, %v10007_v50, 0.0  ;;  %v9968_v26 = vmul.f32 %v9946_v45, %v9946_v45 }
 0x654   : > { %v10055_v53 = vadd.f32 %v10054_v17, %v10053_v39  ;;  %v15676_v39 = vld [vmem:[#allocation26_spill] sm:$0xff]  ;;  %v10010_v13 = vrot.slane %v9966_v28, 4  ;;  %v10011_v50 = vrot.slane %v9967_v59, 4 }
 0x655   : > { %v15093_v17 = vsub.f32 %v15676_v39, %v14975_v1  ;;  %v9948_v37 = vmul.f32 %v15086_v18, %v14660_v3  ;;  %v10062_v39 = vsel %vm9400_vm1, %v10008_v43, 0.0  ;;  %v9969_v36 = vmul.f32 %v9947_v51, %v9947_v51 }
 0x656   : > { %v10057_v30 = vadd.f32 %v10056_v60, %v10055_v53  ;;  %v15677_v53 = vld [vmem:[#allocation27_spill] sm:$0xff]  ;;  %v10012_v43 = vrot.slane %v9968_v26, 4 }
 0x657   : > { %v15100_v60 = vsub.f32 %v15677_v53, %v14975_v1  ;;  %v9949_v44 = vmul.f32 %v15093_v17, %v14668_v20  ;;  %v10064_v53 = vsel %vm9400_vm1, %v10009_v52, 0.0  ;;  %v9970_v28 = vmul.f32 %v9948_v37, %v9948_v37 }
 0x658   : > { %v10059_v35 = vadd.f32 %v10058_v38, %v10057_v30  ;;  %v15678_v30 = vld [vmem:[#allocation28_spill] sm:$0xff]  ;;  %v10013_v59 = vrot.slane %v9969_v36, 4  ;;  %v10068_v52 = vsel %vm9400_vm1, %v10011_v50, 0.0 }
 0x659   : > { %v15107_v38 = vsub.f32 %v15678_v30, %v14975_v1  ;;  %v9950_v45 = vmul.f32 %v15100_v60, %v14676_v4  ;;  %v9971_v51 = vmul.f32 %v9949_v44, %v9949_v44  ;;  %v10014_v30 = vrot.slane %v9970_v28, 4 }
 0x65a   : > { %v10061_v33 = vadd.f32 %v10060_v6, %v10059_v35  ;;  %v15114_v35 = vsub.f32 %v14805_v21, %v14975_v1  ;;  %v10066_v6 = vsel %vm9400_vm1, %v10010_v13, 0.0  ;;  %v10070_v4 = vsel %vm9400_vm1, %v10012_v43, 0.0 }
 0x65b   : > { %v9951_v20 = vmul.f32 %v15107_v38, %v14684_v32  ;;  %v9972_v1 = vmul.f32 %v9950_v45, %v9950_v45  ;;  %v10072_v13 = vsel %vm9400_vm1, %v10013_v59, 0.0  ;;  %v10074_v44 = vsel %vm9400_vm1, %v10014_v30, 0.0 }
 0x65c   : > { %v10063_v34 = vadd.f32 %v10062_v39, %v10061_v33  ;;  %v9952_v21 = vmul.f32 %v15114_v35, %v14692_v56  ;;  %v9578_v30 = vstv %s14973_s11 }
 0x65d   : > { %v9973_v26 = vmul.f32 %v9951_v20, %v9951_v20  ;;  %v10016_v32 = vrot.slane %v9972_v1, 4  ;;  %v9629_v1 = vld [vmem:[%s15596_s5] sm:$0xf] }
 0x65e   : > { %v10065_v3 = vadd.f32 %v10064_v53, %v10063_v34  ;;  %v10015_v34 = vrot.slane %v9971_v51, 4 }
 0x65f   : > { %v10017_v50 = vrot.slane %v9973_v26, 4  ;;  %v10078_v45 = vsel %vm9400_vm1, %v10016_v32, 0.0  ;;  %v9579_v26 = vmul.f32 %v9578_v30, %v14821_v16  ;;  %v9584_v32 = vmul.f32 %v9578_v30, %v14847_v23 }
 0x660   : > { %v10067_v33 = vadd.f32 %v10066_v6, %v10065_v3  ;;  %v9974_v3 = vmul.f32 %v9952_v21, %v9952_v21  ;;  %v10076_v6 = vsel %vm9400_vm1, %v10015_v34, 0.0  ;;  %v10121_v21 = vld [vmem:[%s15595_s4 + $0x4] sm:$0xf]  ;;  %v9580_v34 = vmul.f32 %v9578_v30, %v14825_v11 }
 0x661   : > { %v10080_v43 = vsel %vm9400_vm1, %v10017_v50, 0.0  ;;  %10124 = vperm.xlu0 %11031, %v10121_v21   ;;  %v9586_v50 = vmul.f32 %v9578_v30, %v14859_v19  ;;  %v9588_v16 = vmul.f32 %v9578_v30, %v14874_v48  ;;  %v9589_v11 = vmul.f32 %v9578_v30, %v14881_v61  ;;  %v15679_v61 = vld [vmem:[#allocation6_spill] sm:$0xff] }
 0x662   : > { %v10069_v39 = vadd.f32 %v10068_v52, %v10067_v33  ;;  %v10018_v56 = vrot.slane %v9974_v3, 4  ;;  %v9601_v52 = vld [vmem:[%s15595_s4] sm:$0xf]  ;;  %v9583_v3 = vmul.f32 %v9578_v30, %v14841_v57  ;;  %v9592_v57 = vmul.f32 %v9578_v30, %v14902_v46 }
 0x663   : > { %v9593_v23 = vmul.f32 %v9578_v30, %v14909_v2  ;;  %v9596_v19 = vmul.f32 %v9578_v30, %v14930_v22  ;;  %v9598_v48 = vmul.f32 %v9578_v30, %v14944_v40 }
 0x664   : > { %v10071_v37 = vadd.f32 %v10070_v4, %v10069_v39  ;;  %v10082_v51 = vsel %vm9400_vm1, %v10018_v56, 0.0  ;;  %v10150_v39 = vld [vmem:[%s15596_s5 + $0x4] sm:$0xf]  ;;  %v9595_v56 = vmul.f32 %v9578_v30, %v14923_v0 }
 0x666   : > { %v10073_v53 = vadd.f32 %v10072_v13, %v10071_v37  ;;  %v9581_v13 = vmul.f32 %v9578_v30, %v14829_v49  ;;  %v9590_v49 = vmul.f32 %v9578_v30, %v14888_v15 }
 0x668   : > { %v10075_v36 = vadd.f32 %v10074_v44, %v10073_v53  ;;  %v9582_v53 = vmul.f32 %v9578_v30, %v14833_v9  ;;  %v9585_v44 = vmul.f32 %v9578_v30, %v14853_v47  ;;  %v9591_v9 = vmul.f32 %v9578_v30, %v14895_v14 }
 0x669   : > { %v9594_v47 = vmul.f32 %v9578_v30, %v14916_v27 }
 0x66a   : > { %v10077_v33 = vadd.f32 %v10076_v6, %v10075_v36  ;;  %v9587_v6 = vmul.f32 %v9578_v30, %v14867_v29  ;;  %v9597_v29 = vmul.f32 %v9578_v30, %v14937_v31 }
 0x66c   : > { %v10079_v28 = vadd.f32 %v10078_v45, %v10077_v33  ;;  %v9599_v45 = vmul.f32 %v9578_v30, %v15679_v61 }
 0x66e   : > { %v10081_v20 = vadd.f32 %v10080_v43, %v10079_v28  ;;  %v15680_v28 = vld [vmem:[#allocation7_spill] sm:$0xff] }
 0x66f   : > { %v9600_v15 = vmul.f32 %v9578_v30, %v15680_v28 }
 0x670   : > { %v10083_v59 = vadd.f32 %v10082_v51, %v10081_v20 }
 0x672   : > { %10084 = vadd.xlane.f32.xlu1 %v10083_v59 }
 0x683   : > { %9604 = vperm.xlu1 %11032, %v9601_v52  }
 0x687   : > { %10153 = vperm.xlu1 %11032, %v10150_v39  }
 0x68b   : > { %9632 = vperm.xlu1 %11032, %v9629_v1  }
 0x6ff   : > { %v10085_v4 = vpop.xlane.xlu1 %10084 }
 0x700   : > { %v10086_v37 = vrot.slane %v10085_v4, 4 }
 0x702   : > { %v15151_v36 = vadd.f32 %v10086_v37, %v10085_v4 }
 0x703   : > { %v9605_v33 = vpop.permute.xlu1 %9604 }
 0x704   : > { %v9607_v46 = vmul.f32 %v9605_v33, %v9579_v26  ;;  %v9608_v2 = vmul.f32 %v9605_v33, %v9580_v34  ;;  %v9609_v20 = vmul.f32 %v9605_v33, %v9581_v13  ;;  %v9610_v27 = vmul.f32 %v9605_v33, %v9582_v53 }
 0x705   : > { %v9611_v51 = vmul.f32 %v9605_v33, %v9583_v3  ;;  %v9612_v0 = vmul.f32 %v9605_v33, %v9584_v32  ;;  %v9613_v59 = vmul.f32 %v9605_v33, %v9585_v44  ;;  %v9614_v22 = vmul.f32 %v9605_v33, %v9586_v50 }
 0x706   : > { %v9615_v52 = vmul.f32 %v9605_v33, %v9587_v6  ;;  %v9616_v31 = vmul.f32 %v9605_v33, %v9588_v16  ;;  %v9617_v39 = vmul.f32 %v9605_v33, %v9589_v11  ;;  %v9618_v40 = vmul.f32 %v9605_v33, %v9590_v49 }
 0x707   : > { %v15169_v43 = vpop.permute.xlu1 %10153  ;;  %v9619_v21 = vmul.f32 %v9605_v33, %v9591_v9  ;;  %v9620_v1 = vmul.f32 %v9605_v33, %v9592_v57  ;;  %v9621_v4 = vmul.f32 %v9605_v33, %v9593_v23  ;;  %v9622_v30 = vmul.f32 %v9605_v33, %v9594_v47 }
 0x708   : > { %v9623_v61 = vmul.f32 %v9605_v33, %v9595_v56  ;;  %v9624_v28 = vmul.f32 %v9605_v33, %v9596_v19  ;;  %v9625_v14 = vmul.f32 %v9605_v33, %v9597_v29  ;;  %v9626_v26 = vmul.f32 %v9605_v33, %v9598_v48 }
 0x709   : > { %v9627_v34 = vmul.f32 %v9605_v33, %v9599_v45  ;;  %v9628_v13 = vmul.f32 %v9605_v33, %v9600_v15 }
 0x70b   : > { %v9633_v37 = vpop.permute.xlu1 %9632 }
 0x70c   : > { %v9635_v53 = vadd.f32 %v9633_v37, %v9607_v46  ;;  %v9636_v3 = vadd.f32 %v9633_v37, %v9608_v2  ;;  %v9637_v32 = vadd.f32 %v9633_v37, %v9609_v20  ;;  %v15171_v44 = vadd.f32 %v9633_v37, %v9610_v27 }
 0x70d   : > { %v15173_v50 = vadd.f32 %v9633_v37, %v9611_v51  ;;  %v15175_v6 = vadd.f32 %v9633_v37, %v9612_v0  ;;  %v15177_v16 = vadd.f32 %v9633_v37, %v9613_v59  ;;  %v15179_v11 = vadd.f32 %v9633_v37, %v9614_v22 }
 0x70e   : > { %v15181_v49 = vadd.f32 %v9633_v37, %v9615_v52  ;;  %v15183_v9 = vadd.f32 %v9633_v37, %v9616_v31  ;;  %v15185_v57 = vadd.f32 %v9633_v37, %v9617_v39  ;;  %v15187_v33 = vadd.f32 %v9633_v37, %v9618_v40 }
 0x70f   : > { %v15189_v23 = vadd.f32 %v9633_v37, %v9619_v21  ;;  %v15191_v47 = vadd.f32 %v9633_v37, %v9620_v1  ;;  %v15193_v56 = vadd.f32 %v9633_v37, %v9621_v4  ;;  %v15195_v19 = vadd.f32 %v9633_v37, %v9622_v30 }
 0x710   : > { %v15197_v29 = vadd.f32 %v9633_v37, %v9623_v61  ;;  %v15199_v48 = vadd.f32 %v9633_v37, %v9624_v28  ;;  %v15201_v45 = vadd.f32 %v9633_v37, %v9625_v14  ;;  %v15203_v15 = vadd.f32 %v9633_v37, %v9626_v26 }
 0x711   : > { %v15205_v46 = vadd.f32 %v9633_v37, %v9627_v34  ;;  %v15207_v2 = vadd.f32 %v9633_v37, %v9628_v13  ;;  %vm9657_vm2 = vcmp.ge.f32.partialorder %v9635_v53, 0.0  ;;  %vm9658_vm3 = vcmp.ge.f32.partialorder %v9636_v3, 0.0 }
 0x712   : > { %vm9659_vm0 = vcmp.ge.f32.partialorder %v9637_v32, 0.0  ;;  %vm9660_vm4 = vcmp.ge.f32.partialorder %v15171_v44, 0.0  ;;  %vm9661_vm5 = vcmp.ge.f32.partialorder %v15173_v50, 0.0  ;;  %vm9662_vm6 = vcmp.ge.f32.partialorder %v15175_v6, 0.0 }
 0x713   : > { %vm9669_vm13 = vcmp.ge.f32.partialorder %v15189_v23, 0.0  ;;  %vm9670_vm14 = vcmp.ge.f32.partialorder %v15191_v47, 0.0  ;;  %vm9671_vm15 = vcmp.ge.f32.partialorder %v15193_v56, 0.0  ;;  %vm9672_vm1 = vcmp.ge.f32.partialorder %v15195_v19, 0.0 }
 0x714   : > { %vm9673_vm7 = vcmp.ge.f32.partialorder %v15197_v29, 0.0  ;;  %vm9674_vm8 = vcmp.ge.f32.partialorder %v15199_v48, 0.0  ;;  %vm9675_vm9 = vcmp.ge.f32.partialorder %v15201_v45, 0.0  ;;  %vm9676_vm10 = vcmp.ge.f32.partialorder %v15203_v15, 0.0 }
 0x715   : > { %vm9677_vm11 = vcmp.ge.f32.partialorder %v15205_v46, 0.0  ;;  %vm9678_vm12 = vcmp.ge.f32.partialorder %v15207_v2, 0.0  ;;  %v9679_v14 = vmul.f32 0.2, %v9635_v53  ;;  %v9680_v20 = vmul.f32 0.2, %v9636_v3 }
 0x716   : > { %v9681_v27 = vmul.f32 0.2, %v9637_v32  ;;  %v9682_v51 = vmul.f32 0.2, %v15171_v44  ;;  %v9683_v0 = vmul.f32 0.2, %v15173_v50 }
 0x717   : > { %v9684_v59 = vmul.f32 0.2, %v15175_v6  ;;  %v15681_v22 = vrot.slane %v15151_v36, 2  ;;  %v9685_v31 = vmul.f32 0.2, %v15177_v16  ;;  %v9701_v21 = vsel %vm9657_vm2, %v9635_v53, %v9679_v14 }
 0x718   : > { %v9686_v39 = vmul.f32 0.2, %v15179_v11  ;;  %v9687_v40 = vmul.f32 0.2, %v15181_v49  ;;  %v9688_v1 = vmul.f32 0.2, %v15183_v9  ;;  %v9702_v37 = vsel %vm9658_vm3, %v9636_v3, %v9680_v20 }
 0x719   : > { %v10089_v52 = vadd.f32 %v15681_v22, %v15151_v36  ;;  %v9689_v4 = vmul.f32 0.2, %v15185_v57  ;;  %v9690_v30 = vmul.f32 0.2, %v15187_v33  ;;  %9723 = vst [vmem:[%s14503_s16] sm:$0xf] %v9701_v21  ;;  %v9703_v26 = vsel %vm9659_vm0, %v9637_v32, %v9681_v27 }
 0x71a   : > { %v9691_v36 = vmul.f32 0.2, %v15189_v23  ;;  %v9692_v61 = vmul.f32 0.2, %v15191_v47  ;;  %v9693_v28 = vmul.f32 0.2, %v15193_v56  ;;  %v9704_v3 = vsel %vm9660_vm4, %v15171_v44, %v9682_v51 }
 0x71b   : > { %9724 = vst [vmem:[%s14503_s16 + $0x8] sm:$0xf] %v9702_v37  ;;  %v9694_v34 = vmul.f32 0.2, %v15195_v19  ;;  %v9695_v13 = vmul.f32 0.2, %v15197_v29  ;;  %v9705_v27 = vsel %vm9661_vm5, %v15173_v50, %v9683_v0  ;;  %v9706_v44 = vsel %vm9662_vm6, %v15175_v6, %v9684_v59 }
 0x71c   : > { %v9696_v53 = vmul.f32 0.2, %v15199_v48  ;;  %9725 = vst [vmem:[%s14503_s16 + $0x10] sm:$0xf] %v9703_v26  ;;  %v9697_v14 = vmul.f32 0.2, %v15201_v45 }
 0x71d   : > { %v9698_v32 = vmul.f32 0.2, %v15203_v15  ;;  %v9699_v20 = vmul.f32 0.2, %v15205_v46  ;;  %9726 = vst [vmem:[%s14503_s16 + $0x18] sm:$0xf] %v9704_v3 }
 0x71e   : > { %v9700_v22 = vmul.f32 0.2, %v15207_v2  ;;  %vm15682_vm2 = vcmp.ge.f32.partialorder %v15177_v16, 0.0  ;;  %vm15683_vm3 = vcmp.ge.f32.partialorder %v15179_v11, 0.0  ;;  %9727 = vst [vmem:[%s14503_s16 + $0x20] sm:$0xf] %v9705_v27 }
 0x71f   : > { %v9707_v51 = vsel %vm15682_vm2, %v15177_v16, %v9685_v31  ;;  %v9708_v21 = vsel %vm15683_vm3, %v15179_v11, %v9686_v39  ;;  %vm15684_vm0 = vcmp.ge.f32.partialorder %v15181_v49, 0.0  ;;  %vm15685_vm4 = vcmp.ge.f32.partialorder %v15183_v9, 0.0  ;;  %9728 = vst [vmem:[%s14503_s16 + $0x28] sm:$0xf] %v9706_v44  ;;  %v15688_v37 = vld [vmem:[#allocation8_spill] sm:$0xff]  ;;  %v15690_v26 = vld [vmem:[#allocation10_spill] sm:$0xff] }
 0x720   : > { %v9709_v50 = vsel %vm15684_vm0, %v15181_v49, %v9687_v40  ;;  %v9710_v6 = vsel %vm15685_vm4, %v15183_v9, %v9688_v1  ;;  %vm15686_vm5 = vcmp.ge.f32.partialorder %v15185_v57, 0.0  ;;  %vm15687_vm6 = vcmp.ge.f32.partialorder %v15187_v33, 0.0  ;;  %9729 = vst [vmem:[%s14503_s16 + $0x30] sm:$0xf] %v9707_v51  ;;  %9730 = vst [vmem:[%s14503_s16 + $0x38] sm:$0xf] %v9708_v21 }
 0x721   : > { %v9711_v0 = vsel %vm15686_vm5, %v15185_v57, %v9689_v4  ;;  %v9712_v16 = vsel %vm15687_vm6, %v15187_v33, %v9690_v30  ;;  %v9713_v11 = vsel %vm9669_vm13, %v15189_v23, %v9691_v36  ;;  %v9714_v49 = vsel %vm9670_vm14, %v15191_v47, %v9692_v61  ;;  %9731 = vst [vmem:[%s14503_s16 + $0x40] sm:$0xf] %v9709_v50  ;;  %v15689_v61 = vld [vmem:[#allocation9_spill] sm:$0xff] }
 0x722   : > { %v9715_v9 = vsel %vm9671_vm15, %v15193_v56, %v9693_v28  ;;  %v9716_v57 = vsel %vm9672_vm1, %v15195_v19, %v9694_v34  ;;  %9732 = vst [vmem:[%s14503_s16 + $0x48] sm:$0xf] %v9710_v6  ;;  %9733 = vst [vmem:[%s14503_s16 + $0x50] sm:$0xf] %v9711_v0  ;;  %v9717_v33 = vsel %vm9673_vm7, %v15197_v29, %v9695_v13 }
 0x723   : > { %9734 = vst [vmem:[%s14503_s16 + $0x58] sm:$0xf] %v9712_v16  ;;  %v9718_v23 = vsel %vm9674_vm8, %v15199_v48, %v9696_v53  ;;  %v9719_v47 = vsel %vm9675_vm9, %v15201_v45, %v9697_v14  ;;  %v9720_v56 = vsel %vm9676_vm10, %v15203_v15, %v9698_v32  ;;  %9735 = vst [vmem:[%s14503_s16 + $0x60] sm:$0xf] %v9713_v11  ;;  %v10090_v48 = vrot.slane %v10089_v52, 1 }
 0x724   : > { %9736 = vst [vmem:[%s14503_s16 + $0x68] sm:$0xf] %v9714_v49  ;;  %9737 = vst [vmem:[%s14503_s16 + $0x70] sm:$0xf] %v9715_v9  ;;  %v9721_v19 = vsel %vm9677_vm11, %v15205_v46, %v9699_v20  ;;  %v9722_v29 = vsel %vm9678_vm12, %v15207_v2, %v9700_v22  ;;  %v10125_v46 = vpop.permute.xlu0 %10124  ;;  %v15333_v2 = vrot.slane %v15169_v43, 4 }
 0x725   : > { %9738 = vst [vmem:[%s14503_s16 + $0x78] sm:$0xf] %v9716_v57  ;;  %9739 = vst [vmem:[%s14503_s16 + $0x80] sm:$0xf] %v9717_v33  ;;  %v10091_v45 = vadd.f32 %v10090_v48, %v10089_v52  ;;  %v10126_v1 = vrot.slane %v10125_v46, 4 }
 0x726   : > { %9740 = vst [vmem:[%s14503_s16 + $0x88] sm:$0xf] %v9718_v23  ;;  %9741 = vst [vmem:[%s14503_s16 + $0x90] sm:$0xf] %v9719_v47 }
 0x727   : > { %9742 = vst [vmem:[%s14503_s16 + $0x98] sm:$0xf] %v9720_v56  ;;  %9743 = vst [vmem:[%s14503_s16 + $0xa0] sm:$0xf] %v9721_v19 }
 0x728   : > { %9744 = vst [vmem:[%s14503_s16 + $0xa8] sm:$0xf] %v9722_v29  ;;  %10918 = vpush %v10091_v45 }
 0x759   : > { %s10919_s11 = spop %10918 }
 0x75a   : > { %s10093_s12 = smul.f32 0.00012207031, %s10919_s11 }
 0x75c   : > { %s10094_s20 = sadd.f32 1e-05, %s10093_s12 }
 0x75e   : > { %v10095_v15 = vstv %s10094_s20 }
 0x75f   : > { %11035 = vrsqrt.f32 %v10095_v15 }
 0x769   : > { %v11036_v59 = vpop.eup %11035 }
 0x76a   : > { %10920 = vpush %v11036_v59 }
 0x79b   : > { %s10921_s29 = spop %10920 }
 0x79c   : > { %v10098_v31 = vstv %s10921_s29 }
 0x79d   : > { %v10099_v39 = vmul.f32 %v10098_v31, %v14979_v24  ;;  %v10100_v40 = vmul.f32 %v10098_v31, %v14983_v55  ;;  %v10101_v52 = vmul.f32 %v10098_v31, %v14987_v58  ;;  %v10102_v4 = vmul.f32 %v10098_v31, %v14991_v62 }
 0x79e   : > { %v10103_v30 = vmul.f32 %v10098_v31, %v14999_v63  ;;  %v10104_v36 = vmul.f32 %v10098_v31, %v15688_v37  ;;  %v10105_v28 = vmul.f32 %v10098_v31, %v15689_v61  ;;  %v10106_v34 = vmul.f32 %v10098_v31, %v15690_v26 }
 0x79f   : > { %v10107_v43 = vmul.f32 %v10098_v31, %v15023_v42  ;;  %v10108_v13 = vmul.f32 %v10098_v31, %v15029_v54  ;;  %v10109_v24 = vmul.f32 %v10098_v31, %v15037_v8  ;;  %v10110_v55 = vmul.f32 %v10098_v31, %v15044_v41 }
 0x7a0   : > { %v10111_v58 = vmul.f32 %v10098_v31, %v15051_v12  ;;  %v10112_v62 = vmul.f32 %v10098_v31, %v15058_v25  ;;  %v10113_v63 = vmul.f32 %v10098_v31, %v15065_v5  ;;  %v10114_v53 = vmul.f32 %v10098_v31, %v15072_v7 }
 0x7a1   : > { %v10115_v3 = vmul.f32 %v10098_v31, %v15079_v10  ;;  %v10116_v14 = vmul.f32 %v10098_v31, %v15086_v18  ;;  %v10117_v42 = vmul.f32 %v10098_v31, %v15093_v17  ;;  %v10118_v54 = vmul.f32 %v10098_v31, %v15100_v60 }
 0x7a2   : > { %v10119_v8 = vmul.f32 %v10098_v31, %v15107_v38  ;;  %v10120_v41 = vmul.f32 %v10098_v31, %v15114_v35  ;;  %v10128_v32 = vmul.f32 %v10126_v1, %v10099_v39  ;;  %v10129_v12 = vmul.f32 %v10126_v1, %v10100_v40 }
 0x7a3   : > { %v10130_v20 = vmul.f32 %v10126_v1, %v10101_v52  ;;  %v10131_v25 = vmul.f32 %v10126_v1, %v10102_v4  ;;  %v10132_v27 = vmul.f32 %v10126_v1, %v10103_v30  ;;  %v10133_v5 = vmul.f32 %v10126_v1, %v10104_v36 }
 0x7a4   : > { %v10134_v22 = vmul.f32 %v10126_v1, %v10105_v28  ;;  %v10135_v7 = vmul.f32 %v10126_v1, %v10106_v34  ;;  %v10136_v44 = vmul.f32 %v10126_v1, %v10107_v43  ;;  %v10137_v10 = vmul.f32 %v10126_v1, %v10108_v13 }
 0x7a5   : > { %v10138_v51 = vmul.f32 %v10126_v1, %v10109_v24  ;;  %v10139_v18 = vmul.f32 %v10126_v1, %v10110_v55  ;;  %v10140_v21 = vmul.f32 %v10126_v1, %v10111_v58  ;;  %v10141_v17 = vmul.f32 %v10126_v1, %v10112_v62 }
 0x7a6   : > { %v10142_v50 = vmul.f32 %v10126_v1, %v10113_v63  ;;  %v10143_v60 = vmul.f32 %v10126_v1, %v10114_v53  ;;  %v10144_v6 = vmul.f32 %v10126_v1, %v10115_v3  ;;  %v10145_v38 = vmul.f32 %v10126_v1, %v10116_v14 }
 0x7a7   : > { %v10146_v0 = vmul.f32 %v10126_v1, %v10117_v42  ;;  %v10147_v35 = vmul.f32 %v10126_v1, %v10118_v54  ;;  %v10148_v16 = vmul.f32 %v10126_v1, %v10119_v8  ;;  %v10149_v11 = vmul.f32 %v10126_v1, %v10120_v41 }
 0x7a8   : > { %v10157_v49 = vadd.f32 %v15333_v2, %v10128_v32  ;;  %v10158_v9 = vadd.f32 %v15333_v2, %v10129_v12  ;;  %v10159_v57 = vadd.f32 %v15333_v2, %v10130_v20  ;;  %v15361_v33 = vadd.f32 %v15333_v2, %v10131_v25 }
 0x7a9   : > { %v15364_v23 = vadd.f32 %v15333_v2, %v10132_v27  ;;  %v15367_v47 = vadd.f32 %v15333_v2, %v10133_v5  ;;  %v15370_v56 = vadd.f32 %v15333_v2, %v10134_v22  ;;  %v15373_v19 = vadd.f32 %v15333_v2, %v10135_v7 }
 0x7aa   : > { %v15376_v29 = vadd.f32 %v15333_v2, %v10136_v44  ;;  %v15379_v48 = vadd.f32 %v15333_v2, %v10137_v10  ;;  %v15382_v45 = vadd.f32 %v15333_v2, %v10138_v51  ;;  %v15385_v15 = vadd.f32 %v15333_v2, %v10139_v18 }
 0x7ab   : > { %v15388_v59 = vadd.f32 %v15333_v2, %v10140_v21  ;;  %v15391_v46 = vadd.f32 %v15333_v2, %v10141_v17  ;;  %v15394_v31 = vadd.f32 %v15333_v2, %v10142_v50  ;;  %v15397_v39 = vadd.f32 %v15333_v2, %v10143_v60 }
 0x7ac   : > { %v15400_v40 = vadd.f32 %v15333_v2, %v10144_v6  ;;  %v15403_v1 = vadd.f32 %v15333_v2, %v10145_v38  ;;  %v15406_v52 = vadd.f32 %v15333_v2, %v10146_v0  ;;  %v15409_v4 = vadd.f32 %v15333_v2, %v10147_v35 }
 0x7ad   : > { %v15412_v30 = vadd.f32 %v15333_v2, %v10148_v16  ;;  %v15415_v37 = vadd.f32 %v15333_v2, %v10149_v11  ;;  %vm10179_vm7 = vcmp.ge.f32.partialorder %v10157_v49, 0.0  ;;  %vm10180_vm8 = vcmp.ge.f32.partialorder %v10158_v9, 0.0 }
 0x7ae   : > { %vm10181_vm9 = vcmp.ge.f32.partialorder %v10159_v57, 0.0  ;;  %vm10182_vm10 = vcmp.ge.f32.partialorder %v15361_v33, 0.0  ;;  %vm10183_vm11 = vcmp.ge.f32.partialorder %v15364_v23, 0.0  ;;  %vm10184_vm12 = vcmp.ge.f32.partialorder %v15367_v47, 0.0 }
 0x7af   : > { %vm10191_vm0 = vcmp.ge.f32.partialorder %v15388_v59, 0.0  ;;  %vm10192_vm4 = vcmp.ge.f32.partialorder %v15391_v46, 0.0  ;;  %vm10193_vm5 = vcmp.ge.f32.partialorder %v15394_v31, 0.0  ;;  %vm10194_vm6 = vcmp.ge.f32.partialorder %v15397_v39, 0.0 }
 0x7b0   : > { %vm10195_vm13 = vcmp.ge.f32.partialorder %v15400_v40, 0.0  ;;  %vm10196_vm14 = vcmp.ge.f32.partialorder %v15403_v1, 0.0  ;;  %vm10197_vm15 = vcmp.ge.f32.partialorder %v15406_v52, 0.0  ;;  %vm10198_vm1 = vcmp.ge.f32.partialorder %v15409_v4, 0.0 }
 0x7b1   : > { %vm10199_vm2 = vcmp.ge.f32.partialorder %v15412_v30, 0.0  ;;  %vm10200_vm3 = vcmp.ge.f32.partialorder %v15415_v37, 0.0  ;;  %v10201_v2 = vmul.f32 0.2, %v10157_v49  ;;  %v10202_v36 = vmul.f32 0.2, %v10158_v9 }
 0x7b2   : > { %v10203_v61 = vmul.f32 0.2, %v10159_v57  ;;  %v10204_v28 = vmul.f32 0.2, %v15361_v33  ;;  %v10205_v26 = vmul.f32 0.2, %v15364_v23 }
 0x7b3   : > { %v10206_v34 = vmul.f32 0.2, %v15367_v47  ;;  %v10207_v43 = vmul.f32 0.2, %v15370_v56  ;;  %v10208_v13 = vmul.f32 0.2, %v15373_v19  ;;  %v10223_v55 = vsel %vm10179_vm7, %v10157_v49, %v10201_v2 }
 0x7b4   : > { %v10209_v24 = vmul.f32 0.2, %v15376_v29  ;;  %v10210_v58 = vmul.f32 0.2, %v15379_v48  ;;  %v10211_v62 = vmul.f32 0.2, %v15382_v45  ;;  %v10224_v53 = vsel %vm10180_vm8, %v10158_v9, %v10202_v36 }
 0x7b5   : > { %v10212_v63 = vmul.f32 0.2, %v15385_v15  ;;  %10245 = vst [vmem:[%s14503_s16] sm:$0xf0] %v10223_v55  ;;  %v10213_v3 = vmul.f32 0.2, %v15388_v59  ;;  %v10225_v54 = vsel %vm10181_vm9, %v10159_v57, %v10203_v61  ;;  %v10226_v12 = vsel %vm10182_vm10, %v15361_v33, %v10204_v28 }
 0x7b6   : > { %v10214_v14 = vmul.f32 0.2, %v15391_v46  ;;  %v10215_v42 = vmul.f32 0.2, %v15394_v31  ;;  %10246 = vst [vmem:[%s14503_s16 + $0x8] sm:$0xf0] %v10224_v53  ;;  %v10227_v5 = vsel %vm10183_vm11, %v15364_v23, %v10205_v26  ;;  %v10228_v7 = vsel %vm10184_vm12, %v15367_v47, %v10206_v34 }
 0x7b7   : > { %v10216_v8 = vmul.f32 0.2, %v15397_v39  ;;  %v10217_v41 = vmul.f32 0.2, %v15400_v40  ;;  %v10218_v32 = vmul.f32 0.2, %v15403_v1  ;;  %v10235_v50 = vsel %vm10191_vm0, %v15388_v59, %v10213_v3 }
 0x7b8   : > { %10247 = vst [vmem:[%s14503_s16 + $0x10] sm:$0xf0] %v10225_v54  ;;  %v10219_v20 = vmul.f32 0.2, %v15406_v52  ;;  %v10220_v25 = vmul.f32 0.2, %v15409_v4  ;;  %v10236_v60 = vsel %vm10192_vm4, %v15391_v46, %v10214_v14  ;;  %v10237_v6 = vsel %vm10193_vm5, %v15394_v31, %v10215_v42 }
 0x7b9   : > { %v10221_v27 = vmul.f32 0.2, %v15412_v30  ;;  %10248 = vst [vmem:[%s14503_s16 + $0x18] sm:$0xf0] %v10226_v12  ;;  %v10222_v22 = vmul.f32 0.2, %v15415_v37  ;;  %v10238_v38 = vsel %vm10194_vm6, %v15397_v39, %v10216_v8  ;;  %v10239_v0 = vsel %vm10195_vm13, %v15400_v40, %v10217_v41 }
 0x7ba   : > { %vm15691_vm7 = vcmp.ge.f32.partialorder %v15370_v56, 0.0  ;;  %vm15692_vm8 = vcmp.ge.f32.partialorder %v15373_v19, 0.0  ;;  %10249 = vst [vmem:[%s14503_s16 + $0x20] sm:$0xf0] %v10227_v5  ;;  %vm15693_vm9 = vcmp.ge.f32.partialorder %v15376_v29, 0.0  ;;  %vm15694_vm10 = vcmp.ge.f32.partialorder %v15379_v48, 0.0 }
 0x7bb   : > { %v10229_v44 = vsel %vm15691_vm7, %v15370_v56, %v10207_v43  ;;  %v10230_v10 = vsel %vm15692_vm8, %v15373_v19, %v10208_v13  ;;  %v10231_v51 = vsel %vm15693_vm9, %v15376_v29, %v10209_v24  ;;  %v10232_v18 = vsel %vm15694_vm10, %v15379_v48, %v10210_v58  ;;  %10250 = vst [vmem:[%s14503_s16 + $0x28] sm:$0xf0] %v10228_v7 }
 0x7bc   : > { %vm15695_vm11 = vcmp.ge.f32.partialorder %v15382_v45, 0.0  ;;  %vm15696_vm12 = vcmp.ge.f32.partialorder %v15385_v15, 0.0  ;;  %10251 = vst [vmem:[%s14503_s16 + $0x30] sm:$0xf0] %v10229_v44  ;;  %10252 = vst [vmem:[%s14503_s16 + $0x38] sm:$0xf0] %v10230_v10  ;;  %v10240_v35 = vsel %vm10196_vm14, %v15403_v1, %v10218_v32  ;;  %v10241_v16 = vsel %vm10197_vm15, %v15406_v52, %v10219_v20 }
 0x7bd   : > { %v10233_v21 = vsel %vm15695_vm11, %v15382_v45, %v10211_v62  ;;  %v10234_v17 = vsel %vm15696_vm12, %v15385_v15, %v10212_v63  ;;  %10253 = vst [vmem:[%s14503_s16 + $0x40] sm:$0xf0] %v10231_v51  ;;  %10254 = vst [vmem:[%s14503_s16 + $0x48] sm:$0xf0] %v10232_v18  ;;  %v10242_v11 = vsel %vm10198_vm1, %v15409_v4, %v10220_v25 }
 0x7be   : > { %10255 = vst [vmem:[%s14503_s16 + $0x50] sm:$0xf0] %v10233_v21  ;;  %10256 = vst [vmem:[%s14503_s16 + $0x58] sm:$0xf0] %v10234_v17  ;;  %v10243_v49 = vsel %vm10199_vm2, %v15412_v30, %v10221_v27  ;;  %v10244_v9 = vsel %vm10200_vm3, %v15415_v37, %v10222_v22 }
 0x7bf   : > { %10257 = vst [vmem:[%s14503_s16 + $0x60] sm:$0xf0] %v10235_v50  ;;  %10258 = vst [vmem:[%s14503_s16 + $0x68] sm:$0xf0] %v10236_v60 }
 0x7c0   : > { %10259 = vst [vmem:[%s14503_s16 + $0x70] sm:$0xf0] %v10237_v6  ;;  %10260 = vst [vmem:[%s14503_s16 + $0x78] sm:$0xf0] %v10238_v38 }
 0x7c1   : > { %10261 = vst [vmem:[%s14503_s16 + $0x80] sm:$0xf0] %v10239_v0  ;;  %10262 = vst [vmem:[%s14503_s16 + $0x88] sm:$0xf0] %v10240_v35 }
 0x7c2   : > { %10263 = vst [vmem:[%s14503_s16 + $0x90] sm:$0xf0] %v10241_v16  ;;  %10264 = vst [vmem:[%s14503_s16 + $0x98] sm:$0xf0] %v10242_v11 }
 0x7c3   : > { %10265 = vst [vmem:[%s14503_s16 + $0xa0] sm:$0xf0] %v10243_v49  ;;  %10266 = vst [vmem:[%s14503_s16 + $0xa8] sm:$0xf0] %v10244_v9 }
 0x7c4 PF: > { %s10922_s14 = smul.u32 2816, %s11119_s25  ;;  %s10282_s15 = sshll.u32 %s14503_s16, 4  ;;  %s10283_s15 = int_to_ptr.vmem [resolvable:$true] %s10282_s15 }
 0x7c5   : > { %s10268_s24 = scalar_lea.sflag [#allocation4], %s254_s30  ;;  %s11037_s11 = scalar_lea.vmem %s10283_s15, 2816 }
 0x7c6   : > { %s15542_s19 = scalar_lea.hbm %s15597_s6, %s10922_s14  ;;  %p11038_p0 = scmp.ne.s32.totalorder %s10283_s15, %s11037_s11 }
 0x7c7   : > { %s11164_s12 = smov [#allocation3]  }
 0x7c8   : > { %p11039_p1 = pnand %p11038_p0, %p11249_p3  ;;  %s11041_s20 = sshll.u32 %s11164_s12, 4  ;;  %s11042_s20 = int_to_ptr.vmem [resolvable:$false] %s11041_s20 }
 0x7c9   : > { %s11043_s29 = scalar_lea.vmem %s11042_s20, 5632  ;;  %p11044_p4 = scmp.lt.s32.totalorder %s10283_s15, %s11042_s20 }
 0x7ca   : > { %p11040_p2 = pneg %p11039_p1  ;;  %p11045_p5 = scmp.lt.s32.totalorder %s11043_s29, %s11037_s11 }
 0x7cc   : > { %p11046_p6 = por %p11045_p5, %p11044_p4 }
 0x7ce   : > { %p11047_p7 = pnand %p11046_p6, %p11040_p2 }
 0x7d0   : > { %11050 = shalt.err (!%p11047_p7)
}
 0x7d1   : > { %s11051_s25 = scalar_lea.hbm %s15542_s19, 2816  ;;  %s11055_s14 = scalar_lea.hbm %s15597_s6, 5632 }
 0x7d2   : > { %p11052_p8 = scmp.ne.s32.totalorder %s15542_s19, %s11051_s25  ;;  %p11056_p12 = scmp.lt.u32.totalorder %s15542_s19, %s15597_s6 }
 0x7d3   : > { %p11057_p13 = scmp.lt.u32.totalorder %s11055_s14, %s11051_s25  ;;  %p11059_p1 = scmp.lt.u32.totalorder %s11051_s25, %s15542_s19 }
 0x7d4   : > { %p11053_p10 = pnand %p11052_p8, %p11249_p3 }
 0x7d5   : > { %p11058_p0 = por %p11057_p13, %p11056_p12 }
 0x7d6   : > { %p11054_p11 = pneg %p11053_p10 }
 0x7d7   : > { %p11060_p2 = por %p11059_p1, %p11058_p0 }
 0x7d9   : > { %p11061_p4 = pnand %p11060_p2, %p11054_p11 }
 0x7db   : > { %11064 = shalt.err (!%p11061_p4)
}
 0x7dc   : > { %10923 = dma.vmem_to_hbm [thread:$0]  (%p11249_p3), %s10283_s15, 2816, %s15542_s19, %s10268_s24  }
 0x7dd PF: > { %p10929_p5 = scmp.ge.s32.totalorder %s11131_s28, 2  ;;  %s10294_s11 = sand.u32 1, %s11103_s21  }
 0x7de   : > { %s10295_s12 = scalar_lea.sflag [#allocation4], %s10294_s11 }
 0x7df   : > { %p10926_p6 = pnand %p10929_p5, %p11259_p9 }
 0x7e1   : > { %11098 = dma.done.wait (!%p10926_p6), %s10295_s12, 2816  }
 0x7e2   : > { %11100 = vsyncadd (!%p10926_p6), %s10295_s12, 4294964480  ;;  %s19_s28 = sadd.s32 1, %s11131_s28   ;;  %s15697_s21 = smov %s11107_s22 }
 0x7e3   : > { %p16_p7 = scmp.ge.s32.totalorder %s19_s28, 6   ;;  %s15698_s22 = smov %s11111_s23 }
 0x7e4   : > { %s15699_s23 = smov %s11267_s13  ;;  %s15700_s24 = smov %s11123_s26 }
 0x7e5   : > { %s15701_s25 = smov %s11127_s27  ;;  %s15702_s26 = smov %s15705_s7 }
 0x7e6   : > { %s15703_s27 = smov %s15709_s8  ;;  %18 = sbr.rel (!%p16_p7) target bundleno = 5 (0x5), region = 111 }
 0x7ed   :  { %10300 = vsyncpa [#allocation4], 1 }
 0x7ee   :  { %10302 = vsyncpa [#allocation4 + $0x1], 1 }

</bundles_post_ra>
